<compile_context>
chip_gen: v7x
topology: tpu7x:2x2x1
jax: 0.10.0
libtpu: 0.0.40
codegen_flags: <defaults>
</compile_context>

<pallas_src>
import jax
import jax.numpy as jnp
from jax.experimental import pallas as pl
from jax.experimental.pallas import tpu as pltpu

# ---------------------------------------------------------------------------
# Static geometry (re-derived for the compacted layout; 50x50 input only).
#
# conv1 rows are supplied grouped by pool1 window parity (dh, dw): 4 blocks of
# 400 rows; within a block, row 20*u + v holds conv1 output at spatial
# (2u+dh, 2v+dw), u, v in [0, 20).  Only the 1600 rows the network actually
# consumes are computed (old kernel: 2008 rows incl. garbage).
M1 = 1600
P1_VALID = 400                   # pool1: 20x20 compact, pitch 20
A1_ROWS = 416                    # + 16 zero pad rows so conv2 row reads stay in range
PITCH1 = 20

M2 = 320                         # conv2 rows; valid outputs at 20*i + j, i, j < 16
OFF2 = tuple(PITCH1 * kh + kw for kh in range(5) for kw in range(5))   # tap offsets
G2 = 4                           # taps per conv2 K-chunk (4 * 32ch = 128 lanes)
# max a1 read  = (M2-1) + OFF2[-1] = 319 + 84 = 403 < A1_ROWS          OK

# pool2: h-compacted to pitch (16, 2): row 16*i + 2*j holds pool2(i, j), i, j < 8
P2_BLK = 16
A2_ROWS = 128
OFFP2 = (0, 1, PITCH1, PITCH1 + 1)   # 2x2 max window offsets on the pitch-20 grid
# max y2 read = 40*7 + 21 + 15 = 316 < M2 = 320                        OK

M3 = 56                          # conv3 rows; valid outputs at 16*i + 2*j, i, j < 4
OFF3 = tuple(P2_BLK * kh + 2 * kw for kh in range(5) for kw in range(5))
G3 = 2                           # taps per conv3 K-chunk (2 * 64ch = 128 lanes)
# max a2 read = 55 + 72 = 127 < A2_ROWS = 128                          OK

P3_BASE = (0, 4, 32, 36)         # conv3 row of pool3 slot s = 2h + w
P3_OFF = (0, 2, 16, 18)          # 2x2 max window offsets on the (16, 2) grid
# max y3 read = 36 + 18 = 54 < M3 = 56                                 OK


def _net_kernel(p1_ref, w1_ref, b1_ref, w2_ref, b2_ref, w3_ref, b3_ref,
                fc1w_ref, fc1b_ref, fc2w_ref, fc2b_ref, o_ref):
    f32, bf16 = jnp.float32, jnp.bfloat16

    # ---- conv1 (1 -> 32) + bias + ReLU (bf16 operands, f32 accum) ----------
    y1 = jnp.dot(p1_ref[0], w1_ref[...], preferred_element_type=f32)    # (1600, 32)
    y1 = jnp.maximum(y1 + b1_ref[...], 0.0)

    # ---- pool1: max over the 4 parity blocks -> fully compact (400, 32) ----
    a1f = jnp.maximum(jnp.maximum(y1[0:400], y1[400:800]),
                      jnp.maximum(y1[800:1200], y1[1200:1600]))
    a1 = jnp.concatenate(
        [a1f, jnp.zeros((A1_ROWS - P1_VALID, 32), f32)], axis=0).astype(bf16)

    # ---- conv2 (32 -> 64): K-chunked accumulation, no patch scratch --------
    # Each chunk = 4 consecutive taps lane-concatenated (4 * 32 = 128 lanes);
    # the 7 chunk GEMMs accumulate in f32 and overlap with chunk assembly.
    y2 = None
    for t0 in range(0, 25, G2):
        tl = list(range(t0, min(t0 + G2, 25)))
        chunk = jnp.concatenate([a1[OFF2[t]:OFF2[t] + M2] for t in tl], axis=1)
        part = jnp.dot(chunk, w2_ref[t0 * 32:(t0 + len(tl)) * 32, :],
                       preferred_element_type=f32)
        y2 = part if y2 is None else y2 + part
    y2 = jnp.maximum(y2 + b2_ref[...], 0.0)                             # (320, 64)

    # ---- pool2: 2x2 max + h-compaction to pitch (16, 2) --------------------
    blocks = []
    for i in range(8):
        base = 40 * i
        c = [y2[base + o:base + o + P2_BLK] for o in OFFP2]
        blocks.append(jnp.maximum(jnp.maximum(c[0], c[1]),
                                  jnp.maximum(c[2], c[3])))
    a2 = jnp.concatenate(blocks, axis=0).astype(bf16)                    # (128, 64)

    # ---- conv3 (64 -> 128): K-chunked accumulation (2 taps = 128 lanes) ----
    y3 = None
    for t0 in range(0, 25, G3):
        tl = list(range(t0, min(t0 + G3, 25)))
        chunk = jnp.concatenate([a2[OFF3[t]:OFF3[t] + M3] for t in tl], axis=1)
        part = jnp.dot(chunk, w3_ref[t0 * 64:(t0 + len(tl)) * 64, :],
                       preferred_element_type=f32)
        y3 = part if y3 is None else y3 + part
    y3 = jnp.maximum(y3 + b3_ref[...], 0.0)                              # (56, 128)

    # ---- pool3 + FC head (single K=512 GEMM, PyTorch (C,H,W) flatten) ------
    rows = []
    for base in P3_BASE:
        c = [y3[base + o:base + o + 1] for o in P3_OFF]
        rows.append(jnp.maximum(jnp.maximum(c[0], c[1]),
                                jnp.maximum(c[2], c[3])))                # (1, 128)
    # x512 lane index = s*128 + c; fc1 weight rows were re-ordered to match.
    x512 = jnp.concatenate(rows, axis=1).astype(bf16)                    # (1, 512)

    h = jnp.dot(x512, fc1w_ref[...], preferred_element_type=f32) + fc1b_ref[...]
    h = jnp.maximum(h, 0.0).astype(bf16)
    logits = (jnp.dot(h, fc2w_ref[...], preferred_element_type=f32)
              + fc2b_ref[...])
    m = jnp.max(logits, axis=-1, keepdims=True)
    e = jnp.exp(logits - m)
    o_ref[0] = e / jnp.sum(e, axis=-1, keepdims=True)                    # (1, 2)


def init_params(key):
    ks = jax.random.split(key, 10)

    def conv_w(k, cout, cin, ksz):
        scale = 1.0 / (cin * ksz * ksz) ** 0.5
        return jax.random.normal(k, (cout, cin, ksz, ksz), jnp.float32) * scale

    def lin_w(k, din, dout):
        return jax.random.normal(k, (din, dout), jnp.float32) / (din ** 0.5)

    return dict(
        conv1_w=conv_w(ks[0], 32, 1, 5),
        conv1_b=jax.random.normal(ks[1], (32,), jnp.float32) * 0.01,
        conv2_w=conv_w(ks[2], 64, 32, 5),
        conv2_b=jax.random.normal(ks[3], (64,), jnp.float32) * 0.01,
        conv3_w=conv_w(ks[4], 128, 64, 5),
        conv3_b=jax.random.normal(ks[5], (128,), jnp.float32) * 0.01,
        fc1_w=lin_w(ks[6], 512, 512),          # _to_linear = 128*2*2 = 512
        fc1_b=jax.random.normal(ks[7], (512,), jnp.float32) * 0.01,
        fc2_w=lin_w(ks[8], 512, 2),
        fc2_b=jax.random.normal(ks[9], (2,), jnp.float32) * 0.01,
    )


@jax.jit
def net_forward(params, x_nchw):
    # x_nchw: (N, 1, 50, 50) float32 (PyTorch-style layout)
    n = x_nchw.shape[0]
    bf16 = jnp.bfloat16
    x = x_nchw.astype(jnp.float32).reshape(n, 50, 50)

    # conv1 im2col, grouped by pool1 window parity (dh, dw): 4 blocks of 400
    # rows (20x20 pooled positions each, pitch 20), tap order (kh, kw).
    blocks = []
    for dh in (0, 1):
        for dw in (0, 1):
            taps = [x[:, dh + kh:dh + kh + 40:2, dw + kw:dw + kw + 40:2]
                        .reshape(n, 400)
                    for kh in range(5) for kw in range(5)]
            blocks.append(jnp.stack(taps, axis=-1))               # (n, 400, 25)
    patches1 = jnp.concatenate(blocks, axis=1).astype(bf16)        # (n, 1600, 25)

    # Weight layouts expected by the kernel (K ordered as (kh, kw, ci)); bf16
    # MXU operands, f32 accumulation in-kernel.
    w1 = jnp.transpose(params["conv1_w"], (2, 3, 1, 0)).reshape(25, 32).astype(bf16)
    w2 = jnp.transpose(params["conv2_w"], (2, 3, 1, 0)).reshape(800, 64).astype(bf16)
    w3 = jnp.transpose(params["conv3_w"], (2, 3, 1, 0)).reshape(1600, 128).astype(bf16)
    # fc1 acts on the PyTorch flatten feature[c*4 + s]; re-order rows to
    # (s*128 + c) so the kernel's lane-concatenated pool3 vector matches.
    fc1w = (params["fc1_w"].reshape(128, 4, 512).transpose(1, 0, 2)
            .reshape(512, 512).astype(bf16))
    fc2w = params["fc2_w"].astype(bf16)                             # (512, 2)
    b1 = params["conv1_b"].reshape(1, 32)
    b2 = params["conv2_b"].reshape(1, 64)
    b3 = params["conv3_b"].reshape(1, 128)
    fc1b = params["fc1_b"].reshape(1, 512)
    fc2b = params["fc2_b"].reshape(1, 2)

    out = pl.pallas_call(
        _net_kernel,
        out_shape=jax.ShapeDtypeStruct((n, 1, 2), jnp.float32),
        grid_spec=pltpu.PrefetchScalarGridSpec(
            num_scalar_prefetch=0,
            grid=(n,),
            in_specs=[
                pl.BlockSpec((1, M1, 25), lambda i: (i, 0, 0)),     # conv1 patches
                pl.BlockSpec((25, 32), lambda i: (0, 0)),           # w1
                pl.BlockSpec((1, 32), lambda i: (0, 0)),            # b1
                pl.BlockSpec((800, 64), lambda i: (0, 0)),          # w2
                pl.BlockSpec((1, 64), lambda i: (0, 0)),            # b2
                pl.BlockSpec((1600, 128), lambda i: (0, 0)),        # w3
                pl.BlockSpec((1, 128), lambda i: (0, 0)),           # b3
                pl.BlockSpec((512, 512), lambda i: (0, 0)),         # fc1 w (re-ordered)
                pl.BlockSpec((1, 512), lambda i: (0, 0)),           # fc1 b
                pl.BlockSpec((512, 2), lambda i: (0, 0)),           # fc2 w
                pl.BlockSpec((1, 2), lambda i: (0, 0)),             # fc2 b
            ],
            out_specs=pl.BlockSpec((1, 1, 2), lambda i: (i, 0, 0)),
        ),
        compiler_params=pltpu.CompilerParams(
            dimension_semantics=("parallel",),
        ),
    )(patches1, w1, b1, w2, b2, w3, b3, fc1w, fc1b, fc2w, fc2b)
    return out.reshape(n, 2)


def net_reference(params, x):
    # Pure-JAX f32 reference of the original PyTorch module.
    def conv(a, w, b):
        y = jax.lax.conv_general_dilated(
            a, w, (1, 1), "VALID",
            dimension_numbers=("NCHW", "OIHW", "NCHW"))
        return jax.nn.relu(y + b[None, :, None, None])

    def pool(a):
        return jax.lax.reduce_window(a, -jnp.inf, jax.lax.max,
                                     (1, 1, 2, 2), (1, 1, 2, 2), "VALID")

    a = pool(conv(x, params["conv1_w"], params["conv1_b"]))
    a = pool(conv(a, params["conv2_w"], params["conv2_b"]))
    a = pool(conv(a, params["conv3_w"], params["conv3_b"]))
    a = a.reshape(x.shape[0], -1)                       # (N, 512), (C,H,W) order
    h = jax.nn.relu(a @ params["fc1_w"] + params["fc1_b"])
    logits = h @ params["fc2_w"] + params["fc2_b"]
    return jax.nn.softmax(logits, axis=1)


if __name__ == "__main__":
    key = jax.random.PRNGKey(0)
    k_data, k_params = jax.random.split(key)
    x = jax.random.normal(k_data, (2, 1, 50, 50), jnp.float32)
    params = init_params(k_params)

    out = net_forward(params, x)
    out = jax.block_until_ready(out)

    assert out.shape == (2, 2), out.shape
    assert bool(jnp.all(jnp.isfinite(out)))
    # softmax rows sum to 1
    assert bool(jnp.allclose(jnp.sum(out, axis=1), 1.0, atol=1e-4))
    # matches the f32 reference up to bf16 operand rounding
    ref = net_reference(params, x)
    assert bool(jnp.allclose(out, ref, atol=0.06)), (out, ref)
    print("KERNEL_OK")
</pallas_src>

<mosaic_0001>
module attributes {stable_mosaic.version = 11 : i64} {
  func.func @_net_kernel(%arg0: i32, %arg1: memref<1x1600x25xbf16, #tpu.memory_space<vmem>>, %arg2: memref<25x32xbf16, #tpu.memory_space<vmem>>, %arg3: memref<1x32xf32, #tpu.memory_space<vmem>>, %arg4: memref<800x64xbf16, #tpu.memory_space<vmem>>, %arg5: memref<1x64xf32, #tpu.memory_space<vmem>>, %arg6: memref<1600x128xbf16, #tpu.memory_space<vmem>>, %arg7: memref<1x128xf32, #tpu.memory_space<vmem>>, %arg8: memref<512x512xbf16, #tpu.memory_space<vmem>>, %arg9: memref<1x512xf32, #tpu.memory_space<vmem>>, %arg10: memref<512x2xbf16, #tpu.memory_space<vmem>>, %arg11: memref<1x2xf32, #tpu.memory_space<vmem>>, %arg12: memref<1x1x2xf32, #tpu.memory_space<vmem>>) attributes {dimension_semantics = [#tpu.dimension_semantics<parallel>], iteration_bounds = array<i64: 2>, scalar_prefetch = 0 : i64, scratch_operands = 0 : i64, tpu.core_type = #tpu.core_type<tc>, window_params = [{transform_indices = @transform_0, window_bounds = array<i64: 1, 1600, 25>}, {pipeline_mode = #tpu.pipeline_mode<synchronous>, transform_indices = @transform_1, window_bounds = array<i64: 25, 32>}, {pipeline_mode = #tpu.pipeline_mode<synchronous>, transform_indices = @transform_2, window_bounds = array<i64: 1, 32>}, {pipeline_mode = #tpu.pipeline_mode<synchronous>, transform_indices = @transform_3, window_bounds = array<i64: 800, 64>}, {pipeline_mode = #tpu.pipeline_mode<synchronous>, transform_indices = @transform_4, window_bounds = array<i64: 1, 64>}, {pipeline_mode = #tpu.pipeline_mode<synchronous>, transform_indices = @transform_5, window_bounds = array<i64: 1600, 128>}, {pipeline_mode = #tpu.pipeline_mode<synchronous>, transform_indices = @transform_6, window_bounds = array<i64: 1, 128>}, {pipeline_mode = #tpu.pipeline_mode<synchronous>, transform_indices = @transform_7, window_bounds = array<i64: 512, 512>}, {pipeline_mode = #tpu.pipeline_mode<synchronous>, transform_indices = @transform_8, window_bounds = array<i64: 1, 512>}, {pipeline_mode = #tpu.pipeline_mode<synchronous>, transform_indices = @transform_9, window_bounds = array<i64: 512, 2>}, {pipeline_mode = #tpu.pipeline_mode<synchronous>, transform_indices = @transform_10, window_bounds = array<i64: 1, 2>}, {transform_indices = @transform_11, window_bounds = array<i64: 1, 1, 2>}]} {
    %c0 = arith.constant 0 : index
    %c0_0 = arith.constant 0 : index
    %c0_1 = arith.constant 0 : index
    %0 = vector.load %arg1[%c0, %c0_0, %c0_1] : memref<1x1600x25xbf16, #tpu.memory_space<vmem>>, vector<1x1600x25xbf16>
    %1 = vector.shape_cast %0 : vector<1x1600x25xbf16> to vector<1600x25xbf16>
    %c0_2 = arith.constant 0 : index
    %c0_3 = arith.constant 0 : index
    %2 = vector.load %arg2[%c0_2, %c0_3] : memref<25x32xbf16, #tpu.memory_space<vmem>>, vector<25x32xbf16>
    %cst = arith.constant dense<0.000000e+00> : vector<1600x32xf32>
    %3 = tpu.matmul %1, %2, %cst {dimension_numbers = #tpu.dot_dimension_numbers<[1], [0], [0], [1], [0, 0, 1, 1], [], []>} : vector<1600x25xbf16>, vector<25x32xbf16>, vector<1600x32xf32> -> vector<1600x32xf32>
    %c0_4 = arith.constant 0 : index
    %c0_5 = arith.constant 0 : index
    %4 = vector.load %arg3[%c0_4, %c0_5] : memref<1x32xf32, #tpu.memory_space<vmem>>, vector<1x32xf32>
    %5 = vector.broadcast %4 : vector<1x32xf32> to vector<1600x32xf32>
    %6 = arith.addf %3, %5 : vector<1600x32xf32>
    %cst_6 = arith.constant 0.000000e+00 : f32
    %7 = vector.broadcast %cst_6 : f32 to vector<1600x32xf32>
    %8 = arith.maximumf %6, %7 : vector<1600x32xf32>
    %9 = vector.extract_strided_slice %8 {offsets = [0, 0], sizes = [400, 32], strides = [1, 1]} : vector<1600x32xf32> to vector<400x32xf32>
    %10 = vector.extract_strided_slice %8 {offsets = [400, 0], sizes = [400, 32], strides = [1, 1]} : vector<1600x32xf32> to vector<400x32xf32>
    %11 = arith.maximumf %9, %10 : vector<400x32xf32>
    %12 = vector.extract_strided_slice %8 {offsets = [800, 0], sizes = [400, 32], strides = [1, 1]} : vector<1600x32xf32> to vector<400x32xf32>
    %13 = vector.extract_strided_slice %8 {offsets = [1200, 0], sizes = [400, 32], strides = [1, 1]} : vector<1600x32xf32> to vector<400x32xf32>
    %14 = arith.maximumf %12, %13 : vector<400x32xf32>
    %15 = arith.maximumf %11, %14 : vector<400x32xf32>
    %cst_7 = arith.constant 0.000000e+00 : f32
    %16 = vector.broadcast %cst_7 : f32 to vector<16x32xf32>
    %17 = tpu.concatenate %15, %16 in 0 : vector<400x32xf32>, vector<16x32xf32> -> vector<416x32xf32>
    %18 = arith.truncf %17 : vector<416x32xf32> to vector<416x32xbf16>
    %19 = vector.extract_strided_slice %18 {offsets = [0, 0], sizes = [320, 32], strides = [1, 1]} : vector<416x32xbf16> to vector<320x32xbf16>
    %20 = vector.extract_strided_slice %18 {offsets = [1, 0], sizes = [320, 32], strides = [1, 1]} : vector<416x32xbf16> to vector<320x32xbf16>
    %21 = vector.extract_strided_slice %18 {offsets = [2, 0], sizes = [320, 32], strides = [1, 1]} : vector<416x32xbf16> to vector<320x32xbf16>
    %22 = vector.extract_strided_slice %18 {offsets = [3, 0], sizes = [320, 32], strides = [1, 1]} : vector<416x32xbf16> to vector<320x32xbf16>
    %23 = tpu.concatenate %19, %20, %21, %22 in 1 : vector<320x32xbf16>, vector<320x32xbf16>, vector<320x32xbf16>, vector<320x32xbf16> -> vector<320x128xbf16>
    %c0_8 = arith.constant 0 : index
    %c0_9 = arith.constant 0 : index
    %24 = vector.load %arg4[%c0_8, %c0_9] : memref<800x64xbf16, #tpu.memory_space<vmem>>, vector<128x64xbf16>
    %cst_10 = arith.constant dense<0.000000e+00> : vector<320x64xf32>
    %25 = tpu.matmul %23, %24, %cst_10 {dimension_numbers = #tpu.dot_dimension_numbers<[1], [0], [0], [1], [0, 0, 1, 1], [], []>} : vector<320x128xbf16>, vector<128x64xbf16>, vector<320x64xf32> -> vector<320x64xf32>
    %26 = vector.extract_strided_slice %18 {offsets = [4, 0], sizes = [320, 32], strides = [1, 1]} : vector<416x32xbf16> to vector<320x32xbf16>
    %27 = vector.extract_strided_slice %18 {offsets = [20, 0], sizes = [320, 32], strides = [1, 1]} : vector<416x32xbf16> to vector<320x32xbf16>
    %28 = vector.extract_strided_slice %18 {offsets = [21, 0], sizes = [320, 32], strides = [1, 1]} : vector<416x32xbf16> to vector<320x32xbf16>
    %29 = vector.extract_strided_slice %18 {offsets = [22, 0], sizes = [320, 32], strides = [1, 1]} : vector<416x32xbf16> to vector<320x32xbf16>
    %30 = tpu.concatenate %26, %27, %28, %29 in 1 : vector<320x32xbf16>, vector<320x32xbf16>, vector<320x32xbf16>, vector<320x32xbf16> -> vector<320x128xbf16>
    %c128 = arith.constant 128 : index
    %c0_11 = arith.constant 0 : index
    %31 = vector.load %arg4[%c128, %c0_11] : memref<800x64xbf16, #tpu.memory_space<vmem>>, vector<128x64xbf16>
    %cst_12 = arith.constant dense<0.000000e+00> : vector<320x64xf32>
    %32 = tpu.matmul %30, %31, %cst_12 {dimension_numbers = #tpu.dot_dimension_numbers<[1], [0], [0], [1], [0, 0, 1, 1], [], []>} : vector<320x128xbf16>, vector<128x64xbf16>, vector<320x64xf32> -> vector<320x64xf32>
    %33 = arith.addf %25, %32 : vector<320x64xf32>
    %34 = vector.extract_strided_slice %18 {offsets = [23, 0], sizes = [320, 32], strides = [1, 1]} : vector<416x32xbf16> to vector<320x32xbf16>
    %35 = vector.extract_strided_slice %18 {offsets = [24, 0], sizes = [320, 32], strides = [1, 1]} : vector<416x32xbf16> to vector<320x32xbf16>
    %36 = vector.extract_strided_slice %18 {offsets = [40, 0], sizes = [320, 32], strides = [1, 1]} : vector<416x32xbf16> to vector<320x32xbf16>
    %37 = vector.extract_strided_slice %18 {offsets = [41, 0], sizes = [320, 32], strides = [1, 1]} : vector<416x32xbf16> to vector<320x32xbf16>
    %38 = tpu.concatenate %34, %35, %36, %37 in 1 : vector<320x32xbf16>, vector<320x32xbf16>, vector<320x32xbf16>, vector<320x32xbf16> -> vector<320x128xbf16>
    %c256 = arith.constant 256 : index
    %c0_13 = arith.constant 0 : index
    %39 = vector.load %arg4[%c256, %c0_13] : memref<800x64xbf16, #tpu.memory_space<vmem>>, vector<128x64xbf16>
    %cst_14 = arith.constant dense<0.000000e+00> : vector<320x64xf32>
    %40 = tpu.matmul %38, %39, %cst_14 {dimension_numbers = #tpu.dot_dimension_numbers<[1], [0], [0], [1], [0, 0, 1, 1], [], []>} : vector<320x128xbf16>, vector<128x64xbf16>, vector<320x64xf32> -> vector<320x64xf32>
    %41 = arith.addf %33, %40 : vector<320x64xf32>
    %42 = vector.extract_strided_slice %18 {offsets = [42, 0], sizes = [320, 32], strides = [1, 1]} : vector<416x32xbf16> to vector<320x32xbf16>
    %43 = vector.extract_strided_slice %18 {offsets = [43, 0], sizes = [320, 32], strides = [1, 1]} : vector<416x32xbf16> to vector<320x32xbf16>
    %44 = vector.extract_strided_slice %18 {offsets = [44, 0], sizes = [320, 32], strides = [1, 1]} : vector<416x32xbf16> to vector<320x32xbf16>
    %45 = vector.extract_strided_slice %18 {offsets = [60, 0], sizes = [320, 32], strides = [1, 1]} : vector<416x32xbf16> to vector<320x32xbf16>
    %46 = tpu.concatenate %42, %43, %44, %45 in 1 : vector<320x32xbf16>, vector<320x32xbf16>, vector<320x32xbf16>, vector<320x32xbf16> -> vector<320x128xbf16>
    %c384 = arith.constant 384 : index
    %c0_15 = arith.constant 0 : index
    %47 = vector.load %arg4[%c384, %c0_15] : memref<800x64xbf16, #tpu.memory_space<vmem>>, vector<128x64xbf16>
    %cst_16 = arith.constant dense<0.000000e+00> : vector<320x64xf32>
    %48 = tpu.matmul %46, %47, %cst_16 {dimension_numbers = #tpu.dot_dimension_numbers<[1], [0], [0], [1], [0, 0, 1, 1], [], []>} : vector<320x128xbf16>, vector<128x64xbf16>, vector<320x64xf32> -> vector<320x64xf32>
    %49 = arith.addf %41, %48 : vector<320x64xf32>
    %50 = vector.extract_strided_slice %18 {offsets = [61, 0], sizes = [320, 32], strides = [1, 1]} : vector<416x32xbf16> to vector<320x32xbf16>
    %51 = vector.extract_strided_slice %18 {offsets = [62, 0], sizes = [320, 32], strides = [1, 1]} : vector<416x32xbf16> to vector<320x32xbf16>
    %52 = vector.extract_strided_slice %18 {offsets = [63, 0], sizes = [320, 32], strides = [1, 1]} : vector<416x32xbf16> to vector<320x32xbf16>
    %53 = vector.extract_strided_slice %18 {offsets = [64, 0], sizes = [320, 32], strides = [1, 1]} : vector<416x32xbf16> to vector<320x32xbf16>
    %54 = tpu.concatenate %50, %51, %52, %53 in 1 : vector<320x32xbf16>, vector<320x32xbf16>, vector<320x32xbf16>, vector<320x32xbf16> -> vector<320x128xbf16>
    %c512 = arith.constant 512 : index
    %c0_17 = arith.constant 0 : index
    %55 = vector.load %arg4[%c512, %c0_17] : memref<800x64xbf16, #tpu.memory_space<vmem>>, vector<128x64xbf16>
    %cst_18 = arith.constant dense<0.000000e+00> : vector<320x64xf32>
    %56 = tpu.matmul %54, %55, %cst_18 {dimension_numbers = #tpu.dot_dimension_numbers<[1], [0], [0], [1], [0, 0, 1, 1], [], []>} : vector<320x128xbf16>, vector<128x64xbf16>, vector<320x64xf32> -> vector<320x64xf32>
    %57 = arith.addf %49, %56 : vector<320x64xf32>
    %58 = vector.extract_strided_slice %18 {offsets = [80, 0], sizes = [320, 32], strides = [1, 1]} : vector<416x32xbf16> to vector<320x32xbf16>
    %59 = vector.extract_strided_slice %18 {offsets = [81, 0], sizes = [320, 32], strides = [1, 1]} : vector<416x32xbf16> to vector<320x32xbf16>
    %60 = vector.extract_strided_slice %18 {offsets = [82, 0], sizes = [320, 32], strides = [1, 1]} : vector<416x32xbf16> to vector<320x32xbf16>
    %61 = vector.extract_strided_slice %18 {offsets = [83, 0], sizes = [320, 32], strides = [1, 1]} : vector<416x32xbf16> to vector<320x32xbf16>
    %62 = tpu.concatenate %58, %59, %60, %61 in 1 : vector<320x32xbf16>, vector<320x32xbf16>, vector<320x32xbf16>, vector<320x32xbf16> -> vector<320x128xbf16>
    %c640 = arith.constant 640 : index
    %c0_19 = arith.constant 0 : index
    %63 = vector.load %arg4[%c640, %c0_19] : memref<800x64xbf16, #tpu.memory_space<vmem>>, vector<128x64xbf16>
    %cst_20 = arith.constant dense<0.000000e+00> : vector<320x64xf32>
    %64 = tpu.matmul %62, %63, %cst_20 {dimension_numbers = #tpu.dot_dimension_numbers<[1], [0], [0], [1], [0, 0, 1, 1], [], []>} : vector<320x128xbf16>, vector<128x64xbf16>, vector<320x64xf32> -> vector<320x64xf32>
    %65 = arith.addf %57, %64 : vector<320x64xf32>
    %66 = vector.extract_strided_slice %18 {offsets = [84, 0], sizes = [320, 32], strides = [1, 1]} : vector<416x32xbf16> to vector<320x32xbf16>
    %c768 = arith.constant 768 : index
    %c0_21 = arith.constant 0 : index
    %67 = vector.load %arg4[%c768, %c0_21] : memref<800x64xbf16, #tpu.memory_space<vmem>>, vector<32x64xbf16>
    %cst_22 = arith.constant dense<0.000000e+00> : vector<320x64xf32>
    %68 = tpu.matmul %66, %67, %cst_22 {dimension_numbers = #tpu.dot_dimension_numbers<[1], [0], [0], [1], [0, 0, 1, 1], [], []>} : vector<320x32xbf16>, vector<32x64xbf16>, vector<320x64xf32> -> vector<320x64xf32>
    %69 = arith.addf %65, %68 : vector<320x64xf32>
    %c0_23 = arith.constant 0 : index
    %c0_24 = arith.constant 0 : index
    %70 = vector.load %arg5[%c0_23, %c0_24] : memref<1x64xf32, #tpu.memory_space<vmem>>, vector<1x64xf32>
    %71 = vector.broadcast %70 : vector<1x64xf32> to vector<320x64xf32>
    %72 = arith.addf %69, %71 : vector<320x64xf32>
    %cst_25 = arith.constant 0.000000e+00 : f32
    %73 = vector.broadcast %cst_25 : f32 to vector<320x64xf32>
    %74 = arith.maximumf %72, %73 : vector<320x64xf32>
    %75 = vector.extract_strided_slice %74 {offsets = [0, 0], sizes = [16, 64], strides = [1, 1]} : vector<320x64xf32> to vector<16x64xf32>
    %76 = vector.extract_strided_slice %74 {offsets = [1, 0], sizes = [16, 64], strides = [1, 1]} : vector<320x64xf32> to vector<16x64xf32>
    %77 = vector.extract_strided_slice %74 {offsets = [20, 0], sizes = [16, 64], strides = [1, 1]} : vector<320x64xf32> to vector<16x64xf32>
    %78 = vector.extract_strided_slice %74 {offsets = [21, 0], sizes = [16, 64], strides = [1, 1]} : vector<320x64xf32> to vector<16x64xf32>
    %79 = arith.maximumf %75, %76 : vector<16x64xf32>
    %80 = arith.maximumf %77, %78 : vector<16x64xf32>
    %81 = arith.maximumf %79, %80 : vector<16x64xf32>
    %82 = vector.extract_strided_slice %74 {offsets = [40, 0], sizes = [16, 64], strides = [1, 1]} : vector<320x64xf32> to vector<16x64xf32>
    %83 = vector.extract_strided_slice %74 {offsets = [41, 0], sizes = [16, 64], strides = [1, 1]} : vector<320x64xf32> to vector<16x64xf32>
    %84 = vector.extract_strided_slice %74 {offsets = [60, 0], sizes = [16, 64], strides = [1, 1]} : vector<320x64xf32> to vector<16x64xf32>
    %85 = vector.extract_strided_slice %74 {offsets = [61, 0], sizes = [16, 64], strides = [1, 1]} : vector<320x64xf32> to vector<16x64xf32>
    %86 = arith.maximumf %82, %83 : vector<16x64xf32>
    %87 = arith.maximumf %84, %85 : vector<16x64xf32>
    %88 = arith.maximumf %86, %87 : vector<16x64xf32>
    %89 = vector.extract_strided_slice %74 {offsets = [80, 0], sizes = [16, 64], strides = [1, 1]} : vector<320x64xf32> to vector<16x64xf32>
    %90 = vector.extract_strided_slice %74 {offsets = [81, 0], sizes = [16, 64], strides = [1, 1]} : vector<320x64xf32> to vector<16x64xf32>
    %91 = vector.extract_strided_slice %74 {offsets = [100, 0], sizes = [16, 64], strides = [1, 1]} : vector<320x64xf32> to vector<16x64xf32>
    %92 = vector.extract_strided_slice %74 {offsets = [101, 0], sizes = [16, 64], strides = [1, 1]} : vector<320x64xf32> to vector<16x64xf32>
    %93 = arith.maximumf %89, %90 : vector<16x64xf32>
    %94 = arith.maximumf %91, %92 : vector<16x64xf32>
    %95 = arith.maximumf %93, %94 : vector<16x64xf32>
    %96 = vector.extract_strided_slice %74 {offsets = [120, 0], sizes = [16, 64], strides = [1, 1]} : vector<320x64xf32> to vector<16x64xf32>
    %97 = vector.extract_strided_slice %74 {offsets = [121, 0], sizes = [16, 64], strides = [1, 1]} : vector<320x64xf32> to vector<16x64xf32>
    %98 = vector.extract_strided_slice %74 {offsets = [140, 0], sizes = [16, 64], strides = [1, 1]} : vector<320x64xf32> to vector<16x64xf32>
    %99 = vector.extract_strided_slice %74 {offsets = [141, 0], sizes = [16, 64], strides = [1, 1]} : vector<320x64xf32> to vector<16x64xf32>
    %100 = arith.maximumf %96, %97 : vector<16x64xf32>
    %101 = arith.maximumf %98, %99 : vector<16x64xf32>
    %102 = arith.maximumf %100, %101 : vector<16x64xf32>
    %103 = vector.extract_strided_slice %74 {offsets = [160, 0], sizes = [16, 64], strides = [1, 1]} : vector<320x64xf32> to vector<16x64xf32>
    %104 = vector.extract_strided_slice %74 {offsets = [161, 0], sizes = [16, 64], strides = [1, 1]} : vector<320x64xf32> to vector<16x64xf32>
    %105 = vector.extract_strided_slice %74 {offsets = [180, 0], sizes = [16, 64], strides = [1, 1]} : vector<320x64xf32> to vector<16x64xf32>
    %106 = vector.extract_strided_slice %74 {offsets = [181, 0], sizes = [16, 64], strides = [1, 1]} : vector<320x64xf32> to vector<16x64xf32>
    %107 = arith.maximumf %103, %104 : vector<16x64xf32>
    %108 = arith.maximumf %105, %106 : vector<16x64xf32>
    %109 = arith.maximumf %107, %108 : vector<16x64xf32>
    %110 = vector.extract_strided_slice %74 {offsets = [200, 0], sizes = [16, 64], strides = [1, 1]} : vector<320x64xf32> to vector<16x64xf32>
    %111 = vector.extract_strided_slice %74 {offsets = [201, 0], sizes = [16, 64], strides = [1, 1]} : vector<320x64xf32> to vector<16x64xf32>
    %112 = vector.extract_strided_slice %74 {offsets = [220, 0], sizes = [16, 64], strides = [1, 1]} : vector<320x64xf32> to vector<16x64xf32>
    %113 = vector.extract_strided_slice %74 {offsets = [221, 0], sizes = [16, 64], strides = [1, 1]} : vector<320x64xf32> to vector<16x64xf32>
    %114 = arith.maximumf %110, %111 : vector<16x64xf32>
    %115 = arith.maximumf %112, %113 : vector<16x64xf32>
    %116 = arith.maximumf %114, %115 : vector<16x64xf32>
    %117 = vector.extract_strided_slice %74 {offsets = [240, 0], sizes = [16, 64], strides = [1, 1]} : vector<320x64xf32> to vector<16x64xf32>
    %118 = vector.extract_strided_slice %74 {offsets = [241, 0], sizes = [16, 64], strides = [1, 1]} : vector<320x64xf32> to vector<16x64xf32>
    %119 = vector.extract_strided_slice %74 {offsets = [260, 0], sizes = [16, 64], strides = [1, 1]} : vector<320x64xf32> to vector<16x64xf32>
    %120 = vector.extract_strided_slice %74 {offsets = [261, 0], sizes = [16, 64], strides = [1, 1]} : vector<320x64xf32> to vector<16x64xf32>
    %121 = arith.maximumf %117, %118 : vector<16x64xf32>
    %122 = arith.maximumf %119, %120 : vector<16x64xf32>
    %123 = arith.maximumf %121, %122 : vector<16x64xf32>
    %124 = vector.extract_strided_slice %74 {offsets = [280, 0], sizes = [16, 64], strides = [1, 1]} : vector<320x64xf32> to vector<16x64xf32>
    %125 = vector.extract_strided_slice %74 {offsets = [281, 0], sizes = [16, 64], strides = [1, 1]} : vector<320x64xf32> to vector<16x64xf32>
    %126 = vector.extract_strided_slice %74 {offsets = [300, 0], sizes = [16, 64], strides = [1, 1]} : vector<320x64xf32> to vector<16x64xf32>
    %127 = vector.extract_strided_slice %74 {offsets = [301, 0], sizes = [16, 64], strides = [1, 1]} : vector<320x64xf32> to vector<16x64xf32>
    %128 = arith.maximumf %124, %125 : vector<16x64xf32>
    %129 = arith.maximumf %126, %127 : vector<16x64xf32>
    %130 = arith.maximumf %128, %129 : vector<16x64xf32>
    %131 = tpu.concatenate %81, %88, %95, %102, %109, %116, %123, %130 in 0 : vector<16x64xf32>, vector<16x64xf32>, vector<16x64xf32>, vector<16x64xf32>, vector<16x64xf32>, vector<16x64xf32>, vector<16x64xf32>, vector<16x64xf32> -> vector<128x64xf32>
    %132 = arith.truncf %131 : vector<128x64xf32> to vector<128x64xbf16>
    %133 = vector.extract_strided_slice %132 {offsets = [0, 0], sizes = [56, 64], strides = [1, 1]} : vector<128x64xbf16> to vector<56x64xbf16>
    %134 = vector.extract_strided_slice %132 {offsets = [2, 0], sizes = [56, 64], strides = [1, 1]} : vector<128x64xbf16> to vector<56x64xbf16>
    %135 = tpu.concatenate %133, %134 in 1 : vector<56x64xbf16>, vector<56x64xbf16> -> vector<56x128xbf16>
    %c0_26 = arith.constant 0 : index
    %c0_27 = arith.constant 0 : index
    %136 = vector.load %arg6[%c0_26, %c0_27] : memref<1600x128xbf16, #tpu.memory_space<vmem>>, vector<128x128xbf16>
    %cst_28 = arith.constant dense<0.000000e+00> : vector<56x128xf32>
    %137 = tpu.matmul %135, %136, %cst_28 {dimension_numbers = #tpu.dot_dimension_numbers<[1], [0], [0], [1], [0, 0, 1, 1], [], []>} : vector<56x128xbf16>, vector<128x128xbf16>, vector<56x128xf32> -> vector<56x128xf32>
    %138 = vector.extract_strided_slice %132 {offsets = [4, 0], sizes = [56, 64], strides = [1, 1]} : vector<128x64xbf16> to vector<56x64xbf16>
    %139 = vector.extract_strided_slice %132 {offsets = [6, 0], sizes = [56, 64], strides = [1, 1]} : vector<128x64xbf16> to vector<56x64xbf16>
    %140 = tpu.concatenate %138, %139 in 1 : vector<56x64xbf16>, vector<56x64xbf16> -> vector<56x128xbf16>
    %c128_29 = arith.constant 128 : index
    %c0_30 = arith.constant 0 : index
    %141 = vector.load %arg6[%c128_29, %c0_30] : memref<1600x128xbf16, #tpu.memory_space<vmem>>, vector<128x128xbf16>
    %cst_31 = arith.constant dense<0.000000e+00> : vector<56x128xf32>
    %142 = tpu.matmul %140, %141, %cst_31 {dimension_numbers = #tpu.dot_dimension_numbers<[1], [0], [0], [1], [0, 0, 1, 1], [], []>} : vector<56x128xbf16>, vector<128x128xbf16>, vector<56x128xf32> -> vector<56x128xf32>
    %143 = arith.addf %137, %142 : vector<56x128xf32>
    %144 = vector.extract_strided_slice %132 {offsets = [8, 0], sizes = [56, 64], strides = [1, 1]} : vector<128x64xbf16> to vector<56x64xbf16>
    %145 = vector.extract_strided_slice %132 {offsets = [16, 0], sizes = [56, 64], strides = [1, 1]} : vector<128x64xbf16> to vector<56x64xbf16>
    %146 = tpu.concatenate %144, %145 in 1 : vector<56x64xbf16>, vector<56x64xbf16> -> vector<56x128xbf16>
    %c256_32 = arith.constant 256 : index
    %c0_33 = arith.constant 0 : index
    %147 = vector.load %arg6[%c256_32, %c0_33] : memref<1600x128xbf16, #tpu.memory_space<vmem>>, vector<128x128xbf16>
    %cst_34 = arith.constant dense<0.000000e+00> : vector<56x128xf32>
    %148 = tpu.matmul %146, %147, %cst_34 {dimension_numbers = #tpu.dot_dimension_numbers<[1], [0], [0], [1], [0, 0, 1, 1], [], []>} : vector<56x128xbf16>, vector<128x128xbf16>, vector<56x128xf32> -> vector<56x128xf32>
    %149 = arith.addf %143, %148 : vector<56x128xf32>
    %150 = vector.extract_strided_slice %132 {offsets = [18, 0], sizes = [56, 64], strides = [1, 1]} : vector<128x64xbf16> to vector<56x64xbf16>
    %151 = vector.extract_strided_slice %132 {offsets = [20, 0], sizes = [56, 64], strides = [1, 1]} : vector<128x64xbf16> to vector<56x64xbf16>
    %152 = tpu.concatenate %150, %151 in 1 : vector<56x64xbf16>, vector<56x64xbf16> -> vector<56x128xbf16>
    %c384_35 = arith.constant 384 : index
    %c0_36 = arith.constant 0 : index
    %153 = vector.load %arg6[%c384_35, %c0_36] : memref<1600x128xbf16, #tpu.memory_space<vmem>>, vector<128x128xbf16>
    %cst_37 = arith.constant dense<0.000000e+00> : vector<56x128xf32>
    %154 = tpu.matmul %152, %153, %cst_37 {dimension_numbers = #tpu.dot_dimension_numbers<[1], [0], [0], [1], [0, 0, 1, 1], [], []>} : vector<56x128xbf16>, vector<128x128xbf16>, vector<56x128xf32> -> vector<56x128xf32>
    %155 = arith.addf %149, %154 : vector<56x128xf32>
    %156 = vector.extract_strided_slice %132 {offsets = [22, 0], sizes = [56, 64], strides = [1, 1]} : vector<128x64xbf16> to vector<56x64xbf16>
    %157 = vector.extract_strided_slice %132 {offsets = [24, 0], sizes = [56, 64], strides = [1, 1]} : vector<128x64xbf16> to vector<56x64xbf16>
    %158 = tpu.concatenate %156, %157 in 1 : vector<56x64xbf16>, vector<56x64xbf16> -> vector<56x128xbf16>
    %c512_38 = arith.constant 512 : index
    %c0_39 = arith.constant 0 : index
    %159 = vector.load %arg6[%c512_38, %c0_39] : memref<1600x128xbf16, #tpu.memory_space<vmem>>, vector<128x128xbf16>
    %cst_40 = arith.constant dense<0.000000e+00> : vector<56x128xf32>
    %160 = tpu.matmul %158, %159, %cst_40 {dimension_numbers = #tpu.dot_dimension_numbers<[1], [0], [0], [1], [0, 0, 1, 1], [], []>} : vector<56x128xbf16>, vector<128x128xbf16>, vector<56x128xf32> -> vector<56x128xf32>
    %161 = arith.addf %155, %160 : vector<56x128xf32>
    %162 = vector.extract_strided_slice %132 {offsets = [32, 0], sizes = [56, 64], strides = [1, 1]} : vector<128x64xbf16> to vector<56x64xbf16>
    %163 = vector.extract_strided_slice %132 {offsets = [34, 0], sizes = [56, 64], strides = [1, 1]} : vector<128x64xbf16> to vector<56x64xbf16>
    %164 = tpu.concatenate %162, %163 in 1 : vector<56x64xbf16>, vector<56x64xbf16> -> vector<56x128xbf16>
    %c640_41 = arith.constant 640 : index
    %c0_42 = arith.constant 0 : index
    %165 = vector.load %arg6[%c640_41, %c0_42] : memref<1600x128xbf16, #tpu.memory_space<vmem>>, vector<128x128xbf16>
    %cst_43 = arith.constant dense<0.000000e+00> : vector<56x128xf32>
    %166 = tpu.matmul %164, %165, %cst_43 {dimension_numbers = #tpu.dot_dimension_numbers<[1], [0], [0], [1], [0, 0, 1, 1], [], []>} : vector<56x128xbf16>, vector<128x128xbf16>, vector<56x128xf32> -> vector<56x128xf32>
    %167 = arith.addf %161, %166 : vector<56x128xf32>
    %168 = vector.extract_strided_slice %132 {offsets = [36, 0], sizes = [56, 64], strides = [1, 1]} : vector<128x64xbf16> to vector<56x64xbf16>
    %169 = vector.extract_strided_slice %132 {offsets = [38, 0], sizes = [56, 64], strides = [1, 1]} : vector<128x64xbf16> to vector<56x64xbf16>
    %170 = tpu.concatenate %168, %169 in 1 : vector<56x64xbf16>, vector<56x64xbf16> -> vector<56x128xbf16>
    %c768_44 = arith.constant 768 : index
    %c0_45 = arith.constant 0 : index
    %171 = vector.load %arg6[%c768_44, %c0_45] : memref<1600x128xbf16, #tpu.memory_space<vmem>>, vector<128x128xbf16>
    %cst_46 = arith.constant dense<0.000000e+00> : vector<56x128xf32>
    %172 = tpu.matmul %170, %171, %cst_46 {dimension_numbers = #tpu.dot_dimension_numbers<[1], [0], [0], [1], [0, 0, 1, 1], [], []>} : vector<56x128xbf16>, vector<128x128xbf16>, vector<56x128xf32> -> vector<56x128xf32>
    %173 = arith.addf %167, %172 : vector<56x128xf32>
    %174 = vector.extract_strided_slice %132 {offsets = [40, 0], sizes = [56, 64], strides = [1, 1]} : vector<128x64xbf16> to vector<56x64xbf16>
    %175 = vector.extract_strided_slice %132 {offsets = [48, 0], sizes = [56, 64], strides = [1, 1]} : vector<128x64xbf16> to vector<56x64xbf16>
    %176 = tpu.concatenate %174, %175 in 1 : vector<56x64xbf16>, vector<56x64xbf16> -> vector<56x128xbf16>
    %c896 = arith.constant 896 : index
    %c0_47 = arith.constant 0 : index
    %177 = vector.load %arg6[%c896, %c0_47] : memref<1600x128xbf16, #tpu.memory_space<vmem>>, vector<128x128xbf16>
    %cst_48 = arith.constant dense<0.000000e+00> : vector<56x128xf32>
    %178 = tpu.matmul %176, %177, %cst_48 {dimension_numbers = #tpu.dot_dimension_numbers<[1], [0], [0], [1], [0, 0, 1, 1], [], []>} : vector<56x128xbf16>, vector<128x128xbf16>, vector<56x128xf32> -> vector<56x128xf32>
    %179 = arith.addf %173, %178 : vector<56x128xf32>
    %180 = vector.extract_strided_slice %132 {offsets = [50, 0], sizes = [56, 64], strides = [1, 1]} : vector<128x64xbf16> to vector<56x64xbf16>
    %181 = vector.extract_strided_slice %132 {offsets = [52, 0], sizes = [56, 64], strides = [1, 1]} : vector<128x64xbf16> to vector<56x64xbf16>
    %182 = tpu.concatenate %180, %181 in 1 : vector<56x64xbf16>, vector<56x64xbf16> -> vector<56x128xbf16>
    %c1024 = arith.constant 1024 : index
    %c0_49 = arith.constant 0 : index
    %183 = vector.load %arg6[%c1024, %c0_49] : memref<1600x128xbf16, #tpu.memory_space<vmem>>, vector<128x128xbf16>
    %cst_50 = arith.constant dense<0.000000e+00> : vector<56x128xf32>
    %184 = tpu.matmul %182, %183, %cst_50 {dimension_numbers = #tpu.dot_dimension_numbers<[1], [0], [0], [1], [0, 0, 1, 1], [], []>} : vector<56x128xbf16>, vector<128x128xbf16>, vector<56x128xf32> -> vector<56x128xf32>
    %185 = arith.addf %179, %184 : vector<56x128xf32>
    %186 = vector.extract_strided_slice %132 {offsets = [54, 0], sizes = [56, 64], strides = [1, 1]} : vector<128x64xbf16> to vector<56x64xbf16>
    %187 = vector.extract_strided_slice %132 {offsets = [56, 0], sizes = [56, 64], strides = [1, 1]} : vector<128x64xbf16> to vector<56x64xbf16>
    %188 = tpu.concatenate %186, %187 in 1 : vector<56x64xbf16>, vector<56x64xbf16> -> vector<56x128xbf16>
    %c1152 = arith.constant 1152 : index
    %c0_51 = arith.constant 0 : index
    %189 = vector.load %arg6[%c1152, %c0_51] : memref<1600x128xbf16, #tpu.memory_space<vmem>>, vector<128x128xbf16>
    %cst_52 = arith.constant dense<0.000000e+00> : vector<56x128xf32>
    %190 = tpu.matmul %188, %189, %cst_52 {dimension_numbers = #tpu.dot_dimension_numbers<[1], [0], [0], [1], [0, 0, 1, 1], [], []>} : vector<56x128xbf16>, vector<128x128xbf16>, vector<56x128xf32> -> vector<56x128xf32>
    %191 = arith.addf %185, %190 : vector<56x128xf32>
    %192 = vector.extract_strided_slice %132 {offsets = [64, 0], sizes = [56, 64], strides = [1, 1]} : vector<128x64xbf16> to vector<56x64xbf16>
    %193 = vector.extract_strided_slice %132 {offsets = [66, 0], sizes = [56, 64], strides = [1, 1]} : vector<128x64xbf16> to vector<56x64xbf16>
    %194 = tpu.concatenate %192, %193 in 1 : vector<56x64xbf16>, vector<56x64xbf16> -> vector<56x128xbf16>
    %c1280 = arith.constant 1280 : index
    %c0_53 = arith.constant 0 : index
    %195 = vector.load %arg6[%c1280, %c0_53] : memref<1600x128xbf16, #tpu.memory_space<vmem>>, vector<128x128xbf16>
    %cst_54 = arith.constant dense<0.000000e+00> : vector<56x128xf32>
    %196 = tpu.matmul %194, %195, %cst_54 {dimension_numbers = #tpu.dot_dimension_numbers<[1], [0], [0], [1], [0, 0, 1, 1], [], []>} : vector<56x128xbf16>, vector<128x128xbf16>, vector<56x128xf32> -> vector<56x128xf32>
    %197 = arith.addf %191, %196 : vector<56x128xf32>
    %198 = vector.extract_strided_slice %132 {offsets = [68, 0], sizes = [56, 64], strides = [1, 1]} : vector<128x64xbf16> to vector<56x64xbf16>
    %199 = vector.extract_strided_slice %132 {offsets = [70, 0], sizes = [56, 64], strides = [1, 1]} : vector<128x64xbf16> to vector<56x64xbf16>
    %200 = tpu.concatenate %198, %199 in 1 : vector<56x64xbf16>, vector<56x64xbf16> -> vector<56x128xbf16>
    %c1408 = arith.constant 1408 : index
    %c0_55 = arith.constant 0 : index
    %201 = vector.load %arg6[%c1408, %c0_55] : memref<1600x128xbf16, #tpu.memory_space<vmem>>, vector<128x128xbf16>
    %cst_56 = arith.constant dense<0.000000e+00> : vector<56x128xf32>
    %202 = tpu.matmul %200, %201, %cst_56 {dimension_numbers = #tpu.dot_dimension_numbers<[1], [0], [0], [1], [0, 0, 1, 1], [], []>} : vector<56x128xbf16>, vector<128x128xbf16>, vector<56x128xf32> -> vector<56x128xf32>
    %203 = arith.addf %197, %202 : vector<56x128xf32>
    %204 = vector.extract_strided_slice %132 {offsets = [72, 0], sizes = [56, 64], strides = [1, 1]} : vector<128x64xbf16> to vector<56x64xbf16>
    %c1536 = arith.constant 1536 : index
    %c0_57 = arith.constant 0 : index
    %205 = vector.load %arg6[%c1536, %c0_57] : memref<1600x128xbf16, #tpu.memory_space<vmem>>, vector<64x128xbf16>
    %cst_58 = arith.constant dense<0.000000e+00> : vector<56x128xf32>
    %206 = tpu.matmul %204, %205, %cst_58 {dimension_numbers = #tpu.dot_dimension_numbers<[1], [0], [0], [1], [0, 0, 1, 1], [], []>} : vector<56x64xbf16>, vector<64x128xbf16>, vector<56x128xf32> -> vector<56x128xf32>
    %207 = arith.addf %203, %206 : vector<56x128xf32>
    %c0_59 = arith.constant 0 : index
    %c0_60 = arith.constant 0 : index
    %208 = vector.load %arg7[%c0_59, %c0_60] : memref<1x128xf32, #tpu.memory_space<vmem>>, vector<1x128xf32>
    %209 = vector.broadcast %208 : vector<1x128xf32> to vector<56x128xf32>
    %210 = arith.addf %207, %209 : vector<56x128xf32>
    %cst_61 = arith.constant 0.000000e+00 : f32
    %211 = vector.broadcast %cst_61 : f32 to vector<56x128xf32>
    %212 = arith.maximumf %210, %211 : vector<56x128xf32>
    %213 = vector.extract_strided_slice %212 {offsets = [0, 0], sizes = [1, 128], strides = [1, 1]} : vector<56x128xf32> to vector<1x128xf32>
    %214 = vector.extract_strided_slice %212 {offsets = [2, 0], sizes = [1, 128], strides = [1, 1]} : vector<56x128xf32> to vector<1x128xf32>
    %215 = vector.extract_strided_slice %212 {offsets = [16, 0], sizes = [1, 128], strides = [1, 1]} : vector<56x128xf32> to vector<1x128xf32>
    %216 = vector.extract_strided_slice %212 {offsets = [18, 0], sizes = [1, 128], strides = [1, 1]} : vector<56x128xf32> to vector<1x128xf32>
    %217 = arith.maximumf %213, %214 : vector<1x128xf32>
    %218 = arith.maximumf %215, %216 : vector<1x128xf32>
    %219 = arith.maximumf %217, %218 : vector<1x128xf32>
    %220 = vector.extract_strided_slice %212 {offsets = [4, 0], sizes = [1, 128], strides = [1, 1]} : vector<56x128xf32> to vector<1x128xf32>
    %221 = vector.extract_strided_slice %212 {offsets = [6, 0], sizes = [1, 128], strides = [1, 1]} : vector<56x128xf32> to vector<1x128xf32>
    %222 = vector.extract_strided_slice %212 {offsets = [20, 0], sizes = [1, 128], strides = [1, 1]} : vector<56x128xf32> to vector<1x128xf32>
    %223 = vector.extract_strided_slice %212 {offsets = [22, 0], sizes = [1, 128], strides = [1, 1]} : vector<56x128xf32> to vector<1x128xf32>
    %224 = arith.maximumf %220, %221 : vector<1x128xf32>
    %225 = arith.maximumf %222, %223 : vector<1x128xf32>
    %226 = arith.maximumf %224, %225 : vector<1x128xf32>
    %227 = vector.extract_strided_slice %212 {offsets = [32, 0], sizes = [1, 128], strides = [1, 1]} : vector<56x128xf32> to vector<1x128xf32>
    %228 = vector.extract_strided_slice %212 {offsets = [34, 0], sizes = [1, 128], strides = [1, 1]} : vector<56x128xf32> to vector<1x128xf32>
    %229 = vector.extract_strided_slice %212 {offsets = [48, 0], sizes = [1, 128], strides = [1, 1]} : vector<56x128xf32> to vector<1x128xf32>
    %230 = vector.extract_strided_slice %212 {offsets = [50, 0], sizes = [1, 128], strides = [1, 1]} : vector<56x128xf32> to vector<1x128xf32>
    %231 = arith.maximumf %227, %228 : vector<1x128xf32>
    %232 = arith.maximumf %229, %230 : vector<1x128xf32>
    %233 = arith.maximumf %231, %232 : vector<1x128xf32>
    %234 = vector.extract_strided_slice %212 {offsets = [36, 0], sizes = [1, 128], strides = [1, 1]} : vector<56x128xf32> to vector<1x128xf32>
    %235 = vector.extract_strided_slice %212 {offsets = [38, 0], sizes = [1, 128], strides = [1, 1]} : vector<56x128xf32> to vector<1x128xf32>
    %236 = vector.extract_strided_slice %212 {offsets = [52, 0], sizes = [1, 128], strides = [1, 1]} : vector<56x128xf32> to vector<1x128xf32>
    %237 = vector.extract_strided_slice %212 {offsets = [54, 0], sizes = [1, 128], strides = [1, 1]} : vector<56x128xf32> to vector<1x128xf32>
    %238 = arith.maximumf %234, %235 : vector<1x128xf32>
    %239 = arith.maximumf %236, %237 : vector<1x128xf32>
    %240 = arith.maximumf %238, %239 : vector<1x128xf32>
    %241 = tpu.concatenate %219, %226, %233, %240 in 1 : vector<1x128xf32>, vector<1x128xf32>, vector<1x128xf32>, vector<1x128xf32> -> vector<1x512xf32>
    %242 = arith.truncf %241 : vector<1x512xf32> to vector<1x512xbf16>
    %c0_62 = arith.constant 0 : index
    %c0_63 = arith.constant 0 : index
    %243 = vector.load %arg8[%c0_62, %c0_63] : memref<512x512xbf16, #tpu.memory_space<vmem>>, vector<512x512xbf16>
    %cst_64 = arith.constant dense<0.000000e+00> : vector<1x512xf32>
    %244 = tpu.matmul %242, %243, %cst_64 {dimension_numbers = #tpu.dot_dimension_numbers<[1], [0], [0], [1], [0, 0, 1, 1], [], []>} : vector<1x512xbf16>, vector<512x512xbf16>, vector<1x512xf32> -> vector<1x512xf32>
    %c0_65 = arith.constant 0 : index
    %c0_66 = arith.constant 0 : index
    %245 = vector.load %arg9[%c0_65, %c0_66] : memref<1x512xf32, #tpu.memory_space<vmem>>, vector<1x512xf32>
    %246 = arith.addf %244, %245 : vector<1x512xf32>
    %cst_67 = arith.constant 0.000000e+00 : f32
    %247 = vector.broadcast %cst_67 : f32 to vector<1x512xf32>
    %248 = arith.maximumf %246, %247 : vector<1x512xf32>
    %249 = arith.truncf %248 : vector<1x512xf32> to vector<1x512xbf16>
    %c0_68 = arith.constant 0 : index
    %c0_69 = arith.constant 0 : index
    %250 = vector.load %arg10[%c0_68, %c0_69] : memref<512x2xbf16, #tpu.memory_space<vmem>>, vector<512x2xbf16>
    %cst_70 = arith.constant dense<0.000000e+00> : vector<1x2xf32>
    %251 = tpu.matmul %249, %250, %cst_70 {dimension_numbers = #tpu.dot_dimension_numbers<[1], [0], [0], [1], [0, 0, 1, 1], [], []>} : vector<1x512xbf16>, vector<512x2xbf16>, vector<1x2xf32> -> vector<1x2xf32>
    %c0_71 = arith.constant 0 : index
    %c0_72 = arith.constant 0 : index
    %252 = vector.load %arg11[%c0_71, %c0_72] : memref<1x2xf32, #tpu.memory_space<vmem>>, vector<1x2xf32>
    %253 = arith.addf %251, %252 : vector<1x2xf32>
    %cst_73 = arith.constant dense<0xFF800000> : vector<1xf32>
    %254 = vector.multi_reduction <maximumf>, %253, %cst_73 [1] : vector<1x2xf32> to vector<1xf32>
    %255 = vector.shape_cast %254 : vector<1xf32> to vector<1x1xf32>
    %256 = vector.broadcast %255 : vector<1x1xf32> to vector<1x2xf32>
    %257 = arith.subf %253, %256 : vector<1x2xf32>
    %258 = math.exp %257 : vector<1x2xf32>
    %cst_74 = arith.constant dense<0.000000e+00> : vector<1xf32>
    %259 = vector.multi_reduction <add>, %258, %cst_74 [1] : vector<1x2xf32> to vector<1xf32>
    %260 = vector.shape_cast %259 : vector<1xf32> to vector<1x1xf32>
    %261 = vector.broadcast %260 : vector<1x1xf32> to vector<1x2xf32>
    %262 = arith.divf %258, %261 : vector<1x2xf32>
    %c0_75 = arith.constant 0 : index
    %c0_76 = arith.constant 0 : index
    %c0_77 = arith.constant 0 : index
    %263 = vector.load %arg12[%c0_75, %c0_76, %c0_77] : memref<1x1x2xf32, #tpu.memory_space<vmem>>, vector<1x1x2xf32>
    %264 = vector.shape_cast %263 : vector<1x1x2xf32> to vector<1x2xf32>
    %265 = vector.shape_cast %262 : vector<1x2xf32> to vector<1x1x2xf32>
    tpu.vector_store %arg12[%c0_75, %c0_76, %c0_77], %265 {strides = array<i32>} : memref<1x1x2xf32, #tpu.memory_space<vmem>>, vector<1x1x2xf32>,
    return
  }
  func.func @transform_0(%arg0: i32) -> (i32, i32, i32) {
    %c0_i32 = arith.constant 0 : i32
    %c0_i32_0 = arith.constant 0 : i32
    %c0_i32_1 = arith.constant 0 : i32
    return %arg0, %c0_i32, %c0_i32_0 : i32, i32, i32
  }
  func.func @transform_1(%arg0: i32) -> (i32, i32) {
    %c0_i32 = arith.constant 0 : i32
    %c0_i32_0 = arith.constant 0 : i32
    %c0_i32_1 = arith.constant 0 : i32
    return %c0_i32, %c0_i32_0 : i32, i32
  }
  func.func @transform_2(%arg0: i32) -> (i32, i32) {
    %c0_i32 = arith.constant 0 : i32
    %c0_i32_0 = arith.constant 0 : i32
    %c0_i32_1 = arith.constant 0 : i32
    return %c0_i32, %c0_i32_0 : i32, i32
  }
  func.func @transform_3(%arg0: i32) -> (i32, i32) {
    %c0_i32 = arith.constant 0 : i32
    %c0_i32_0 = arith.constant 0 : i32
    %c0_i32_1 = arith.constant 0 : i32
    return %c0_i32, %c0_i32_0 : i32, i32
  }
  func.func @transform_4(%arg0: i32) -> (i32, i32) {
    %c0_i32 = arith.constant 0 : i32
    %c0_i32_0 = arith.constant 0 : i32
    %c0_i32_1 = arith.constant 0 : i32
    return %c0_i32, %c0_i32_0 : i32, i32
  }
  func.func @transform_5(%arg0: i32) -> (i32, i32) {
    %c0_i32 = arith.constant 0 : i32
    %c0_i32_0 = arith.constant 0 : i32
    %c0_i32_1 = arith.constant 0 : i32
    return %c0_i32, %c0_i32_0 : i32, i32
  }
  func.func @transform_6(%arg0: i32) -> (i32, i32) {
    %c0_i32 = arith.constant 0 : i32
    %c0_i32_0 = arith.constant 0 : i32
    %c0_i32_1 = arith.constant 0 : i32
    return %c0_i32, %c0_i32_0 : i32, i32
  }
  func.func @transform_7(%arg0: i32) -> (i32, i32) {
    %c0_i32 = arith.constant 0 : i32
    %c0_i32_0 = arith.constant 0 : i32
    %c0_i32_1 = arith.constant 0 : i32
    return %c0_i32, %c0_i32_0 : i32, i32
  }
  func.func @transform_8(%arg0: i32) -> (i32, i32) {
    %c0_i32 = arith.constant 0 : i32
    %c0_i32_0 = arith.constant 0 : i32
    %c0_i32_1 = arith.constant 0 : i32
    return %c0_i32, %c0_i32_0 : i32, i32
  }
  func.func @transform_9(%arg0: i32) -> (i32, i32) {
    %c0_i32 = arith.constant 0 : i32
    %c0_i32_0 = arith.constant 0 : i32
    %c0_i32_1 = arith.constant 0 : i32
    return %c0_i32, %c0_i32_0 : i32, i32
  }
  func.func @transform_10(%arg0: i32) -> (i32, i32) {
    %c0_i32 = arith.constant 0 : i32
    %c0_i32_0 = arith.constant 0 : i32
    %c0_i32_1 = arith.constant 0 : i32
    return %c0_i32, %c0_i32_0 : i32, i32
  }
  func.func @transform_11(%arg0: i32) -> (i32, i32, i32) {
    %c0_i32 = arith.constant 0 : i32
    %c0_i32_0 = arith.constant 0 : i32
    %c0_i32_1 = arith.constant 0 : i32
    return %arg0, %c0_i32, %c0_i32_0 : i32, i32, i32
  }
}

</mosaic_0001>

<bundles_post_ra>
// kernel: net_forward.1
= control target key start
LH: loop header
LB: loop body
LE: loop exit
PB: predicated region body
PF: predicated region fallthrough
CT: control target
= control target key end

     0   :  { %s17172_s0 = inlined_call_operand.vmem [shape: bf16[2,1600,25], index: 0, kind: input, shape index: {}]   ;;  %s17173_s1 = inlined_call_operand.vmem [shape: bf16[25,32], index: 1, kind: input, shape index: {}]   ;;  %s17174_s2 = inlined_call_operand.vmem [shape: f32[1,32], index: 2, kind: input, shape index: {}]   ;;  %s17175_s3 = inlined_call_operand.vmem [shape: bf16[800,64], index: 3, kind: input, shape index: {}]   ;;  %s17176_s4 = inlined_call_operand.vmem [shape: f32[1,64], index: 4, kind: input, shape index: {}]   ;;  %s17177_s5 = inlined_call_operand.vmem [shape: bf16[1600,128], index: 5, kind: input, shape index: {}]   ;;  %s17178_s6 = inlined_call_operand.vmem [shape: f32[1,128], index: 6, kind: input, shape index: {}]   ;;  %s17179_s7 = inlined_call_operand.vmem [shape: bf16[512,512], index: 7, kind: input, shape index: {}]   ;;  %s17180_s8 = inlined_call_operand.vmem [shape: f32[1,512], index: 8, kind: input, shape index: {}]   ;;  %s17181_s9 = inlined_call_operand.vmem [shape: bf16[512,2], index: 9, kind: input, shape index: {}]   ;;  %s17182_s10 = inlined_call_operand.vmem [shape: f32[1,2], index: 10, kind: input, shape index: {}]   ;;  %s17183_s11 = inlined_call_operand.hbm [shape: f32[2,1,2], index: 11, kind: output, shape index: {}]  }
   0x1   :  { %17272 = sst [smem:[#allocation58_spill]] %s17172_s0 }
   0x2   :  { %17273 = sst [smem:[#allocation59_spill]] %s17173_s1 }
   0x3   :  { %16 = vsyncpa [#allocation3], 0 }
   0x4   :  { %18 = vsyncpa [#allocation3 + $0x1], 0  ;;  %s12830_s17 = smov 0   ;;  %s12832_s18 = smov 0  }
   0x5   :  { %s12834_s19 = smov 0   ;;  %s12836_s20 = smov 0  }
   0x6 LB: > { %s12851_s21 = sadd.s32 4294967295, %s12761_s20   ;;  %s9997_s22 = sadd.s32 4294967294, %s12761_s20   ;;  %s12761_s20 = sphi %s12836_s20, %s17619_s20   ;;  %s12757_s19 = sphi %s12834_s19, %s17618_s19   ;;  %s12753_s18 = sphi %s12832_s18, %s17617_s18   ;;  %s12749_s17 = sphi %s12830_s17, %s17616_s17  }
   0x7   : > { %s12855_s23 = sadd.s32 1, %s12761_s20   ;;  %s267_s24 = sadd.s32 1, %s12757_s19 }
   0x8   : > { %s264_s25 = ssub.s32 %s12761_s20, %s12855_s23  ;;  %p277_p0 = scmp.ne.s32.totalorder %s12757_s19, %s12753_s18 }
   0x9   : > { %p265_p1 = scmp.eq.s32.totalorder %s264_s25, 0  ;;  %p278_p2 = scmp.eq.s32.totalorder %s12851_s21, 1 }
   0xa   : > { %p283_p3 = scmp.ne.s32.totalorder %s12753_s18, %s12749_s17  ;;  %p284_p4 = scmp.eq.s32.totalorder %s9997_s22, 1 }
   0xb   : > { %s12866_s26 = scalar_select %p265_p1, %s12757_s19, %s267_s24  }
   0xc   : > { %p12868_p5 = por %p278_p2, %p277_p0  ;;  %p12872_p6 = por %p284_p4, %p283_p3 }
   0xd   : > { %p10000_p7 = scmp.ge.s32.totalorder %s12761_s20, 1  ;;  %p340_p8 = scmp.lt.s32.totalorder %s12761_s20, 3 }
   0xf   : > { %p341_p9 = pnand %p10000_p7, %p340_p8 }
  0x11   : > { %344 = sbr.rel (%p341_p9) target bundleno = 2967 (0xb97), region = 64 }
  0x18   : > { %s17276_s1 = sld [smem:[#allocation59_spill]]  ;;  %vm1408_vm0 = vcmask 1043456   ;;  %vm1409_vm1 = vcmask 1044480   ;;  %p379_p10 = scmp.lt.s32.totalorder %s12851_s21, 1  ;;  %vm1107_vm2 = vcmask 203776   ;;  %v12763_v2 = vmov 65535  }
  0x19   : > { %v1410_v3 = vsel %vm1408_vm0, 4294967295, %v12763_v2  ;;  %s17277_s0 = sld [smem:[#allocation58_spill]]  ;;  %vm2850_vm3 = vcmask 1046528   ;;  %vm2624_vm4 = vsmask.f32 7424  ;;  %s12764_s30 = smov 32  }
  0x1a   : > { %v1411_v4 = vsel %vm1409_vm1, %v1410_v3, 0  ;;  %s380_s14 = scalar_select %p379_p10, %s12851_s21, 1  ;;  %vm2932_vm5 = vsmask.f32 6400  ;;  %vm3058_vm6 = vcmask 261120   ;;  %vm3099_vm7 = vcmask 523264  }
  0x1b   : > { %s12766_s12 = smov 96   ;;  %vm3140_vm8 = vcmask 785408   ;;  %vm3518_vm9 = vcmask 1045504   ;;  %vm4151_vm10 = vsmask.f32 4352  ;;  %vm4707_vm11 = vcmask 1042432  }
  0x1c   : > { %s12172_s15 = smul.u32 800, %s380_s14  ;;  %vm5122_vm12 = vsmask.f32 1280  ;;  %vm9916_vm13 = vcmask 8192  }
  0x1e   : > { %v12218_v0 = vld [vmem:[%s17276_s1] sm:$0xff]   ;;  %v12219_v1 = vld [vmem:[%s17276_s1 + $0x8] sm:$0x1f]  }
  0x1f   : > { %11032 = vmatprep.subr.bf16.mxu0 %v12218_v0  ;;  %v1413_v5 = vand.u32 %v12219_v1, %v1411_v4  ;;  %s12891_s24 = scalar_lea.vmem %s17277_s0, %s12172_s15 }
  0x20   : > { %11033 = vmatpush3.bf16.msra.mxu0 %v12218_v0  ;;  %v12220_v6 = vld [vmem:[%s12891_s24] sm:$0xff]   ;;  %v12221_v7 = vld [vmem:[%s12891_s24 + $0x8] sm:$0xff]   ;;  %v12222_v8 = vld [vmem:[%s12891_s24 + $0x10] sm:$0xff]  }
  0x21   : > { %11034 = vmatprep.subr.bf16.mxu0 %v1413_v5  ;;  %11036 = vmatprep.mubr.msk.bf16.mxu0 %vm1107_vm2, %v12220_v6  ;;  %v12223_v9 = vld [vmem:[%s12891_s24 + $0x18] sm:$0xff]   ;;  %v12224_v10 = vld [vmem:[%s12891_s24 + $0x20] sm:$0xff]   ;;  %v12225_v11 = vld [vmem:[%s12891_s24 + $0x28] sm:$0xff]  }
  0x22   : > { %v12226_v12 = vld [vmem:[%s12891_s24 + $0x30] sm:$0xff]   ;;  %v12227_v13 = vld [vmem:[%s12891_s24 + $0x38] sm:$0xff]   ;;  %v12228_v14 = vld [vmem:[%s12891_s24 + $0x40] sm:$0xff]  }
  0x23   : > { %v12229_v15 = vld [vmem:[%s12891_s24 + $0x48] sm:$0xff]   ;;  %v12230_v16 = vld [vmem:[%s12891_s24 + $0x50] sm:$0xff]   ;;  %v12231_v17 = vld [vmem:[%s12891_s24 + $0x58] sm:$0xff]  }
  0x24   : > { %11035 = vmatpush3.bf16.msra.mxu0 %v1413_v5  ;;  %v12232_v18 = vld [vmem:[%s12891_s24 + $0x60] sm:$0xff]   ;;  %v12233_v19 = vld [vmem:[%s12891_s24 + $0x68] sm:$0xff]   ;;  %v12234_v20 = vld [vmem:[%s12891_s24 + $0x70] sm:$0xff]  }
  0x25   : > { %v12235_v21 = vld [vmem:[%s12891_s24 + $0x78] sm:$0xff]   ;;  %v12236_v22 = vld [vmem:[%s12891_s24 + $0x80] sm:$0xff]   ;;  %v12237_v23 = vld [vmem:[%s12891_s24 + $0x88] sm:$0xff]  }
  0x26   : > { %v12238_v24 = vld [vmem:[%s12891_s24 + $0x90] sm:$0xff]   ;;  %v12239_v25 = vld [vmem:[%s12891_s24 + $0x98] sm:$0xff]   ;;  %v12240_v26 = vld [vmem:[%s12891_s24 + $0xa0] sm:$0xff]  }
  0x27   : > { %11037 = vmatmul.mubr.msk.bf16.vlgmr.msra.gmra.mrb[0].mxu0 %vm1107_vm2, %v12221_v7  ;;  %v12241_v27 = vld [vmem:[%s12891_s24 + $0xa8] sm:$0xff]   ;;  %v12242_v28 = vld [vmem:[%s12891_s24 + $0xb0] sm:$0xff]   ;;  %v12243_v29 = vld [vmem:[%s12891_s24 + $0xb8] sm:$0xff]  }
  0x28   : > { %11040 = vmatprep.mubr.msk.bf16.mxu0 %vm1107_vm2, %v12222_v8  ;;  %v12244_v30 = vld [vmem:[%s12891_s24 + $0xc0] sm:$0xff]   ;;  %v12245_v31 = vld [vmem:[%s12891_s24 + $0xc8] sm:$0xff]   ;;  %v12246_v32 = vld [vmem:[%s12891_s24 + $0xd0] sm:$0xff]  }
  0x29   : > { %v12247_v33 = vld [vmem:[%s12891_s24 + $0xd8] sm:$0xff]   ;;  %v12248_v34 = vld [vmem:[%s12891_s24 + $0xe0] sm:$0xff]   ;;  %v12249_v35 = vld [vmem:[%s12891_s24 + $0xe8] sm:$0xff]  }
  0x2a   : > { %v12250_v36 = vld [vmem:[%s12891_s24 + $0xf0] sm:$0xff]   ;;  %v12251_v37 = vld [vmem:[%s12891_s24 + $0xf8] sm:$0xff]   ;;  %v12252_v38 = vld [vmem:[%s12891_s24 + $0x100] sm:$0xff]  }
  0x2b   : > { %v12253_v39 = vld [vmem:[%s12891_s24 + $0x108] sm:$0xff]   ;;  %v12254_v40 = vld [vmem:[%s12891_s24 + $0x110] sm:$0xff]   ;;  %v12255_v41 = vld [vmem:[%s12891_s24 + $0x118] sm:$0xff]  }
  0x2c   : > { %v12256_v42 = vld [vmem:[%s12891_s24 + $0x120] sm:$0xff]   ;;  %v12257_v43 = vld [vmem:[%s12891_s24 + $0x128] sm:$0xff]   ;;  %v12258_v44 = vld [vmem:[%s12891_s24 + $0x130] sm:$0xff]  }
  0x2d   : > { %v12259_v45 = vld [vmem:[%s12891_s24 + $0x138] sm:$0xff]   ;;  %v12260_v46 = vld [vmem:[%s12891_s24 + $0x140] sm:$0xff]   ;;  %v12261_v47 = vld [vmem:[%s12891_s24 + $0x148] sm:$0xff]  }
  0x2e   : > { %v12262_v48 = vld [vmem:[%s12891_s24 + $0x150] sm:$0xff]   ;;  %v12263_v49 = vld [vmem:[%s12891_s24 + $0x158] sm:$0xff]   ;;  %v12264_v50 = vld [vmem:[%s12891_s24 + $0x160] sm:$0xff]  }
  0x2f   : > { %11041 = vmatmul.mubr.msk.bf16.gmra.mrb[4].mxu0 %vm1107_vm2, %v12223_v9  ;;  %v12265_v51 = vld [vmem:[%s12891_s24 + $0x168] sm:$0xff]   ;;  %v12266_v52 = vld [vmem:[%s12891_s24 + $0x170] sm:$0xff]   ;;  %v12267_v53 = vld [vmem:[%s12891_s24 + $0x178] sm:$0xff]  }
  0x30   : > { %11044 = vmatprep.mubr.msk.bf16.mxu0 %vm1107_vm2, %v12224_v10  ;;  %v12268_v54 = vld [vmem:[%s12891_s24 + $0x180] sm:$0xff]   ;;  %v12269_v55 = vld [vmem:[%s12891_s24 + $0x188] sm:$0xff]   ;;  %v12270_v56 = vld [vmem:[%s12891_s24 + $0x190] sm:$0xff]  }
  0x31   : > { %v12271_v57 = vld [vmem:[%s12891_s24 + $0x198] sm:$0xff]   ;;  %v12272_v58 = vld [vmem:[%s12891_s24 + $0x1a0] sm:$0xff]   ;;  %v12273_v59 = vld [vmem:[%s12891_s24 + $0x1a8] sm:$0xff]  }
  0x32   : > { %v12274_v60 = vld [vmem:[%s12891_s24 + $0x1b0] sm:$0xff]   ;;  %v12275_v61 = vld [vmem:[%s12891_s24 + $0x1b8] sm:$0xff]   ;;  %v12276_v1 = vld [vmem:[%s12891_s24 + $0x1c0] sm:$0xff]  }
  0x33   : > { %v12277_v3 = vld [vmem:[%s12891_s24 + $0x1c8] sm:$0xff]   ;;  %v12278_v7 = vld [vmem:[%s12891_s24 + $0x1d0] sm:$0xff]   ;;  %v12279_v9 = vld [vmem:[%s12891_s24 + $0x1d8] sm:$0xff]  }
  0x37   : > { %11045 = vmatmul.mubr.msk.bf16.gmra.mrb[8].mxu0 %vm1107_vm2, %v12225_v11 }
  0x38   : > { %11048 = vmatprep.mubr.msk.bf16.mxu0 %vm1107_vm2, %v12226_v12 }
  0x3f   : > { %11049 = vmatmul.mubr.msk.bf16.gmra.mrb[12].mxu0 %vm1107_vm2, %v12227_v13  ;;  %v12280_v13 = vld [vmem:[%s12891_s24 + $0x1e0] sm:$0xff]  }
  0x40   : > { %11052 = vmatprep.mubr.msk.bf16.mxu0 %vm1107_vm2, %v12228_v14 }
  0x47   : > { %11053 = vmatmul.mubr.msk.bf16.gmra.mrb[16].mxu0 %vm1107_vm2, %v12229_v15 }
  0x48   : > { %11056 = vmatprep.mubr.msk.bf16.mxu0 %vm1107_vm2, %v12230_v16 }
  0x4f   : > { %11057 = vmatmul.mubr.msk.bf16.gmra.mrb[20].mxu0 %vm1107_vm2, %v12231_v17  ;;  %v12281_v17 = vld [vmem:[%s12891_s24 + $0x1e8] sm:$0xff]  }
  0x50   : > { %11060 = vmatprep.mubr.msk.bf16.mxu0 %vm1107_vm2, %v12232_v18 }
  0x57   : > { %11061 = vmatmul.mubr.msk.bf16.gmra.mrb[24].mxu0 %vm1107_vm2, %v12233_v19  ;;  %v12282_v19 = vld [vmem:[%s12891_s24 + $0x1f0] sm:$0xff]  }
  0x58   : > { %11064 = vmatprep.mubr.msk.bf16.mxu0 %vm1107_vm2, %v12234_v20 }
  0x5f   : > { %11065 = vmatmul.mubr.msk.bf16.gmra.mrb[28].mxu0 %vm1107_vm2, %v12235_v21 }
  0x60   : > { %11068 = vmatprep.mubr.msk.bf16.mxu0 %vm1107_vm2, %v12236_v22 }
  0x67   : > { %11069 = vmatmul.mubr.msk.bf16.gmra.mrb[32].mxu0 %vm1107_vm2, %v12237_v23  ;;  %v12283_v23 = vld [vmem:[%s12891_s24 + $0x1f8] sm:$0xff]  }
  0x68   : > { %11072 = vmatprep.mubr.msk.bf16.mxu0 %vm1107_vm2, %v12238_v24 }
  0x6f   : > { %11073 = vmatmul.mubr.msk.bf16.gmra.mrb[36].mxu0 %vm1107_vm2, %v12239_v25  ;;  %v12284_v25 = vld [vmem:[%s12891_s24 + $0x200] sm:$0xff]  }
  0x70   : > { %11076 = vmatprep.mubr.msk.bf16.mxu0 %vm1107_vm2, %v12240_v26 }
  0x77   : > { %11077 = vmatmul.mubr.msk.bf16.gmra.mrb[40].mxu0 %vm1107_vm2, %v12241_v27 }
  0x78   : > { %11080 = vmatprep.mubr.msk.bf16.mxu0 %vm1107_vm2, %v12242_v28 }
  0x7f   : > { %11081 = vmatmul.mubr.msk.bf16.gmra.mrb[44].mxu0 %vm1107_vm2, %v12243_v29  ;;  %v12285_v29 = vld [vmem:[%s12891_s24 + $0x208] sm:$0xff]  }
  0x80   : > { %11084 = vmatprep.mubr.msk.bf16.mxu0 %vm1107_vm2, %v12244_v30 }
  0x87   : > { %11085 = vmatmul.mubr.msk.bf16.gmra.mrb[48].mxu0 %vm1107_vm2, %v12245_v31  ;;  %v12286_v31 = vld [vmem:[%s12891_s24 + $0x210] sm:$0xff]  }
  0x88   : > { %11088 = vmatprep.mubr.msk.bf16.mxu0 %vm1107_vm2, %v12246_v32 }
  0x8f   : > { %11089 = vmatmul.mubr.msk.bf16.gmra.mrb[52].mxu0 %vm1107_vm2, %v12247_v33 }
  0x90   : > { %11092 = vmatprep.mubr.msk.bf16.mxu0 %vm1107_vm2, %v12248_v34 }
  0x97   : > { %11093 = vmatmul.mubr.msk.bf16.gmra.mrb[56].mxu0 %vm1107_vm2, %v12249_v35  ;;  %v12287_v35 = vld [vmem:[%s12891_s24 + $0x218] sm:$0xff]  }
  0x98   : > { %11096 = vmatprep.mubr.msk.bf16.mxu0 %vm1107_vm2, %v12250_v36 }
  0x9f   : > { %11097 = vmatmul.mubr.msk.bf16.gmra.mrb[60].mxu0 %vm1107_vm2, %v12251_v37  ;;  %v12288_v37 = vld [vmem:[%s12891_s24 + $0x220] sm:$0xff]  }
  0xa0   : > { %11100 = vmatprep.mubr.msk.bf16.mxu0 %vm1107_vm2, %v12252_v38 }
  0xa7   : > { %11101 = vmatmul.mubr.msk.bf16.gmra.mrb[64].mxu0 %vm1107_vm2, %v12253_v39 }
  0xa8   : > { %11104 = vmatprep.mubr.msk.bf16.mxu0 %vm1107_vm2, %v12254_v40 }
  0xaf   : > { %11105 = vmatmul.mubr.msk.bf16.gmra.mrb[68].mxu0 %vm1107_vm2, %v12255_v41  ;;  %v12289_v41 = vld [vmem:[%s12891_s24 + $0x228] sm:$0xff]  }
  0xb0   : > { %11108 = vmatprep.mubr.msk.bf16.mxu0 %vm1107_vm2, %v12256_v42 }
  0xb7   : > { %11109 = vmatmul.mubr.msk.bf16.gmra.mrb[72].mxu0 %vm1107_vm2, %v12257_v43  ;;  %v12290_v43 = vld [vmem:[%s12891_s24 + $0x230] sm:$0xff]  }
  0xb8   : > { %11112 = vmatprep.mubr.msk.bf16.mxu0 %vm1107_vm2, %v12258_v44 }
  0xbf   : > { %11113 = vmatmul.mubr.msk.bf16.gmra.mrb[76].mxu0 %vm1107_vm2, %v12259_v45 }
  0xc0   : > { %11116 = vmatprep.mubr.msk.bf16.mxu0 %vm1107_vm2, %v12260_v46 }
  0xc7   : > { %11117 = vmatmul.mubr.msk.bf16.gmra.mrb[80].mxu0 %vm1107_vm2, %v12261_v47  ;;  %v12291_v47 = vld [vmem:[%s12891_s24 + $0x238] sm:$0xff]  }
  0xc8   : > { %11120 = vmatprep.mubr.msk.bf16.mxu0 %vm1107_vm2, %v12262_v48 }
  0xcf   : > { %11121 = vmatmul.mubr.msk.bf16.gmra.mrb[84].mxu0 %vm1107_vm2, %v12263_v49  ;;  %v12292_v49 = vld [vmem:[%s12891_s24 + $0x240] sm:$0xff]  }
  0xd0   : > { %11124 = vmatprep.mubr.msk.bf16.mxu0 %vm1107_vm2, %v12264_v50 }
  0xd7   : > { %11125 = vmatmul.mubr.msk.bf16.gmra.mrb[88].mxu0 %vm1107_vm2, %v12265_v51 }
  0xd8   : > { %11128 = vmatprep.mubr.msk.bf16.mxu0 %vm1107_vm2, %v12266_v52 }
  0xdf   : > { %11129 = vmatmul.mubr.msk.bf16.gmra.mrb[92].mxu0 %vm1107_vm2, %v12267_v53  ;;  %v12293_v53 = vld [vmem:[%s12891_s24 + $0x248] sm:$0xff]  }
  0xe0   : > { %11132 = vmatprep.mubr.msk.bf16.mxu0 %vm1107_vm2, %v12268_v54 }
  0xe7   : > { %11133 = vmatmul.mubr.msk.bf16.gmra.mrb[96].mxu0 %vm1107_vm2, %v12269_v55  ;;  %v12294_v55 = vld [vmem:[%s12891_s24 + $0x250] sm:$0xff]  }
  0xe8   : > { %11136 = vmatprep.mubr.msk.bf16.mxu0 %vm1107_vm2, %v12270_v56 }
  0xef   : > { %11137 = vmatmul.mubr.msk.bf16.gmra.mrb[100].mxu0 %vm1107_vm2, %v12271_v57 }
  0xf0   : > { %11140 = vmatprep.mubr.msk.bf16.mxu0 %vm1107_vm2, %v12272_v58 }
  0xf7   : > { %11141 = vmatmul.mubr.msk.bf16.gmra.mrb[104].mxu0 %vm1107_vm2, %v12273_v59  ;;  %v12295_v59 = vld [vmem:[%s12891_s24 + $0x258] sm:$0xff]  }
  0xf8   : > { %11144 = vmatprep.mubr.msk.bf16.mxu0 %vm1107_vm2, %v12274_v60 }
  0xfa   : > { %v13004_v62 = vpop.f32.mrb[0].mxu0 }
  0xfb   : > { %v13006_v63 = vpop.f32.mrb[1].mxu0 }
  0xfc   : > { %v13008_v0 = vpop.f32.mrb[2].mxu0 }
  0xfd   : > { %v13011_v2 = vpop.f32.mrb[3].mxu0 }
  0xff   : > { %11145 = vmatmul.mubr.msk.bf16.gmra.mrb[108].mxu0 %vm1107_vm2, %v12275_v61  ;;  %v12296_v61 = vld [vmem:[%s12891_s24 + $0x260] sm:$0xff]  }
 0x100   : > { %11148 = vmatprep.mubr.msk.bf16.mxu0 %vm1107_vm2, %v12276_v1 }
 0x102   : > { %v13016_v4 = vpop.f32.mrb[4].mxu0 }
 0x103   : > { %v13018_v5 = vpop.f32.mrb[5].mxu0 }
 0x104   : > { %v13020_v6 = vpop.f32.mrb[6].mxu0 }
 0x105   : > { %v13023_v8 = vpop.f32.mrb[7].mxu0 }
 0x107   : > { %11149 = vmatmul.mubr.msk.bf16.gmra.mrb[112].mxu0 %vm1107_vm2, %v12277_v3 }
 0x108   : > { %11152 = vmatprep.mubr.msk.bf16.mxu0 %vm1107_vm2, %v12278_v7 }
 0x10a   : > { %v13028_v10 = vpop.f32.mrb[8].mxu0 }
 0x10b   : > { %v13030_v11 = vpop.f32.mrb[9].mxu0 }
 0x10c   : > { %v13032_v12 = vpop.f32.mrb[10].mxu0 }
 0x10d   : > { %v13035_v14 = vpop.f32.mrb[11].mxu0 }
 0x10f   : > { %11153 = vmatmul.mubr.msk.bf16.gmra.mrb[116].mxu0 %vm1107_vm2, %v12279_v9  ;;  %v12297_v9 = vld [vmem:[%s12891_s24 + $0x268] sm:$0xff]  }
 0x110   : > { %11156 = vmatprep.mubr.msk.bf16.mxu0 %vm1107_vm2, %v12280_v13 }
 0x112   : > { %v13039_v15 = vpop.f32.mrb[12].mxu0 }
 0x113   : > { %v13041_v16 = vpop.f32.mrb[13].mxu0 }
 0x114   : > { %v13044_v18 = vpop.f32.mrb[14].mxu0 }
 0x115   : > { %v13047_v20 = vpop.f32.mrb[15].mxu0 }
 0x117   : > { %11157 = vmatmul.mubr.msk.bf16.gmra.mrb[120].mxu0 %vm1107_vm2, %v12281_v17  ;;  %v12298_v17 = vld [vmem:[%s12891_s24 + $0x270] sm:$0xff]  }
 0x118   : > { %11160 = vmatprep.mubr.msk.bf16.mxu0 %vm1107_vm2, %v12282_v19 }
 0x11a   : > { %v13051_v21 = vpop.f32.mrb[16].mxu0 }
 0x11b   : > { %v13053_v22 = vpop.f32.mrb[17].mxu0 }
 0x11c   : > { %v13056_v24 = vpop.f32.mrb[18].mxu0 }
 0x11d   : > { %v13059_v26 = vpop.f32.mrb[19].mxu0 }
 0x11f   : > { %11161 = vmatmul.mubr.msk.bf16.gmra.mrb[124].mxu0 %vm1107_vm2, %v12283_v23  ;;  %v13148_v23 = vld [vmem:[%s17174_s2] ss:$0 sm:$0xff] }
 0x120   : > { %11164 = vmatprep.mubr.msk.bf16.mxu0 %vm1107_vm2, %v12284_v25  ;;  %v1450_v25 = vadd.f32 %v13148_v23, %v13006_v63 }
 0x122   : > { %v13063_v27 = vpop.f32.mrb[20].mxu0 }
 0x123   : > { %v13065_v28 = vpop.f32.mrb[21].mxu0 }
 0x124   : > { %v13068_v30 = vpop.f32.mrb[22].mxu0 }
 0x125   : > { %v13071_v32 = vpop.f32.mrb[23].mxu0 }
 0x127   : > { %11165 = vmatmul.mubr.msk.bf16.gmra.mrb[128].mxu0 %vm1107_vm2, %v12285_v29 }
 0x128   : > { %11168 = vmatprep.mubr.msk.bf16.mxu0 %vm1107_vm2, %v12286_v31  ;;  %v1453_v31 = vadd.f32 %v13148_v23, %v13011_v2  ;;  %v1466_v2 = vadd.f32 %v13148_v23, %v13018_v5  ;;  %v12302_v5 = vld [vmem:[%s12891_s24 + $0x290] sm:$0xff]  }
 0x12a   : > { %v13075_v33 = vpop.f32.mrb[24].mxu0 }
 0x12b   : > { %v13077_v34 = vpop.f32.mrb[25].mxu0 }
 0x12c   : > { %v13080_v36 = vpop.f32.mrb[26].mxu0 }
 0x12d   : > { %v13083_v38 = vpop.f32.mrb[27].mxu0 }
 0x12f   : > { %11169 = vmatmul.mubr.msk.bf16.gmra.mrb[132].mxu0 %vm1107_vm2, %v12287_v35 }
 0x130   : > { %11172 = vmatprep.mubr.msk.bf16.mxu0 %vm1107_vm2, %v12288_v37 }
 0x132   : > { %v13087_v39 = vpop.f32.mrb[28].mxu0 }
 0x133   : > { %v13089_v40 = vpop.f32.mrb[29].mxu0 }
 0x134   : > { %v13092_v42 = vpop.f32.mrb[30].mxu0 }
 0x135   : > { %v13095_v44 = vpop.f32.mrb[31].mxu0 }
 0x137   : > { %11173 = vmatmul.mubr.msk.bf16.gmra.mrb[136].mxu0 %vm1107_vm2, %v12289_v41  ;;  %v12299_v41 = vld [vmem:[%s12891_s24 + $0x278] sm:$0xff]  }
 0x138   : > { %11176 = vmatprep.mubr.msk.bf16.mxu0 %vm1107_vm2, %v12290_v43 }
 0x13a   : > { %v13099_v45 = vpop.f32.mrb[32].mxu0 }
 0x13b   : > { %v13101_v46 = vpop.f32.mrb[33].mxu0 }
 0x13c   : > { %v13104_v48 = vpop.f32.mrb[34].mxu0 }
 0x13d   : > { %v13107_v50 = vpop.f32.mrb[35].mxu0 }
 0x13f   : > { %11177 = vmatmul.mubr.msk.bf16.gmra.mrb[140].mxu0 %vm1107_vm2, %v12291_v47  ;;  %v12300_v47 = vld [vmem:[%s12891_s24 + $0x280] sm:$0xff]  }
 0x140   : > { %11180 = vmatprep.mubr.msk.bf16.mxu0 %vm1107_vm2, %v12292_v49  ;;  %v2248_v49 = vmax.f32 %v1450_v25, 0.0  ;;  %v1458_v25 = vadd.f32 %v13004_v62, %v13148_v23 }
 0x142   : > { %v13111_v51 = vpop.f32.mrb[36].mxu0 }
 0x143   : > { %v13113_v52 = vpop.f32.mrb[37].mxu0 }
 0x144   : > { %v13116_v54 = vpop.f32.mrb[38].mxu0 }
 0x145   : > { %v13119_v56 = vpop.f32.mrb[39].mxu0 }
 0x147   : > { %11181 = vmatmul.mubr.msk.bf16.gmra.mrb[144].mxu0 %vm1107_vm2, %v12293_v53 }
 0x148   : > { %11184 = vmatprep.mubr.msk.bf16.mxu0 %vm1107_vm2, %v12294_v55 }
 0x14a   : > { %v13123_v57 = vpop.f32.mrb[40].mxu0 }
 0x14b   : > { %v13125_v58 = vpop.f32.mrb[41].mxu0 }
 0x14c   : > { %v13128_v60 = vpop.f32.mrb[42].mxu0 }
 0x14d   : > { %v13131_v1 = vpop.f32.mrb[43].mxu0 }
 0x14f   : > { %11185 = vmatmul.mubr.msk.bf16.gmra.mrb[148].mxu0 %vm1107_vm2, %v12295_v59 }
 0x150   : > { %11188 = vmatprep.mubr.msk.bf16.mxu0 %vm1107_vm2, %v12296_v61  ;;  %v2249_v61 = vmax.f32 %v1453_v31, 0.0  ;;  %v1469_v31 = vadd.f32 %v13148_v23, %v13023_v8 }
 0x152   : > { %v13135_v3 = vpop.f32.mrb[44].mxu0 }
 0x153   : > { %v13137_v7 = vpop.f32.mrb[45].mxu0 }
 0x154   : > { %v13140_v13 = vpop.f32.mrb[46].mxu0 }
 0x155   : > { %17278 = vst [vmem:[#allocation5_spill] sm:$0xff] %v13140_v13  ;;  %v13143_v19 = vpop.f32.mrb[47].mxu0  ;;  %v2253_v13 = vmax.f32 %v1469_v31, 0.0  ;;  %v1474_v31 = vadd.f32 %v13016_v4, %v13148_v23 }
 0x157   : > { %11189 = vmatmul.mubr.msk.bf16.gmra.mrb[152].mxu0 %vm1107_vm2, %v12297_v9 }
 0x158   : > { %11192 = vmatprep.mubr.msk.bf16.mxu0 %vm1107_vm2, %v12298_v17 }
 0x15a   : > { %v11086_v29 = vpop.f32.mrb[48].mxu0 }
 0x15b   : > { %v1650_v35 = vadd.f32 %v11086_v29, %v13148_v23  ;;  %v13157_v37 = vpop.f32.mrb[49].mxu0 }
 0x15c   : > { %v11087_v43 = vpop.f32.mrb[50].mxu0 }
 0x15d   : > { %v2298_v53 = vmax.f32 %v1650_v35, 0.0  ;;  %v1653_v55 = vadd.f32 %v11087_v43, %v13148_v23  ;;  %v13162_v59 = vpop.f32.mrb[51].mxu0 }
 0x15e   : > { %17279 = vst [vmem:[#allocation6_spill] sm:$0xff] %v13162_v59 }
 0x15f   : > { %v13164_v63 = vmax.f32 %v2248_v49, %v2298_v53  ;;  %v2299_v9 = vmax.f32 %v1653_v55, 0.0  ;;  %11193 = vmatmul.mubr.msk.bf16.gmra.mrb[156].mxu0 %vm1107_vm2, %v12299_v41  ;;  %v12301_v49 = vld [vmem:[%s12891_s24 + $0x288] sm:$0xff]   ;;  %v1461_v41 = vadd.f32 %v13008_v0, %v13148_v23  ;;  %v2252_v55 = vmax.f32 %v1466_v2, 0.0 }
 0x160   : > { %11196 = vmatprep.mubr.msk.bf16.mxu0 %vm1107_vm2, %v12300_v47 }
 0x161   : > { %17280 = vst [vmem:[#allocation7_spill] sm:$0xff] %v13164_v63  ;;  %v13170_v17 = vmax.f32 %v2249_v61, %v2299_v9  ;;  %v2251_v0 = vmax.f32 %v1461_v41, 0.0  ;;  %v12303_v41 = vld [vmem:[%s12891_s24 + $0x298] sm:$0xff]  }
 0x162   : > { %v11090_v29 = vpop.f32.mrb[52].mxu0 }
 0x163   : > { %17281 = vst [vmem:[#allocation8_spill] sm:$0xff] %v13170_v17  ;;  %v1666_v35 = vadd.f32 %v11090_v29, %v13148_v23  ;;  %v1657_v43 = vpop.f32.mrb[53].mxu0  ;;  %v2250_v17 = vmax.f32 %v1458_v25, 0.0  ;;  %v1482_v25 = vadd.f32 %v13148_v23, %v13030_v11 }
 0x164   : > { %v1658_v47 = vadd.f32 %v13148_v23, %v1657_v43  ;;  %v11091_v53 = vpop.f32.mrb[54].mxu0 }
 0x165   : > { %v2302_v61 = vmax.f32 %v1666_v35, 0.0  ;;  %v1669_v9 = vadd.f32 %v11091_v53, %v13148_v23  ;;  %v1660_v62 = vpop.f32.mrb[55].mxu0 }
 0x166   : > { %v2300_v63 = vmax.f32 %v1658_v47, 0.0  ;;  %v1661_v8 = vadd.f32 %v13148_v23, %v1660_v62  ;;  %v2254_v62 = vmax.f32 %v1474_v31, 0.0  ;;  %v1498_v31 = vadd.f32 %v13148_v23, %v13041_v16 }
 0x167   : > { %v13184_v29 = vmax.f32 %v2252_v55, %v2302_v61  ;;  %v2303_v59 = vmax.f32 %v1669_v9, 0.0  ;;  %11197 = vmatmul.mubr.msk.bf16.gmra.mrb[160].mxu0 %vm1107_vm2, %v12301_v49  ;;  %v1485_v49 = vadd.f32 %v13148_v23, %v13035_v14  ;;  %v2256_v55 = vmax.f32 %v1482_v25, 0.0 }
 0x168   : > { %v13187_v43 = vmax.f32 %v2250_v17, %v2300_v63  ;;  %v2301_v2 = vmax.f32 %v1661_v8, 0.0  ;;  %11200 = vmatprep.mubr.msk.bf16.mxu0 %vm1107_vm2, %v12302_v5  ;;  %v1477_v5 = vadd.f32 %v13020_v6, %v13148_v23 }
 0x169   : > { %v13192_v35 = vmax.f32 %v2253_v13, %v2303_v59  ;;  %v12304_v59 = vld [vmem:[%s12891_s24 + $0x2a0] sm:$0xff]  }
 0x16a   : > { %v13196_v47 = vmax.f32 %v2251_v0, %v2301_v2  ;;  %v11094_v53 = vpop.f32.mrb[56].mxu0  ;;  %v2257_v0 = vmax.f32 %v1485_v49, 0.0  ;;  %v2255_v6 = vmax.f32 %v1477_v5, 0.0  ;;  %v1490_v49 = vadd.f32 %v13028_v10, %v13148_v23 }
 0x16b   : > { %v1682_v63 = vadd.f32 %v11094_v53, %v13148_v23  ;;  %v1673_v17 = vpop.f32.mrb[57].mxu0 }
 0x16c   : > { %v1674_v11 = vadd.f32 %v13148_v23, %v1673_v17  ;;  %v11095_v13 = vpop.f32.mrb[58].mxu0 }
 0x16d   : > { %v2306_v61 = vmax.f32 %v1682_v63, 0.0  ;;  %v1685_v4 = vadd.f32 %v11095_v13, %v13148_v23  ;;  %v1676_v9 = vpop.f32.mrb[59].mxu0 }
 0x16e   : > { %v2304_v8 = vmax.f32 %v1674_v11, 0.0  ;;  %v1677_v14 = vadd.f32 %v13148_v23, %v1676_v9  ;;  %v12306_v9 = vld [vmem:[%s12891_s24 + $0x2b0] sm:$0xff]  }
 0x16f   : > { %v13208_v2 = vmax.f32 %v2256_v55, %v2306_v61  ;;  %v2307_v53 = vmax.f32 %v1685_v4, 0.0  ;;  %11201 = vmatmul.mubr.msk.bf16.gmra.mrb[164].mxu0 %vm1107_vm2, %v12303_v41  ;;  %v1501_v41 = vadd.f32 %v13148_v23, %v13047_v20  ;;  %v12305_v61 = vld [vmem:[%s12891_s24 + $0x2a8] sm:$0xff]  }
 0x170   : > { %v13211_v17 = vmax.f32 %v2254_v62, %v2304_v8  ;;  %v2305_v25 = vmax.f32 %v1677_v14, 0.0  ;;  %11204 = vmatprep.mubr.msk.bf16.mxu0 %vm1107_vm2, %v12304_v59  ;;  %v1493_v59 = vadd.f32 %v13032_v12, %v13148_v23  ;;  %v2260_v62 = vmax.f32 %v1498_v31, 0.0 }
 0x171   : > { %v13216_v63 = vmax.f32 %v2257_v0, %v2307_v53  ;;  %v2258_v0 = vmax.f32 %v1490_v49, 0.0  ;;  %v1514_v49 = vadd.f32 %v13148_v23, %v13053_v22  ;;  %v12308_v22 = vld [vmem:[%s12891_s24 + $0x2c0] sm:$0xff]  }
 0x172   : > { %v13220_v11 = vmax.f32 %v2255_v6, %v2305_v25  ;;  %v11098_v13 = vpop.f32.mrb[60].mxu0  ;;  %v2261_v6 = vmax.f32 %v1501_v41, 0.0  ;;  %v2259_v12 = vmax.f32 %v1493_v59, 0.0  ;;  %v1506_v41 = vadd.f32 %v13039_v15, %v13148_v23 }
 0x173   : > { %v1698_v5 = vadd.f32 %v11098_v13, %v13148_v23  ;;  %v1689_v55 = vpop.f32.mrb[61].mxu0 }
 0x174   : > { %v1690_v16 = vadd.f32 %v13148_v23, %v1689_v55  ;;  %v11099_v4 = vpop.f32.mrb[62].mxu0 }
 0x175   : > { %v2310_v8 = vmax.f32 %v1698_v5, 0.0  ;;  %v1701_v10 = vadd.f32 %v11099_v4, %v13148_v23  ;;  %v1692_v14 = vpop.f32.mrb[63].mxu0 }
 0x176   : > { %v2308_v53 = vmax.f32 %v1690_v16, 0.0  ;;  %v1693_v20 = vadd.f32 %v13148_v23, %v1692_v14 }
 0x177   : > { %v13232_v25 = vmax.f32 %v2260_v62, %v2310_v8  ;;  %v2311_v13 = vmax.f32 %v1701_v10, 0.0  ;;  %11205 = vmatmul.mubr.msk.bf16.gmra.mrb[168].mxu0 %vm1107_vm2, %v12305_v61  ;;  %v1517_v62 = vadd.f32 %v13148_v23, %v13059_v26  ;;  %v12307_v8 = vld [vmem:[%s12891_s24 + $0x2b8] sm:$0xff]  }
 0x178   : > { %v13235_v55 = vmax.f32 %v2258_v0, %v2308_v53  ;;  %v2309_v31 = vmax.f32 %v1693_v20, 0.0  ;;  %11208 = vmatprep.mubr.msk.bf16.mxu0 %vm1107_vm2, %v12306_v9  ;;  %v1509_v9 = vadd.f32 %v13044_v18, %v13148_v23  ;;  %v2264_v0 = vmax.f32 %v1514_v49, 0.0 }
 0x179   : > { %v13238_v5 = vmax.f32 %v2261_v6, %v2311_v13  ;;  %v2262_v6 = vmax.f32 %v1506_v41, 0.0  ;;  %v2265_v26 = vmax.f32 %v1517_v62, 0.0  ;;  %v1530_v41 = vadd.f32 %v13148_v23, %v13065_v28 }
 0x17a   : > { %v13244_v16 = vmax.f32 %v2259_v12, %v2309_v31  ;;  %v11102_v4 = vpop.f32.mrb[64].mxu0  ;;  %v2263_v18 = vmax.f32 %v1509_v9, 0.0  ;;  %v1522_v62 = vadd.f32 %v13051_v21, %v13148_v23  ;;  %v1525_v28 = vadd.f32 %v13056_v24, %v13148_v23 }
 0x17b   : > { %v1714_v61 = vadd.f32 %v11102_v4, %v13148_v23  ;;  %v1705_v59 = vpop.f32.mrb[65].mxu0 }
 0x17c   : > { %v1706_v10 = vadd.f32 %v13148_v23, %v1705_v59  ;;  %v11103_v14 = vpop.f32.mrb[66].mxu0  ;;  %v2266_v21 = vmax.f32 %v1522_v62, 0.0  ;;  %v2267_v24 = vmax.f32 %v1525_v28, 0.0  ;;  %v1546_v62 = vadd.f32 %v13148_v23, %v13077_v34 }
 0x17d   : > { %v2314_v53 = vmax.f32 %v1714_v61, 0.0  ;;  %v1717_v15 = vadd.f32 %v11103_v14, %v13148_v23  ;;  %v1708_v20 = vpop.f32.mrb[67].mxu0 }
 0x17e   : > { %v2312_v13 = vmax.f32 %v1706_v10, 0.0  ;;  %v1709_v12 = vadd.f32 %v13148_v23, %v1708_v20  ;;  %v12310_v20 = vld [vmem:[%s12891_s24 + $0x2d0] sm:$0xff]  }
 0x17f   : > { %v13256_v31 = vmax.f32 %v2264_v0, %v2314_v53  ;;  %v2315_v4 = vmax.f32 %v1717_v15, 0.0  ;;  %11209 = vmatmul.mubr.msk.bf16.gmra.mrb[172].mxu0 %vm1107_vm2, %v12307_v8  ;;  %v1533_v8 = vadd.f32 %v13148_v23, %v13071_v32  ;;  %v12309_v53 = vld [vmem:[%s12891_s24 + $0x2c8] sm:$0xff]  }
 0x180   : > { %v13259_v59 = vmax.f32 %v2262_v6, %v2312_v13  ;;  %v2313_v49 = vmax.f32 %v1709_v12, 0.0  ;;  %11212 = vmatprep.mubr.msk.bf16.mxu0 %vm1107_vm2, %v12308_v22  ;;  %v2268_v6 = vmax.f32 %v1530_v41, 0.0 }
 0x181   : > { %v13264_v61 = vmax.f32 %v2265_v26, %v2315_v4 }
 0x182   : > { %v13266_v10 = vmax.f32 %v2263_v18, %v2313_v49  ;;  %v11106_v14 = vpop.f32.mrb[68].mxu0  ;;  %v2269_v18 = vmax.f32 %v1533_v8, 0.0  ;;  %v1538_v8 = vadd.f32 %v13063_v27, %v13148_v23 }
 0x183   : > { %v1730_v9 = vadd.f32 %v11106_v14, %v13148_v23  ;;  %v1721_v0 = vpop.f32.mrb[69].mxu0 }
 0x184   : > { %17282 = vst [vmem:[#allocation9_spill] sm:$0xff] %v13266_v10  ;;  %v1722_v22 = vadd.f32 %v13148_v23, %v1721_v0  ;;  %v11107_v15 = vpop.f32.mrb[70].mxu0 }
 0x185   : > { %v2318_v13 = vmax.f32 %v1730_v9, 0.0  ;;  %v1733_v12 = vadd.f32 %v11107_v15, %v13148_v23  ;;  %v1724_v26 = vpop.f32.mrb[71].mxu0 }
 0x186   : > { %v2316_v4 = vmax.f32 %v1722_v22, 0.0  ;;  %v1725_v32 = vadd.f32 %v13148_v23, %v1724_v26  ;;  %v12312_v26 = vld [vmem:[%s12891_s24 + $0x2e0] sm:$0xff]  }
 0x187   : > { %v13280_v49 = vmax.f32 %v2268_v6, %v2318_v13  ;;  %v2319_v14 = vmax.f32 %v1733_v12, 0.0  ;;  %11213 = vmatmul.mubr.msk.bf16.gmra.mrb[176].mxu0 %vm1107_vm2, %v12309_v53  ;;  %v1549_v53 = vadd.f32 %v13148_v23, %v13083_v38  ;;  %v12311_v13 = vld [vmem:[%s12891_s24 + $0x2d8] sm:$0xff]  }
 0x188   : > { %v13283_v0 = vmax.f32 %v2266_v21, %v2316_v4  ;;  %v2317_v41 = vmax.f32 %v1725_v32, 0.0  ;;  %11216 = vmatprep.mubr.msk.bf16.mxu0 %vm1107_vm2, %v12310_v20  ;;  %v1541_v20 = vadd.f32 %v13068_v30, %v13148_v23  ;;  %v2272_v21 = vmax.f32 %v1546_v62, 0.0 }
 0x189   : > { %17283 = vst [vmem:[#allocation10_spill] sm:$0xff] %v13280_v49  ;;  %v13288_v9 = vmax.f32 %v2269_v18, %v2319_v14  ;;  %v2270_v18 = vmax.f32 %v1538_v8, 0.0  ;;  %v1562_v8 = vadd.f32 %v13148_v23, %v13089_v40 }
 0x18a   : > { %17284 = vst [vmem:[#allocation11_spill] sm:$0xff] %v13283_v0  ;;  %v13292_v22 = vmax.f32 %v2267_v24, %v2317_v41  ;;  %v11110_v15 = vpop.f32.mrb[72].mxu0  ;;  %v2273_v24 = vmax.f32 %v1549_v53, 0.0  ;;  %v2271_v30 = vmax.f32 %v1541_v20, 0.0  ;;  %v1554_v53 = vadd.f32 %v13075_v33, %v13148_v23 }
 0x18b   : > { %17285 = vst [vmem:[#allocation12_spill] sm:$0xff] %v13288_v9  ;;  %v1746_v6 = vadd.f32 %v11110_v15, %v13148_v23  ;;  %v1737_v28 = vpop.f32.mrb[73].mxu0 }
 0x18c   : > { %17286 = vst [vmem:[#allocation13_spill] sm:$0xff] %v13292_v22  ;;  %v1738_v34 = vadd.f32 %v13148_v23, %v1737_v28  ;;  %v11111_v12 = vpop.f32.mrb[74].mxu0 }
 0x18d   : > { %v2322_v4 = vmax.f32 %v1746_v6, 0.0  ;;  %v1749_v27 = vadd.f32 %v11111_v12, %v13148_v23  ;;  %v1740_v32 = vpop.f32.mrb[75].mxu0 }
 0x18e   : > { %v2320_v14 = vmax.f32 %v1738_v34, 0.0  ;;  %v1741_v38 = vadd.f32 %v13148_v23, %v1740_v32  ;;  %v12314_v32 = vld [vmem:[%s12891_s24 + $0x2f0] sm:$0xff]  }
 0x18f   : > { %v13304_v41 = vmax.f32 %v2272_v21, %v2322_v4  ;;  %v2323_v15 = vmax.f32 %v1749_v27, 0.0  ;;  %11217 = vmatmul.mubr.msk.bf16.gmra.mrb[180].mxu0 %vm1107_vm2, %v12311_v13  ;;  %v1565_v13 = vadd.f32 %v13148_v23, %v13095_v44  ;;  %v12313_v4 = vld [vmem:[%s12891_s24 + $0x2e8] sm:$0xff]  }
 0x190   : > { %v13307_v28 = vmax.f32 %v2270_v18, %v2320_v14  ;;  %v2321_v62 = vmax.f32 %v1741_v38, 0.0  ;;  %11220 = vmatprep.mubr.msk.bf16.mxu0 %vm1107_vm2, %v12312_v26  ;;  %v1557_v26 = vadd.f32 %v13080_v36, %v13148_v23  ;;  %v2276_v18 = vmax.f32 %v1562_v8, 0.0 }
 0x191   : > { %17287 = vst [vmem:[#allocation14_spill] sm:$0xff] %v13304_v41  ;;  %v13312_v6 = vmax.f32 %v2273_v24, %v2323_v15  ;;  %v2274_v24 = vmax.f32 %v1554_v53, 0.0  ;;  %v1578_v53 = vadd.f32 %v13148_v23, %v13101_v46 }
 0x192   : > { %17288 = vst [vmem:[#allocation15_spill] sm:$0xff] %v13307_v28  ;;  %v13316_v34 = vmax.f32 %v2271_v30, %v2321_v62  ;;  %v11114_v12 = vpop.f32.mrb[76].mxu0  ;;  %v2277_v30 = vmax.f32 %v1565_v13, 0.0  ;;  %v2275_v36 = vmax.f32 %v1557_v26, 0.0  ;;  %v1570_v13 = vadd.f32 %v13087_v39, %v13148_v23 }
 0x193   : > { %17289 = vst [vmem:[#allocation16_spill] sm:$0xff] %v13312_v6  ;;  %v1762_v20 = vadd.f32 %v11114_v12, %v13148_v23  ;;  %v1753_v21 = vpop.f32.mrb[77].mxu0 }
 0x194   : > { %17290 = vst [vmem:[#allocation17_spill] sm:$0xff] %v13316_v34  ;;  %v1754_v40 = vadd.f32 %v13148_v23, %v1753_v21  ;;  %v11115_v27 = vpop.f32.mrb[78].mxu0 }
 0x195   : > { %v2326_v14 = vmax.f32 %v1762_v20, 0.0  ;;  %v1765_v33 = vadd.f32 %v11115_v27, %v13148_v23  ;;  %v1756_v38 = vpop.f32.mrb[79].mxu0 }
 0x196   : > { %v2324_v15 = vmax.f32 %v1754_v40, 0.0  ;;  %v1757_v44 = vadd.f32 %v13148_v23, %v1756_v38  ;;  %v12316_v38 = vld [vmem:[%s12891_s24 + $0x300] sm:$0xff]  }
 0x197   : > { %v13328_v62 = vmax.f32 %v2276_v18, %v2326_v14  ;;  %v2327_v12 = vmax.f32 %v1765_v33, 0.0  ;;  %11221 = vmatmul.mubr.msk.bf16.gmra.mrb[184].mxu0 %vm1107_vm2, %v12313_v4  ;;  %v1581_v4 = vadd.f32 %v13148_v23, %v13107_v50  ;;  %v12315_v14 = vld [vmem:[%s12891_s24 + $0x2f8] sm:$0xff]  }
 0x198   : > { %v13331_v21 = vmax.f32 %v2274_v24, %v2324_v15  ;;  %v2325_v8 = vmax.f32 %v1757_v44, 0.0  ;;  %11224 = vmatprep.mubr.msk.bf16.mxu0 %vm1107_vm2, %v12314_v32  ;;  %v1573_v32 = vadd.f32 %v13092_v42, %v13148_v23  ;;  %v2280_v24 = vmax.f32 %v1578_v53, 0.0 }
 0x199   : > { %17291 = vst [vmem:[#allocation18_spill] sm:$0xff] %v13328_v62  ;;  %v13336_v20 = vmax.f32 %v2277_v30, %v2327_v12  ;;  %v2278_v30 = vmax.f32 %v1570_v13, 0.0  ;;  %v1594_v13 = vadd.f32 %v13148_v23, %v13113_v52 }
 0x19a   : > { %17292 = vst [vmem:[#allocation19_spill] sm:$0xff] %v13331_v21  ;;  %v13340_v40 = vmax.f32 %v2275_v36, %v2325_v8  ;;  %v11118_v27 = vpop.f32.mrb[80].mxu0  ;;  %v2281_v36 = vmax.f32 %v1581_v4, 0.0  ;;  %v2279_v42 = vmax.f32 %v1573_v32, 0.0  ;;  %v1586_v4 = vadd.f32 %v13099_v45, %v13148_v23 }
 0x19b   : > { %17293 = vst [vmem:[#allocation20_spill] sm:$0xff] %v13336_v20  ;;  %v1778_v26 = vadd.f32 %v11118_v27, %v13148_v23  ;;  %v1769_v18 = vpop.f32.mrb[81].mxu0 }
 0x19c   : > { %17294 = vst [vmem:[#allocation21_spill] sm:$0xff] %v13340_v40  ;;  %v1770_v46 = vadd.f32 %v13148_v23, %v1769_v18  ;;  %v11119_v33 = vpop.f32.mrb[82].mxu0 }
 0x19d   : > { %v2330_v15 = vmax.f32 %v1778_v26, 0.0  ;;  %v1781_v39 = vadd.f32 %v11119_v33, %v13148_v23  ;;  %v1772_v44 = vpop.f32.mrb[83].mxu0 }
 0x19e   : > { %v2328_v12 = vmax.f32 %v1770_v46, 0.0  ;;  %v1773_v50 = vadd.f32 %v13148_v23, %v1772_v44  ;;  %v12318_v44 = vld [vmem:[%s12891_s24 + $0x310] sm:$0xff]  }
 0x19f   : > { %v13352_v8 = vmax.f32 %v2280_v24, %v2330_v15  ;;  %v2331_v27 = vmax.f32 %v1781_v39, 0.0  ;;  %11225 = vmatmul.mubr.msk.bf16.gmra.mrb[188].mxu0 %vm1107_vm2, %v12315_v14  ;;  %v1597_v14 = vadd.f32 %v13148_v23, %v13119_v56  ;;  %v12317_v15 = vld [vmem:[%s12891_s24 + $0x308] sm:$0xff]  }
 0x1a0   : > { %v13355_v18 = vmax.f32 %v2278_v30, %v2328_v12  ;;  %v2329_v53 = vmax.f32 %v1773_v50, 0.0  ;;  %11228 = vmatprep.mubr.msk.bf16.mxu0 %vm1107_vm2, %v12316_v38  ;;  %v1589_v38 = vadd.f32 %v13104_v48, %v13148_v23  ;;  %v2284_v30 = vmax.f32 %v1594_v13, 0.0 }
 0x1a1   : > { %17295 = vst [vmem:[#allocation22_spill] sm:$0xff] %v13352_v8  ;;  %v13360_v26 = vmax.f32 %v2281_v36, %v2331_v27  ;;  %v2282_v36 = vmax.f32 %v1586_v4, 0.0  ;;  %v1610_v13 = vadd.f32 %v13148_v23, %v13125_v58 }
 0x1a2   : > { %17296 = vst [vmem:[#allocation23_spill] sm:$0xff] %v13355_v18  ;;  %v13364_v46 = vmax.f32 %v2279_v42, %v2329_v53  ;;  %v11122_v33 = vpop.f32.mrb[84].mxu0  ;;  %v2285_v42 = vmax.f32 %v1597_v14, 0.0  ;;  %v2283_v48 = vmax.f32 %v1589_v38, 0.0  ;;  %v1602_v14 = vadd.f32 %v13111_v51, %v13148_v23 }
 0x1a3   : > { %17297 = vst [vmem:[#allocation24_spill] sm:$0xff] %v13360_v26  ;;  %v1794_v32 = vadd.f32 %v11122_v33, %v13148_v23  ;;  %v1785_v24 = vpop.f32.mrb[85].mxu0 }
 0x1a4   : > { %17298 = vst [vmem:[#allocation25_spill] sm:$0xff] %v13364_v46  ;;  %v1786_v52 = vadd.f32 %v13148_v23, %v1785_v24  ;;  %v11123_v39 = vpop.f32.mrb[86].mxu0 }
 0x1a5   : > { %v2334_v12 = vmax.f32 %v1794_v32, 0.0  ;;  %v1797_v45 = vadd.f32 %v11123_v39, %v13148_v23  ;;  %v1788_v50 = vpop.f32.mrb[87].mxu0 }
 0x1a6   : > { %v2332_v27 = vmax.f32 %v1786_v52, 0.0  ;;  %v1789_v56 = vadd.f32 %v13148_v23, %v1788_v50 }
 0x1a7   : > { %v13376_v53 = vmax.f32 %v2284_v30, %v2334_v12  ;;  %v2335_v33 = vmax.f32 %v1797_v45, 0.0  ;;  %11229 = vmatmul.mubr.msk.bf16.gmra.mrb[192].mxu0 %vm1107_vm2, %v12317_v15  ;;  %v1613_v15 = vadd.f32 %v13148_v23, %v13131_v1  ;;  %v12319_v30 = vld [vmem:[%s12891_s24 + $0x318] sm:$0xff]   ;;  %v2288_v45 = vmax.f32 %v1610_v13, 0.0  ;;  %s12765_s24 = smov 64  }
 0x1a8   : > { %v13379_v24 = vmax.f32 %v2282_v36, %v2332_v27  ;;  %v2333_v46 = vmax.f32 %v1789_v56, 0.0  ;;  %11232 = vmatprep.mubr.msk.bf16.mxu0 %vm1107_vm2, %v12318_v44  ;;  %v1605_v44 = vadd.f32 %v13116_v54, %v13148_v23  ;;  %v2286_v36 = vmax.f32 %v1602_v14, 0.0 }
 0x1a9   : > { %17299 = vst [vmem:[#allocation26_spill] sm:$0xff] %v13376_v53  ;;  %v13384_v4 = vmax.f32 %v2285_v42, %v2335_v33  ;;  %v2289_v1 = vmax.f32 %v1613_v15, 0.0  ;;  %v1626_v13 = vadd.f32 %v13148_v23, %v13137_v7  ;;  %v1618_v14 = vadd.f32 %v13123_v57, %v13148_v23 }
 0x1aa   : > { %17300 = vst [vmem:[#allocation27_spill] sm:$0xff] %v13379_v24  ;;  %v13388_v32 = vmax.f32 %v2283_v48, %v2333_v46  ;;  %v11126_v52 = vpop.f32.mrb[88].mxu0  ;;  %v2287_v48 = vmax.f32 %v1605_v44, 0.0 }
 0x1ab   : > { %17301 = vst [vmem:[#allocation28_spill] sm:$0xff] %v13384_v4  ;;  %v1810_v38 = vadd.f32 %v11126_v52, %v13148_v23  ;;  %v1801_v39 = vpop.f32.mrb[89].mxu0 }
 0x1ac   : > { %17302 = vst [vmem:[#allocation29_spill] sm:$0xff] %v13388_v32  ;;  %v1802_v58 = vadd.f32 %v13148_v23, %v1801_v39  ;;  %v11127_v12 = vpop.f32.mrb[90].mxu0 }
 0x1ad   : > { %v2338_v50 = vmax.f32 %v1810_v38, 0.0  ;;  %v1813_v51 = vadd.f32 %v11127_v12, %v13148_v23  ;;  %v1804_v46 = vpop.f32.mrb[91].mxu0  ;;  %v1621_v12 = vadd.f32 %v13128_v60, %v13148_v23 }
 0x1ae   : > { %v2336_v27 = vmax.f32 %v1802_v58, 0.0  ;;  %v1805_v56 = vadd.f32 %v13148_v23, %v1804_v46  ;;  %v1629_v58 = vadd.f32 %v13148_v23, %v13143_v19 }
 0x1af   : > { %v13399_v42 = vmax.f32 %v2288_v45, %v2338_v50  ;;  %v2339_v33 = vmax.f32 %v1813_v51, 0.0  ;;  %11233 = vmatmul.mubr.msk.bf16.gmra.mrb[196].mxu0 %vm1107_vm2, %v12319_v30  ;;  %v2292_v50 = vmax.f32 %v1626_v13, 0.0 }
 0x1b0   : > { %v13402_v54 = vmax.f32 %v2286_v36, %v2336_v27  ;;  %v2337_v52 = vmax.f32 %v1805_v56, 0.0  ;;  %v2290_v36 = vmax.f32 %v1618_v14, 0.0 }
 0x1b1   : > { %17303 = vst [vmem:[#allocation30_spill] sm:$0xff] %v13399_v42  ;;  %v13406_v38 = vmax.f32 %v2289_v1, %v2339_v33  ;;  %v2293_v1 = vmax.f32 %v1629_v58, 0.0 }
 0x1b2   : > { %17304 = vst [vmem:[#allocation31_spill] sm:$0xff] %v13402_v54  ;;  %v13410_v39 = vmax.f32 %v2287_v48, %v2337_v52  ;;  %v11130_v15 = vpop.f32.mrb[92].mxu0  ;;  %v2291_v48 = vmax.f32 %v1621_v12, 0.0 }
 0x1b3   : > { %17305 = vst [vmem:[#allocation32_spill] sm:$0xff] %v13406_v38  ;;  %v1826_v30 = vadd.f32 %v11130_v15, %v13148_v23  ;;  %v1817_v44 = vpop.f32.mrb[93].mxu0  ;;  %v1642_v15 = vadd.f32 %v13148_v23, %v13157_v37 }
 0x1b4   : > { %17306 = vst [vmem:[#allocation33_spill] sm:$0xff] %v13410_v39  ;;  %v1818_v45 = vadd.f32 %v13148_v23, %v1817_v44  ;;  %v11131_v7 = vpop.f32.mrb[94].mxu0 }
 0x1b5   : > { %v2342_v51 = vmax.f32 %v1826_v30, 0.0  ;;  %v1829_v46 = vadd.f32 %v11131_v7, %v13148_v23  ;;  %v1820_v57 = vpop.f32.mrb[95].mxu0  ;;  %v1634_v30 = vadd.f32 %v13135_v3, %v13148_v23 }
 0x1b6   : > { %v2340_v27 = vmax.f32 %v1818_v45, 0.0  ;;  %v1821_v56 = vadd.f32 %v13148_v23, %v1820_v57  ;;  %v17311_v45 = vld [vmem:[#allocation6_spill] sm:$0xff]  ;;  %v2296_v57 = vmax.f32 %v1642_v15, 0.0 }
 0x1b7   : > { %v13420_v19 = vmax.f32 %v2292_v50, %v2342_v51  ;;  %v2343_v33 = vmax.f32 %v1829_v46, 0.0  ;;  %v1645_v58 = vadd.f32 %v13148_v23, %v17311_v45  ;;  %v17312_v50 = vld [vmem:[#allocation5_spill] sm:$0xff] }
 0x1b8   : > { %v13422_v52 = vmax.f32 %v2290_v36, %v2340_v27  ;;  %v2341_v60 = vmax.f32 %v1821_v56, 0.0  ;;  %v1637_v51 = vadd.f32 %v17312_v50, %v13148_v23  ;;  %v2294_v56 = vmax.f32 %v1634_v30, 0.0 }
 0x1b9   : > { %17307 = vst [vmem:[#allocation34_spill] sm:$0xff] %v13420_v19  ;;  %v13426_v13 = vmax.f32 %v2293_v1, %v2343_v33 }
 0x1ba   : > { %17308 = vst [vmem:[#allocation35_spill] sm:$0xff] %v13422_v52  ;;  %v13430_v14 = vmax.f32 %v2291_v48, %v2341_v60  ;;  %v11134_v44 = vpop.f32.mrb[96].mxu0  ;;  %v2297_v48 = vmax.f32 %v1645_v58, 0.0  ;;  %v2295_v45 = vmax.f32 %v1637_v51, 0.0 }
 0x1bb   : > { %17309 = vst [vmem:[#allocation36_spill] sm:$0xff] %v13426_v13  ;;  %v1842_v7 = vadd.f32 %v11134_v44, %v13148_v23  ;;  %v1833_v12 = vpop.f32.mrb[97].mxu0 }
 0x1bc   : > { %17310 = vst [vmem:[#allocation37_spill] sm:$0xff] %v13430_v14  ;;  %v1834_v46 = vadd.f32 %v13148_v23, %v1833_v12  ;;  %v11135_v37 = vpop.f32.mrb[98].mxu0 }
 0x1bd   : > { %v2346_v36 = vmax.f32 %v1842_v7, 0.0  ;;  %v1845_v27 = vadd.f32 %v11135_v37, %v13148_v23  ;;  %v1836_v3 = vpop.f32.mrb[99].mxu0 }
 0x1be   : > { %v2344_v1 = vmax.f32 %v1834_v46, 0.0  ;;  %v1837_v33 = vadd.f32 %v13148_v23, %v1836_v3 }
 0x1bf   : > { %v13440_v60 = vmax.f32 %v2296_v57, %v2346_v36  ;;  %v2347_v44 = vmax.f32 %v1845_v27, 0.0 }
 0x1c0   : > { %v13442_v14 = vmax.f32 %v2294_v56, %v2344_v1  ;;  %v2345_v50 = vmax.f32 %v1837_v33, 0.0 }
 0x1c1   : > { %17313 = vst [vmem:[#allocation6_spill] sm:$0xff] %v13440_v60  ;;  %v13444_v13 = vmax.f32 %v2297_v48, %v2347_v44 }
 0x1c2   : > { %17314 = vst [vmem:[#allocation5_spill] sm:$0xff] %v13442_v14  ;;  %v13446_v12 = vmax.f32 %v2295_v45, %v2345_v50  ;;  %v11138_v15 = vpop.f32.mrb[100].mxu0 }
 0x1c3   : > { %17315 = vst [vmem:[#allocation38_spill] sm:$0xff] %v13444_v13  ;;  %v1849_v7 = vpop.f32.mrb[101].mxu0 }
 0x1c4   : > { %17316 = vst [vmem:[#allocation39_spill] sm:$0xff] %v13446_v12  ;;  %v11139_v37 = vpop.f32.mrb[102].mxu0 }
 0x1c5   : > { %v1852_v52 = vpop.f32.mrb[103].mxu0 }
 0x1ca   : > { %v11142_v30 = vpop.f32.mrb[104].mxu0 }
 0x1cb   : > { %v1865_v46 = vpop.f32.mrb[105].mxu0 }
 0x1cc   : > { %v11143_v19 = vpop.f32.mrb[106].mxu0 }
 0x1cd   : > { %v1868_v3 = vpop.f32.mrb[107].mxu0 }
 0x1d2   : > { %v11146_v58 = vpop.f32.mrb[108].mxu0 }
 0x1d3   : > { %v1881_v57 = vpop.f32.mrb[109].mxu0 }
 0x1d4   : > { %v11147_v36 = vpop.f32.mrb[110].mxu0 }
 0x1d5   : > { %v1884_v27 = vpop.f32.mrb[111].mxu0 }
 0x1da   : > { %v11150_v51 = vpop.f32.mrb[112].mxu0 }
 0x1db   : > { %v1897_v56 = vpop.f32.mrb[113].mxu0 }
 0x1dc   : > { %v11151_v1 = vpop.f32.mrb[114].mxu0 }
 0x1dd   : > { %v13448_v33 = vpop.f32.mrb[115].mxu0 }
 0x1e2   : > { %v13450_v48 = vpop.f32.mrb[116].mxu0 }
 0x1e3   : > { %v13452_v44 = vpop.f32.mrb[117].mxu0 }
 0x1e4   : > { %v13454_v45 = vpop.f32.mrb[118].mxu0 }
 0x1e5   : > { %v13456_v50 = vpop.f32.mrb[119].mxu0 }
 0x1ea   : > { %v13458_v12 = vpop.f32.mrb[120].mxu0 }
 0x1eb   : > { %v13460_v13 = vpop.f32.mrb[121].mxu0 }
 0x1ec   : > { %v13462_v14 = vpop.f32.mrb[122].mxu0 }
 0x1ed   : > { %v13464_v60 = vpop.f32.mrb[123].mxu0 }
 0x1f2   : > { %v13466_v39 = vpop.f32.mrb[124].mxu0 }
 0x1f3   : > { %v13468_v38 = vpop.f32.mrb[125].mxu0 }
 0x1f4   : > { %v13470_v54 = vpop.f32.mrb[126].mxu0 }
 0x1f5   : > { %v13472_v42 = vpop.f32.mrb[127].mxu0 }
 0x1fa   : > { %v13474_v32 = vpop.f32.mrb[128].mxu0 }
 0x1fb   : > { %v13476_v4 = vpop.f32.mrb[129].mxu0 }
 0x1fc   : > { %v13478_v24 = vpop.f32.mrb[130].mxu0 }
 0x1fd   : > { %v13480_v53 = vpop.f32.mrb[131].mxu0 }
 0x202   : > { %v13482_v26 = vpop.f32.mrb[132].mxu0 }
 0x203   : > { %v13484_v18 = vpop.f32.mrb[133].mxu0 }
 0x204   : > { %v13486_v8 = vpop.f32.mrb[134].mxu0 }
 0x205   : > { %v13488_v40 = vpop.f32.mrb[135].mxu0 }
 0x206   : > { %17317 = vst [vmem:[#allocation40_spill] sm:$0xff] %v13488_v40 }
 0x20a   : > { %v13490_v20 = vpop.f32.mrb[136].mxu0 }
 0x20b   : > { %17318 = vst [vmem:[#allocation41_spill] sm:$0xff] %v13490_v20  ;;  %v13492_v21 = vpop.f32.mrb[137].mxu0 }
 0x20c   : > { %17319 = vst [vmem:[#allocation42_spill] sm:$0xff] %v13492_v21  ;;  %v13494_v62 = vpop.f32.mrb[138].mxu0  ;;  %v13513_v21 = vadd.f32 %v11138_v15, %v13148_v23  ;;  %v13532_v15 = vadd.f32 %v13148_v23, %v1868_v3 }
 0x20d   : > { %17320 = vst [vmem:[#allocation43_spill] sm:$0xff] %v13494_v62  ;;  %v13496_v34 = vpop.f32.mrb[139].mxu0  ;;  %v1850_v62 = vadd.f32 %v13148_v23, %v1849_v7  ;;  %v13535_v7 = vadd.f32 %v11146_v58, %v13148_v23  ;;  %v13547_v58 = vadd.f32 %v11147_v36, %v13148_v23  ;;  %v13564_v36 = vadd.f32 %v11151_v1, %v13148_v23  ;;  %v17334_v1 = vld [vmem:[#allocation8_spill] sm:$0xff] }
 0x20e   : > { %17321 = vst [vmem:[#allocation44_spill] sm:$0xff] %v13496_v34 }
 0x212   : > { %v13498_v6 = vpop.f32.mrb[140].mxu0 }
 0x213   : > { %17322 = vst [vmem:[#allocation45_spill] sm:$0xff] %v13498_v6  ;;  %v13500_v28 = vpop.f32.mrb[141].mxu0  ;;  %v13519_v6 = vadd.f32 %v11139_v37, %v13148_v23  ;;  %v13538_v37 = vadd.f32 %v13148_v23, %v1881_v57 }
 0x214   : > { %17323 = vst [vmem:[#allocation46_spill] sm:$0xff] %v13500_v28  ;;  %v13502_v41 = vpop.f32.mrb[142].mxu0 }
 0x215   : > { %17324 = vst [vmem:[#allocation47_spill] sm:$0xff] %v13502_v41  ;;  %v13504_v22 = vpop.f32.mrb[143].mxu0  ;;  %v1853_v41 = vadd.f32 %v13148_v23, %v1852_v52 }
 0x216   : > { %17325 = vst [vmem:[#allocation48_spill] sm:$0xff] %v13504_v22  ;;  %v13523_v22 = vadd.f32 %v11142_v30, %v13148_v23  ;;  %v13561_v30 = vadd.f32 %v13148_v23, %v1897_v56  ;;  %v13583_v56 = vadd.f32 %v13454_v45, %v13148_v23  ;;  %v13598_v45 = vadd.f32 %v13148_v23, %v13460_v13 }
 0x217   : > { %v13610_v13 = vadd.f32 %v13462_v14, %v13148_v23  ;;  %v13623_v14 = vadd.f32 %v13466_v39, %v13148_v23 }
 0x21a   : > { %v13506_v9 = vpop.f32.mrb[144].mxu0 }
 0x21b   : > { %17326 = vst [vmem:[#allocation49_spill] sm:$0xff] %v13506_v9  ;;  %v13508_v0 = vpop.f32.mrb[145].mxu0  ;;  %v13526_v9 = vadd.f32 %v13148_v23, %v1865_v46  ;;  %v13555_v46 = vadd.f32 %v13148_v23, %v1884_v27  ;;  %v13575_v27 = vadd.f32 %v13450_v48, %v13148_v23 }
 0x21c   : > { %17327 = vst [vmem:[#allocation50_spill] sm:$0xff] %v13508_v0  ;;  %v13510_v49 = vpop.f32.mrb[146].mxu0  ;;  %v2349_v0 = vmax.f32 %v1853_v41, 0.0 }
 0x21d   : > { %17328 = vst [vmem:[#allocation51_spill] sm:$0xff] %v13510_v49  ;;  %v13516_v34 = vpop.f32.mrb[147].mxu0  ;;  %v13529_v49 = vadd.f32 %v11143_v19, %v13148_v23  ;;  %v2352_v19 = vmax.f32 %v13526_v9, 0.0  ;;  %v13558_v9 = vadd.f32 %v11150_v51, %v13148_v23  ;;  %v13579_v51 = vadd.f32 %v13148_v23, %v13452_v44 }
 0x21e   : > { %17329 = vst [vmem:[#allocation52_spill] sm:$0xff] %v13516_v34  ;;  %v2348_v34 = vmax.f32 %v1850_v62, 0.0  ;;  %v13571_v62 = vadd.f32 %v13148_v23, %v13448_v33  ;;  %v13594_v44 = vadd.f32 %v13458_v12, %v13148_v23 }
 0x222   : > { %v11186_v28 = vpop.f32.mrb[148].mxu0 }
 0x223   : > { %v2050_v57 = vadd.f32 %v11186_v28, %v13148_v23  ;;  %v13550_v10 = vpop.f32.mrb[149].mxu0 }
 0x224   : > { %17330 = vst [vmem:[#allocation53_spill] sm:$0xff] %v13550_v10  ;;  %v11187_v3 = vpop.f32.mrb[150].mxu0 }
 0x225   : > { %v2398_v28 = vmax.f32 %v2050_v57, 0.0  ;;  %v2053_v20 = vadd.f32 %v11187_v3, %v13148_v23  ;;  %v13567_v52 = vpop.f32.mrb[151].mxu0  ;;  %v13588_v3 = vadd.f32 %v13148_v23, %v13456_v50  ;;  %v17332_v50 = vld [vmem:[#allocation7_spill] sm:$0xff] }
 0x226   : > { %17331 = vst [vmem:[#allocation54_spill] sm:$0xff] %v13567_v52  ;;  %17333 = vst [vmem:[#allocation7_spill] sm:$0xff] %v13610_v13 }
 0x227   : > { %v2498_v33 = vmax.f32 %v2348_v34, %v2398_v28  ;;  %v2399_v57 = vmax.f32 %v2053_v20, 0.0  ;;  %v13618_v28 = vadd.f32 %v13148_v23, %v13464_v60  ;;  %v13634_v60 = vadd.f32 %v13470_v54, %v13148_v23 }
 0x228   : > { %v17336_v54 = vmax.f32 %v13513_v21, 0.0 }
 0x229   : > { %v2548_v10 = vmax.f32 %v17332_v50, %v2498_v33  ;;  %v2499_v34 = vmax.f32 %v2349_v0, %v2399_v57  ;;  %v13630_v57 = vadd.f32 %v13148_v23, %v13468_v38  ;;  %v13645_v38 = vadd.f32 %v13474_v32, %v13148_v23 }
 0x22a   : > { %v11190_v41 = vpop.f32.mrb[152].mxu0 }
 0x22b   : > { %v2549_v52 = vmax.f32 %v17334_v1, %v2499_v34  ;;  %v2066_v33 = vadd.f32 %v11190_v41, %v13148_v23  ;;  %v2057_v0 = vpop.f32.mrb[153].mxu0 }
 0x22c   : > { %v2058_v12 = vadd.f32 %v13148_v23, %v2057_v0  ;;  %v11191_v40 = vpop.f32.mrb[154].mxu0 }
 0x22d   : > { %v13625_v48 = vpack.c.bf16 %v2549_v52, %v2548_v10  ;;  %v2402_v1 = vmax.f32 %v2066_v33, 0.0  ;;  %v2069_v41 = vadd.f32 %v11191_v40, %v13148_v23  ;;  %v2060_v34 = vpop.f32.mrb[155].mxu0  ;;  %v13640_v10 = vadd.f32 %v13148_v23, %v13472_v42 }
 0x22e   : > { %v2400_v0 = vmax.f32 %v2058_v12, 0.0  ;;  %v2061_v50 = vadd.f32 %v13148_v23, %v2060_v34  ;;  %v17337_v42 = vmax.f32 %v13532_v15, 0.0  ;;  %v17338_v33 = vmax.f32 %v13519_v6, 0.0 }
 0x22f   : > { %17335 = vst [vmem:[#allocation8_spill] sm:$0xff] %v13625_v48  ;;  %v2502_v52 = vmax.f32 %v2352_v19, %v2402_v1  ;;  %v2403_v40 = vmax.f32 %v2069_v41, 0.0  ;;  %v2628_v19 = vshll.u32 %v13625_v48, 16  ;;  %v2851_v41 = vrot.slane %v13625_v48, 1 }
 0x230   : > { %v2500_v12 = vmax.f32 %v17336_v54, %v2400_v0  ;;  %v2401_v20 = vmax.f32 %v2061_v50, 0.0 }
 0x231   : > { %v2552_v39 = vmax.f32 %v13184_v29, %v2502_v52  ;;  %v2503_v13 = vmax.f32 %v17337_v42, %v2403_v40  ;;  %v13662_v29 = vadd.f32 %v13148_v23, %v13476_v4 }
 0x232   : > { %v2550_v32 = vmax.f32 %v13187_v43, %v2500_v12  ;;  %v2501_v21 = vmax.f32 %v17338_v33, %v2401_v20  ;;  %v11194_v0 = vpop.f32.mrb[156].mxu0  ;;  %v13669_v43 = vadd.f32 %v13478_v24, %v13148_v23 }
 0x233   : > { %v2553_v15 = vmax.f32 %v13192_v35, %v2503_v13  ;;  %v2082_v52 = vadd.f32 %v11194_v0, %v13148_v23  ;;  %v2073_v40 = vpop.f32.mrb[157].mxu0  ;;  %v2630_v13 = vrot.slane %v2628_v19, 1 }
 0x234   : > { %v2551_v6 = vmax.f32 %v13196_v47, %v2501_v21  ;;  %v2074_v20 = vadd.f32 %v13148_v23, %v2073_v40  ;;  %v11195_v33 = vpop.f32.mrb[158].mxu0  ;;  %v17339_v47 = vmax.f32 %v13538_v37, 0.0 }
 0x235   : > { %v13673_v12 = vpack.c.bf16 %v2553_v15, %v2552_v39  ;;  %v2406_v4 = vmax.f32 %v2082_v52, 0.0  ;;  %v2085_v42 = vadd.f32 %v11195_v33, %v13148_v23  ;;  %v2076_v35 = vpop.f32.mrb[159].mxu0  ;;  %v2626_v15 = vshrl.u32 %v13625_v48, 16  ;;  %v13698_v33 = vld [vmem:[%s17174_s2] ss:$0 sm:$0xff] }
 0x236   : > { %v13678_v0 = vpack.c.bf16 %v2551_v6, %v2550_v32  ;;  %v2404_v54 = vmax.f32 %v2074_v20, 0.0  ;;  %v2077_v24 = vadd.f32 %v13148_v23, %v2076_v35  ;;  %v12320_v32 = vld [vmem:[%s17175_s3 + $0x40] sm:$0xff]   ;;  %v17340_v23 = vmax.f32 %v13523_v22, 0.0 }
 0x237   : > { %v2506_v21 = vmax.f32 %v17339_v47, %v2406_v4  ;;  %v2407_v40 = vmax.f32 %v2085_v42, 0.0  ;;  %3220 = vrot.lane.b32.xlu0 %v13673_v12, %s12764_s30  ;;  %v2854_v39 = vrot.slane %v13673_v12, 1  ;;  %v13702_v4 = vadd.f32 %v13698_v33, %v13480_v53  ;;  %11236 = vmatprep.subr.bf16.mxu1 %v12320_v32 }
 0x238   : > { %v2504_v52 = vmax.f32 %v17340_v23, %v2404_v54  ;;  %v2405_v6 = vmax.f32 %v2077_v24, 0.0  ;;  %v2852_v37 = vrot.slane %v13678_v0, 1  ;;  %v2633_v20 = vshll.u32 %v13678_v0, 16  ;;  %11237 = vmatpush3.bf16.msra.mxu1 %v12320_v32 }
 0x239   : > { %v2556_v42 = vmax.f32 %v13208_v2, %v2506_v21  ;;  %v17341_v35 = vmax.f32 %v13555_v46, 0.0  ;;  %v2631_v54 = vor.u32 %v2630_v13, %v2626_v15  ;;  %v17342_v47 = vmax.f32 %v13529_v49, 0.0  ;;  %v12321_v2 = vld [vmem:[%s17175_s3 + $0x48] sm:$0xff]  }
 0x23a   : > { %v2554_v24 = vmax.f32 %v13211_v17, %v2504_v52  ;;  %v11198_v34 = vpop.f32.mrb[160].mxu0  ;;  %v2853_v50 = vsel %vm2850_vm3, %v2851_v41, %v2852_v37  ;;  %v2641_v1 = vshll.u32 %v13673_v12, 16  ;;  %v2635_v17 = vrot.slane %v2633_v20, 1  ;;  %11238 = vmatprep.subr.bf16.mxu1 %v12321_v2 }
 0x23b   : > { %v2507_v22 = vmax.f32 %v17341_v35, %v2407_v40  ;;  %v2505_v23 = vmax.f32 %v17342_v47, %v2405_v6  ;;  %v2098_v46 = vadd.f32 %v13698_v33, %v11198_v34  ;;  %v2089_v13 = vpop.f32.mrb[161].mxu0  ;;  %3218 = vrot.lane.b32.xlu0 %v13678_v0, %s12764_s30  ;;  %2892 = vrot.lane.b32.xlu1 %v2853_v50, %s12765_s24  ;;  %v2637_v49 = vshrl.u32 %v13678_v0, 16 }
 0x23c   : > { %v2090_v21 = vadd.f32 %v13698_v33, %v2089_v13  ;;  %v11199_v40 = vpop.f32.mrb[162].mxu0  ;;  %v2645_v34 = vshrl.u32 %v13673_v12, 16  ;;  %v2636_v35 = vsel %vm2624_vm4, %v2631_v54, %v2635_v17  ;;  %11239 = vmatpush3.bf16.msra.mxu1 %v12321_v2  ;;  %v13741_v54 = vrot.slane %v2641_v1, 1 }
 0x23d   : > { %v2557_v53 = vmax.f32 %v13216_v63, %v2507_v22  ;;  %v2555_v41 = vmax.f32 %v13220_v11, %v2505_v23  ;;  %v2855_v63 = vsel %vm2850_vm3, %v2852_v37, %v2854_v39  ;;  %v2410_v52 = vmax.f32 %v2098_v46, 0.0  ;;  %v2092_v6 = vpop.f32.mrb[163].mxu0  ;;  %v12322_v37 = vld [vmem:[%s17175_s3 + $0x50] sm:$0xff]  }
 0x23e   : > { %v2101_v50 = vadd.f32 %v13698_v33, %v11199_v40  ;;  %v2408_v22 = vmax.f32 %v2090_v21, 0.0  ;;  %v2093_v47 = vadd.f32 %v13698_v33, %v2092_v6  ;;  %v2639_v23 = vor.u32 %v2637_v49, %v2635_v17  ;;  %11240 = vmatprep.subr.bf16.mxu1 %v12322_v37 }
 0x23f   : > { %v13727_v32 = vpack.c.bf16 %v2557_v53, %v2556_v42  ;;  %v13731_v11 = vpack.c.bf16 %v2555_v41, %v2554_v24  ;;  %v17343_v42 = vmax.f32 %v13561_v30, 0.0  ;;  %3313 = vrot.lane.b32.xlu0 %v2855_v63, %s12766_s12  ;;  %2789 = vrot.lane.b32.xlu1 %v2636_v35, %s12764_s30  ;;  %v2933_v24 = vrot.slane %v2626_v15, 1 }
 0x240   : > { %v2411_v46 = vmax.f32 %v2101_v50, 0.0  ;;  %v17344_v13 = vmax.f32 %v13535_v7, 0.0  ;;  %v2409_v2 = vmax.f32 %v2093_v47, 0.0  ;;  %v2936_v41 = vrot.slane %v2637_v49, 1  ;;  %11241 = vmatpush3.bf16.msra.mxu1 %v12322_v37 }
 0x241   : > { %v2510_v53 = vmax.f32 %v17343_v42, %v2410_v52  ;;  %v2937_v21 = vrot.slane %v2633_v20, 2  ;;  %v17345_v30 = vmax.f32 %v13571_v62, 0.0  ;;  %v2940_v50 = vrot.slane %v2645_v34, 1 }
 0x242   : > { %v2508_v17 = vmax.f32 %v17344_v13, %v2408_v22  ;;  %v2934_v6 = vrot.slane %v2628_v19, 2  ;;  %v17346_v7 = vmax.f32 %v13547_v58, 0.0  ;;  %v11202_v22 = vpop.f32.mrb[164].mxu0  ;;  %v2644_v20 = vsel %vm2624_vm4, %v2639_v23, %v13741_v54 }
 0x243   : > { %v2560_v40 = vmax.f32 %v13232_v25, %v2510_v53  ;;  %v2511_v52 = vmax.f32 %v17345_v30, %v2411_v46  ;;  %v2941_v49 = vrot.slane %v2641_v1, 2  ;;  %v12323_v25 = vld [vmem:[%s17175_s3 + $0x58] sm:$0xff]   ;;  %v2376_v62 = vmax.f32 %v13662_v29, 0.0  ;;  %v2105_v58 = vpop.f32.mrb[165].mxu0  ;;  %2894 = vrot.lane.b32.xlu0 %v2855_v63, %s12765_s24  ;;  %3269 = vrot.lane.b32.xlu1 %v2644_v20, %s12765_s24  ;;  %v12324_v63 = vld [vmem:[%s17175_s3 + $0x60] sm:$0xff]  }
 0x244   : > { %v2558_v15 = vmax.f32 %v13235_v55, %v2508_v17  ;;  %v2509_v35 = vmax.f32 %v17346_v7, %v2409_v2  ;;  %v2379_v47 = vmax.f32 %v13669_v43, 0.0  ;;  %v2114_v55 = vadd.f32 %v13698_v33, %v11202_v22  ;;  %v11203_v42 = vpop.f32.mrb[166].mxu0  ;;  %11242 = vmatprep.subr.bf16.mxu1 %v12323_v25 }
 0x245   : > { %v2561_v19 = vmax.f32 %v13238_v5, %v2511_v52  ;;  %v2377_v1 = vmax.f32 %v13702_v4, 0.0  ;;  %v2106_v37 = vadd.f32 %v13698_v33, %v2105_v58  ;;  %v2938_v53 = vor.u32 %v2937_v21, %v2936_v41  ;;  %v2108_v17 = vpop.f32.mrb[167].mxu0  ;;  %11243 = vmatpush3.bf16.msra.mxu1 %v12323_v25 }
 0x246   : > { %v2559_v23 = vmax.f32 %v13244_v16, %v2509_v35  ;;  %v2414_v13 = vmax.f32 %v2114_v55, 0.0  ;;  %v2117_v5 = vadd.f32 %v13698_v33, %v11203_v42  ;;  %v2935_v2 = vor.u32 %v2934_v6, %v2933_v24  ;;  %11244 = vmatprep.subr.bf16.mxu1 %v12324_v63 }
 0x247   : > { %v13769_v46 = vpack.c.bf16 %v2561_v19, %v2560_v40  ;;  %v2412_v52 = vmax.f32 %v2106_v37, 0.0  ;;  %v2109_v16 = vadd.f32 %v13698_v33, %v2108_v17  ;;  %v13778_v7 = vor.u32 %v2941_v49, %v2940_v50  ;;  %2791 = vrot.lane.b32.xlu0 %v2644_v20, %s12764_s30  ;;  %3224 = vrot.lane.b32.xlu1 %v13727_v32, %s12764_s30 }
 0x248   : > { %v13775_v30 = vpack.c.bf16 %v2559_v23, %v2558_v15  ;;  %v13782_v41 = vadd.f32 %v13698_v33, %v13482_v26  ;;  %v13786_v21 = vadd.f32 %v13698_v33, %v13484_v18  ;;  %v17348_v24 = vmax.f32 %v13579_v51, 0.0 }
 0x249   : > { %v2415_v6 = vmax.f32 %v2117_v5, 0.0  ;;  %v13795_v50 = vadd.f32 %v13698_v33, %v13486_v8  ;;  %v17349_v26 = vmax.f32 %v13558_v9, 0.0  ;;  %v2413_v35 = vmax.f32 %v2109_v16, 0.0  ;;  %11245 = vmatpush3.bf16.msra.mxu1 %v12324_v63  ;;  %v17353_v5 = vld [vmem:[#allocation9_spill] sm:$0xff] }
 0x24a   : > { %17347 = vst [vmem:[#allocation55_spill] sm:$0xff] %v13775_v30  ;;  %v2514_v40 = vmax.f32 %v17348_v24, %v2414_v13  ;;  %v2939_v18 = vsel %vm2932_vm5, %v2935_v2, %v2938_v53  ;;  %v17350_v22 = vmax.f32 %v13588_v3, 0.0  ;;  %v2856_v20 = vrot.slane %v13731_v11, 1  ;;  %v11206_v9 = vpop.f32.mrb[168].mxu0 }
 0x24b   : > { %v2512_v15 = vmax.f32 %v17349_v26, %v2412_v52  ;;  %v2858_v25 = vrot.slane %v13727_v32, 1  ;;  %v17351_v8 = vmax.f32 %v13564_v36, 0.0  ;;  %v2943_v58 = vsel %vm2932_vm5, %v2938_v53, %v13778_v7  ;;  %v2121_v13 = vpop.f32.mrb[169].mxu0  ;;  %3018 = vrot.lane.b32.xlu1 %v2939_v18, %s12766_s12  ;;  %v17352_v36 = vld [vmem:[#allocation40_spill] sm:$0xff]  ;;  %v12325_v18 = vld [vmem:[%s17175_s3 + $0x68] sm:$0xff]  }
 0x24c   : > { %v2564_v51 = vmax.f32 %v13256_v31, %v2514_v40  ;;  %v2515_v49 = vmax.f32 %v17350_v22, %v2415_v6  ;;  %v2649_v23 = vshll.u32 %v13731_v11, 16  ;;  %v2382_v31 = vmax.f32 %v13782_v41, 0.0  ;;  %3020 = vrot.lane.b32.xlu0 %v2943_v58, %s12766_s12  ;;  %v11207_v63 = vpop.f32.mrb[170].mxu0  ;;  %v17356_v22 = vld [vmem:[#allocation41_spill] sm:$0xff]  ;;  %11246 = vmatprep.subr.bf16.mxu1 %v12325_v18 }
 0x24d   : > { %v2562_v19 = vmax.f32 %v13259_v59, %v2512_v15  ;;  %v2513_v55 = vmax.f32 %v17351_v8, %v2413_v35  ;;  %v2380_v3 = vmax.f32 %v13786_v21, 0.0  ;;  %v2130_v42 = vadd.f32 %v13698_v33, %v11206_v9  ;;  %v2124_v24 = vpop.f32.mrb[171].mxu0  ;;  %v17357_v8 = vld [vmem:[#allocation42_spill] sm:$0xff]  ;;  %11247 = vmatpush3.bf16.msra.mxu1 %v12325_v18  ;;  %v17378_v59 = vld [vmem:[#allocation45_spill] sm:$0xff] }
 0x24e   : > { %v2565_v37 = vmax.f32 %v13264_v61, %v2515_v49  ;;  %v13820_v53 = vadd.f32 %v13698_v33, %v17352_v36  ;;  %v2122_v2 = vadd.f32 %v13698_v33, %v2121_v13  ;;  %v2133_v16 = vadd.f32 %v13698_v33, %v11207_v63 }
 0x24f   : > { %v2563_v17 = vmax.f32 %v17353_v5, %v2513_v55  ;;  %v2418_v61 = vmax.f32 %v2130_v42, 0.0  ;;  %v2859_v40 = vsel %vm2850_vm3, %v2856_v20, %v2858_v25  ;;  %v2125_v15 = vadd.f32 %v13698_v33, %v2124_v24  ;;  %3222 = vrot.lane.b32.xlu1 %v13731_v11, %s12764_s30 }
 0x250   : > { %v13824_v52 = vpack.c.bf16 %v2565_v37, %v2564_v51  ;;  %v2416_v26 = vmax.f32 %v2122_v2, 0.0  ;;  %v2651_v35 = vrot.slane %v2649_v23, 1  ;;  %v12326_v51 = vld [vmem:[%s17175_s3 + $0x70] sm:$0xff]   ;;  %v13841_v49 = vadd.f32 %v13698_v33, %v17356_v22  ;;  %3317 = vrot.lane.b32.xlu0 %v2859_v40, %s12766_s12 }
 0x251   : > { %v13830_v6 = vpack.c.bf16 %v2563_v17, %v2562_v19  ;;  %v13845_v19 = vadd.f32 %v13698_v33, %v17357_v8  ;;  %v17358_v55 = vmax.f32 %v13598_v45, 0.0  ;;  %v2419_v58 = vmax.f32 %v2133_v16, 0.0  ;;  %v17360_v17 = vld [vmem:[#allocation10_spill] sm:$0xff]  ;;  %v17362_v16 = vld [vmem:[#allocation11_spill] sm:$0xff]  ;;  %11248 = vmatprep.subr.bf16.mxu1 %v12326_v51  ;;  %v17364_v8 = vld [vmem:[#allocation12_spill] sm:$0xff] }
 0x252   : > { %17354 = vst [vmem:[#allocation40_spill] sm:$0xff] %v13824_v52  ;;  %v17359_v37 = vmax.f32 %v13575_v27, 0.0  ;;  %v2417_v13 = vmax.f32 %v2125_v15, 0.0  ;;  %v2647_v36 = vor.u32 %v2645_v34, %v13741_v54  ;;  %v2653_v5 = vshrl.u32 %v13731_v11, 16  ;;  %v11210_v54 = vpop.f32.mrb[172].mxu0  ;;  %11249 = vmatpush3.bf16.msra.mxu1 %v12326_v51 }
 0x253   : > { %17355 = vst [vmem:[#allocation9_spill] sm:$0xff] %v13830_v6  ;;  %v2518_v9 = vmax.f32 %v17358_v55, %v2418_v61  ;;  %v17361_v2 = vmax.f32 %v13618_v28, 0.0  ;;  %v2857_v61 = vsel %vm2850_vm3, %v2854_v39, %v2856_v20  ;;  %v2661_v27 = vshrl.u32 %v13727_v32, 16  ;;  %v2137_v20 = vpop.f32.mrb[173].mxu0 }
 0x254   : > { %v2516_v42 = vmax.f32 %v17359_v37, %v2416_v26  ;;  %v17363_v26 = vmax.f32 %v13583_v56, 0.0  ;;  %v2652_v15 = vsel %vm2624_vm4, %v2647_v36, %v2651_v35  ;;  %v2657_v22 = vshll.u32 %v13727_v32, 16  ;;  %2898 = vrot.lane.b32.xlu0 %v2859_v40, %s12765_s24  ;;  %3315 = vrot.lane.b32.xlu1 %v2857_v61, %s12766_s12  ;;  %v17365_v56 = vld [vmem:[#allocation13_spill] sm:$0xff]  ;;  %v11211_v37 = vpop.f32.mrb[174].mxu0 }
 0x255   : > { %v2568_v45 = vmax.f32 %v17360_v17, %v2518_v9  ;;  %v2519_v63 = vmax.f32 %v17361_v2, %v2419_v58  ;;  %v2381_v28 = vmax.f32 %v13820_v53, 0.0  ;;  %v2146_v39 = vadd.f32 %v13698_v33, %v11210_v54 }
 0x256   : > { %v2566_v24 = vmax.f32 %v17362_v16, %v2516_v42  ;;  %v2517_v34 = vmax.f32 %v17363_v26, %v2417_v13  ;;  %v2655_v18 = vor.u32 %v2653_v5, %v2651_v35  ;;  %v2138_v58 = vadd.f32 %v13698_v33, %v2137_v20 }
 0x257   : > { %v2569_v55 = vmax.f32 %v17364_v8, %v2519_v63  ;;  %v2944_v42 = vrot.slane %v2653_v5, 1  ;;  %v2945_v13 = vrot.slane %v2649_v23, 2  ;;  %v2422_v17 = vmax.f32 %v2146_v39, 0.0  ;;  %v2140_v63 = vpop.f32.mrb[175].mxu0  ;;  %v12327_v23 = vld [vmem:[%s17175_s3 + $0x78] sm:$0xff]  }
 0x258   : > { %v2567_v9 = vmax.f32 %v17365_v56, %v2517_v34  ;;  %v2149_v2 = vadd.f32 %v13698_v33, %v11211_v37  ;;  %v2948_v16 = vrot.slane %v2661_v27, 1  ;;  %v2420_v35 = vmax.f32 %v2138_v58, 0.0  ;;  %v17368_v5 = vld [vmem:[#allocation43_spill] sm:$0xff]  ;;  %3271 = vrot.lane.b32.xlu0 %v2652_v15, %s12765_s24  ;;  %2896 = vrot.lane.b32.xlu1 %v2857_v61, %s12765_s24  ;;  %v17371_v58 = vld [vmem:[#allocation44_spill] sm:$0xff]  ;;  %v17372_v37 = vld [vmem:[#allocation14_spill] sm:$0xff] }
 0x259   : > { %v13877_v36 = vpack.c.bf16 %v2569_v55, %v2568_v45  ;;  %v2141_v26 = vadd.f32 %v13698_v33, %v2140_v63  ;;  %v2949_v34 = vrot.slane %v2657_v22, 2  ;;  %v13890_v45 = vadd.f32 %v13698_v33, %v17368_v5  ;;  %11250 = vmatprep.subr.bf16.mxu1 %v12327_v23  ;;  %v17374_v63 = vld [vmem:[#allocation15_spill] sm:$0xff] }
 0x25a   : > { %v13882_v40 = vpack.c.bf16 %v2567_v9, %v2566_v24  ;;  %v17369_v54 = vmax.f32 %v13630_v57, 0.0  ;;  %v2423_v55 = vmax.f32 %v2149_v2, 0.0  ;;  %v13896_v51 = vrot.slane %v2657_v22, 1  ;;  %11251 = vmatpush3.bf16.msra.mxu1 %v12327_v23 }
 0x25b   : > { %17366 = vst [vmem:[#allocation41_spill] sm:$0xff] %v13877_v36  ;;  %v2384_v39 = vmax.f32 %v13845_v19, 0.0  ;;  %v17370_v20 = vmax.f32 %v13594_v44, 0.0  ;;  %v2421_v9 = vmax.f32 %v2141_v26, 0.0  ;;  %v13904_v57 = vadd.f32 %v13698_v33, %v17371_v58  ;;  %v11214_v26 = vpop.f32.mrb[176].mxu0 }
 0x25c   : > { %17367 = vst [vmem:[#allocation42_spill] sm:$0xff] %v13882_v40  ;;  %v2522_v8 = vmax.f32 %v17369_v54, %v2422_v17  ;;  %v17373_v2 = vmax.f32 %v13640_v10, 0.0  ;;  %v2660_v22 = vsel %vm2624_vm4, %v2655_v18, %v13896_v51  ;;  %v17375_v54 = vld [vmem:[#allocation7_spill] sm:$0xff]  ;;  %v13914_v24 = vor.u32 %v2949_v34, %v2948_v16  ;;  %v17379_v10 = vld [vmem:[#allocation16_spill] sm:$0xff]  ;;  %v2153_v23 = vpop.f32.mrb[177].mxu0  ;;  %2793 = vrot.lane.b32.xlu1 %v2652_v15, %s12764_s30  ;;  %v17382_v34 = vld [vmem:[#allocation17_spill] sm:$0xff] }
 0x25d   : > { %v2520_v56 = vmax.f32 %v17370_v20, %v2420_v35  ;;  %v17376_v44 = vmax.f32 %v17375_v54, 0.0  ;;  %v2946_v20 = vor.u32 %v2945_v13, %v2944_v42  ;;  %v2162_v18 = vadd.f32 %v13698_v33, %v11214_v26  ;;  %2795 = vrot.lane.b32.xlu0 %v2660_v22, %s12764_s30  ;;  %v17381_v13 = vld [vmem:[#allocation47_spill] sm:$0xff] }
 0x25e   : > { %v2572_v17 = vmax.f32 %v17372_v37, %v2522_v8  ;;  %v2523_v61 = vmax.f32 %v17373_v2, %v2423_v55  ;;  %17377 = vst [vmem:[#allocation10_spill] sm:$0xff] %v13914_v24  ;;  %v13919_v8 = vadd.f32 %v13698_v33, %v17378_v59  ;;  %v13931_v16 = vadd.f32 %v13698_v33, %v17381_v13  ;;  %v11215_v37 = vpop.f32.mrb[178].mxu0  ;;  %v17383_v2 = vld [vmem:[#allocation48_spill] sm:$0xff] }
 0x25f   : > { %v2570_v5 = vmax.f32 %v17374_v63, %v2520_v56  ;;  %v2521_v35 = vmax.f32 %v17376_v44, %v2421_v9  ;;  %v17380_v56 = vld [vmem:[#allocation46_spill] sm:$0xff]  ;;  %v2154_v9 = vadd.f32 %v13698_v33, %v2153_v23  ;;  %v2426_v15 = vmax.f32 %v2162_v18, 0.0  ;;  %v2156_v44 = vpop.f32.mrb[179].mxu0 }
 0x260   : > { %v2573_v55 = vmax.f32 %v17379_v10, %v2523_v61  ;;  %v13927_v42 = vadd.f32 %v13698_v33, %v17380_v56  ;;  %v13937_v61 = vadd.f32 %v13698_v33, %v17383_v2  ;;  %v2165_v54 = vadd.f32 %v13698_v33, %v11215_v37  ;;  %3273 = vrot.lane.b32.xlu1 %v2660_v22, %s12765_s24  ;;  %v17388_v22 = vld [vmem:[#allocation19_spill] sm:$0xff] }
 0x261   : > { %v2571_v59 = vmax.f32 %v17382_v34, %v2521_v35  ;;  %v2424_v10 = vmax.f32 %v2154_v9, 0.0  ;;  %v2157_v56 = vadd.f32 %v13698_v33, %v2156_v44  ;;  %v2951_v35 = vsel %vm2932_vm5, %v2946_v20, %v13914_v24 }
 0x262   : > { %v13939_v63 = vpack.c.bf16 %v2573_v55, %v2572_v17  ;;  %v2385_v23 = vmax.f32 %v13904_v57, 0.0  ;;  %v2526_v13 = vmax.f32 %v2376_v62, %v2426_v15  ;;  %v2427_v34 = vmax.f32 %v2165_v54, 0.0  ;;  %3024 = vrot.lane.b32.xlu0 %v2951_v35, %s12766_s12  ;;  %v17387_v62 = vld [vmem:[#allocation18_spill] sm:$0xff] }
 0x263   : > { %v13942_v26 = vpack.c.bf16 %v2571_v59, %v2570_v5  ;;  %v2665_v17 = vshll.u32 %v13775_v30, 16  ;;  %v17386_v18 = vmax.f32 %v13623_v14, 0.0  ;;  %v2425_v9 = vmax.f32 %v2157_v56, 0.0  ;;  %v11218_v5 = vpop.f32.mrb[180].mxu0 }
 0x264   : > { %17384 = vst [vmem:[#allocation11_spill] sm:$0xff] %v13939_v63  ;;  %v2576_v2 = vmax.f32 %v17387_v62, %v2526_v13  ;;  %v2527_v15 = vmax.f32 %v2377_v1, %v2427_v34  ;;  %v17389_v44 = vmax.f32 %v13634_v60, 0.0  ;;  %v2860_v58 = vrot.slane %v13775_v30, 1  ;;  %v2169_v4 = vpop.f32.mrb[181].mxu0  ;;  %3228 = vrot.lane.b32.xlu1 %v13769_v46, %s12764_s30  ;;  %v17392_v1 = vld [vmem:[#allocation21_spill] sm:$0xff] }
 0x265   : > { %17385 = vst [vmem:[#allocation12_spill] sm:$0xff] %v13942_v26  ;;  %v2524_v59 = vmax.f32 %v17386_v18, %v2424_v10  ;;  %v17185_v14 = vrot.slane %v13769_v46, 1  ;;  %v17390_v10 = vld [vmem:[#allocation49_spill] sm:$0xff]  ;;  %v17391_v18 = vld [vmem:[#allocation20_spill] sm:$0xff]  ;;  %v2178_v13 = vadd.f32 %v13698_v33, %v11218_v5  ;;  %v13979_v60 = vrot.slane %v2665_v17, 1 }
 0x266   : > { %v2525_v35 = vmax.f32 %v17389_v44, %v2425_v9  ;;  %v13969_v56 = vadd.f32 %v13698_v33, %v17390_v10  ;;  %v2577_v37 = vmax.f32 %v17391_v18, %v2527_v15  ;;  %3226 = vrot.lane.b32.xlu0 %v13775_v30, %s12764_s30  ;;  %v11219_v9 = vpop.f32.mrb[182].mxu0  ;;  %v2947_v62 = vsel %vm2932_vm5, %v13778_v7, %v2946_v20  ;;  %v17395_v7 = vld [vmem:[#allocation50_spill] sm:$0xff] }
 0x267   : > { %v2574_v54 = vmax.f32 %v17388_v22, %v2524_v59  ;;  %v2170_v59 = vadd.f32 %v13698_v33, %v2169_v4  ;;  %v2669_v5 = vshrl.u32 %v13775_v30, 16  ;;  %v2430_v22 = vmax.f32 %v2178_v13, 0.0  ;;  %v2172_v10 = vpop.f32.mrb[183].mxu0 }
 0x268   : > { %v2575_v34 = vmax.f32 %v17392_v1, %v2525_v35  ;;  %v13986_v15 = vpack.c.bf16 %v2577_v37, %v2576_v2  ;;  %v2181_v44 = vadd.f32 %v13698_v33, %v11219_v9  ;;  %v2673_v18 = vshll.u32 %v13769_v46, 16  ;;  %3022 = vrot.lane.b32.xlu1 %v2947_v62, %s12766_s12  ;;  %v17396_v1 = vld [vmem:[#allocation51_spill] sm:$0xff] }
 0x269   : > { %v2428_v55 = vmax.f32 %v2170_v59, 0.0  ;;  %v2173_v35 = vadd.f32 %v13698_v33, %v2172_v10  ;;  %v2863_v4 = vsel %vm2850_vm3, %v2860_v58, %v17185_v14  ;;  %v13998_v20 = vadd.f32 %v13698_v33, %v17395_v7  ;;  %v17398_v7 = vld [vmem:[#allocation22_spill] sm:$0xff]  ;;  %v17400_v14 = vld [vmem:[#allocation23_spill] sm:$0xff] }
 0x26a   : > { %17393 = vst [vmem:[#allocation13_spill] sm:$0xff] %v13986_v15  ;;  %v13990_v29 = vpack.c.bf16 %v2575_v34, %v2574_v54  ;;  %v2530_v37 = vmax.f32 %v2380_v3, %v2430_v22  ;;  %v2431_v2 = vmax.f32 %v2181_v44, 0.0  ;;  %3321 = vrot.lane.b32.xlu0 %v2863_v4, %s12766_s12  ;;  %v2671_v54 = vor.u32 %v2669_v5, %v13979_v60  ;;  %v17399_v44 = vld [vmem:[#allocation52_spill] sm:$0xff] }
 0x26b   : > { %v14008_v34 = vadd.f32 %v13698_v33, %v17396_v1  ;;  %v17397_v59 = vmax.f32 %v13645_v38, 0.0  ;;  %v2429_v10 = vmax.f32 %v2173_v35, 0.0  ;;  %v14015_v22 = vrot.slane %v2673_v18, 1 }
 0x26c   : > { %17394 = vst [vmem:[#allocation43_spill] sm:$0xff] %v13990_v29  ;;  %v2580_v21 = vmax.f32 %v17398_v7, %v2530_v37  ;;  %v2531_v3 = vmax.f32 %v2381_v28, %v2431_v2  ;;  %v2677_v62 = vshrl.u32 %v13769_v46, 16  ;;  %v14020_v13 = vadd.f32 %v13698_v33, %v17399_v44  ;;  %v17401_v28 = vld [vmem:[#allocation24_spill] sm:$0xff] }
 0x26d   : > { %v2528_v9 = vmax.f32 %v17397_v59, %v2428_v55  ;;  %v2529_v38 = vmax.f32 %v2379_v47, %v2429_v10  ;;  %v11222_v55 = vpop.f32.mrb[184].mxu0  ;;  %v2861_v35 = vsel %vm2850_vm3, %v2858_v25, %v2860_v58  ;;  %v2392_v53 = vmax.f32 %v13998_v20, 0.0  ;;  %v17402_v47 = vld [vmem:[#allocation25_spill] sm:$0xff] }
 0x26e   : > { %v2581_v37 = vmax.f32 %v17401_v28, %v2531_v3  ;;  %v2194_v2 = vadd.f32 %v13698_v33, %v11222_v55  ;;  %v2185_v59 = vpop.f32.mrb[185].mxu0  ;;  %2902 = vrot.lane.b32.xlu0 %v2863_v4, %s12765_s24  ;;  %3319 = vrot.lane.b32.xlu1 %v2861_v35, %s12766_s12  ;;  %v2676_v43 = vsel %vm2624_vm4, %v2671_v54, %v14015_v22  ;;  %v2952_v25 = vrot.slane %v2669_v5, 1 }
 0x26f   : > { %v2578_v1 = vmax.f32 %v17400_v14, %v2528_v9  ;;  %v2579_v14 = vmax.f32 %v17402_v47, %v2529_v38  ;;  %v2186_v9 = vadd.f32 %v13698_v33, %v2185_v59  ;;  %v11223_v10 = vpop.f32.mrb[186].mxu0  ;;  %v2953_v58 = vrot.slane %v2665_v17, 2  ;;  %v17405_v47 = vld [vmem:[#allocation53_spill] sm:$0xff] }
 0x270   : > { %v14039_v7 = vpack.c.bf16 %v2581_v37, %v2580_v21  ;;  %v2434_v3 = vmax.f32 %v2194_v2, 0.0  ;;  %v2197_v44 = vadd.f32 %v13698_v33, %v11223_v10  ;;  %v2188_v4 = vpop.f32.mrb[187].mxu0  ;;  %v2956_v55 = vrot.slane %v2677_v62, 1 }
 0x271   : > { %v14044_v28 = vpack.c.bf16 %v2579_v14, %v2578_v1  ;;  %v2432_v54 = vmax.f32 %v2186_v9, 0.0  ;;  %v2189_v38 = vadd.f32 %v13698_v33, %v2188_v4  ;;  %v2957_v59 = vrot.slane %v2673_v18, 2  ;;  %v17406_v9 = vld [vmem:[#allocation54_spill] sm:$0xff] }
 0x272   : > { %17403 = vst [vmem:[#allocation44_spill] sm:$0xff] %v14039_v7  ;;  %v14049_v5 = vadd.f32 %v13698_v33, %v17405_v47  ;;  %v2534_v17 = vmax.f32 %v2384_v39, %v2434_v3  ;;  %v2435_v21 = vmax.f32 %v2197_v44, 0.0  ;;  %3277 = vrot.lane.b32.xlu0 %v2676_v43, %s12765_s24  ;;  %2900 = vrot.lane.b32.xlu1 %v2861_v35, %s12765_s24  ;;  %v2395_v37 = vmax.f32 %v14008_v34, 0.0  ;;  %v17407_v39 = vld [vmem:[#allocation26_spill] sm:$0xff]  ;;  %v11226_v41 = vpop.f32.mrb[188].mxu0  ;;  %v17410_v47 = vld [vmem:[#allocation28_spill] sm:$0xff] }
 0x273   : > { %17404 = vst [vmem:[#allocation14_spill] sm:$0xff] %v14044_v28  ;;  %v2663_v1 = vor.u32 %v2661_v27, %v13896_v51  ;;  %v2393_v18 = vmax.f32 %v14020_v13, 0.0  ;;  %v2532_v2 = vmax.f32 %v2382_v31, %v2432_v54  ;;  %v2433_v14 = vmax.f32 %v2189_v38, 0.0  ;;  %v17408_v51 = vld [vmem:[#allocation27_spill] sm:$0xff]  ;;  %v2201_v57 = vpop.f32.mrb[189].mxu0 }
 0x274   : > { %v14064_v19 = vadd.f32 %v13698_v33, %v17406_v9  ;;  %v2584_v10 = vmax.f32 %v17407_v39, %v2534_v17  ;;  %v2535_v35 = vmax.f32 %v2385_v23, %v2435_v21  ;;  %v17409_v44 = vmax.f32 %v13795_v50, 0.0 }
 0x275   : > { %v2668_v27 = vsel %vm2624_vm4, %v2663_v1, %v13979_v60  ;;  %v2582_v3 = vmax.f32 %v17408_v51, %v2532_v2  ;;  %v2954_v31 = vor.u32 %v2953_v58, %v2952_v25  ;;  %v14074_v54 = vor.u32 %v2957_v59, %v2956_v55  ;;  %v17411_v60 = vld [vmem:[#allocation29_spill] sm:$0xff]  ;;  %v11227_v25 = vpop.f32.mrb[190].mxu0 }
 0x276   : > { %v2533_v4 = vmax.f32 %v17409_v44, %v2433_v14  ;;  %v2396_v38 = vmax.f32 %v14049_v5, 0.0  ;;  %v2585_v9 = vmax.f32 %v17410_v47, %v2535_v35  ;;  %v2210_v17 = vadd.f32 %v13698_v33, %v11226_v41  ;;  %2799 = vrot.lane.b32.xlu0 %v2676_v43, %s12764_s30  ;;  %3275 = vrot.lane.b32.xlu1 %v2668_v27, %s12765_s24  ;;  %v2204_v14 = vpop.f32.mrb[191].mxu0 }
 0x277   : > { %v17186_v23 = vshll.u32 %v13830_v6, 16  ;;  %v2202_v21 = vadd.f32 %v13698_v33, %v2201_v57  ;;  %v2864_v58 = vrot.slane %v13830_v6, 1  ;;  %v2866_v55 = vrot.slane %v13824_v52, 1 }
 0x278   : > { %v2583_v50 = vmax.f32 %v17411_v60, %v2533_v4  ;;  %v2397_v59 = vmax.f32 %v14064_v19, 0.0  ;;  %v14087_v1 = vpack.c.bf16 %v2585_v9, %v2584_v10  ;;  %v2438_v2 = vmax.f32 %v2210_v17, 0.0  ;;  %v17436_v19 = vld [vmem:[#allocation38_spill] sm:$0xff] }
 0x279   : > { %v2213_v43 = vadd.f32 %v13698_v33, %v11227_v25  ;;  %v2436_v35 = vmax.f32 %v2202_v21, 0.0  ;;  %v2205_v51 = vadd.f32 %v13698_v33, %v2204_v14  ;;  %v2959_v44 = vsel %vm2932_vm5, %v2954_v31, %v14074_v54  ;;  %v17419_v14 = vld [vmem:[#allocation31_spill] sm:$0xff] }
 0x27a   : > { %17412 = vst [vmem:[#allocation15_spill] sm:$0xff] %v14087_v1  ;;  %v14090_v39 = vpack.c.bf16 %v2583_v50, %v2582_v3  ;;  %v17414_v4 = vmax.f32 %v13927_v42, 0.0  ;;  %3028 = vrot.lane.b32.xlu0 %v2959_v44, %s12766_s12  ;;  %2797 = vrot.lane.b32.xlu1 %v2668_v27, %s12764_s30  ;;  %v2683_v10 = vrot.slane %v17186_v23, 1  ;;  %v17187_v3 = vshll.u32 %v13824_v52, 16  ;;  %v17416_v50 = vld [vmem:[#allocation30_spill] sm:$0xff] }
 0x27b   : > { %v2439_v47 = vmax.f32 %v2213_v43, 0.0  ;;  %v17415_v9 = vmax.f32 %v13841_v49, 0.0  ;;  %v2437_v57 = vmax.f32 %v2205_v51, 0.0  ;;  %v14107_v60 = vsel %vm2850_vm3, %v2864_v58, %v2866_v55 }
 0x27c   : > { %17413 = vst [vmem:[#allocation7_spill] sm:$0xff] %v14090_v39  ;;  %v2538_v41 = vmax.f32 %v17414_v4, %v2438_v2  ;;  %v2955_v42 = vsel %vm2932_vm5, %v13914_v24, %v2954_v31  ;;  %v17417_v27 = vmax.f32 %v13937_v61, 0.0  ;;  %v17191_v2 = vshrl.u32 %v13830_v6, 16  ;;  %v11230_v4 = vpop.f32.mrb[192].mxu0 }
 0x27d   : > { %v2536_v17 = vmax.f32 %v17415_v9, %v2436_v35  ;;  %v17418_v43 = vrot.slane %v13769_v46, 1  ;;  %v17420_v51 = vmax.f32 %v13890_v45, 0.0  ;;  %v2679_v31 = vor.u32 %v2677_v62, %v14015_v22  ;;  %v17422_v22 = vld [vmem:[#allocation33_spill] sm:$0xff] }
 0x27e   : > { %v2588_v21 = vmax.f32 %v17416_v50, %v2538_v41  ;;  %v2539_v25 = vmax.f32 %v17417_v27, %v2439_v47  ;;  %v17188_v61 = vshll.u32 %v13882_v40, 16  ;;  %v17421_v41 = vld [vmem:[#allocation32_spill] sm:$0xff]  ;;  %v2226_v9 = vadd.f32 %v13698_v33, %v11230_v4  ;;  %v2217_v50 = vpop.f32.mrb[193].mxu0  ;;  %3230 = vrot.lane.b32.xlu0 %v13830_v6, %s12764_s30  ;;  %3232 = vrot.lane.b32.xlu1 %v13824_v52, %s12764_s30 }
 0x27f   : > { %v14118_v49 = vsel %vm2850_vm3, %v17418_v43, %v2864_v58  ;;  %v2586_v35 = vmax.f32 %v17419_v14, %v2536_v17  ;;  %v2537_v44 = vmax.f32 %v17420_v51, %v2437_v57  ;;  %v2687_v45 = vor.u32 %v17191_v2, %v2683_v10  ;;  %v11231_v57 = vpop.f32.mrb[194].mxu0 }
 0x280   : > { %v2589_v47 = vmax.f32 %v17421_v41, %v2539_v25  ;;  %v2691_v58 = vrot.slane %v17187_v3, 1  ;;  %v2218_v17 = vadd.f32 %v13698_v33, %v2217_v50  ;;  %v14140_v27 = vsel %vm2624_vm4, %v2679_v31, %v2683_v10  ;;  %v2220_v4 = vpop.f32.mrb[195].mxu0 }
 0x281   : > { %v2587_v62 = vmax.f32 %v17422_v22, %v2537_v44  ;;  %v2868_v25 = vrot.slane %v13882_v40, 1  ;;  %v2442_v14 = vmax.f32 %v2226_v9, 0.0  ;;  %v2229_v51 = vadd.f32 %v13698_v33, %v11231_v57 }
 0x282   : > { %v14143_v43 = vpack.c.bf16 %v2589_v47, %v2588_v21  ;;  %v17192_v41 = vrot.slane %v13877_v36, 1  ;;  %v2440_v3 = vmax.f32 %v2218_v17, 0.0  ;;  %v2221_v44 = vadd.f32 %v13698_v33, %v2220_v4  ;;  %3325 = vrot.lane.b32.xlu0 %v14107_v60, %s12766_s12  ;;  %3026 = vrot.lane.b32.xlu1 %v2955_v42, %s12766_s12  ;;  %v11234_v4 = vpop.f32.mrb[196].mxu0 }
 0x283   : > { %v14147_v23 = vpack.c.bf16 %v2587_v62, %v2586_v35  ;;  %v2699_v50 = vrot.slane %v17188_v61, 1  ;;  %v2542_v10 = vmax.f32 %v2392_v53, %v2442_v14  ;;  %v2443_v31 = vmax.f32 %v2229_v51, 0.0  ;;  %v17426_v53 = vld [vmem:[#allocation34_spill] sm:$0xff] }
 0x284   : > { %17423 = vst [vmem:[#allocation45_spill] sm:$0xff] %v14143_v43  ;;  %v14158_v21 = vsel %vm2624_vm4, %v2687_v45, %v2691_v58  ;;  %v17189_v35 = vshll.u32 %v13877_v36, 16  ;;  %v17425_v47 = vmax.f32 %v13919_v8, 0.0  ;;  %v2441_v22 = vmax.f32 %v2221_v44, 0.0  ;;  %v17429_v44 = vld [vmem:[#allocation36_spill] sm:$0xff] }
 0x285   : > { %17424 = vst [vmem:[#allocation16_spill] sm:$0xff] %v14147_v23  ;;  %v17190_v62 = vshrl.u32 %v13882_v40, 16  ;;  %v2713_v20 = vshll.u32 %v13942_v26, 16  ;;  %v2592_v17 = vmax.f32 %v17426_v53, %v2542_v10  ;;  %v2543_v57 = vmax.f32 %v2393_v18, %v2443_v31 }
 0x286   : > { %v2540_v9 = vmax.f32 %v17425_v47, %v2440_v3  ;;  %v14171_v42 = vsel %vm2850_vm3, %v2868_v25, %v17192_v41  ;;  %v14176_v8 = vsel %vm2850_vm3, %v2866_v55, %v2868_v25  ;;  %v17427_v3 = vld [vmem:[#allocation35_spill] sm:$0xff]  ;;  %v17428_v14 = vmax.f32 %v13931_v16, 0.0  ;;  %v2233_v47 = vpop.f32.mrb[197].mxu0  ;;  %3281 = vrot.lane.b32.xlu0 %v14158_v21, %s12765_s24  ;;  %3323 = vrot.lane.b32.xlu1 %v14118_v49, %s12766_s12  ;;  %v17430_v25 = vld [vmem:[#allocation37_spill] sm:$0xff] }
 0x287   : > { %v2703_v13 = vor.u32 %v17190_v62, %v2699_v50  ;;  %v2693_v18 = vshrl.u32 %v13824_v52, 16  ;;  %v2593_v10 = vmax.f32 %v17429_v44, %v2543_v57  ;;  %v2242_v31 = vadd.f32 %v13698_v33, %v11234_v4  ;;  %v11235_v53 = vpop.f32.mrb[198].mxu0 }
 0x288   : > { %v2590_v45 = vmax.f32 %v17427_v3, %v2540_v9  ;;  %v2541_v51 = vmax.f32 %v17428_v14, %v2441_v22  ;;  %v2707_v16 = vrot.slane %v17189_v35, 1  ;;  %v2872_v55 = vrot.slane %v13942_v26, 1  ;;  %v2236_v61 = vpop.f32.mrb[199].mxu0 }
 0x289   : > { %v2234_v22 = vadd.f32 %v13698_v33, %v2233_v47  ;;  %v17193_v57 = vrot.slane %v13939_v63, 1  ;;  %v2715_v3 = vrot.slane %v2713_v20, 1  ;;  %v14198_v14 = vpack.c.bf16 %v2593_v10, %v2592_v17 }
 0x28a   : > { %v2591_v9 = vmax.f32 %v17430_v25, %v2541_v51  ;;  %v2446_v4 = vmax.f32 %v2242_v31, 0.0  ;;  %v2245_v44 = vadd.f32 %v13698_v33, %v11235_v53  ;;  %v2717_v35 = vshrl.u32 %v13942_v26, 16  ;;  %3234 = vrot.lane.b32.xlu0 %v13882_v40, %s12764_s30  ;;  %3279 = vrot.lane.b32.xlu1 %v14140_v27, %s12765_s24  ;;  %v14225_v31 = vld [vmem:[%s17175_s3] sm:$0xff]  }
 0x28b   : > { %17431 = vst [vmem:[#allocation46_spill] sm:$0xff] %v14198_v14  ;;  %v2444_v2 = vmax.f32 %v2234_v22, 0.0  ;;  %v2237_v51 = vadd.f32 %v13698_v33, %v2236_v61  ;;  %v2721_v47 = vshll.u32 %v13939_v63, 16  ;;  %v14213_v17 = vsel %vm2624_vm4, %v2703_v13, %v2707_v16  ;;  %11292 = vmatprep.subr.bf16.mxu1 %v14225_v31 }
 0x28c   : > { %v14202_v62 = vpack.c.bf16 %v2591_v9, %v2590_v45  ;;  %v2546_v25 = vmax.f32 %v2396_v38, %v2446_v4  ;;  %v2447_v41 = vmax.f32 %v2245_v44, 0.0  ;;  %v2695_v45 = vor.u32 %v2693_v18, %v2691_v58  ;;  %v17434_v9 = vld [vmem:[#allocation6_spill] sm:$0xff] }
 0x28d   : > { %v17433_v33 = vmax.f32 %v13969_v56, 0.0  ;;  %v2445_v10 = vmax.f32 %v2237_v51, 0.0  ;;  %v2719_v5 = vor.u32 %v2717_v35, %v2715_v3  ;;  %v2709_v38 = vshrl.u32 %v13877_v36, 16 }
 0x28e   : > { %17432 = vst [vmem:[#allocation47_spill] sm:$0xff] %v14202_v62  ;;  %v2596_v13 = vmax.f32 %v17434_v9, %v2546_v25  ;;  %v2547_v22 = vmax.f32 %v2397_v59, %v2447_v41  ;;  %v14231_v58 = vsel %vm2624_vm4, %v2695_v45, %v2699_v50  ;;  %v14236_v56 = vsel %vm2850_vm3, %v2872_v55, %v17193_v57 }
 0x28f   : > { %v2544_v61 = vmax.f32 %v17433_v33, %v2444_v2  ;;  %v17435_v2 = vld [vmem:[#allocation5_spill] sm:$0xff]  ;;  %v2545_v4 = vmax.f32 %v2395_v37, %v2445_v10  ;;  %v14243_v44 = vrot.slane %v2721_v47, 1  ;;  %v2711_v51 = vor.u32 %v2709_v38, %v2707_v16  ;;  %3329 = vrot.lane.b32.xlu0 %v14171_v42, %s12766_s12  ;;  %3236 = vrot.lane.b32.xlu1 %v13877_v36, %s12764_s30  ;;  %v17438_v16 = vld [vmem:[#allocation39_spill] sm:$0xff] }
 0x290   : > { %v2597_v59 = vmax.f32 %v17436_v19, %v2547_v22  ;;  %v17437_v41 = vrot.slane %v13877_v36, 1  ;;  %v17194_v22 = vshrl.u32 %v13939_v63, 16  ;;  %v17442_v57 = vshll.u32 %v13830_v6, 16 }
 0x291   : > { %v2594_v53 = vmax.f32 %v17435_v2, %v2544_v61  ;;  %v2595_v25 = vmax.f32 %v17438_v16, %v2545_v4  ;;  %v14261_v45 = vsel %vm2624_vm4, %v2719_v5, %v14243_v44  ;;  %v14264_v33 = vsel %vm2624_vm4, %v2711_v51, %v2715_v3 }
 0x292   : > { %v14254_v34 = vsel %vm2850_vm3, %v17437_v41, %v2872_v55  ;;  %v17197_v61 = vshll.u32 %v13990_v29, 16  ;;  %v14267_v10 = vpack.c.bf16 %v2597_v59, %v2596_v13  ;;  %v17195_v55 = vshrl.u32 %v13990_v29, 16 }
 0x293   : > { %v14272_v2 = vpack.c.bf16 %v2595_v25, %v2594_v53  ;;  %3285 = vrot.lane.b32.xlu0 %v14213_v17, %s12765_s24  ;;  %3327 = vrot.lane.b32.xlu1 %v14176_v8, %s12766_s12  ;;  %v17196_v3 = vshrl.u32 %v13986_v15, 16  ;;  %v17441_v16 = vshrl.u32 %v13830_v6, 16  ;;  %v2961_v37 = vrot.slane %v17442_v57, 2 }
 0x294   : > { %17439 = vst [vmem:[#allocation17_spill] sm:$0xff] %v14267_v10  ;;  %v2964_v41 = vrot.slane %v2693_v18, 1  ;;  %v17443_v59 = vshll.u32 %v13824_v52, 16  ;;  %v17444_v19 = vshrl.u32 %v13882_v40, 16  ;;  %v17445_v53 = vshll.u32 %v13882_v40, 16 }
 0x295   : > { %17440 = vst [vmem:[#allocation48_spill] sm:$0xff] %v14272_v2  ;;  %v2960_v25 = vrot.slane %v17441_v16, 1  ;;  %v2976_v5 = vrot.slane %v2717_v35, 1  ;;  %v2977_v57 = vrot.slane %v2713_v20, 2  ;;  %v2985_v35 = vrot.slane %v17197_v61, 2 }
 0x296   : > { %v2965_v16 = vrot.slane %v17443_v59, 2  ;;  %v2968_v51 = vrot.slane %v17444_v19, 1  ;;  %v17446_v59 = vshll.u32 %v13877_v36, 16  ;;  %v2980_v19 = vrot.slane %v17194_v22, 1 }
 0x297   : > { %v2962_v4 = vor.u32 %v2961_v37, %v2960_v25  ;;  %3238 = vrot.lane.b32.xlu0 %v13942_v26, %s12764_s30  ;;  %3283 = vrot.lane.b32.xlu1 %v14231_v58, %s12765_s24  ;;  %v2969_v37 = vrot.slane %v17445_v53, 2  ;;  %v2972_v25 = vrot.slane %v2709_v38, 1  ;;  %v2981_v38 = vrot.slane %v2721_v47, 2 }
 0x298   : > { %v2966_v50 = vor.u32 %v2965_v16, %v2964_v41  ;;  %v2973_v13 = vrot.slane %v17446_v59, 2  ;;  %v2984_v41 = vrot.slane %v17195_v55, 1  ;;  %v2978_v47 = vor.u32 %v2977_v57, %v2976_v5 }
 0x299   : > { %v14311_v18 = vsel %vm2932_vm5, %v14074_v54, %v2962_v4  ;;  %v2970_v9 = vor.u32 %v2969_v37, %v2968_v51  ;;  %v2982_v51 = vor.u32 %v2981_v38, %v2980_v19  ;;  %v17447_v37 = vshll.u32 %v13986_v15, 16 }
 0x29a   : > { %v14324_v53 = vsel %vm2932_vm5, %v2962_v4, %v2966_v50  ;;  %v2974_v54 = vor.u32 %v2973_v13, %v2972_v25  ;;  %v2988_v4 = vrot.slane %v17196_v3, 1  ;;  %v2986_v16 = vor.u32 %v2985_v35, %v2984_v41 }
 0x29b   : > { %3333 = vrot.lane.b32.xlu0 %v14236_v56, %s12766_s12  ;;  %3240 = vrot.lane.b32.xlu1 %v13939_v63, %s12764_s30  ;;  %v14335_v20 = vsel %vm2932_vm5, %v2966_v50, %v2970_v9  ;;  %v2989_v25 = vrot.slane %v17447_v37, 2  ;;  %v17448_v59 = vshrl.u32 %v14044_v28, 16  ;;  %v14347_v55 = vsel %vm2932_vm5, %v2978_v47, %v2982_v51 }
 0x29c   : > { %v14340_v13 = vsel %vm2932_vm5, %v2970_v9, %v2974_v54  ;;  %v14350_v50 = vsel %vm2932_vm5, %v2974_v54, %v2978_v47  ;;  %v17449_v5 = vshll.u32 %v14044_v28, 16  ;;  %v17450_v19 = vshrl.u32 %v14039_v7, 16 }
 0x29d   : > { %v2992_v22 = vrot.slane %v17448_v59, 1  ;;  %v2990_v38 = vor.u32 %v2989_v25, %v2988_v4  ;;  %v14357_v41 = vsel %vm2932_vm5, %v2982_v51, %v2986_v16  ;;  %v17451_v35 = vshll.u32 %v14039_v7, 16 }
 0x29e   : > { %v2993_v57 = vrot.slane %v17449_v5, 2  ;;  %v2996_v9 = vrot.slane %v17450_v19, 1  ;;  %v17452_v59 = vshrl.u32 %v14090_v39, 16  ;;  %v17453_v47 = vshll.u32 %v14090_v39, 16 }
 0x29f   : > { %v2997_v37 = vrot.slane %v17451_v35, 2  ;;  %3289 = vrot.lane.b32.xlu0 %v14261_v45, %s12765_s24  ;;  %3331 = vrot.lane.b32.xlu1 %v14254_v34, %s12766_s12  ;;  %v17454_v4 = vshrl.u32 %v14087_v1, 16  ;;  %v17455_v25 = vshll.u32 %v14087_v1, 16  ;;  %v14374_v35 = vsel %vm2932_vm5, %v2986_v16, %v2990_v38 }
 0x2a0   : > { %v3000_v3 = vrot.slane %v17452_v59, 1  ;;  %v2994_v54 = vor.u32 %v2993_v57, %v2992_v22  ;;  %v3001_v5 = vrot.slane %v17453_v47, 2  ;;  %v17456_v61 = vshrl.u32 %v14147_v23, 16 }
 0x2a1   : > { %v3004_v51 = vrot.slane %v17454_v4, 1  ;;  %v3005_v19 = vrot.slane %v17455_v25, 2  ;;  %v2998_v59 = vor.u32 %v2997_v37, %v2996_v9  ;;  %v17457_v24 = vshll.u32 %v14147_v23, 16 }
 0x2a2   : > { %v3008_v10 = vrot.slane %v17456_v61, 1  ;;  %v14381_v22 = vsel %vm2932_vm5, %v2990_v38, %v2994_v54  ;;  %v3002_v57 = vor.u32 %v3001_v5, %v3000_v3  ;;  %v17459_v4 = vshrl.u32 %v14143_v43, 16 }
 0x2a3   : > { %v3009_v2 = vrot.slane %v17457_v24, 2  ;;  %17458 = vst [vmem:[#allocation18_spill] sm:$0xff] %v14381_v22  ;;  %v3006_v47 = vor.u32 %v3005_v19, %v3004_v51  ;;  %v17460_v25 = vshll.u32 %v13990_v29, 16  ;;  %v14388_v16 = vsel %vm2932_vm5, %v2994_v54, %v2998_v59  ;;  %3242 = vrot.lane.b32.xlu0 %v13990_v29, %s12764_s30  ;;  %3287 = vrot.lane.b32.xlu1 %v14264_v33, %s12765_s24 }
 0x2a4   : > { %v3014_v14 = vrot.slane %v17459_v4, 1  ;;  %17461 = vst [vmem:[#allocation19_spill] sm:$0xff] %v14388_v16  ;;  %v17462_v61 = vshll.u32 %v14143_v43, 16  ;;  %v17463_v24 = vshrl.u32 %v14202_v62, 16  ;;  %v14402_v5 = vsel %vm2932_vm5, %v2998_v59, %v3002_v57 }
 0x2a5   : > { %v2731_v26 = vrot.slane %v17460_v25, 1  ;;  %v3010_v9 = vor.u32 %v3009_v2, %v3008_v10  ;;  %v14399_v38 = vsel %vm2932_vm5, %v3002_v57, %v3006_v47  ;;  %17465 = vst [vmem:[#allocation20_spill] sm:$0xff] %v14402_v5  ;;  %v17467_v2 = vshll.u32 %v14202_v62, 16 }
 0x2a6   : > { %v3015_v37 = vrot.slane %v17462_v61, 2  ;;  %v5066_v3 = vrot.slane %v17463_v24, 1  ;;  %17464 = vst [vmem:[#allocation49_spill] sm:$0xff] %v14399_v38  ;;  %v17468_v19 = vrot.slane %v13986_v15, 1  ;;  %v17469_v4 = vrot.slane %v13990_v29, 1 }
 0x2a7   : > { %v14405_v10 = vsel %vm2932_vm5, %v3006_v47, %v3010_v9  ;;  %v5067_v51 = vrot.slane %v17467_v2, 2  ;;  %v17470_v61 = vshrl.u32 %v13990_v29, 16  ;;  %3244 = vrot.lane.b32.xlu1 %v13986_v15, %s12764_s30  ;;  %v17473_v57 = vshll.u32 %v13986_v15, 16 }
 0x2a8   : > { %v3016_v54 = vor.u32 %v3015_v37, %v3014_v14  ;;  %17466 = vst [vmem:[#allocation21_spill] sm:$0xff] %v14405_v10  ;;  %v14414_v25 = vsel %vm2850_vm3, %v17469_v4, %v17468_v19  ;;  %v17476_v19 = vrot.slane %v13939_v63, 1  ;;  %v17483_v29 = vrot.slane %v13986_v15, 1 }
 0x2a9   : > { %v2735_v24 = vor.u32 %v17470_v61, %v2731_v26  ;;  %3337 = vrot.lane.b32.xlu0 %v14414_v25, %s12766_s12  ;;  %v14425_v14 = vor.u32 %v5067_v51, %v5066_v3  ;;  %v2739_v47 = vrot.slane %v17473_v57, 1  ;;  %v17477_v3 = vshrl.u32 %v13939_v63, 16  ;;  %v14450_v51 = vpop.permute.xlu0 %3220 }
 0x2aa   : > { %v14419_v59 = vsel %vm2932_vm5, %v3010_v9, %v3016_v54  ;;  %v17475_v9 = vmov %v17469_v4  ;;  %v2882_v57 = vrot.slane %v14039_v7, 1  ;;  %v2884_v38 = vrot.slane %v14090_v39, 1 }
 0x2ab   : > { %17471 = vst [vmem:[#allocation50_spill] sm:$0xff] %v14419_v59  ;;  %17472 = vst [vmem:[#allocation51_spill] sm:$0xff] %v14425_v14  ;;  %v14431_v37 = vsel %vm2932_vm5, %v3016_v54, %v14425_v14  ;;  %v14434_v2 = vsel %vm2624_vm4, %v2735_v24, %v2739_v47  ;;  %v14441_v4 = vsel %vm2850_vm3, %v17476_v19, %v17475_v9  ;;  %v2880_v24 = vrot.slane %v14044_v28, 1 }
 0x2ac   : > { %17474 = vst [vmem:[#allocation22_spill] sm:$0xff] %v14431_v37  ;;  %3335 = vrot.lane.b32.xlu1 %v14441_v4, %s12766_s12  ;;  %v2727_v54 = vor.u32 %v17477_v3, %v14243_v44  ;;  %v17478_v9 = vshll.u32 %v14044_v28, 16 }
 0x2ad   : > { %3293 = vrot.lane.b32.xlu0 %v14434_v2, %s12765_s24  ;;  %v3219_v37 = vpop.permute.xlu0 %3218  ;;  %v14463_v44 = vpop.permute.xlu1 %2892  ;;  %v14466_v3 = vsel %vm2850_vm3, %v2880_v24, %v2882_v57 }
 0x2ae   : > { %v14453_v61 = vsel %vm2624_vm4, %v2727_v54, %v2731_v26  ;;  %v2747_v19 = vrot.slane %v17478_v9, 1  ;;  %17479 = vst [vmem:[#allocation52_spill] sm:$0xff] %v14463_v44  ;;  %v17480_v26 = vshrl.u32 %v14044_v28, 16  ;;  %v17481_v9 = vshll.u32 %v14039_v7, 16 }
 0x2b0   : > { %3291 = vrot.lane.b32.xlu1 %v14453_v61, %s12765_s24  ;;  %v2751_v54 = vor.u32 %v17480_v26, %v2747_v19  ;;  %v2755_v14 = vrot.slane %v17481_v9, 1  ;;  %v17485_v26 = vshrl.u32 %v13986_v15, 16 }
 0x2b1   : > { %3246 = vrot.lane.b32.xlu0 %v14044_v28, %s12764_s30  ;;  %v3314_v10 = vpop.permute.xlu0 %3313  ;;  %v14476_v59 = vpop.permute.xlu1 %2789  ;;  %v14484_v28 = vsel %vm2850_vm3, %v17483_v29, %v2880_v24  ;;  %v2886_v29 = vrot.slane %v14087_v1, 1  ;;  %v17487_v24 = vshll.u32 %v14090_v39, 16 }
 0x2b2   : > { %17482 = vst [vmem:[#allocation23_spill] sm:$0xff] %v14476_v59  ;;  %v14479_v44 = vsel %vm2624_vm4, %v2751_v54, %v2755_v14  ;;  %17484 = vst [vmem:[#allocation24_spill] sm:$0xff] %v14484_v28  ;;  %v2743_v9 = vor.u32 %v17485_v26, %v2739_v47 }
 0x2b3   : > { %v2763_v63 = vrot.slane %v17487_v24, 1  ;;  %v17490_v24 = vshll.u32 %v14087_v1, 16 }
 0x2b4   : > { %3248 = vrot.lane.b32.xlu1 %v14039_v7, %s12764_s30  ;;  %v14495_v54 = vsel %vm2624_vm4, %v2743_v9, %v2747_v19  ;;  %v17489_v19 = vshrl.u32 %v14090_v39, 16 }
 0x2b5   : > { %3341 = vrot.lane.b32.xlu0 %v14466_v3, %s12766_s12  ;;  %v14492_v5 = vpop.permute.xlu0 %2894  ;;  %v3270_v59 = vpop.permute.xlu1 %3269  ;;  %v2771_v15 = vrot.slane %v17490_v24, 1 }
 0x2b6   : > { %17486 = vst [vmem:[#allocation25_spill] sm:$0xff] %v14492_v5  ;;  %v14508_v5 = vsel %vm2850_vm3, %v2884_v38, %v2886_v29  ;;  %v2767_v9 = vor.u32 %v17489_v19, %v2763_v63  ;;  %v17495_v19 = vshrl.u32 %v14039_v7, 16  ;;  %v17501_v7 = vshrl.u32 %v14147_v23, 16 }
 0x2b7   : > { %17488 = vst [vmem:[#allocation53_spill] sm:$0xff] %v14508_v5 }
 0x2b8   : > { %3339 = vrot.lane.b32.xlu1 %v14484_v28, %s12766_s12  ;;  %v14523_v40 = vsel %vm2624_vm4, %v2767_v9, %v2771_v15  ;;  %v14526_v28 = vsel %vm2850_vm3, %v2882_v57, %v2884_v38  ;;  %v2888_v9 = vrot.slane %v14147_v23, 1  ;;  %v2890_v38 = vrot.slane %v14143_v43, 1 }
 0x2b9   : > { %3297 = vrot.lane.b32.xlu0 %v14479_v44, %s12765_s24  ;;  %v2792_v47 = vpop.permute.xlu0 %2791  ;;  %v14505_v26 = vpop.permute.xlu1 %3224  ;;  %17493 = vst [vmem:[#allocation27_spill] sm:$0xff] %v14523_v40  ;;  %17494 = vst [vmem:[#allocation28_spill] sm:$0xff] %v14526_v28  ;;  %v17498_v57 = vshll.u32 %v14147_v23, 16 }
 0x2bc   : > { %3295 = vrot.lane.b32.xlu1 %v14495_v54, %s12765_s24 }
 0x2bd   : > { %3250 = vrot.lane.b32.xlu0 %v14090_v39, %s12764_s30  ;;  %v14520_v16 = vpop.permute.xlu1 %3018  ;;  %v2759_v39 = vor.u32 %v17495_v19, %v2755_v14 }
 0x2be   : > { %v14518_v22 = vpop.permute.xlu0 %3020  ;;  %17492 = vst [vmem:[#allocation26_spill] sm:$0xff] %v14520_v16 }
 0x2bf   : > { %17491 = vst [vmem:[#allocation54_spill] sm:$0xff] %v14518_v22  ;;  %v14537_v16 = vsel %vm2624_vm4, %v2759_v39, %v2763_v63  ;;  %v3356_v63 = vsel %vm3058_vm6, %v13625_v48, %v3219_v37  ;;  %v14552_v39 = vsel %vm2850_vm3, %v2888_v9, %v2890_v38  ;;  %v3358_v37 = vsel %vm3058_vm6, %v13678_v0, %v14450_v51 }
 0x2c0   : > { %3252 = vrot.lane.b32.xlu1 %v14087_v1, %s12764_s30  ;;  %17497 = vst [vmem:[#allocation30_spill] sm:$0xff] %v14537_v16  ;;  %17500 = vst [vmem:[#allocation32_spill] sm:$0xff] %v14552_v39  ;;  %v14568_v48 = vsel %vm3058_vm6, %v13678_v0, %v2792_v47 }
 0x2c1   : > { %3345 = vrot.lane.b32.xlu0 %v14508_v5, %s12766_s12  ;;  %v3223_v22 = vpop.permute.xlu1 %3222  ;;  %v2779_v5 = vrot.slane %v17498_v57, 1  ;;  %17503 = vst [vmem:[#allocation33_spill] sm:$0xff] %v14568_v48 }
 0x2c2   : > { %v14534_v24 = vpop.permute.xlu0 %3317 }
 0x2c3   : > { %17496 = vst [vmem:[#allocation29_spill] sm:$0xff] %v14534_v24  ;;  %v2783_v57 = vor.u32 %v17501_v7, %v2779_v5 }
 0x2c4   : > { %3343 = vrot.lane.b32.xlu1 %v14526_v28, %s12766_s12  ;;  %v3398_v28 = vsel %vm3099_vm7, %v3356_v63, %v3270_v59  ;;  %v14573_v59 = vsel %vm2850_vm3, %v2886_v29, %v2888_v9 }
 0x2c5   : > { %3301 = vrot.lane.b32.xlu0 %v14523_v40, %s12765_s24  ;;  %v3440_v63 = vsel %vm3140_vm8, %v3398_v28, %v3314_v10  ;;  %v17505_v28 = vshrl.u32 %v14087_v1, 16 }
 0x2c6   : > { %v14547_v14 = vpop.permute.xlu0 %2898  ;;  %v3316_v19 = vpop.permute.xlu1 %3315 }
 0x2c7   : > { %17499 = vst [vmem:[#allocation31_spill] sm:$0xff] %v14547_v14  ;;  %v17502_v14 = vshll.u32 %v14143_v43, 16  ;;  %v2775_v10 = vor.u32 %v17505_v28, %v2771_v15 }
 0x2c8   : > { %3299 = vrot.lane.b32.xlu1 %v14537_v16, %s12765_s24 }
 0x2c9   : > { %3254 = vrot.lane.b32.xlu0 %v14147_v23, %s12764_s30  ;;  %v2787_v16 = vrot.slane %v17502_v14, 1 }
 0x2ca   : > { %v3272_v7 = vpop.permute.xlu0 %3271  ;;  %v14570_v23 = vpop.permute.xlu1 %2896 }
 0x2cb   : > { %17504 = vst [vmem:[#allocation34_spill] sm:$0xff] %v14570_v23  ;;  %v4089_v14 = vsel %vm3099_vm7, %v14568_v48, %v3272_v7  ;;  %v14580_v40 = vsel %vm2624_vm4, %v2783_v57, %v2787_v16  ;;  %v14593_v57 = vsel %vm2624_vm4, %v2775_v10, %v2779_v5 }
 0x2cc   : > { %3256 = vrot.lane.b32.xlu1 %v14143_v43, %s12764_s30  ;;  %v4112_v51 = vsel %vm3140_vm8, %v4089_v14, %v3316_v19 }
 0x2cd   : > { %3349 = vrot.lane.b32.xlu0 %v14552_v39, %s12766_s12  ;;  %v3400_v39 = vsel %vm3099_vm7, %v3358_v37, %v3272_v7  ;;  %v3519_v37 = vrot.slane %v3440_v63, 2  ;;  %v14596_v7 = vrot.slane %v14202_v62, 1  ;;  %v4152_v23 = vshrl.u32 %v4112_v51, 16 }
 0x2ce   : > { %v3442_v0 = vsel %vm3140_vm8, %v3400_v39, %v3316_v19  ;;  %v2794_v9 = vpop.permute.xlu1 %2793  ;;  %v4155_v19 = vshll.u32 %v4112_v51, 16  ;;  %v3360_v39 = vsel %vm3058_vm6, %v13673_v12, %v3223_v22 }
 0x2cf   : > { %v3520_v29 = vrot.slane %v3442_v0, 2  ;;  %v14590_v47 = vpop.permute.xlu0 %2795  ;;  %v14607_v5 = vsel %vm3058_vm6, %v13673_v12, %v2794_v9  ;;  %v17508_v0 = vshll.u32 %v14202_v62, 16  ;;  %v14618_v51 = vsel %vm2850_vm3, %v2890_v38, %v14596_v7 }
 0x2d0   : > { %3347 = vrot.lane.b32.xlu1 %v14573_v59, %s12766_s12  ;;  %17506 = vst [vmem:[#allocation35_spill] sm:$0xff] %v14607_v5  ;;  %v4154_v22 = vrot.slane %v4152_v23, 3 }
 0x2d1   : > { %3305 = vrot.lane.b32.xlu0 %v14580_v40, %s12765_s24  ;;  %v3521_v15 = vsel %vm3518_vm9, %v3519_v37, %v3520_v29  ;;  %v3264_v28 = vrot.slane %v17508_v0, 1 }
 0x2d2   : > { %11252 = vmatprep.mubr.bf16.mxu1 %v3521_v15  ;;  %v3274_v14 = vpop.permute.xlu1 %3273  ;;  %v17509_v15 = vshrl.u32 %v14143_v43, 16 }
 0x2d3   : > { %v3402_v10 = vsel %vm3099_vm7, %v3360_v39, %v3274_v14  ;;  %v4090_v37 = vsel %vm3099_vm7, %v14607_v5, %v3274_v14  ;;  %v4157_v14 = vrot.slane %v4155_v19, 4  ;;  %v17510_v5 = vshrl.u32 %v14202_v62, 16 }
 0x2d4   : > { %3303 = vrot.lane.b32.xlu1 %v14593_v57, %s12765_s24  ;;  %v14609_v63 = vpop.permute.xlu0 %3024  ;;  %v14622_v12 = vsel %vm3140_vm8, %v3402_v10, %v14534_v24  ;;  %v4113_v9 = vsel %vm3140_vm8, %v4090_v37, %v14534_v24  ;;  %v3260_v39 = vor.u32 %v17509_v15, %v2787_v16  ;;  %v12329_v16 = vld [vmem:[%s17175_s3 + $0x8] sm:$0xff]  }
 0x2d5   : > { %3258 = vrot.lane.b32.xlu0 %v14202_v62, %s12764_s30  ;;  %17507 = vst [vmem:[#allocation36_spill] sm:$0xff] %v14609_v63  ;;  %v3522_v38 = vrot.slane %v14622_v12, 2  ;;  %v4159_v23 = vshrl.u32 %v4113_v9, 16  ;;  %v4162_v0 = vshll.u32 %v4113_v9, 16  ;;  %v14637_v37 = vor.u32 %v17510_v5, %v3264_v28 }
 0x2d6   : > { %v14633_v10 = vpop.permute.xlu1 %3228  ;;  %v14640_v1 = vsel %vm2624_vm4, %v3260_v39, %v3264_v28  ;;  %v4158_v5 = vor.u32 %v4157_v14, %v4154_v22  ;;  %v12330_v39 = vld [vmem:[%s17175_s3 + $0x10] sm:$0xff]   ;;  %v14697_v14 = vsel %vm3058_vm6, %v13731_v11, %v14590_v47 }
 0x2d7   : > { %v4161_v24 = vrot.slane %v4159_v23, 3  ;;  %v4164_v48 = vrot.slane %v4162_v0, 4  ;;  %v3523_v19 = vsel %vm3518_vm9, %v3520_v29, %v3522_v38 }
 0x2d8   : > { %3351 = vrot.lane.b32.xlu1 %v14618_v51, %s12766_s12  ;;  %v3227_v63 = vpop.permute.xlu0 %3226  ;;  %11253 = vmatmul.mubr.bf16.vlgmr.msra.gmra.mrb[0].mxu1 %v3523_v19 }
 0x2d9   : > { %3353 = vrot.lane.b32.xlu0 %v14596_v7, %s12766_s12  ;;  %v14652_v9 = vor.u32 %v4164_v48, %v4161_v24  ;;  %11293 = vmatpush3.bf16.msra.mxu1 %v14225_v31  ;;  %v12331_v31 = vld [vmem:[%s17175_s3 + $0x18] sm:$0xff]   ;;  %v3364_v22 = vsel %vm3058_vm6, %v13727_v32, %v3227_v63 }
 0x2da   : > { %v14656_v15 = vpop.permute.xlu1 %3022  ;;  %11294 = vmatprep.subr.bf16.mxu1 %v12329_v16 }
 0x2db   : > { %v14664_v23 = vsel %vm4151_vm10, %v4158_v5, %v14652_v9 }
 0x2dc   : > { %3307 = vrot.lane.b32.xlu1 %v14640_v1, %s12765_s24  ;;  %v14654_v28 = vpop.permute.xlu0 %3321  ;;  %17511 = vst [vmem:[#allocation37_spill] sm:$0xff] %v14664_v23 }
 0x2dd   : > { %3309 = vrot.lane.b32.xlu0 %v14637_v37, %s12765_s24  ;;  %11295 = vmatpush3.bf16.msra.mxu1 %v12329_v16 }
 0x2de   : > { %11296 = vmatprep.subr.bf16.mxu1 %v12330_v39 }
 0x2e0   : > { %2801 = vrot.lane.b32.xlu1 %v14140_v27, %s12764_s30  ;;  %v14670_v48 = vpop.permute.xlu0 %2902  ;;  %v14672_v24 = vpop.permute.xlu1 %3319  ;;  %v12332_v27 = vld [vmem:[%s17175_s3 + $0x20] sm:$0xff]  }
 0x2e1   : > { %2803 = vrot.lane.b32.xlu0 %v14158_v21, %s12764_s30  ;;  %17512 = vst [vmem:[#allocation6_spill] sm:$0xff] %v14672_v24  ;;  %11297 = vmatpush3.bf16.msra.mxu1 %v12330_v39 }
 0x2e2   : > { %11298 = vmatprep.subr.bf16.mxu1 %v12331_v31 }
 0x2e4   : > { %2904 = vrot.lane.b32.xlu1 %v14118_v49, %s12765_s24  ;;  %v3278_v21 = vpop.permute.xlu0 %3277  ;;  %v2901_v29 = vpop.permute.xlu1 %2900  ;;  %v3362_v49 = vsel %vm3058_vm6, %v13731_v11, %v14505_v26 }
 0x2e5   : > { %2906 = vrot.lane.b32.xlu0 %v14107_v60, %s12765_s24  ;;  %v3406_v60 = vsel %vm3099_vm7, %v3364_v22, %v3278_v21  ;;  %11299 = vmatpush3.bf16.msra.mxu1 %v12331_v31 }
 0x2e6   : > { %11300 = vmatprep.subr.bf16.mxu1 %v12332_v27  ;;  %v14707_v26 = vsel %vm3140_vm8, %v3406_v60, %v14654_v28 }
 0x2e7   : > { %v3526_v60 = vrot.slane %v14707_v26, 2 }
 0x2e8   : > { %3030 = vrot.lane.b32.xlu1 %v14311_v18, %s12766_s12  ;;  %v2800_v0 = vpop.permute.xlu0 %2799  ;;  %v3276_v16 = vpop.permute.xlu1 %3275  ;;  %v12333_v18 = vld [vmem:[%s17175_s3 + $0x28] sm:$0xff]  }
 0x2e9   : > { %3032 = vrot.lane.b32.xlu0 %v14324_v53, %s12766_s12  ;;  %v3404_v63 = vsel %vm3099_vm7, %v3362_v49, %v3276_v16  ;;  %v4091_v53 = vsel %vm3099_vm7, %v14697_v14, %v3276_v16  ;;  %11301 = vmatpush3.bf16.msra.mxu1 %v12332_v27 }
 0x2ea   : > { %v3446_v11 = vsel %vm3140_vm8, %v3404_v63, %v14672_v24  ;;  %v4114_v47 = vsel %vm3140_vm8, %v4091_v53, %v14672_v24  ;;  %11302 = vmatprep.subr.bf16.mxu1 %v12333_v18 }
 0x2eb   : > { %v3524_v19 = vrot.slane %v3446_v11, 2  ;;  %v4167_v5 = vshrl.u32 %v4114_v47, 16  ;;  %v4170_v39 = vshll.u32 %v4114_v47, 16 }
 0x2ec   : > { %2805 = vrot.lane.b32.xlu1 %v14231_v58, %s12764_s30  ;;  %v14717_v31 = vpop.permute.xlu0 %3028  ;;  %v2798_v22 = vpop.permute.xlu1 %2797 }
 0x2ed   : > { %2807 = vrot.lane.b32.xlu0 %v14213_v17, %s12764_s30  ;;  %v4169_v49 = vrot.slane %v4167_v5, 3  ;;  %v4172_v16 = vrot.slane %v4170_v39, 4  ;;  %v3068_v63 = vsel %vm3058_vm6, %v13727_v32, %v2798_v22  ;;  %v3525_v58 = vsel %vm3518_vm9, %v3522_v38, %v3524_v19  ;;  %11303 = vmatpush3.bf16.msra.mxu1 %v12333_v18 }
 0x2ee   : > { %v4092_v17 = vsel %vm3099_vm7, %v3068_v63, %v3278_v21  ;;  %11256 = vmatprep.mubr.bf16.mxu1 %v3525_v58  ;;  %v3527_v32 = vsel %vm3518_vm9, %v3524_v19, %v3526_v60  ;;  %v12335_v19 = vld [vmem:[%s17175_s3 + $0x38] sm:$0xff]   ;;  %v3366_v58 = vsel %vm3058_vm6, %v13775_v30, %v14633_v10 }
 0x2ef   : > { %v4173_v27 = vor.u32 %v4172_v16, %v4169_v49  ;;  %v4115_v53 = vsel %vm3140_vm8, %v4092_v17, %v14654_v28  ;;  %11257 = vmatmul.mubr.bf16.gmra.mrb[4].mxu1 %v3527_v32  ;;  %v3070_v49 = vsel %vm3058_vm6, %v13775_v30, %v2800_v0 }
 0x2f0   : > { %2908 = vrot.lane.b32.xlu1 %v14176_v8, %s12765_s24  ;;  %v4175_v21 = vshrl.u32 %v4115_v53, 16  ;;  %v4178_v11 = vshll.u32 %v4115_v53, 16  ;;  %v3231_v8 = vpop.permute.xlu0 %3230  ;;  %v14738_v12 = vpop.permute.xlu1 %3232 }
 0x2f1   : > { %2910 = vrot.lane.b32.xlu0 %v14171_v42, %s12765_s24  ;;  %v12334_v42 = vld [vmem:[%s17175_s3 + $0x30] sm:$0xff]   ;;  %v14742_v38 = vsel %vm4151_vm10, %v14652_v9, %v4173_v27  ;;  %v14756_v9 = vsel %vm3099_vm7, %v3068_v63, %v2901_v29  ;;  %v3368_v16 = vsel %vm3058_vm6, %v13769_v46, %v3231_v8 }
 0x2f2   : > { %17513 = vst [vmem:[#allocation5_spill] sm:$0xff] %v14742_v38  ;;  %v4177_v47 = vrot.slane %v4175_v21, 3  ;;  %v4180_v5 = vrot.slane %v4178_v11, 4  ;;  %11304 = vmatprep.subr.bf16.mxu1 %v12334_v42  ;;  %v14775_v29 = vsel %vm3140_vm8, %v14756_v9, %v14654_v28 }
 0x2f3   : > { %11305 = vmatpush3.bf16.msra.mxu1 %v12334_v42  ;;  %17515 = vst [vmem:[#allocation39_spill] sm:$0xff] %v14775_v29 }
 0x2f4   : > { %3034 = vrot.lane.b32.xlu1 %v14335_v20, %s12766_s12  ;;  %v14751_v39 = vpop.permute.xlu0 %3325  ;;  %v14753_v18 = vpop.permute.xlu1 %3026  ;;  %v4181_v22 = vor.u32 %v4180_v5, %v4177_v47  ;;  %11306 = vmatprep.subr.bf16.mxu1 %v12335_v19 }
 0x2f5   : > { %3036 = vrot.lane.b32.xlu0 %v14340_v13, %s12766_s12  ;;  %v14770_v13 = vld [vmem:[%s17175_s3 + $0x80] sm:$0xff]  }
 0x2f6   : > { %v14765_v20 = vsel %vm4151_vm10, %v4173_v27, %v4181_v22 }
 0x2f7   : > { %17514 = vst [vmem:[#allocation38_spill] sm:$0xff] %v14765_v20  ;;  %11307 = vmatpush3.bf16.msra.mxu1 %v12335_v19 }
 0x2f8   : > { %2809 = vrot.lane.b32.xlu1 %v14264_v33, %s12764_s30  ;;  %v14781_v0 = vpop.permute.xlu0 %3281  ;;  %v3324_v33 = vpop.permute.xlu1 %3323  ;;  %11348 = vmatprep.subr.bf16.mxu1 %v14770_v13 }
 0x2f9   : > { %2811 = vrot.lane.b32.xlu0 %v14261_v45, %s12764_s30  ;;  %v14779_v45 = vsel %vm3099_vm7, %v3070_v49, %v14670_v48  ;;  %v3410_v17 = vsel %vm3099_vm7, %v3368_v16, %v14781_v0  ;;  %v17233_v48 = vrot.slane %v14775_v29, 5 }
 0x2fa   : > { %v14787_v63 = vsel %vm3140_vm8, %v14779_v45, %v3324_v33 }
 0x2fb   : > { %v17234_v28 = vrot.slane %v14787_v63, 5 }
 0x2fc   : > { %2912 = vrot.lane.b32.xlu1 %v14254_v34, %s12765_s24  ;;  %v3235_v27 = vpop.permute.xlu0 %3234  ;;  %v3280_v53 = vpop.permute.xlu1 %3279  ;;  %v3452_v34 = vsel %vm3140_vm8, %v3410_v17, %v14751_v39 }
 0x2fd   : > { %2914 = vrot.lane.b32.xlu0 %v14236_v56, %s12765_s24  ;;  %v14806_v56 = vsel %vm4707_vm11, %v17233_v48, %v17234_v28  ;;  %v3408_v32 = vsel %vm3099_vm7, %v3366_v58, %v3280_v53  ;;  %v4093_v42 = vsel %vm3099_vm7, %v3070_v49, %v3280_v53  ;;  %v3530_v5 = vrot.slane %v3452_v34, 2 }
 0x2fe   : > { %17516 = vst [vmem:[#allocation56_spill] sm:$0xff] %v14806_v56  ;;  %v3450_v21 = vsel %vm3140_vm8, %v3408_v32, %v3324_v33  ;;  %v4116_v10 = vsel %vm3140_vm8, %v4093_v42, %v3324_v33  ;;  %v3372_v33 = vsel %vm3058_vm6, %v13824_v52, %v3235_v27 }
 0x2ff   : > { %v3528_v11 = vrot.slane %v3450_v21, 2  ;;  %v4183_v8 = vshrl.u32 %v4116_v10, 16  ;;  %v4186_v47 = vshll.u32 %v4116_v10, 16 }
 0x300   : > { %3038 = vrot.lane.b32.xlu1 %v14350_v50, %s12766_s12 }
 0x301   : > { %3040 = vrot.lane.b32.xlu0 %v14347_v55, %s12766_s12  ;;  %v14818_v19 = vpop.permute.xlu0 %3329  ;;  %v3237_v16 = vpop.permute.xlu1 %3236  ;;  %v4185_v17 = vrot.slane %v4183_v8, 3  ;;  %v4188_v58 = vrot.slane %v4186_v47, 4  ;;  %v3529_v49 = vsel %vm3518_vm9, %v3526_v60, %v3528_v11  ;;  %v3531_v55 = vsel %vm3518_vm9, %v3528_v11, %v3530_v5 }
 0x302   : > { %11260 = vmatprep.mubr.bf16.mxu1 %v3529_v49 }
 0x303   : > { %v14828_v50 = vor.u32 %v4188_v58, %v4185_v17  ;;  %11261 = vmatmul.mubr.bf16.gmra.mrb[8].mxu1 %v3531_v55 }
 0x304   : > { %2813 = vrot.lane.b32.xlu1 %v14453_v61, %s12764_s30  ;;  %v3370_v61 = vsel %vm3058_vm6, %v13830_v6, %v14738_v12 }
 0x305   : > { %2815 = vrot.lane.b32.xlu0 %v14434_v2, %s12764_s30  ;;  %v14832_v53 = vpop.permute.xlu0 %3285  ;;  %v14834_v26 = vpop.permute.xlu1 %3327  ;;  %v14840_v2 = vsel %vm4151_vm10, %v4181_v22, %v14828_v50 }
 0x306   : > { %v3414_v60 = vsel %vm3099_vm7, %v3372_v33, %v14832_v53  ;;  %17517 = vst [vmem:[#allocation57_spill] sm:$0xff] %v14840_v2 }
 0x307   : > { %v3456_v27 = vsel %vm3140_vm8, %v3414_v60, %v14818_v19  ;;  %v17521_v60 = vld [vmem:[#allocation18_spill] sm:$0xff] }
 0x308   : > { %2916 = vrot.lane.b32.xlu1 %v14441_v4, %s12765_s24 }
 0x309   : > { %2918 = vrot.lane.b32.xlu0 %v14414_v25, %s12765_s24  ;;  %v3239_v34 = vpop.permute.xlu0 %3238  ;;  %v14851_v32 = vpop.permute.xlu1 %3283  ;;  %v3534_v25 = vrot.slane %v3456_v27, 2 }
 0x30a   : > { %v3412_v22 = vsel %vm3099_vm7, %v3370_v61, %v14851_v32 }
 0x30b   : > { %v3454_v42 = vsel %vm3140_vm8, %v3412_v22, %v14834_v26 }
 0x30c   : > { %3042 = vrot.lane.b32.xlu1 %v14357_v41, %s12766_s12  ;;  %v3532_v4 = vrot.slane %v3454_v42, 2 }
 0x30d   : > { %3044 = vrot.lane.b32.xlu0 %v14374_v35, %s12766_s12  ;;  %v14861_v12 = vpop.permute.xlu0 %3333  ;;  %v3241_v21 = vpop.permute.xlu1 %3240  ;;  %v3376_v35 = vsel %vm3058_vm6, %v13877_v36, %v3239_v34 }
 0x30e   : > { %v3533_v10 = vsel %vm3518_vm9, %v3530_v5, %v3532_v4  ;;  %v3535_v11 = vsel %vm3518_vm9, %v3532_v4, %v3534_v25  ;;  %v17519_v5 = vld [vmem:[#allocation42_spill] sm:$0xff]  ;;  %v17522_v4 = vld [vmem:[#allocation27_spill] sm:$0xff] }
 0x30f   : > { %11264 = vmatprep.mubr.bf16.mxu1 %v3533_v10  ;;  %v17523_v10 = vld [vmem:[#allocation30_spill] sm:$0xff] }
 0x310   : > { %2817 = vrot.lane.b32.xlu1 %v14495_v54, %s12764_s30  ;;  %11265 = vmatmul.mubr.bf16.gmra.mrb[12].mxu1 %v3535_v11  ;;  %v3374_v54 = vsel %vm3058_vm6, %v17519_v5, %v3237_v16  ;;  %v17524_v11 = vld [vmem:[#allocation11_spill] sm:$0xff] }
 0x311   : > { %2819 = vrot.lane.b32.xlu0 %v14479_v44, %s12764_s30  ;;  %v14871_v41 = vpop.permute.xlu0 %3289  ;;  %v14873_v8 = vpop.permute.xlu1 %3331  ;;  %v17518_v44 = vld [vmem:[#allocation24_spill] sm:$0xff] }
 0x312   : > { %v3418_v47 = vsel %vm3099_vm7, %v3376_v35, %v14871_v41 }
 0x313   : > { %v3460_v17 = vsel %vm3140_vm8, %v3418_v47, %v14861_v12 }
 0x314   : > { %2920 = vrot.lane.b32.xlu1 %v17518_v44, %s12765_s24  ;;  %v3538_v61 = vrot.slane %v3460_v17, 2  ;;  %v17526_v17 = vld [vmem:[#allocation28_spill] sm:$0xff] }
 0x315   : > { %2922 = vrot.lane.b32.xlu0 %v14466_v3, %s12765_s24  ;;  %v3243_v58 = vpop.permute.xlu0 %3242  ;;  %v14885_v49 = vpop.permute.xlu1 %3287  ;;  %v17520_v3 = vld [vmem:[#allocation19_spill] sm:$0xff] }
 0x316   : > { %v3416_v55 = vsel %vm3099_vm7, %v3374_v54, %v14885_v49  ;;  %v3380_v35 = vsel %vm3058_vm6, %v17524_v11, %v3243_v58  ;;  %v17525_v54 = vld [vmem:[#allocation53_spill] sm:$0xff] }
 0x317   : > { %v3458_v33 = vsel %vm3140_vm8, %v3416_v55, %v14873_v8  ;;  %v17527_v55 = vld [vmem:[#allocation12_spill] sm:$0xff] }
 0x318   : > { %3046 = vrot.lane.b32.xlu1 %v17521_v60, %s12766_s12  ;;  %v3536_v16 = vrot.slane %v3458_v33, 2  ;;  %v3378_v33 = vsel %vm3058_vm6, %v17527_v55, %v3241_v21 }
 0x319   : > { %3048 = vrot.lane.b32.xlu0 %v17520_v3, %s12766_s12  ;;  %v3245_v34 = vpop.permute.xlu1 %3244 }
 0x31a   : > { %v3537_v22 = vsel %vm3518_vm9, %v3534_v25, %v3536_v16  ;;  %v3539_v42 = vsel %vm3518_vm9, %v3536_v16, %v3538_v61 }
 0x31b   : > { %v14895_v27 = vpop.permute.xlu0 %3337  ;;  %11268 = vmatprep.mubr.bf16.mxu1 %v3537_v22 }
 0x31c   : > { %2821 = vrot.lane.b32.xlu1 %v17523_v10, %s12764_s30  ;;  %11269 = vmatmul.mubr.bf16.gmra.mrb[16].mxu1 %v3539_v42  ;;  %v17528_v42 = vld [vmem:[#allocation49_spill] sm:$0xff] }
 0x31d   : > { %2823 = vrot.lane.b32.xlu0 %v17522_v4, %s12764_s30  ;;  %v17529_v4 = vld [vmem:[#allocation20_spill] sm:$0xff] }
 0x31e   : > { %v14907_v44 = vpop.permute.xlu1 %3335 }
 0x31f   : > { %v14905_v47 = vpop.permute.xlu0 %3293 }
 0x320   : > { %v3422_v25 = vsel %vm3099_vm7, %v3380_v35, %v14905_v47  ;;  %2924 = vrot.lane.b32.xlu1 %v17526_v17, %s12765_s24 }
 0x321   : > { %2926 = vrot.lane.b32.xlu0 %v17525_v54, %s12765_s24  ;;  %v3464_v58 = vsel %vm3140_vm8, %v3422_v25, %v14895_v27 }
 0x322   : > { %v14919_v60 = vpop.permute.xlu1 %3291  ;;  %v3542_v10 = vrot.slane %v3464_v58, 2 }
 0x323   : > { %v3247_v3 = vpop.permute.xlu0 %3246  ;;  %v3420_v16 = vsel %vm3099_vm7, %v3378_v33, %v14919_v60  ;;  %v17531_v33 = vld [vmem:[#allocation13_spill] sm:$0xff] }
 0x324   : > { %v3462_v22 = vsel %vm3140_vm8, %v3420_v16, %v14907_v44  ;;  %3050 = vrot.lane.b32.xlu1 %v17529_v4, %s12766_s12  ;;  %v3384_v16 = vsel %vm3058_vm6, %v17531_v33, %v3247_v3 }
 0x325   : > { %3052 = vrot.lane.b32.xlu0 %v17528_v42, %s12766_s12  ;;  %v3540_v21 = vrot.slane %v3462_v22, 2  ;;  %v17532_v42 = vld [vmem:[#allocation46_spill] sm:$0xff] }
 0x326   : > { %v3249_v25 = vpop.permute.xlu1 %3248  ;;  %v17237_v4 = vshll.u32 %v17532_v42, 16 }
 0x327   : > { %v14929_v35 = vpop.permute.xlu0 %3341  ;;  %v3541_v54 = vsel %vm3518_vm9, %v3538_v61, %v3540_v21  ;;  %v3543_v17 = vsel %vm3518_vm9, %v3540_v21, %v3542_v10  ;;  %v17533_v21 = vld [vmem:[#allocation32_spill] sm:$0xff] }
 0x328   : > { %17530 = vst [vmem:[#allocation24_spill] sm:$0xff] %v14929_v35  ;;  %2825 = vrot.lane.b32.xlu1 %v14593_v57, %s12764_s30  ;;  %11272 = vmatprep.mubr.bf16.mxu1 %v3541_v54  ;;  %v4069_v48 = vrot.slane %v17237_v4, 1 }
 0x329   : > { %2827 = vrot.lane.b32.xlu0 %v14580_v40, %s12764_s30  ;;  %11273 = vmatmul.mubr.bf16.gmra.mrb[20].mxu1 %v3543_v17  ;;  %v17534_v40 = vld [vmem:[#allocation43_spill] sm:$0xff] }
 0x32a   : > { %v14941_v22 = vpop.permute.xlu1 %3339  ;;  %v3382_v57 = vsel %vm3058_vm6, %v17534_v40, %v3245_v34  ;;  %v17536_v34 = vld [vmem:[#allocation21_spill] sm:$0xff] }
 0x32b   : > { %v14939_v58 = vpop.permute.xlu0 %3297 }
 0x32c   : > { %v3426_v61 = vsel %vm3099_vm7, %v3384_v16, %v14939_v58  ;;  %2928 = vrot.lane.b32.xlu1 %v14573_v59, %s12765_s24  ;;  %v17535_v59 = vld [vmem:[#allocation50_spill] sm:$0xff] }
 0x32d   : > { %2930 = vrot.lane.b32.xlu0 %v17533_v21, %s12765_s24  ;;  %v3468_v3 = vsel %vm3140_vm8, %v3426_v61, %v14929_v35  ;;  %v4071_v61 = vshrl.u32 %v17532_v42, 16 }
 0x32e   : > { %v14954_v17 = vpop.permute.xlu1 %3295  ;;  %v3546_v28 = vrot.slane %v3468_v3, 2 }
 0x32f   : > { %v3251_v54 = vpop.permute.xlu0 %3250  ;;  %v3424_v16 = vsel %vm3099_vm7, %v3382_v57, %v14954_v17  ;;  %v14969_v4 = vor.u32 %v4071_v61, %v4069_v48 }
 0x330   : > { %v3466_v21 = vsel %vm3140_vm8, %v3424_v16, %v14941_v22  ;;  %3054 = vrot.lane.b32.xlu1 %v17536_v34, %s12766_s12  ;;  %v17538_v16 = vld [vmem:[#allocation44_spill] sm:$0xff]  ;;  %v4079_v34 = vrot.slane %v17532_v42, 1 }
 0x331   : > { %3056 = vrot.lane.b32.xlu0 %v17535_v59, %s12766_s12  ;;  %v3544_v30 = vrot.slane %v3466_v21, 2  ;;  %v3388_v3 = vsel %vm3058_vm6, %v17538_v16, %v3251_v54 }
 0x332   : > { %v3253_v29 = vpop.permute.xlu1 %3252 }
 0x333   : > { %v14967_v56 = vpop.permute.xlu0 %3345  ;;  %v3545_v57 = vsel %vm3518_vm9, %v3542_v10, %v3544_v30  ;;  %v3547_v24 = vsel %vm3518_vm9, %v3544_v30, %v3546_v28  ;;  %v4070_v30 = vsel %vm2624_vm4, %v14637_v37, %v4069_v48  ;;  %v4080_v48 = vsel %vm2850_vm3, %v14596_v7, %v4079_v34  ;;  %v17542_v7 = vld [vmem:[#allocation15_spill] sm:$0xff] }
 0x334   : > { %17537 = vst [vmem:[#allocation19_spill] sm:$0xff] %v14967_v56  ;;  %4062 = vrot.lane.b32.xlu1 %v14640_v1, %s12764_s30  ;;  %11276 = vmatprep.mubr.bf16.mxu1 %v3545_v57  ;;  %v17540_v1 = vld [vmem:[#allocation14_spill] sm:$0xff] }
 0x335   : > { %4076 = vrot.lane.b32.xlu0 %v14969_v4, %s12765_s24  ;;  %11277 = vmatmul.mubr.bf16.gmra.mrb[24].mxu1 %v3547_v24  ;;  %v3386_v24 = vsel %vm3058_vm6, %v17540_v1, %v3249_v25 }
 0x336   : > { %v14981_v59 = vpop.permute.xlu1 %3343 }
 0x337   : > { %v14979_v21 = vpop.permute.xlu0 %3301 }
 0x338   : > { %17539 = vst [vmem:[#allocation18_spill] sm:$0xff] %v14979_v21  ;;  %v3430_v10 = vsel %vm3099_vm7, %v3388_v3, %v14979_v21  ;;  %4074 = vrot.lane.b32.xlu1 %v4070_v30, %s12765_s24 }
 0x339   : > { %4064 = vrot.lane.b32.xlu0 %v14637_v37, %s12764_s30  ;;  %v3472_v54 = vsel %vm3140_vm8, %v3430_v10, %v14967_v56 }
 0x33a   : > { %v14995_v62 = vpop.permute.xlu1 %3299  ;;  %v3550_v25 = vrot.slane %v3472_v54, 2 }
 0x33b   : > { %v3255_v57 = vpop.permute.xlu0 %3254  ;;  %v3428_v3 = vsel %vm3099_vm7, %v3386_v24, %v14995_v62 }
 0x33c   : > { %v3470_v37 = vsel %vm3140_vm8, %v3428_v3, %v14981_v59  ;;  %4081 = vrot.lane.b32.xlu1 %v4080_v48, %s12766_s12  ;;  %v3392_v24 = vsel %vm3058_vm6, %v17542_v7, %v3255_v57 }
 0x33d   : > { %4083 = vrot.lane.b32.xlu0 %v4079_v34, %s12766_s12  ;;  %v3548_v2 = vrot.slane %v3470_v37, 2 }
 0x33e   : > { %v3257_v10 = vpop.permute.xlu1 %3256 }
 0x33f   : > { %v15005_v20 = vpop.permute.xlu0 %3349  ;;  %v3549_v38 = vsel %vm3518_vm9, %v3546_v28, %v3548_v2  ;;  %v3551_v23 = vsel %vm3518_vm9, %v3548_v2, %v3550_v25  ;;  %v17545_v28 = vld [vmem:[#allocation48_spill] sm:$0xff] }
 0x340   : > { %17541 = vst [vmem:[#allocation27_spill] sm:$0xff] %v15005_v20  ;;  %4624 = vrot.lane.b32.xlu1 %v14618_v51, %s12765_s24  ;;  %11280 = vmatprep.mubr.bf16.mxu1 %v3549_v38  ;;  %v15021_v56 = vrot.slane %v17545_v28, 1  ;;  %v17546_v51 = vld [vmem:[#allocation7_spill] sm:$0xff] }
 0x341   : > { %4626 = vrot.lane.b32.xlu0 %v4080_v48, %s12765_s24  ;;  %11281 = vmatmul.mubr.bf16.gmra.mrb[28].mxu1 %v3551_v23  ;;  %v3390_v38 = vsel %vm3058_vm6, %v17546_v51, %v3253_v29 }
 0x342   : > { %v15016_v54 = vpop.permute.xlu1 %3347 }
 0x343   : > { %v15014_v3 = vpop.permute.xlu0 %3305  ;;  %17544 = vst [vmem:[#allocation53_spill] sm:$0xff] %v15016_v54 }
 0x344   : > { %17543 = vst [vmem:[#allocation30_spill] sm:$0xff] %v15014_v3  ;;  %v3434_v37 = vsel %vm3099_vm7, %v3392_v24, %v15014_v3  ;;  %4622 = vrot.lane.b32.xlu1 %v14969_v4, %s12764_s30  ;;  %v4632_v24 = vsel %vm2850_vm3, %v4079_v34, %v15021_v56  ;;  %v5070_v3 = vrot.slane %v4071_v61, 1 }
 0x345   : > { %4620 = vrot.lane.b32.xlu0 %v4070_v30, %s12764_s30  ;;  %v3476_v23 = vsel %vm3140_vm8, %v3434_v37, %v15005_v20  ;;  %v17548_v30 = vshll.u32 %v17532_v42, 16 }
 0x346   : > { %v15030_v57 = vpop.permute.xlu1 %3303  ;;  %v3554_v29 = vrot.slane %v3476_v23, 2  ;;  %v17551_v23 = vld [vmem:[#allocation16_spill] sm:$0xff] }
 0x347   : > { %v3259_v2 = vpop.permute.xlu0 %3258  ;;  %17547 = vst [vmem:[#allocation28_spill] sm:$0xff] %v15030_v57  ;;  %v3432_v48 = vsel %vm3099_vm7, %v3390_v38, %v15030_v57  ;;  %v5071_v7 = vrot.slane %v17548_v30, 2  ;;  %v17550_v30 = vld [vmem:[#allocation10_spill] sm:$0xff] }
 0x348   : > { %v3474_v21 = vsel %vm3140_vm8, %v3432_v48, %v15016_v54  ;;  %4628 = vrot.lane.b32.xlu1 %v4079_v34, %s12765_s24  ;;  %v5051_v34 = vshll.u32 %v17545_v28, 16  ;;  %v3396_v48 = vsel %vm3058_vm6, %v14143_v43, %v3259_v2 }
 0x349   : > { %4633 = vrot.lane.b32.xlu0 %v4632_v24, %s12766_s12  ;;  %v3552_v37 = vrot.slane %v3474_v21, 2  ;;  %v15046_v61 = vor.u32 %v5071_v7, %v5070_v3  ;;  %v3394_v21 = vsel %vm3058_vm6, %v17551_v23, %v3257_v10  ;;  %v5055_v7 = vshrl.u32 %v17545_v28, 16  ;;  %v17555_v28 = vld [vmem:[#allocation17_spill] sm:$0xff] }
 0x34a   : > { %v15042_v16 = vpop.permute.xlu1 %3351  ;;  %v5053_v54 = vrot.slane %v5051_v34, 1 }
 0x34b   : > { %v3354_v20 = vpop.permute.xlu0 %3353  ;;  %17549 = vst [vmem:[#allocation49_spill] sm:$0xff] %v15042_v16  ;;  %v3553_v38 = vsel %vm3518_vm9, %v3550_v25, %v3552_v37  ;;  %v3555_v57 = vsel %vm3518_vm9, %v3552_v37, %v3554_v29  ;;  %v5074_v51 = vrot.slane %v5055_v7, 1 }
 0x34c   : > { %4635 = vrot.lane.b32.xlu1 %v15021_v56, %s12766_s12  ;;  %11284 = vmatprep.mubr.bf16.mxu1 %v3553_v38  ;;  %v17553_v38 = vld [vmem:[#allocation51_spill] sm:$0xff] }
 0x34d   : > { %5078 = vrot.lane.b32.xlu0 %v17550_v30, %s12766_s12  ;;  %11285 = vmatmul.mubr.bf16.gmra.mrb[32].mxu1 %v3555_v57  ;;  %v5073_v42 = vsel %vm2932_vm5, %v17553_v38, %v15046_v61  ;;  %v17554_v57 = vld [vmem:[#allocation22_spill] sm:$0xff] }
 0x34e   : > { %v15057_v37 = vpop.permute.xlu1 %3307 }
 0x34f   : > { %v3310_v25 = vpop.permute.xlu0 %3309  ;;  %17552 = vst [vmem:[#allocation20_spill] sm:$0xff] %v15057_v37  ;;  %v3436_v30 = vsel %vm3099_vm7, %v3394_v21, %v15057_v37  ;;  %v17557_v21 = vld [vmem:[#allocation8_spill] sm:$0xff] }
 0x350   : > { %v3438_v3 = vsel %vm3099_vm7, %v3396_v48, %v3310_v25  ;;  %v3478_v2 = vsel %vm3140_vm8, %v3436_v30, %v15042_v16  ;;  %5080 = vrot.lane.b32.xlu1 %v17554_v57, %s12766_s12  ;;  %v5596_v48 = vshrl.u32 %v17555_v28, 16  ;;  %v17556_v25 = vld [vmem:[#allocation23_spill] sm:$0xff]  ;;  %v5075_v30 = vrot.slane %v5051_v34, 2  ;;  %v17558_v34 = vld [vmem:[#allocation52_spill] sm:$0xff] }
 0x351   : > { %v3480_v10 = vsel %vm3140_vm8, %v3438_v3, %v3354_v20  ;;  %5082 = vrot.lane.b32.xlu0 %v5073_v42, %s12766_s12  ;;  %v3060_v37 = vsel %vm3058_vm6, %v17557_v21, %v17556_v25  ;;  %v3556_v38 = vrot.slane %v3478_v2, 2  ;;  %v17559_v21 = vshll.u32 %v17555_v28, 16 }
 0x352   : > { %v3558_v23 = vrot.slane %v3480_v10, 2  ;;  %v2802_v3 = vpop.permute.xlu1 %2801  ;;  %v3101_v25 = vsel %vm3099_vm7, %v3060_v37, %v17558_v34 }
 0x353   : > { %v2804_v20 = vpop.permute.xlu0 %2803  ;;  %v3072_v43 = vsel %vm3058_vm6, %v13769_v46, %v2802_v3  ;;  %v3557_v16 = vsel %vm3518_vm9, %v3554_v29, %v3556_v38 }
 0x354   : > { %v3074_v57 = vsel %vm3058_vm6, %v13830_v6, %v2804_v20  ;;  %v3559_v35 = vsel %vm3518_vm9, %v3556_v38, %v3558_v23  ;;  %v4094_v2 = vsel %vm3099_vm7, %v3072_v43, %v14781_v0  ;;  %5062 = vrot.lane.b32.xlu1 %v4632_v24, %s12765_s24  ;;  %v15095_v20 = vrot.slane %v17559_v21, 1  ;;  %11288 = vmatprep.mubr.bf16.mxu1 %v3557_v16  ;;  %v17560_v0 = vld [vmem:[#allocation26_spill] sm:$0xff] }
 0x355   : > { %v4095_v10 = vsel %vm3099_vm7, %v3074_v57, %v14851_v32  ;;  %5064 = vrot.lane.b32.xlu0 %v15021_v56, %s12765_s24  ;;  %v4117_v32 = vsel %vm3140_vm8, %v4094_v2, %v14751_v39  ;;  %v3142_v23 = vsel %vm3140_vm8, %v3101_v25, %v17560_v0  ;;  %v5057_v38 = vor.u32 %v5055_v7, %v5053_v54 }
 0x356   : > { %v4118_v29 = vsel %vm3140_vm8, %v4095_v10, %v14834_v26  ;;  %v4191_v42 = vshrl.u32 %v4117_v32, 16  ;;  %v4194_v6 = vshll.u32 %v4117_v32, 16  ;;  %11289 = vmatmul.mubr.bf16.gmra.mrb[36].mxu1 %v3559_v35  ;;  %v2905_v34 = vpop.permute.xlu1 %2904  ;;  %v5054_v16 = vsel %vm2624_vm4, %v14969_v4, %v5053_v54 }
 0x357   : > { %v4199_v3 = vshrl.u32 %v4118_v29, 16  ;;  %v4202_v24 = vshll.u32 %v4118_v29, 16  ;;  %v2907_v37 = vpop.permute.xlu0 %2906  ;;  %11308 = vmatprep.mubr.bf16.mxu1 %v3142_v23  ;;  %v15107_v10 = vsel %vm3099_vm7, %v3072_v43, %v2905_v34  ;;  %v15111_v2 = vor.u32 %v5075_v30, %v5074_v51  ;;  %v17561_v23 = vld [vmem:[#allocation25_spill] sm:$0xff]  ;;  %v17563_v34 = vld [vmem:[#allocation54_spill] sm:$0xff] }
 0x358   : > { %v15104_v21 = vsel %vm3099_vm7, %v3074_v57, %v2907_v37  ;;  %v4193_v29 = vrot.slane %v4191_v42, 3  ;;  %v4196_v0 = vrot.slane %v4194_v6, 4  ;;  %5058 = vrot.lane.b32.xlu1 %v5054_v16, %s12764_s30  ;;  %v4651_v43 = vsel %vm3140_vm8, %v15107_v10, %v14751_v39 }
 0x359   : > { %v4201_v7 = vrot.slane %v4199_v3, 3  ;;  %v4204_v25 = vrot.slane %v4202_v24, 4  ;;  %5060 = vrot.lane.b32.xlu0 %v5057_v38, %s12764_s30  ;;  %v15118_v35 = vsel %vm3140_vm8, %v15104_v21, %v14834_v26  ;;  %v12767_v4 = vmov 0   ;;  %v17562_v26 = vld [vmem:[#allocation33_spill] sm:$0xff] }
 0x35a   : > { %v15123_v54 = vrot.slane %v12767_v4, 1  ;;  %v17261_v51 = vrot.slane %v15118_v35, 5  ;;  %v4715_v30 = vrot.slane %v4651_v43, 5  ;;  %v15128_v42 = vpop.permute.xlu1 %3030  ;;  %v4197_v57 = vor.u32 %v4196_v0, %v4193_v29 }
 0x35b   : > { %v15126_v6 = vpop.permute.xlu0 %3032  ;;  %v15130_v32 = vor.u32 %v4204_v25, %v4201_v7  ;;  %v3103_v3 = vsel %vm3099_vm7, %v17562_v26, %v17561_v23  ;;  %v5077_v39 = vsel %vm2932_vm5, %v15046_v61, %v15111_v2  ;;  %v5598_v24 = vor.u32 %v5596_v48, %v15095_v20  ;;  %v17564_v7 = vld [vmem:[#allocation34_spill] sm:$0xff]  ;;  %v17565_v25 = vld [vmem:[#allocation35_spill] sm:$0xff] }
 0x35c   : > { %v5618_v37 = vrot.slane %v5596_v48, 1  ;;  %v3145_v16 = vsel %vm3140_vm8, %v3103_v3, %v17563_v34  ;;  %5084 = vrot.lane.b32.xlu1 %v5077_v39, %s12766_s12  ;;  %v15147_v29 = vsel %vm3099_vm7, %v17565_v25, %v17564_v7  ;;  %v17260_v0 = vmov 0.0|0.0   ;;  %v12337_v48 = vld [vmem:[%s17175_s3 + $0x88] sm:$0xff]  }
 0x35d   : > { %5086 = vrot.lane.b32.xlu0 %v15111_v2, %s12766_s12  ;;  %v5612_v43 = vrot.slane %v17260_v0, 1  ;;  %v17566_v61 = vshll.u32 %v17555_v28, 16  ;;  %v15157_v26 = vsel %vm4151_vm10, %v14828_v50, %v4197_v57  ;;  %v15161_v3 = vsel %vm4151_vm10, %v4197_v57, %v15130_v32 }
 0x35e   : > { %v17567_v39 = vrot.slane %v14787_v63, 5  ;;  %v15171_v7 = vsel %vm4707_vm11, %v4715_v30, %v17261_v51  ;;  %11309 = vmatmul.mubr.bf16.vlgmr.msra.gmra.mrb[0].mxu1 %v3145_v16  ;;  %v3148_v50 = vsel %vm3140_vm8, %v15147_v29, %v14656_v15  ;;  %v17568_v57 = vrot.slane %v17555_v28, 1  ;;  %v17588_v28 = vld [vmem:[#allocation57_spill] sm:$0xff] }
 0x35f   : > { %v5619_v23 = vrot.slane %v17566_v61, 2  ;;  %v2808_v25 = vpop.permute.xlu0 %2807  ;;  %v2806_v61 = vpop.permute.xlu1 %2805  ;;  %11349 = vmatpush3.bf16.msra.mxu1 %v14770_v13  ;;  %11312 = vmatprep.mubr.bf16.mxu1 %v3148_v50  ;;  %v5603_v16 = vsel %vm2624_vm4, %v5598_v24, %v15123_v54  ;;  %v5625_v0 = vrot.slane %v12767_v4, 2  ;;  %v5595_v13 = vsel %vm2624_vm4, %v5057_v38, %v15095_v20 }
 0x360   : > { %v15166_v34 = vsel %vm4707_vm11, %v17567_v39, %v4715_v30  ;;  %v5611_v63 = vsel %vm2850_vm3, %v15021_v56, %v17568_v57  ;;  %v3078_v39 = vsel %vm3058_vm6, %v17519_v5, %v2808_v25  ;;  %v3076_v30 = vsel %vm3058_vm6, %v13824_v52, %v2806_v61  ;;  %11350 = vmatprep.subr.bf16.mxu1 %v12337_v48 }
 0x361   : > { %v4097_v15 = vsel %vm3099_vm7, %v3078_v39, %v14885_v49  ;;  %v4096_v51 = vsel %vm3099_vm7, %v3076_v30, %v14832_v53  ;;  %5606 = vrot.lane.b32.xlu0 %v5603_v16, %s12764_s30  ;;  %5614 = vrot.lane.b32.xlu1 %v5611_v63, %s12765_s24  ;;  %v17569_v4 = vmov %v17568_v57  ;;  %v5620_v25 = vor.u32 %v5619_v23, %v5618_v37  ;;  %v12338_v53 = vld [vmem:[%s17175_s3 + $0x90] sm:$0xff]  }
 0x362   : > { %v4120_v56 = vsel %vm3140_vm8, %v4097_v15, %v14873_v8  ;;  %v4119_v24 = vsel %vm3140_vm8, %v4096_v51, %v14818_v19  ;;  %v5613_v49 = vsel %vm2850_vm3, %v17569_v4, %v5612_v43  ;;  %v17570_v15 = vld [vmem:[#allocation31_spill] sm:$0xff]  ;;  %v5626_v43 = vor.u32 %v5625_v0, %v15123_v54 }
 0x363   : > { %v4215_v50 = vshrl.u32 %v4120_v56, 16  ;;  %v4218_v61 = vshll.u32 %v4120_v56, 16  ;;  %v4207_v57 = vshrl.u32 %v4119_v24, 16  ;;  %v4210_v20 = vshll.u32 %v4119_v24, 16  ;;  %v2911_v38 = vpop.permute.xlu0 %2910  ;;  %v2909_v63 = vpop.permute.xlu1 %2908  ;;  %11351 = vmatpush3.bf16.msra.mxu1 %v12337_v48  ;;  %v17571_v48 = vld [vmem:[#allocation36_spill] sm:$0xff] }
 0x364   : > { %v15206_v16 = vsel %vm3099_vm7, %v3078_v39, %v2911_v38  ;;  %v15209_v51 = vsel %vm3099_vm7, %v3076_v30, %v2909_v63  ;;  %v15214_v37 = vsel %vm3099_vm7, %v14697_v14, %v17570_v15  ;;  %v15233_v0 = vsel %vm3140_vm8, %v14756_v9, %v14753_v18  ;;  %11352 = vmatprep.subr.bf16.mxu1 %v12338_v53  ;;  %v12339_v30 = vld [vmem:[%s17175_s3 + $0x98] sm:$0xff]   ;;  %v12340_v9 = vld [vmem:[%s17175_s3 + $0xa0] sm:$0xff]  }
 0x365   : > { %v4217_v23 = vrot.slane %v4215_v50, 3  ;;  %v4220_v56 = vrot.slane %v4218_v61, 4  ;;  %v4209_v4 = vrot.slane %v4207_v57, 3  ;;  %v4212_v24 = vrot.slane %v4210_v20, 4  ;;  %5616 = vrot.lane.b32.xlu0 %v5613_v49, %s12765_s24  ;;  %5604 = vrot.lane.b32.xlu1 %v5595_v13, %s12764_s30  ;;  %s377_s30 = sand.u32 1, %s12753_s18  }
 0x366   : > { %v15222_v39 = vsel %vm3140_vm8, %v15206_v16, %v14873_v8  ;;  %v4653_v14 = vsel %vm3140_vm8, %v15209_v51, %v14818_v19  ;;  %v3151_v54 = vsel %vm3140_vm8, %v15214_v37, %v17571_v48  ;;  %v5627_v57 = vsel %vm2932_vm5, %v5620_v25, %v5626_v43  ;;  %s378_s22 = scalar_lea.vmem [#allocation2], %s377_s30  ;;  %s9930_s13 = scalar_lea.sflag [#allocation3], %s377_s30 }
 0x367   : > { %v4721_v8 = vrot.slane %v15222_v39, 5  ;;  %v4719_v13 = vrot.slane %v4653_v14, 5  ;;  %11313 = vmatmul.mubr.bf16.gmra.mrb[4].mxu1 %v3151_v54  ;;  %v15239_v49 = vpop.permute.xlu0 %3036  ;;  %v3035_v19 = vpop.permute.xlu1 %3034  ;;  %v4213_v50 = vor.u32 %v4212_v24, %v4209_v4  ;;  %v4221_v61 = vor.u32 %v4220_v56, %v4217_v23  ;;  %v12341_v56 = vld [vmem:[%s17175_s3 + $0xa8] sm:$0xff]   ;;  %s9942_s0 = sshll.u32 %s378_s22, 4  ;;  %s17131_s0 = int_to_ptr.vmem [resolvable:$true] %s9942_s0 }
 0x368   : > { %11316 = vmatprep.mubr.bf16.mxu1 %v15233_v0  ;;  %v5621_v18 = vsel %vm2932_vm5, %v15111_v2, %v5620_v25  ;;  %11353 = vmatpush3.bf16.msra.mxu1 %v12338_v53  ;;  %v17572_v63 = vrot.slane %v15118_v35, 5  ;;  %v15281_v4 = vsel %vm3140_vm8, %v14779_v45, %v14717_v31  ;;  %v15286_v24 = vsel %vm3140_vm8, %v15107_v10, %v15128_v42  ;;  %s12699_s1 = scalar_lea.vmem %s17131_s0, 16 }
 0x369   : > { %5630 = vrot.lane.b32.xlu0 %v5627_v57, %s12766_s12  ;;  %5628 = vrot.lane.b32.xlu1 %v5621_v18, %s12766_s12  ;;  %v15252_v20 = vsel %vm4151_vm10, %v15130_v32, %v4213_v50  ;;  %v15255_v38 = vsel %vm4151_vm10, %v4213_v50, %v4221_v61  ;;  %v15265_v25 = vsel %vm4707_vm11, %v4719_v13, %v4721_v8  ;;  %p12700_p11 = scmp.ne.s32.totalorder %s17131_s0, %s12699_s1 }
 0x36a   : > { %11354 = vmatprep.subr.bf16.mxu1 %v12339_v30  ;;  %v15260_v2 = vsel %vm4707_vm11, %v17572_v63, %v4719_v13  ;;  %v12342_v63 = vld [vmem:[%s17175_s3 + $0xb0] sm:$0xff]  }
 0x36b   : > { %v2812_v53 = vpop.permute.xlu0 %2811  ;;  %v2810_v15 = vpop.permute.xlu1 %2809  ;;  %p12701_p12 = pnand %p12700_p11, %p12868_p5 }
 0x36c   : > { %v3082_v43 = vsel %vm3058_vm6, %v17527_v55, %v2812_v53  ;;  %v3080_v32 = vsel %vm3058_vm6, %v13877_v36, %v2810_v15  ;;  %11355 = vmatpush3.bf16.msra.mxu1 %v12339_v30 }
 0x36d   : > { %v4099_v35 = vsel %vm3099_vm7, %v3082_v43, %v14919_v60  ;;  %v4098_v23 = vsel %vm3099_vm7, %v3080_v32, %v14871_v41  ;;  %11356 = vmatprep.subr.bf16.mxu1 %v12340_v9  ;;  %p12702_p13 = pneg %p12701_p12 }
 0x36e   : > { %v4122_v60 = vsel %vm3140_vm8, %v4099_v35, %v14907_v44  ;;  %v4121_v41 = vsel %vm3140_vm8, %v4098_v23, %v14861_v12 }
 0x36f   : > { %v4231_v14 = vshrl.u32 %v4122_v60, 16  ;;  %v4234_v48 = vshll.u32 %v4122_v60, 16  ;;  %v4223_v54 = vshrl.u32 %v4121_v41, 16  ;;  %v4226_v30 = vshll.u32 %v4121_v41, 16  ;;  %11317 = vmatmul.mubr.bf16.gmra.mrb[8].mxu1 %v15281_v4  ;;  %v2915_v13 = vpop.permute.xlu0 %2914  ;;  %v2913_v31 = vpop.permute.xlu1 %2912 }
 0x370   : > { %v15294_v45 = vsel %vm3099_vm7, %v3082_v43, %v2915_v13  ;;  %11320 = vmatprep.mubr.bf16.mxu1 %v15286_v24  ;;  %v3121_v10 = vsel %vm3099_vm7, %v3080_v32, %v2913_v31  ;;  %11357 = vmatpush3.bf16.msra.mxu1 %v12340_v9  ;;  %v15311_v41 = vsel %vm3140_vm8, %v15104_v21, %v15126_v6 }
 0x371   : > { %v4233_v42 = vrot.slane %v4231_v14, 3  ;;  %v4236_v50 = vrot.slane %v4234_v48, 4  ;;  %v4225_v57 = vrot.slane %v4223_v54, 3  ;;  %v4228_v18 = vrot.slane %v4226_v30, 4  ;;  %11358 = vmatprep.subr.bf16.mxu1 %v12341_v56 }
 0x372   : > { %v4656_v53 = vsel %vm3140_vm8, %v15294_v45, %v14907_v44  ;;  %v4655_v15 = vsel %vm3140_vm8, %v3121_v10, %v14861_v12  ;;  %v12343_v44 = vld [vmem:[%s17175_s3 + $0xb8] sm:$0xff]   ;;  %v15332_v21 = vsel %vm3140_vm8, %v15209_v51, %v3035_v19  ;;  %v15347_v19 = vld [vmem:[%s17175_s3 + $0xc0] sm:$0xff]  }
 0x373   : > { %v4725_v43 = vrot.slane %v4656_v53, 5  ;;  %v4723_v35 = vrot.slane %v4655_v15, 5  ;;  %v15306_v32 = vpop.permute.xlu0 %3040  ;;  %v3039_v9 = vpop.permute.xlu1 %3038  ;;  %v4229_v23 = vor.u32 %v4228_v18, %v4225_v57  ;;  %v4237_v60 = vor.u32 %v4236_v50, %v4233_v42 }
 0x374   : > { %11359 = vmatpush3.bf16.msra.mxu1 %v12341_v56 }
 0x375   : > { %11360 = vmatprep.subr.bf16.mxu1 %v12342_v63  ;;  %v15317_v12 = vsel %vm4151_vm10, %v4221_v61, %v4229_v23  ;;  %v15320_v14 = vsel %vm4151_vm10, %v4229_v23, %v4237_v60  ;;  %v15325_v56 = vsel %vm4707_vm11, %v4721_v8, %v4723_v35  ;;  %v15328_v48 = vsel %vm4707_vm11, %v4723_v35, %v4725_v43 }
 0x377   : > { %11321 = vmatmul.mubr.bf16.gmra.mrb[12].mxu1 %v15311_v41  ;;  %v2816_v6 = vpop.permute.xlu0 %2815  ;;  %v2814_v61 = vpop.permute.xlu1 %2813 }
 0x378   : > { %v3086_v54 = vsel %vm3058_vm6, %v17534_v40, %v2816_v6  ;;  %11324 = vmatprep.mubr.bf16.mxu1 %v15332_v21  ;;  %v3084_v39 = vsel %vm3058_vm6, %v17524_v11, %v2814_v61  ;;  %11361 = vmatpush3.bf16.msra.mxu1 %v12342_v63  ;;  %v15359_v6 = vsel %vm3140_vm8, %v15206_v16, %v15239_v49 }
 0x379   : > { %v4101_v8 = vsel %vm3099_vm7, %v3086_v54, %v14954_v17  ;;  %v4100_v51 = vsel %vm3099_vm7, %v3084_v39, %v14905_v47  ;;  %11362 = vmatprep.subr.bf16.mxu1 %v12343_v44  ;;  %v15362_v61 = vsel %vm3140_vm8, %v3121_v10, %v3039_v9 }
 0x37a   : > { %v4124_v30 = vsel %vm3140_vm8, %v4101_v8, %v14941_v22  ;;  %v4123_v13 = vsel %vm3140_vm8, %v4100_v51, %v14895_v27 }
 0x37b   : > { %v4247_v31 = vshrl.u32 %v4124_v30, 16  ;;  %v4250_v42 = vshll.u32 %v4124_v30, 16  ;;  %v4239_v50 = vshrl.u32 %v4123_v13, 16  ;;  %v4242_v57 = vshll.u32 %v4123_v13, 16  ;;  %v2919_v17 = vpop.permute.xlu0 %2918  ;;  %v2917_v18 = vpop.permute.xlu1 %2916 }
 0x37c   : > { %v3127_v47 = vsel %vm3099_vm7, %v3086_v54, %v2919_v17  ;;  %v3125_v63 = vsel %vm3099_vm7, %v3084_v39, %v2917_v18  ;;  %11363 = vmatpush3.bf16.msra.mxu1 %v12343_v44 }
 0x37d   : > { %v4249_v53 = vrot.slane %v4247_v31, 3  ;;  %v4252_v15 = vrot.slane %v4250_v42, 4  ;;  %v4241_v35 = vrot.slane %v4239_v50, 3  ;;  %v4244_v23 = vrot.slane %v4242_v57, 4  ;;  %11404 = vmatprep.subr.bf16.mxu1 %v15347_v19 }
 0x37e   : > { %v4658_v54 = vsel %vm3140_vm8, %v3127_v47, %v14941_v22  ;;  %v4657_v44 = vsel %vm3140_vm8, %v3125_v63, %v14895_v27 }
 0x37f   : > { %v4729_v39 = vrot.slane %v4658_v54, 5  ;;  %v4727_v8 = vrot.slane %v4657_v44, 5  ;;  %11325 = vmatmul.mubr.bf16.gmra.mrb[16].mxu1 %v15359_v6  ;;  %v3045_v51 = vpop.permute.xlu0 %3044  ;;  %v3043_v30 = vpop.permute.xlu1 %3042  ;;  %v4245_v13 = vor.u32 %v4244_v23, %v4241_v35  ;;  %v4253_v31 = vor.u32 %v4252_v15, %v4249_v53  ;;  %v17573_v53 = vld [vmem:[#allocation24_spill] sm:$0xff] }
 0x380   : > { %11328 = vmatprep.mubr.bf16.mxu1 %v15362_v61  ;;  %v15396_v17 = vsel %vm3140_vm8, %v3125_v63, %v3043_v30 }
 0x381   : > { %v15371_v16 = vsel %vm4151_vm10, %v4237_v60, %v4245_v13  ;;  %v15374_v49 = vsel %vm4151_vm10, %v4245_v13, %v4253_v31  ;;  %v15377_v22 = vsel %vm4707_vm11, %v4725_v43, %v4727_v8  ;;  %v15380_v27 = vsel %vm4707_vm11, %v4727_v8, %v4729_v39 }
 0x382   : > { %v15393_v43 = vsel %vm3140_vm8, %v15294_v45, %v15306_v32 }
 0x383   : > { %v2820_v10 = vpop.permute.xlu0 %2819  ;;  %v2818_v9 = vpop.permute.xlu1 %2817 }
 0x384   : > { %v3090_v42 = vsel %vm3058_vm6, %v17540_v1, %v2820_v10  ;;  %v3088_v50 = vsel %vm3058_vm6, %v17531_v33, %v2818_v9 }
 0x385   : > { %v4103_v60 = vsel %vm3099_vm7, %v3090_v42, %v14995_v62  ;;  %v4102_v57 = vsel %vm3099_vm7, %v3088_v50, %v14939_v58 }
 0x386   : > { %v4126_v18 = vsel %vm3140_vm8, %v4103_v60, %v14981_v59  ;;  %v4125_v15 = vsel %vm3140_vm8, %v4102_v57, %v17573_v53 }
 0x387   : > { %v4263_v35 = vshrl.u32 %v4126_v18, 16  ;;  %v4266_v23 = vshll.u32 %v4126_v18, 16  ;;  %v4255_v62 = vshrl.u32 %v4125_v15, 16  ;;  %v4258_v54 = vshll.u32 %v4125_v15, 16  ;;  %11329 = vmatmul.mubr.bf16.gmra.mrb[20].mxu1 %v15393_v43  ;;  %v2923_v58 = vpop.permute.xlu0 %2922  ;;  %v2921_v44 = vpop.permute.xlu1 %2920 }
 0x388   : > { %v3131_v45 = vsel %vm3099_vm7, %v3090_v42, %v2923_v58  ;;  %11332 = vmatprep.mubr.bf16.mxu1 %v15396_v17  ;;  %v3129_v32 = vsel %vm3099_vm7, %v3088_v50, %v2921_v44  ;;  %v15411_v58 = vsel %vm3140_vm8, %v3127_v47, %v3045_v51  ;;  %v17574_v51 = vld [vmem:[#allocation7_spill] sm:$0xff] }
 0x389   : > { %v4265_v63 = vrot.slane %v4263_v35, 3  ;;  %v4268_v8 = vrot.slane %v4266_v23, 4  ;;  %v4257_v30 = vrot.slane %v4255_v62, 3  ;;  %v4260_v13 = vrot.slane %v4258_v54, 4 }
 0x38a   : > { %v4660_v10 = vsel %vm3140_vm8, %v3131_v45, %v14981_v59  ;;  %v4659_v9 = vsel %vm3140_vm8, %v3129_v32, %v17573_v53 }
 0x38b   : > { %v4733_v60 = vrot.slane %v4660_v10, 5  ;;  %v4731_v57 = vrot.slane %v4659_v9, 5  ;;  %v3049_v18 = vpop.permute.xlu0 %3048  ;;  %v3047_v15 = vpop.permute.xlu1 %3046  ;;  %v4261_v1 = vor.u32 %v4260_v13, %v4257_v30  ;;  %v4269_v42 = vor.u32 %v4268_v8, %v4265_v63  ;;  %v17577_v63 = vld [vmem:[#allocation18_spill] sm:$0xff]  ;;  %v17579_v13 = vld [vmem:[#allocation19_spill] sm:$0xff] }
 0x38c   : > { %v15426_v23 = vsel %vm3140_vm8, %v3129_v32, %v3047_v15  ;;  %v17578_v32 = vld [vmem:[#allocation53_spill] sm:$0xff]  ;;  %v15445_v55 = vsel %vm3140_vm8, %v3131_v45, %v3049_v18 }
 0x38d   : > { %v15414_v50 = vsel %vm4151_vm10, %v4253_v31, %v4261_v1  ;;  %v15417_v35 = vsel %vm4151_vm10, %v4261_v1, %v4269_v42  ;;  %v15420_v59 = vsel %vm4707_vm11, %v4729_v39, %v4731_v57  ;;  %v15423_v53 = vsel %vm4707_vm11, %v4731_v57, %v4733_v60  ;;  %v17575_v1 = vld [vmem:[#allocation44_spill] sm:$0xff] }
 0x38e   : > { %v17576_v39 = vld [vmem:[#allocation28_spill] sm:$0xff] }
 0x38f   : > { %11333 = vmatmul.mubr.bf16.gmra.mrb[24].mxu1 %v15411_v58  ;;  %v2824_v62 = vpop.permute.xlu0 %2823  ;;  %v2822_v47 = vpop.permute.xlu1 %2821 }
 0x390   : > { %v3094_v31 = vsel %vm3058_vm6, %v17574_v51, %v2824_v62  ;;  %11336 = vmatprep.mubr.bf16.mxu1 %v15426_v23  ;;  %v3092_v54 = vsel %vm3058_vm6, %v17575_v1, %v2822_v47 }
 0x391   : > { %v4105_v44 = vsel %vm3099_vm7, %v3094_v31, %v17576_v39  ;;  %v4104_v8 = vsel %vm3099_vm7, %v3092_v54, %v17577_v63 }
 0x392   : > { %v4128_v30 = vsel %vm3140_vm8, %v4105_v44, %v17578_v32  ;;  %v4127_v10 = vsel %vm3140_vm8, %v4104_v8, %v17579_v13 }
 0x393   : > { %v4279_v9 = vshrl.u32 %v4128_v30, 16  ;;  %v4282_v57 = vshll.u32 %v4128_v30, 16  ;;  %v4271_v15 = vshrl.u32 %v4127_v10, 16  ;;  %v4274_v62 = vshll.u32 %v4127_v10, 16  ;;  %v2927_v51 = vpop.permute.xlu0 %2926  ;;  %v2925_v33 = vpop.permute.xlu1 %2924 }
 0x394   : > { %v3135_v47 = vsel %vm3099_vm7, %v3094_v31, %v2927_v51  ;;  %v3133_v1 = vsel %vm3099_vm7, %v3092_v54, %v2925_v33 }
 0x395   : > { %v4281_v39 = vrot.slane %v4279_v9, 3  ;;  %v4284_v40 = vrot.slane %v4282_v57, 4  ;;  %v4273_v11 = vrot.slane %v4271_v15, 3  ;;  %v4276_v63 = vrot.slane %v4274_v62, 4  ;;  %v17580_v57 = vld [vmem:[#allocation16_spill] sm:$0xff] }
 0x396   : > { %v4662_v44 = vsel %vm3140_vm8, %v3135_v47, %v17578_v32  ;;  %v4661_v8 = vsel %vm3140_vm8, %v3133_v1, %v17579_v13 }
 0x397   : > { %v4737_v30 = vrot.slane %v4662_v44, 5  ;;  %v4735_v10 = vrot.slane %v4661_v8, 5  ;;  %11337 = vmatmul.mubr.bf16.gmra.mrb[28].mxu1 %v15445_v55  ;;  %v3053_v51 = vpop.permute.xlu0 %3052  ;;  %v3051_v31 = vpop.permute.xlu1 %3050  ;;  %v4277_v33 = vor.u32 %v4276_v63, %v4273_v11  ;;  %v15452_v54 = vor.u32 %v4284_v40, %v4281_v39 }
 0x398   : > { %v15455_v9 = vsel %vm3140_vm8, %v3133_v1, %v3051_v31  ;;  %v15472_v1 = vsel %vm3140_vm8, %v3135_v47, %v3053_v51  ;;  %v17582_v47 = vld [vmem:[#allocation49_spill] sm:$0xff] }
 0x399   : > { %11340 = vmatprep.mubr.bf16.mxu1 %v15455_v9  ;;  %v15459_v45 = vsel %vm4151_vm10, %v4269_v42, %v4277_v33  ;;  %v15463_v18 = vsel %vm4151_vm10, %v4277_v33, %v15452_v54  ;;  %v15466_v32 = vsel %vm4707_vm11, %v4733_v60, %v4735_v10  ;;  %v15469_v13 = vsel %vm4707_vm11, %v4735_v10, %v4737_v30  ;;  %v17581_v42 = vld [vmem:[#allocation15_spill] sm:$0xff] }
 0x39a   : > { %v17583_v10 = vld [vmem:[#allocation27_spill] sm:$0xff] }
 0x39b   : > { %v2828_v11 = vpop.permute.xlu0 %2827  ;;  %v2826_v40 = vpop.permute.xlu1 %2825 }
 0x39c   : > { %v15476_v15 = vsel %vm3058_vm6, %v17580_v57, %v2828_v11  ;;  %v15480_v62 = vsel %vm3058_vm6, %v17581_v42, %v2826_v40 }
 0x39f   : > { %11341 = vmatmul.mubr.bf16.gmra.mrb[32].mxu1 %v15472_v1  ;;  %v2931_v60 = vpop.permute.xlu0 %2930  ;;  %v2929_v39 = vpop.permute.xlu1 %2928 }
 0x3a0   : > { %v3139_v63 = vsel %vm3099_vm7, %v15476_v15, %v2931_v60  ;;  %v3137_v44 = vsel %vm3099_vm7, %v15480_v62, %v2929_v39 }
 0x3a1   : > { %v4664_v8 = vsel %vm3140_vm8, %v3139_v63, %v17582_v47  ;;  %v4663_v51 = vsel %vm3140_vm8, %v3137_v44, %v17583_v10 }
 0x3a2   : > { %v4741_v31 = vrot.slane %v4664_v8, 5  ;;  %v4739_v33 = vrot.slane %v4663_v51, 5  ;;  %v17584_v51 = vld [vmem:[#allocation37_spill] sm:$0xff] }
 0x3a3   : > { %v3057_v11 = vpop.permute.xlu0 %3056  ;;  %v3055_v40 = vpop.permute.xlu1 %3054 }
 0x3a4   : > { %v15492_v57 = vsel %vm3140_vm8, %v3139_v63, %v3057_v11  ;;  %v15495_v42 = vsel %vm3140_vm8, %v3137_v44, %v3055_v40  ;;  %v15499_v60 = vsel %vm4707_vm11, %v4737_v30, %v4739_v33  ;;  %v15502_v39 = vsel %vm4707_vm11, %v4739_v33, %v4741_v31  ;;  %v12345_v63 = vld [vmem:[%s17175_s3 + $0xc8] sm:$0xff]   ;;  %v12346_v33 = vld [vmem:[%s17175_s3 + $0xd0] sm:$0xff]  }
 0x3a5   : > { %11344 = vmatprep.mubr.bf16.mxu1 %v15495_v42  ;;  %v17585_v44 = vld [vmem:[#allocation5_spill] sm:$0xff]  ;;  %v17586_v30 = vld [vmem:[#allocation38_spill] sm:$0xff] }
 0x3a6   : > { %v17587_v40 = vld [vmem:[#allocation45_spill] sm:$0xff] }
 0x3a7   : > { %11345 = vmatmul.mubr.bf16.gmra.mrb[36].mxu1 %v15492_v57  ;;  %v4063_v8 = vpop.permute.xlu1 %4062 }
 0x3a8   : > { %11364 = vmatprep.mubr.bf16.mxu1 %v17584_v51  ;;  %v4086_v51 = vsel %vm3058_vm6, %v17587_v40, %v4063_v8  ;;  %v12348_v8 = vld [vmem:[%s17175_s3 + $0xe0] sm:$0xff]  }
 0x3ab   : > { %v4075_v36 = vpop.permute.xlu1 %4074 }
 0x3af   : > { %11365 = vmatmul.mubr.bf16.vlgmr.msra.gmra.mrb[0].mxu1 %v17585_v44  ;;  %v4082_v11 = vpop.permute.xlu1 %4081 }
 0x3b0   : > { %11405 = vmatpush3.bf16.msra.mxu1 %v15347_v19  ;;  %11368 = vmatprep.mubr.bf16.mxu1 %v17586_v30  ;;  %v12347_v19 = vld [vmem:[%s17175_s3 + $0xd8] sm:$0xff]  }
 0x3b1   : > { %11406 = vmatprep.subr.bf16.mxu1 %v12345_v63 }
 0x3b3   : > { %v4625_v5 = vpop.permute.xlu1 %4624 }
 0x3b4   : > { %v15518_v52 = vsel %vm3099_vm7, %v4086_v51, %v4625_v5  ;;  %11407 = vmatpush3.bf16.msra.mxu1 %v12345_v63  ;;  %v12349_v63 = vld [vmem:[%s17175_s3 + $0xe8] sm:$0xff]  }
 0x3b5   : > { %v15522_v44 = vsel %vm3140_vm8, %v15518_v52, %v4082_v11  ;;  %11408 = vmatprep.subr.bf16.mxu1 %v12346_v33 }
 0x3b6   : > { %v17271_v30 = vrot.slane %v15522_v44, 5 }
 0x3b7   : > { %11369 = vmatmul.mubr.bf16.gmra.mrb[4].mxu1 %v17588_v28  ;;  %v12350_v28 = vld [vmem:[%s17175_s3 + $0xf0] sm:$0xff]  }
 0x3b8   : > { %11372 = vmatprep.mubr.bf16.mxu1 %v15157_v26  ;;  %11409 = vmatpush3.bf16.msra.mxu1 %v12346_v33  ;;  %v15533_v5 = vsel %vm4707_vm11, %v4741_v31, %v17271_v30  ;;  %v12351_v26 = vld [vmem:[%s17175_s3 + $0xf8] sm:$0xff]  }
 0x3b9   : > { %11410 = vmatprep.subr.bf16.mxu1 %v12347_v19 }
 0x3bc   : > { %11411 = vmatpush3.bf16.msra.mxu1 %v12347_v19 }
 0x3bd   : > { %11412 = vmatprep.subr.bf16.mxu1 %v12348_v8 }
 0x3bf   : > { %11373 = vmatmul.mubr.bf16.gmra.mrb[8].mxu1 %v15161_v3  ;;  %v12352_v3 = vld [vmem:[%s17175_s3 + $0x100] sm:$0xff]  }
 0x3c0   : > { %11376 = vmatprep.mubr.bf16.mxu1 %v15252_v20  ;;  %11413 = vmatpush3.bf16.msra.mxu1 %v12348_v8  ;;  %v17589_v20 = vld [vmem:[#allocation30_spill] sm:$0xff]  ;;  %v17590_v8 = vld [vmem:[#allocation20_spill] sm:$0xff] }
 0x3c1   : > { %11414 = vmatprep.subr.bf16.mxu1 %v12349_v63  ;;  %v4106_v31 = vsel %vm3099_vm7, %v15480_v62, %v17589_v20  ;;  %v17591_v20 = vld [vmem:[#allocation47_spill] sm:$0xff] }
 0x3c4   : > { %11415 = vmatpush3.bf16.msra.mxu1 %v12349_v63 }
 0x3c5   : > { %11416 = vmatprep.subr.bf16.mxu1 %v12350_v28 }
 0x3c7   : > { %11377 = vmatmul.mubr.bf16.gmra.mrb[12].mxu1 %v15255_v38  ;;  %v4129_v38 = vsel %vm3140_vm8, %v4106_v31, %v17583_v10 }
 0x3c8   : > { %11380 = vmatprep.mubr.bf16.mxu1 %v15317_v12  ;;  %11417 = vmatpush3.bf16.msra.mxu1 %v12350_v28  ;;  %v4077_v12 = vpop.permute.xlu0 %4076  ;;  %v4287_v33 = vshrl.u32 %v4129_v38, 16  ;;  %v4290_v19 = vshll.u32 %v4129_v38, 16 }
 0x3c9   : > { %11418 = vmatprep.subr.bf16.mxu1 %v12351_v26 }
 0x3ca   : > { %v4289_v28 = vrot.slane %v4287_v33, 3  ;;  %v4292_v62 = vrot.slane %v4290_v19, 4 }
 0x3cc   : > { %11419 = vmatpush3.bf16.msra.mxu1 %v12351_v26  ;;  %v4065_v63 = vpop.permute.xlu0 %4064 }
 0x3cd   : > { %11460 = vmatprep.subr.bf16.mxu1 %v12352_v3  ;;  %v4088_v31 = vsel %vm3058_vm6, %v17591_v20, %v4065_v63 }
 0x3ce   : > { %v4111_v19 = vsel %vm3099_vm7, %v4088_v31, %v4077_v12 }
 0x3cf   : > { %11381 = vmatmul.mubr.bf16.gmra.mrb[16].mxu1 %v15320_v14  ;;  %v4107_v14 = vsel %vm3099_vm7, %v15476_v15, %v17590_v8  ;;  %v4293_v8 = vor.u32 %v4292_v62, %v4289_v28 }
 0x3d0   : > { %11384 = vmatprep.mubr.bf16.mxu1 %v15371_v16  ;;  %v4130_v16 = vsel %vm3140_vm8, %v4107_v14, %v17582_v47  ;;  %v4084_v30 = vpop.permute.xlu0 %4083 }
 0x3d1   : > { %v4298_v26 = vshll.u32 %v4130_v16, 16 }
 0x3d3   : > { %v4300_v33 = vrot.slane %v4298_v26, 4 }
 0x3d7   : > { %11385 = vmatmul.mubr.bf16.gmra.mrb[20].mxu1 %v15374_v49  ;;  %v4109_v49 = vsel %vm3099_vm7, %v4086_v51, %v4075_v36  ;;  %v4134_v36 = vsel %vm3140_vm8, %v4111_v19, %v4084_v30  ;;  %v17592_v30 = vld [vmem:[#allocation6_spill] sm:$0xff] }
 0x3d8   : > { %11388 = vmatprep.mubr.bf16.mxu1 %v15414_v50  ;;  %v4132_v10 = vsel %vm3140_vm8, %v4109_v49, %v4082_v11  ;;  %v4295_v50 = vshrl.u32 %v4130_v16, 16  ;;  %v4311_v11 = vshrl.u32 %v4134_v36, 16  ;;  %v4314_v14 = vshll.u32 %v4134_v36, 16  ;;  %v12354_v36 = vld [vmem:[%s17175_s3 + $0x110] sm:$0xff]  }
 0x3d9   : > { %v4303_v15 = vshrl.u32 %v4132_v10, 16  ;;  %v4306_v38 = vshll.u32 %v4132_v10, 16  ;;  %v4648_v10 = vsel %vm3140_vm8, %v15214_v37, %v17592_v30 }
 0x3da   : > { %v4297_v47 = vrot.slane %v4295_v50, 3  ;;  %v4313_v28 = vrot.slane %v4311_v11, 3  ;;  %v4316_v62 = vrot.slane %v4314_v14, 4  ;;  %v4709_v26 = vrot.slane %v4648_v10, 5 }
 0x3db   : > { %v4308_v51 = vrot.slane %v4306_v38, 4 }
 0x3dc   : > { %v4301_v63 = vor.u32 %v4300_v33, %v4297_v47  ;;  %v4317_v50 = vor.u32 %v4316_v62, %v4313_v28  ;;  %v17594_v47 = vld [vmem:[#allocation39_spill] sm:$0xff]  ;;  %v5130_v28 = vshrl.u32 %v15233_v0, 16  ;;  %v5133_v62 = vshll.u32 %v15233_v0, 16 }
 0x3dd   : > { %v17595_v33 = vrot.slane %v17594_v47, 5  ;;  %v5146_v0 = vshrl.u32 %v15286_v24, 16 }
 0x3de   : > { %v4302_v49 = vsel %vm4151_vm10, %v4293_v8, %v4301_v63 }
 0x3df   : > { %11389 = vmatmul.mubr.bf16.gmra.mrb[24].mxu1 %v15417_v35  ;;  %v4305_v35 = vrot.slane %v4303_v15, 3  ;;  %v4712_v19 = vsel %vm4707_vm11, %v4709_v26, %v17595_v33 }
 0x3e0   : > { %11392 = vmatprep.mubr.bf16.mxu1 %v15459_v45  ;;  %v4294_v45 = vsel %vm4151_vm10, %v15452_v54, %v4293_v8  ;;  %v12353_v8 = vld [vmem:[%s17175_s3 + $0x108] sm:$0xff]  }
 0x3e1   : > { %v4309_v16 = vor.u32 %v4308_v51, %v4305_v35  ;;  %v12355_v35 = vld [vmem:[%s17175_s3 + $0x118] sm:$0xff]   ;;  %v12357_v51 = vld [vmem:[%s17175_s3 + $0x128] sm:$0xff]  }
 0x3e3   : > { %v4310_v12 = vsel %vm4151_vm10, %v4301_v63, %v4309_v16  ;;  %v4318_v15 = vsel %vm4151_vm10, %v4309_v16, %v4317_v50  ;;  %v5135_v50 = vrot.slane %v5133_v62, 7 }
 0x3e7   : > { %11393 = vmatmul.mubr.bf16.gmra.mrb[28].mxu1 %v15463_v18  ;;  %v17593_v18 = vld [vmem:[#allocation29_spill] sm:$0xff] }
 0x3e8   : > { %11396 = vmatprep.mubr.bf16.mxu1 %v4294_v45  ;;  %v4647_v54 = vsel %vm3140_vm8, %v15147_v29, %v17593_v18  ;;  %v17596_v29 = vld [vmem:[#allocation56_spill] sm:$0xff]  ;;  %v4623_v45 = vpop.permute.xlu1 %4622 }
 0x3e9   : > { %v4708_v31 = vrot.slane %v4647_v54, 5  ;;  %v5132_v54 = vrot.slane %v5130_v28, 6  ;;  %v5181_v28 = vshll.u32 %v15362_v61, 16 }
 0x3eb   : > { %v4710_v38 = vsel %vm4707_vm11, %v4708_v31, %v4709_v26  ;;  %v5149_v31 = vshll.u32 %v15286_v24, 16  ;;  %v5136_v47 = vor.u32 %v5135_v50, %v5132_v54  ;;  %v5186_v54 = vshrl.u32 %v15393_v43, 16 }
 0x3ec   : > { %v4629_v63 = vpop.permute.xlu1 %4628  ;;  %v5189_v50 = vshll.u32 %v15393_v43, 16 }
 0x3ed   : > { %v5151_v33 = vrot.slane %v5149_v31, 7  ;;  %v5197_v31 = vshll.u32 %v15396_v17, 16 }
 0x3ef   : > { %11397 = vmatmul.mubr.bf16.gmra.mrb[32].mxu1 %v4302_v49  ;;  %v17597_v49 = vld [vmem:[#allocation46_spill] sm:$0xff] }
 0x3f0   : > { %11400 = vmatprep.mubr.bf16.mxu1 %v4310_v12  ;;  %v4636_v16 = vpop.permute.xlu1 %4635  ;;  %v4640_v12 = vsel %vm3058_vm6, %v17597_v49, %v4623_v45 }
 0x3f7   : > { %11401 = vmatmul.mubr.bf16.gmra.mrb[36].mxu1 %v4318_v15 }
 0x3f8   : > { %11420 = vmatprep.mubr.bf16.mxu1 %v4710_v38  ;;  %v5138_v38 = vshrl.u32 %v15281_v4, 16 }
 0x3ff   : > { %11421 = vmatmul.mubr.bf16.vlgmr.msra.gmra.mrb[0].mxu1 %v4712_v19 }
 0x400   : > { %11461 = vmatpush3.bf16.msra.mxu1 %v12352_v3  ;;  %11424 = vmatprep.mubr.bf16.mxu1 %v17596_v29  ;;  %v12356_v3 = vld [vmem:[%s17175_s3 + $0x120] sm:$0xff]   ;;  %v5140_v29 = vrot.slane %v5138_v38, 6  ;;  %v12365_v38 = vld [vmem:[%s17175_s3 + $0x168] sm:$0xff]  }
 0x401   : > { %11462 = vmatprep.subr.bf16.mxu1 %v12353_v8 }
 0x404   : > { %11463 = vmatpush3.bf16.msra.mxu1 %v12353_v8  ;;  %v5141_v8 = vshll.u32 %v15281_v4, 16 }
 0x405   : > { %11464 = vmatprep.subr.bf16.mxu1 %v12354_v36 }
 0x407   : > { %11425 = vmatmul.mubr.bf16.gmra.mrb[4].mxu1 %v15166_v34  ;;  %v12358_v34 = vld [vmem:[%s17175_s3 + $0x130] sm:$0xff]  }
 0x408   : > { %11428 = vmatprep.mubr.bf16.mxu1 %v15171_v7  ;;  %11465 = vmatpush3.bf16.msra.mxu1 %v12354_v36  ;;  %v12359_v7 = vld [vmem:[%s17175_s3 + $0x138] sm:$0xff]   ;;  %v5143_v36 = vrot.slane %v5141_v8, 7  ;;  %v5188_v8 = vrot.slane %v5186_v54, 6 }
 0x409   : > { %11466 = vmatprep.subr.bf16.mxu1 %v12355_v35 }
 0x40c   : > { %11467 = vmatpush3.bf16.msra.mxu1 %v12355_v35  ;;  %v5154_v35 = vshrl.u32 %v15311_v41, 16 }
 0x40d   : > { %11468 = vmatprep.subr.bf16.mxu1 %v12356_v3 }
 0x40f   : > { %11429 = vmatmul.mubr.bf16.gmra.mrb[8].mxu1 %v15260_v2  ;;  %v15623_v2 = vld [vmem:[%s17175_s3 + $0x140] sm:$0xff]  }
 0x410   : > { %11432 = vmatprep.mubr.bf16.mxu1 %v15265_v25  ;;  %11469 = vmatpush3.bf16.msra.mxu1 %v12356_v3  ;;  %v4627_v25 = vpop.permute.xlu0 %4626  ;;  %v5157_v3 = vshll.u32 %v15311_v41, 16 }
 0x411   : > { %11470 = vmatprep.subr.bf16.mxu1 %v12357_v51 }
 0x412   : > { %v5159_v45 = vrot.slane %v5157_v3, 7  ;;  %v5205_v3 = vshll.u32 %v15411_v58, 16 }
 0x414   : > { %11471 = vmatpush3.bf16.msra.mxu1 %v12357_v51  ;;  %v5162_v51 = vshrl.u32 %v15332_v21, 16 }
 0x415   : > { %11472 = vmatprep.subr.bf16.mxu1 %v12358_v34 }
 0x417   : > { %11433 = vmatmul.mubr.bf16.gmra.mrb[12].mxu1 %v15325_v56  ;;  %v4621_v56 = vpop.permute.xlu0 %4620 }
 0x418   : > { %11436 = vmatprep.mubr.bf16.mxu1 %v15328_v48  ;;  %11473 = vmatpush3.bf16.msra.mxu1 %v12358_v34  ;;  %v4638_v11 = vsel %vm3058_vm6, %v17591_v20, %v4621_v56  ;;  %v5165_v34 = vshll.u32 %v15332_v21, 16  ;;  %v12361_v56 = vld [vmem:[%s17175_s3 + $0x148] sm:$0xff]  }
 0x419   : > { %11474 = vmatprep.subr.bf16.mxu1 %v12359_v7 }
 0x41b   : > { %v4634_v48 = vpop.permute.xlu0 %4633 }
 0x41c   : > { %11475 = vmatpush3.bf16.msra.mxu1 %v12359_v7 }
 0x41d   : > { %11516 = vmatprep.subr.bf16.mxu1 %v15623_v2 }
 0x41f   : > { %11437 = vmatmul.mubr.bf16.gmra.mrb[16].mxu1 %v15377_v22  ;;  %v5079_v14 = vpop.permute.xlu0 %5078  ;;  %v15635_v22 = vsel %vm3099_vm7, %v4638_v11, %v4627_v25  ;;  %v5144_v25 = vor.u32 %v5143_v36, %v5140_v29  ;;  %v12370_v29 = vld [vmem:[%s17177_s5 + $0x40] sm:$0xff]   ;;  %v12366_v36 = vld [vmem:[%s17175_s3 + $0x170] sm:$0xff]  }
 0x420   : > { %11440 = vmatprep.mubr.bf16.mxu1 %v15380_v27  ;;  %v4667_v27 = vsel %vm3140_vm8, %v15635_v22, %v4634_v48  ;;  %v5156_v48 = vrot.slane %v5154_v35, 6  ;;  %11616 = vmatprep.subr.bf16.mxu0 %v12370_v29  ;;  %v5202_v35 = vshrl.u32 %v15411_v58, 16 }
 0x421   : > { %v5145_v11 = vsel %vm5122_vm12, %v5136_v47, %v5144_v25  ;;  %11617 = vmatpush3.bf16.msra.mxu0 %v12370_v29 }
 0x427   : > { %11441 = vmatmul.mubr.bf16.gmra.mrb[20].mxu1 %v15420_v59  ;;  %v5097_v59 = vsel %vm3140_vm8, %v15214_v37, %v5079_v14  ;;  %v17598_v37 = vrot.slane %v15522_v44, 5  ;;  %v5148_v44 = vrot.slane %v5146_v0, 6  ;;  %v5164_v14 = vrot.slane %v5162_v51, 6 }
 0x428   : > { %11444 = vmatprep.mubr.bf16.mxu1 %v15423_v53  ;;  %v4745_v53 = vrot.slane %v4667_v27, 5  ;;  %v5194_v0 = vshrl.u32 %v15396_v17, 16 }
 0x429   : > { %v5152_v7 = vor.u32 %v5151_v33, %v5148_v44  ;;  %v5199_v33 = vrot.slane %v5197_v31, 7  ;;  %v5245_v31 = vshll.u32 %v15495_v42, 16 }
 0x42a   : > { %v5196_v44 = vrot.slane %v5194_v0, 6  ;;  %v5242_v0 = vshrl.u32 %v15495_v42, 16 }
 0x42b   : > { %v5153_v27 = vsel %vm5122_vm12, %v5144_v25, %v5152_v7 }
 0x42c   : > { %v5200_v25 = vor.u32 %v5199_v33, %v5196_v44  ;;  %v5244_v44 = vrot.slane %v5242_v0, 6  ;;  %v5247_v33 = vrot.slane %v5245_v31, 7 }
 0x42f   : > { %11445 = vmatmul.mubr.bf16.gmra.mrb[24].mxu1 %v15466_v32  ;;  %v5123_v32 = vshrl.u32 %v5097_v59, 16 }
 0x430   : > { %11448 = vmatprep.mubr.bf16.mxu1 %v15469_v13  ;;  %v5126_v13 = vshll.u32 %v5097_v59, 16  ;;  %v12362_v59 = vld [vmem:[%s17175_s3 + $0x150] sm:$0xff]  }
 0x431   : > { %v5125_v30 = vrot.slane %v5123_v32, 6  ;;  %v5173_v32 = vshll.u32 %v15359_v6, 16 }
 0x432   : > { %v5128_v10 = vrot.slane %v5126_v13, 7  ;;  %v5160_v13 = vor.u32 %v5159_v45, %v5156_v48  ;;  %v5204_v48 = vrot.slane %v5202_v35, 6  ;;  %v5207_v45 = vrot.slane %v5205_v3, 7 }
 0x433   : > { %v5250_v3 = vshrl.u32 %v15492_v57, 16 }
 0x434   : > { %v5129_v15 = vor.u32 %v5128_v10, %v5125_v30  ;;  %v5161_v30 = vsel %vm5122_vm12, %v5152_v7, %v5160_v13  ;;  %v5213_v7 = vshll.u32 %v15426_v23, 16 }
 0x436   : > { %v5137_v19 = vsel %vm5122_vm12, %v5129_v15, %v5136_v47  ;;  %v5191_v47 = vrot.slane %v5189_v50, 7  ;;  %v5234_v50 = vshrl.u32 %v15472_v1, 16 }
 0x437   : > { %11449 = vmatmul.mubr.bf16.gmra.mrb[28].mxu1 %v15499_v60  ;;  %v4646_v60 = vsel %vm3099_vm7, %v4640_v12, %v4629_v63  ;;  %v5167_v63 = vrot.slane %v5165_v34, 7  ;;  %v5210_v34 = vshrl.u32 %v15426_v23, 16 }
 0x438   : > { %11452 = vmatprep.mubr.bf16.mxu1 %v15502_v39  ;;  %v4669_v18 = vsel %vm3140_vm8, %v4646_v60, %v4636_v16  ;;  %v4746_v39 = vsel %vm4707_vm11, %v17598_v37, %v4745_v53  ;;  %v5178_v16 = vshrl.u32 %v15362_v61, 16  ;;  %v5175_v60 = vrot.slane %v5173_v32, 7  ;;  %v15713_v32 = vld [vmem:[%s17175_s3 + $0x180] sm:$0xff]  }
 0x439   : > { %v4747_v26 = vrot.slane %v4669_v18, 5  ;;  %v5168_v62 = vor.u32 %v5167_v63, %v5164_v14  ;;  %v5183_v18 = vrot.slane %v5181_v28, 7  ;;  %v5192_v51 = vor.u32 %v5191_v47, %v5188_v8 }
 0x43a   : > { %v5180_v10 = vrot.slane %v5178_v16, 6  ;;  %v5212_v14 = vrot.slane %v5210_v34, 6  ;;  %v5215_v63 = vrot.slane %v5213_v7, 7  ;;  %v5226_v16 = vshrl.u32 %v15455_v9, 16 }
 0x43b   : > { %v5169_v37 = vsel %vm5122_vm12, %v5160_v13, %v5168_v62  ;;  %v5208_v13 = vor.u32 %v5207_v45, %v5204_v48  ;;  %v5229_v28 = vshll.u32 %v15455_v9, 16  ;;  %v5236_v47 = vrot.slane %v5234_v50, 6 }
 0x43c   : > { %v5184_v15 = vor.u32 %v5183_v18, %v5180_v10  ;;  %v5228_v10 = vrot.slane %v5226_v16, 6  ;;  %v5248_v7 = vor.u32 %v5247_v33, %v5244_v44 }
 0x43d   : > { %v5231_v18 = vrot.slane %v5229_v28, 7 }
 0x43f   : > { %11453 = vmatmul.mubr.bf16.gmra.mrb[32].mxu1 %v15533_v5  ;;  %v4748_v5 = vsel %vm4707_vm11, %v4745_v53, %v4747_v26  ;;  %v5170_v53 = vshrl.u32 %v15359_v6, 16 }
 0x440   : > { %11456 = vmatprep.mubr.bf16.mxu1 %v4746_v39  ;;  %v12364_v39 = vld [vmem:[%s17175_s3 + $0x160] sm:$0xff]  }
 0x441   : > { %v5172_v12 = vrot.slane %v5170_v53, 6  ;;  %v5221_v53 = vshll.u32 %v15445_v55, 16 }
 0x443   : > { %v5176_v26 = vor.u32 %v5175_v60, %v5172_v12  ;;  %v5223_v60 = vrot.slane %v5221_v53, 7 }
 0x447   : > { %11457 = vmatmul.mubr.bf16.gmra.mrb[36].mxu1 %v4748_v5  ;;  %v5177_v5 = vsel %vm5122_vm12, %v5168_v62, %v5176_v26  ;;  %v5081_v62 = vpop.permute.xlu1 %5080 }
 0x448   : > { %11476 = vmatprep.mubr.bf16.mxu1 %v5137_v19  ;;  %v5185_v19 = vsel %vm5122_vm12, %v5176_v26, %v5184_v15  ;;  %v5237_v26 = vshll.u32 %v15472_v1, 16 }
 0x44f   : > { %11477 = vmatmul.mubr.bf16.vlgmr.msra.gmra.mrb[0].mxu1 %v5145_v11  ;;  %v5193_v11 = vsel %vm5122_vm12, %v5184_v15, %v5192_v51  ;;  %v5083_v15 = vpop.permute.xlu0 %5082 }
 0x450   : > { %11517 = vmatpush3.bf16.msra.mxu1 %v15623_v2  ;;  %11480 = vmatprep.mubr.bf16.mxu1 %v5153_v27  ;;  %v12363_v2 = vld [vmem:[%s17175_s3 + $0x158] sm:$0xff]   ;;  %v5201_v27 = vsel %vm5122_vm12, %v5192_v51, %v5200_v25  ;;  %v5253_v51 = vshll.u32 %v15492_v57, 16 }
 0x451   : > { %11518 = vmatprep.subr.bf16.mxu1 %v12361_v56 }
 0x453   : > { %v5065_v35 = vpop.permute.xlu0 %5064 }
 0x454   : > { %11519 = vmatpush3.bf16.msra.mxu1 %v12361_v56  ;;  %v12367_v56 = vld [vmem:[%s17175_s3 + $0x178] sm:$0xff]  }
 0x455   : > { %11520 = vmatprep.subr.bf16.mxu1 %v12362_v59 }
 0x457   : > { %11481 = vmatmul.mubr.bf16.gmra.mrb[4].mxu1 %v5161_v30  ;;  %v5209_v30 = vsel %vm5122_vm12, %v5200_v25, %v5208_v13 }
 0x458   : > { %11484 = vmatprep.mubr.bf16.mxu1 %v5169_v37  ;;  %11521 = vmatpush3.bf16.msra.mxu1 %v12362_v59  ;;  %v5218_v59 = vshrl.u32 %v15445_v55, 16 }
 0x459   : > { %11522 = vmatprep.subr.bf16.mxu1 %v12363_v2 }
 0x45a   : > { %v5220_v12 = vrot.slane %v5218_v59, 6  ;;  %v15740_v59 = vsel %vm3140_vm8, %v15635_v22, %v5083_v15 }
 0x45c   : > { %11523 = vmatpush3.bf16.msra.mxu1 %v12363_v2  ;;  %v5216_v2 = vor.u32 %v5215_v63, %v5212_v14  ;;  %v5224_v54 = vor.u32 %v5223_v60, %v5220_v12  ;;  %v5255_v14 = vrot.slane %v5253_v51, 7  ;;  %v17599_v60 = vld [vmem:[#allocation48_spill] sm:$0xff] }
 0x45d   : > { %11524 = vmatprep.subr.bf16.mxu1 %v12364_v39 }
 0x45e   : > { %v5217_v37 = vsel %vm5122_vm12, %v5208_v13, %v5216_v2  ;;  %v5225_v8 = vsel %vm5122_vm12, %v5216_v2, %v5224_v54  ;;  %v5269_v2 = vshll.u32 %v15740_v59, 16 }
 0x45f   : > { %11485 = vmatmul.mubr.bf16.gmra.mrb[8].mxu1 %v5177_v5  ;;  %v5239_v5 = vrot.slane %v5237_v26, 7 }
 0x460   : > { %11488 = vmatprep.mubr.bf16.mxu1 %v5185_v19  ;;  %11525 = vmatpush3.bf16.msra.mxu1 %v12364_v39  ;;  %v5063_v39 = vpop.permute.xlu1 %5062 }
 0x461   : > { %11526 = vmatprep.subr.bf16.mxu1 %v12365_v38  ;;  %v5240_v34 = vor.u32 %v5239_v5, %v5236_v47 }
 0x464   : > { %11527 = vmatpush3.bf16.msra.mxu1 %v12365_v38  ;;  %v5232_v38 = vor.u32 %v5231_v18, %v5228_v10  ;;  %v5059_v19 = vpop.permute.xlu1 %5058 }
 0x465   : > { %11528 = vmatprep.subr.bf16.mxu1 %v12366_v36  ;;  %v5089_v48 = vsel %vm3058_vm6, %v17597_v49, %v5059_v19 }
 0x466   : > { %v5233_v29 = vsel %vm5122_vm12, %v5224_v54, %v5232_v38  ;;  %v5241_v63 = vsel %vm5122_vm12, %v5232_v38, %v5240_v34  ;;  %v5093_v16 = vsel %vm3099_vm7, %v5089_v48, %v5063_v39  ;;  %v5271_v54 = vrot.slane %v5269_v2, 7 }
 0x467   : > { %11489 = vmatmul.mubr.bf16.gmra.mrb[12].mxu1 %v5193_v11  ;;  %v5252_v11 = vrot.slane %v5250_v3, 6  ;;  %v12371_v3 = vld [vmem:[%s17177_s5 + $0x48] sm:$0xff]  }
 0x468   : > { %11492 = vmatprep.mubr.bf16.mxu1 %v5201_v27  ;;  %11529 = vmatpush3.bf16.msra.mxu1 %v12366_v36  ;;  %v15728_v36 = vsel %vm3140_vm8, %v15518_v52, %v5081_v62  ;;  %v5085_v45 = vpop.permute.xlu1 %5084  ;;  %v5061_v52 = vpop.permute.xlu0 %5060  ;;  %v5249_v27 = vsel %vm5122_vm12, %v5240_v34, %v5248_v7  ;;  %v5266_v62 = vshrl.u32 %v15740_v59, 16 }
 0x469   : > { %11530 = vmatprep.subr.bf16.mxu1 %v12367_v56  ;;  %v5258_v25 = vshrl.u32 %v15728_v36, 16  ;;  %v15744_v28 = vsel %vm3140_vm8, %v5093_v16, %v5085_v45  ;;  %v5256_v12 = vor.u32 %v5255_v14, %v5252_v11  ;;  %11618 = vmatprep.subr.bf16.mxu0 %v12371_v3  ;;  %v17602_v45 = vld [vmem:[#allocation9_spill] sm:$0xff]  ;;  %v17603_v14 = vld [vmem:[#allocation40_spill] sm:$0xff] }
 0x46a   : > { %v5274_v22 = vshrl.u32 %v15744_v28, 16  ;;  %v5277_v10 = vshll.u32 %v15744_v28, 16  ;;  %v5268_v39 = vrot.slane %v5266_v62, 6  ;;  %11619 = vmatpush3.bf16.msra.mxu0 %v12371_v3  ;;  %v5953_v11 = vrot.slane %v17602_v45, 2  ;;  %v17606_v62 = vld [vmem:[#allocation12_spill] sm:$0xff] }
 0x46b   : > { %v5260_v53 = vrot.slane %v5258_v25, 6  ;;  %v5257_v26 = vsel %vm5122_vm12, %v5248_v7, %v5256_v12  ;;  %v12369_v7 = vld [vmem:[%s17175_s3 + $0x188] sm:$0xff]   ;;  %v5961_v2 = vrot.slane %v17606_v62, 2  ;;  %v17614_v3 = vld [vmem:[#allocation16_spill] sm:$0xff] }
 0x46c   : > { %11531 = vmatpush3.bf16.msra.mxu1 %v12367_v56  ;;  %v5261_v56 = vshll.u32 %v15728_v36, 16  ;;  %v5276_v31 = vrot.slane %v5274_v22, 6  ;;  %v5279_v15 = vrot.slane %v5277_v10, 7  ;;  %v5272_v5 = vor.u32 %v5271_v54, %v5268_v39  ;;  %v17609_v39 = vld [vmem:[#allocation13_spill] sm:$0xff] }
 0x46d   : > { %11572 = vmatprep.subr.bf16.mxu1 %v15713_v32  ;;  %v5967_v54 = vrot.slane %v17609_v39, 2 }
 0x46e   : > { %v5263_v13 = vrot.slane %v5261_v56, 7  ;;  %v5280_v44 = vor.u32 %v5279_v15, %v5276_v31  ;;  %v17611_v15 = vld [vmem:[#allocation44_spill] sm:$0xff] }
 0x46f   : > { %11493 = vmatmul.mubr.bf16.gmra.mrb[16].mxu1 %v5209_v30  ;;  %v5091_v30 = vsel %vm3058_vm6, %v17599_v60, %v5061_v52  ;;  %v5955_v52 = vrot.slane %v17603_v14, 2 }
 0x470   : > { %11496 = vmatprep.mubr.bf16.mxu1 %v5217_v37  ;;  %v5264_v18 = vor.u32 %v5263_v13, %v5260_v53  ;;  %v5087_v37 = vpop.permute.xlu0 %5086  ;;  %v5095_v50 = vsel %vm3099_vm7, %v5091_v30, %v5065_v35  ;;  %v5281_v35 = vsel %vm5122_vm12, %v5272_v5, %v5280_v44  ;;  %v17605_v53 = vld [vmem:[#allocation41_spill] sm:$0xff] }
 0x471   : > { %v5105_v0 = vsel %vm3140_vm8, %v5095_v50, %v5087_v37  ;;  %v5959_v13 = vrot.slane %v17605_v53, 2 }
 0x472   : > { %v5265_v38 = vsel %vm5122_vm12, %v5256_v12, %v5264_v18  ;;  %v5285_v47 = vshll.u32 %v5105_v0, 16  ;;  %v17607_v12 = vld [vmem:[#allocation11_spill] sm:$0xff] }
 0x473   : > { %v5963_v30 = vrot.slane %v17607_v12, 2  ;;  %v5962_v22 = vsel %vm3518_vm9, %v5959_v13, %v5961_v2 }
 0x474   : > { %v5287_v19 = vrot.slane %v5285_v47, 7 }
 0x475   : > { %v5964_v10 = vsel %vm3518_vm9, %v5961_v2, %v5963_v30 }
 0x477   : > { %11497 = vmatmul.mubr.bf16.gmra.mrb[20].mxu1 %v5225_v8  ;;  %v5282_v8 = vshrl.u32 %v5105_v0, 16  ;;  %v17610_v0 = vld [vmem:[#allocation14_spill] sm:$0xff] }
 0x478   : > { %11500 = vmatprep.mubr.bf16.mxu1 %v5233_v29  ;;  %v5273_v29 = vsel %vm5122_vm12, %v5264_v18, %v5272_v5  ;;  %v17608_v18 = vld [vmem:[#allocation43_spill] sm:$0xff]  ;;  %v5969_v31 = vrot.slane %v17610_v0, 2 }
 0x479   : > { %v5284_v33 = vrot.slane %v5282_v8, 6  ;;  %v5965_v37 = vrot.slane %v17608_v18, 2  ;;  %v17612_v5 = vld [vmem:[#allocation7_spill] sm:$0xff] }
 0x47a   : > { %v5970_v8 = vsel %vm3518_vm9, %v5967_v54, %v5969_v31 }
 0x47b   : > { %v5288_v51 = vor.u32 %v5287_v19, %v5284_v33  ;;  %v5966_v50 = vsel %vm3518_vm9, %v5963_v30, %v5965_v37  ;;  %v17613_v33 = vld [vmem:[#allocation15_spill] sm:$0xff] }
 0x47c   : > { %v5975_v19 = vrot.slane %v17613_v33, 2 }
 0x47d   : > { %v5289_v34 = vsel %vm5122_vm12, %v5280_v44, %v5288_v51  ;;  %v5973_v44 = vrot.slane %v17612_v5, 2  ;;  %v5977_v51 = vrot.slane %v17614_v3, 2 }
 0x47f   : > { %11501 = vmatmul.mubr.bf16.gmra.mrb[24].mxu1 %v5241_v63 }
 0x480   : > { %11504 = vmatprep.mubr.bf16.mxu1 %v5249_v27  ;;  %v17604_v27 = vld [vmem:[#allocation42_spill] sm:$0xff] }
 0x487   : > { %11505 = vmatmul.mubr.bf16.gmra.mrb[28].mxu1 %v5257_v26  ;;  %v5968_v26 = vsel %vm3518_vm9, %v5965_v37, %v5967_v54 }
 0x488   : > { %11508 = vmatprep.mubr.bf16.mxu1 %v5265_v38  ;;  %v5971_v38 = vrot.slane %v17611_v15, 2 }
 0x48a   : > { %v5972_v47 = vsel %vm3518_vm9, %v5969_v31, %v5971_v38 }
 0x48f   : > { %11509 = vmatmul.mubr.bf16.gmra.mrb[32].mxu1 %v5273_v29  ;;  %v5974_v29 = vsel %vm3518_vm9, %v5971_v38, %v5973_v44 }
 0x490   : > { %11512 = vmatprep.mubr.bf16.mxu1 %v5281_v35  ;;  %v5976_v35 = vsel %vm3518_vm9, %v5973_v44, %v5975_v19 }
 0x497   : > { %11513 = vmatmul.mubr.bf16.gmra.mrb[36].mxu1 %v5289_v34  ;;  %v5979_v34 = vrot.slane %v17587_v40, 2  ;;  %v5985_v40 = vrot.slane %v17599_v60, 2 }
 0x498   : > { %11532 = vmatprep.mubr.bf16.mxu1 %v15281_v4  ;;  %v12372_v4 = vld [vmem:[%s17177_s5 + $0x50] sm:$0xff]  }
 0x499   : > { %11620 = vmatprep.subr.bf16.mxu0 %v12372_v4 }
 0x49a   : > { %11621 = vmatpush3.bf16.msra.mxu0 %v12372_v4  ;;  %v5980_v4 = vsel %vm3518_vm9, %v5977_v51, %v5979_v34 }
 0x49f   : > { %11533 = vmatmul.mubr.bf16.vlgmr.msra.gmra.mrb[0].mxu1 %v15286_v24  ;;  %v12373_v24 = vld [vmem:[%s17177_s5 + $0x58] sm:$0xff]  }
 0x4a0   : > { %11573 = vmatpush3.bf16.msra.mxu1 %v15713_v32  ;;  %11536 = vmatprep.mubr.bf16.mxu1 %v15311_v41  ;;  %v12374_v41 = vld [vmem:[%s17177_s5 + $0x60] sm:$0xff]  }
 0x4a1   : > { %11574 = vmatprep.subr.bf16.mxu1 %v12369_v7  ;;  %11622 = vmatprep.subr.bf16.mxu0 %v12373_v24  ;;  %v17601_v32 = vld [vmem:[#allocation17_spill] sm:$0xff] }
 0x4a2   : > { %11623 = vmatpush3.bf16.msra.mxu0 %v12373_v24  ;;  %v5981_v24 = vrot.slane %v17591_v20, 2 }
 0x4a3   : > { %11624 = vmatprep.subr.bf16.mxu0 %v12374_v41 }
 0x4a4   : > { %11575 = vmatpush3.bf16.msra.mxu1 %v12369_v7  ;;  %v5978_v7 = vsel %vm3518_vm9, %v5975_v19, %v5977_v51 }
 0x4a6   : > { %11625 = vmatpush3.bf16.msra.mxu0 %v12374_v41  ;;  %v5983_v41 = vrot.slane %v17597_v49, 2  ;;  %v17615_v49 = vmov 0.0|0.0  }
 0x4a7   : > { %11537 = vmatmul.mubr.bf16.gmra.mrb[4].mxu1 %v15332_v21  ;;  %v5615_v21 = vpop.permute.xlu1 %5614 }
 0x4a8   : > { %11540 = vmatprep.mubr.bf16.mxu1 %v15359_v6 }
 0x4ab   : > { %v5605_v6 = vpop.permute.xlu1 %5604 }
 0x4af   : > { %11541 = vmatmul.mubr.bf16.gmra.mrb[8].mxu1 %v15362_v61  ;;  %v5607_v61 = vpop.permute.xlu0 %5606 }
 0x4b0   : > { %11544 = vmatprep.mubr.bf16.mxu1 %v15393_v43  ;;  %v5633_v43 = vsel %vm3058_vm6, %v17599_v60, %v5605_v6  ;;  %v5984_v6 = vsel %vm3518_vm9, %v5981_v24, %v5983_v41  ;;  %v12375_v60 = vld [vmem:[%s17177_s5 + $0x68] sm:$0xff]  }
 0x4b1   : > { %11626 = vmatprep.subr.bf16.mxu0 %v12375_v60 }
 0x4b2   : > { %11627 = vmatpush3.bf16.msra.mxu0 %v12375_v60 }
 0x4b7   : > { %11545 = vmatmul.mubr.bf16.gmra.mrb[12].mxu1 %v15396_v17  ;;  %v5617_v17 = vpop.permute.xlu0 %5616 }
 0x4b8   : > { %11548 = vmatprep.mubr.bf16.mxu1 %v15411_v58  ;;  %v5637_v58 = vsel %vm3099_vm7, %v5633_v43, %v5615_v21  ;;  %v5982_v21 = vsel %vm3518_vm9, %v5979_v34, %v5981_v24  ;;  %v5986_v43 = vsel %vm3518_vm9, %v5983_v41, %v5985_v40 }
 0x4bf   : > { %11549 = vmatmul.mubr.bf16.gmra.mrb[16].mxu1 %v15426_v23 }
 0x4c0   : > { %11552 = vmatprep.mubr.bf16.mxu1 %v15445_v55  ;;  %v5629_v55 = vpop.permute.xlu1 %5628 }
 0x4c1   : > { %v5644_v23 = vsel %vm3140_vm8, %v5637_v58, %v5629_v55  ;;  %v5989_v55 = vrot.slane %v17615_v49, 2  ;;  %v12376_v58 = vld [vmem:[%s17177_s5 + $0x70] sm:$0xff]  }
 0x4c2   : > { %11628 = vmatprep.subr.bf16.mxu0 %v12376_v58 }
 0x4c3   : > { %11629 = vmatpush3.bf16.msra.mxu0 %v12376_v58 }
 0x4c7   : > { %11553 = vmatmul.mubr.bf16.gmra.mrb[20].mxu1 %v15455_v9  ;;  %v5631_v9 = vpop.permute.xlu0 %5630 }
 0x4c8   : > { %11556 = vmatprep.mubr.bf16.mxu1 %v15472_v1  ;;  %v17600_v1 = vld [vmem:[#allocation55_spill] sm:$0xff] }
 0x4cf   : > { %11557 = vmatmul.mubr.bf16.gmra.mrb[24].mxu1 %v15495_v42  ;;  %v5951_v42 = vrot.slane %v13769_v46, 2  ;;  %v5956_v46 = vsel %vm3518_vm9, %v5953_v11, %v5955_v52 }
 0x4d0   : > { %11560 = vmatprep.mubr.bf16.mxu1 %v15492_v57  ;;  %v5950_v57 = vrot.slane %v17600_v1, 2 }
 0x4d1   : > { %v5954_v63 = vsel %vm3518_vm9, %v5951_v42, %v5953_v11 }
 0x4d2   : > { %v5952_v48 = vsel %vm3518_vm9, %v5950_v57, %v5951_v42 }
 0x4d7   : > { %11561 = vmatmul.mubr.bf16.gmra.mrb[28].mxu1 %v15728_v36  ;;  %v5635_v36 = vsel %vm3058_vm6, %v17601_v32, %v5607_v61  ;;  %v5987_v61 = vrot.slane %v17601_v32, 2 }
 0x4d8   : > { %11564 = vmatprep.mubr.bf16.mxu1 %v15740_v59  ;;  %v5639_v25 = vsel %vm3099_vm7, %v5635_v36, %v5617_v17  ;;  %v5957_v59 = vrot.slane %v17604_v27, 2 }
 0x4d9   : > { %v5647_v56 = vsel %vm3140_vm8, %v5639_v25, %v5631_v9  ;;  %v5988_v20 = vsel %vm3518_vm9, %v5985_v40, %v5987_v61  ;;  %v5990_v17 = vsel %vm3518_vm9, %v5987_v61, %v5989_v55  ;;  %v15874_v9 = vld [vmem:[%s17176_s4] ss:$0 sm:$0xff] }
 0x4da   : > { %v5958_v16 = vsel %vm3518_vm9, %v5955_v52, %v5957_v59 }
 0x4df   : > { %11565 = vmatmul.mubr.bf16.gmra.mrb[32].mxu1 %v15744_v28  ;;  %v5960_v28 = vsel %vm3518_vm9, %v5957_v59, %v5959_v13 }
 0x4e0   : > { %11568 = vmatprep.mubr.bf16.mxu1 %v5644_v23  ;;  %v12377_v23 = vld [vmem:[%s17177_s5 + $0x78] sm:$0xff]  }
 0x4e1   : > { %11630 = vmatprep.subr.bf16.mxu0 %v12377_v23 }
 0x4e2   : > { %11631 = vmatpush3.bf16.msra.mxu0 %v12377_v23 }
 0x4e7   : > { %11569 = vmatmul.mubr.bf16.gmra.mrb[36].mxu1 %v5647_v56 }
 0x4e8   : > { %11576 = vmatprep.mubr.msk.bf16.mxu1 %vm3058_vm6, %v5952_v48 }
 0x4ef   : > { %11577 = vmatmul.mubr.msk.bf16.vlgmr.msra.gmra.mrb[0].mxu1 %vm3058_vm6, %v5954_v63 }
 0x4f0   : > { %11580 = vmatprep.mubr.msk.bf16.mxu1 %vm3058_vm6, %v5956_v46 }
 0x4f7   : > { %11581 = vmatmul.mubr.msk.bf16.gmra.mrb[4].mxu1 %vm3058_vm6, %v5958_v16 }
 0x4f8   : > { %11584 = vmatprep.mubr.msk.bf16.mxu1 %vm3058_vm6, %v5960_v28 }
 0x4ff   : > { %11585 = vmatmul.mubr.msk.bf16.gmra.mrb[8].mxu1 %vm3058_vm6, %v5962_v22 }
 0x500   : > { %11588 = vmatprep.mubr.msk.bf16.mxu1 %vm3058_vm6, %v5964_v10 }
 0x507   : > { %11589 = vmatmul.mubr.msk.bf16.gmra.mrb[12].mxu1 %vm3058_vm6, %v5966_v50 }
 0x508   : > { %11592 = vmatprep.mubr.msk.bf16.mxu1 %vm3058_vm6, %v5968_v26 }
 0x50f   : > { %11593 = vmatmul.mubr.msk.bf16.gmra.mrb[16].mxu1 %vm3058_vm6, %v5970_v8 }
 0x510   : > { %11596 = vmatprep.mubr.msk.bf16.mxu1 %vm3058_vm6, %v5972_v47 }
 0x517   : > { %11597 = vmatmul.mubr.msk.bf16.gmra.mrb[20].mxu1 %vm3058_vm6, %v5974_v29 }
 0x518   : > { %11600 = vmatprep.mubr.msk.bf16.mxu1 %vm3058_vm6, %v5976_v35 }
 0x51f   : > { %11601 = vmatmul.mubr.msk.bf16.gmra.mrb[24].mxu1 %vm3058_vm6, %v5978_v7 }
 0x520   : > { %11604 = vmatprep.mubr.msk.bf16.mxu1 %vm3058_vm6, %v5980_v4 }
 0x527   : > { %11605 = vmatmul.mubr.msk.bf16.gmra.mrb[28].mxu1 %vm3058_vm6, %v5982_v21 }
 0x528   : > { %11608 = vmatprep.mubr.msk.bf16.mxu1 %vm3058_vm6, %v5984_v6 }
 0x52f   : > { %11609 = vmatmul.mubr.msk.bf16.gmra.mrb[32].mxu1 %vm3058_vm6, %v5986_v43 }
 0x530   : > { %11612 = vmatprep.mubr.msk.bf16.mxu1 %vm3058_vm6, %v5988_v20 }
 0x537   : > { %11613 = vmatmul.mubr.msk.bf16.gmra.mrb[36].mxu1 %vm3058_vm6, %v5990_v17 }
 0x5c2   : > { %v11578_v1 = vpop.f32.mrb[0].mxu1 }
 0x5c3   : > { %v6305_v57 = vadd.f32 %v11578_v1, %v15874_v9  ;;  %v6097_v42 = vpop.f32.mrb[1].mxu1 }
 0x5c4   : > { %v6303_v32 = vadd.f32 %v15874_v9, %v6097_v42  ;;  %v11579_v36 = vpop.f32.mrb[2].mxu1 }
 0x5c5   : > { %v6345_v25 = vmax.f32 %v6305_v57, 0.0  ;;  %v6306_v56 = vadd.f32 %v11579_v36, %v15874_v9  ;;  %v6100_v48 = vpop.f32.mrb[3].mxu1 }
 0x5c6   : > { %v6343_v45 = vmax.f32 %v6303_v32, 0.0  ;;  %v6304_v11 = vadd.f32 %v15874_v9, %v6100_v48 }
 0x5c7   : > { %v6346_v14 = vmax.f32 %v6306_v56, 0.0  ;;  %v6390_v63 = vrot.slane %v6345_v25, 1 }
 0x5c8   : > { %v6344_v52 = vmax.f32 %v6304_v11, 0.0  ;;  %v6387_v27 = vrot.slane %v6343_v45, 1 }
 0x5c9   : > { %v6398_v46 = vrot.slane %v6346_v14, 1 }
 0x5ca   : > { %v6388_v59 = vrot.slane %v6344_v52, 1  ;;  %v11582_v53 = vpop.f32.mrb[4].mxu1 }
 0x5cb   : > { %v6399_v13 = vsel %vm2850_vm3, %v6390_v63, %v6398_v46  ;;  %v6309_v16 = vadd.f32 %v11582_v53, %v15874_v9  ;;  %v6113_v28 = vpop.f32.mrb[5].mxu1 }
 0x5cc   : > { %v6405_v62 = vmax.f32 %v6345_v25, %v6399_v13  ;;  %v6389_v2 = vsel %vm2850_vm3, %v6387_v27, %v6388_v59  ;;  %v6391_v12 = vsel %vm2850_vm3, %v6388_v59, %v6390_v63  ;;  %v6307_v30 = vadd.f32 %v15874_v9, %v6113_v28  ;;  %v11583_v22 = vpop.f32.mrb[6].mxu1 }
 0x5cd   : > { %v6394_v10 = vmax.f32 %v6343_v45, %v6389_v2  ;;  %v6395_v18 = vmax.f32 %v6344_v52, %v6391_v12  ;;  %v6349_v37 = vmax.f32 %v6309_v16, 0.0  ;;  %v6310_v39 = vadd.f32 %v11583_v22, %v15874_v9  ;;  %v6116_v54 = vpop.f32.mrb[7].mxu1 }
 0x5ce   : > { %v6347_v50 = vmax.f32 %v6307_v30, 0.0  ;;  %v6308_v26 = vadd.f32 %v15874_v9, %v6116_v54  ;;  %v6411_v19 = vrot.slane %v6405_v62, 4 }
 0x5cf   : > { %v6350_v0 = vmax.f32 %v6310_v39, 0.0  ;;  %v6424_v38 = vrot.slane %v6349_v37, 1 }
 0x5d0   : > { %v6400_v31 = vrot.slane %v6347_v50, 1  ;;  %v6348_v15 = vmax.f32 %v6308_v26, 0.0 }
 0x5d1   : > { %v6426_v8 = vrot.slane %v6350_v0, 1 }
 0x5d2   : > { %v6401_v47 = vsel %vm2850_vm3, %v6398_v46, %v6400_v31  ;;  %v6407_v5 = vmax.f32 %v6347_v50, %v6400_v31  ;;  %v6423_v44 = vrot.slane %v6348_v15, 1  ;;  %v11586_v33 = vpop.f32.mrb[8].mxu1 }
 0x5d3   : > { %v6406_v29 = vmax.f32 %v6346_v14, %v6401_v47  ;;  %v6427_v35 = vsel %vm2850_vm3, %v6424_v38, %v6426_v8  ;;  %v6313_v3 = vadd.f32 %v11586_v33, %v15874_v9  ;;  %v6129_v51 = vpop.f32.mrb[9].mxu1 }
 0x5d4   : > { %v6414_v34 = vrot.slane %v6407_v5, 4  ;;  %v6431_v7 = vmax.f32 %v6349_v37, %v6427_v35  ;;  %v6425_v4 = vsel %vm2850_vm3, %v6423_v44, %v6424_v38  ;;  %v6311_v24 = vadd.f32 %v15874_v9, %v6129_v51  ;;  %v11587_v41 = vpop.f32.mrb[10].mxu1 }
 0x5d5   : > { %v6412_v21 = vrot.slane %v6406_v29, 4  ;;  %v6430_v6 = vmax.f32 %v6348_v15, %v6425_v4  ;;  %v6353_v40 = vmax.f32 %v6313_v3, 0.0  ;;  %v6314_v61 = vadd.f32 %v11587_v41, %v15874_v9  ;;  %v6132_v43 = vpop.f32.mrb[11].mxu1 }
 0x5d6   : > { %v6351_v20 = vmax.f32 %v6311_v24, 0.0  ;;  %v6312_v49 = vadd.f32 %v15874_v9, %v6132_v43  ;;  %v12378_v43 = vld [vmem:[%s17177_s5 + $0x180] sm:$0xff]  }
 0x5d7   : > { %v6413_v55 = vsel %vm1408_vm0, %v6411_v19, %v6412_v21  ;;  %v6415_v17 = vsel %vm1408_vm0, %v6412_v21, %v6414_v34  ;;  %v6354_v60 = vmax.f32 %v6314_v61, 0.0  ;;  %v6459_v42 = vrot.slane %v6353_v40, 1  ;;  %11760 = vmatprep.subr.bf16.mxu1 %v12378_v43 }
 0x5d8   : > { %v6418_v58 = vmax.f32 %v6394_v10, %v6413_v55  ;;  %v6419_v23 = vmax.f32 %v6395_v18, %v6415_v17  ;;  %v6434_v1 = vrot.slane %v6351_v20, 1  ;;  %v6352_v57 = vmax.f32 %v6312_v49, 0.0  ;;  %11761 = vmatpush3.bf16.msra.mxu1 %v12378_v43 }
 0x5d9   : > { %v6460_v32 = vrot.slane %v6354_v60, 1 }
 0x5da   : > { %v15896_v36 = vpack.c.bf16 %v6419_v23, %v6418_v58  ;;  %v6435_v25 = vsel %vm2850_vm3, %v6426_v8, %v6434_v1  ;;  %v6436_v56 = vrot.slane %v6352_v57, 1  ;;  %v11590_v48 = vpop.f32.mrb[12].mxu1 }
 0x5db   : > { %v6441_v45 = vmax.f32 %v6350_v0, %v6435_v25  ;;  %v6461_v11 = vsel %vm2850_vm3, %v6459_v42, %v6460_v32  ;;  %v6317_v14 = vadd.f32 %v11590_v48, %v15874_v9  ;;  %v6145_v52 = vpop.f32.mrb[13].mxu1 }
 0x5dc   : > { %v15901_v63 = vmax.f32 %v6353_v40, %v6461_v11  ;;  %v6437_v46 = vsel %vm2850_vm3, %v6434_v1, %v6436_v56  ;;  %v6443_v27 = vmax.f32 %v6352_v57, %v6436_v56  ;;  %v6315_v59 = vadd.f32 %v15874_v9, %v6145_v52  ;;  %v11591_v53 = vpop.f32.mrb[14].mxu1 }
 0x5dd   : > { %v6442_v13 = vmax.f32 %v6351_v20, %v6437_v46  ;;  %v6357_v16 = vmax.f32 %v6317_v14, 0.0  ;;  %v6148_v28 = vpop.f32.mrb[15].mxu1  ;;  %v6447_v30 = vrot.slane %v6441_v45, 4  ;;  %v6318_v18 = vadd.f32 %v11591_v53, %v15874_v9 }
 0x5de   : > { %v6450_v62 = vrot.slane %v6443_v27, 4  ;;  %v6355_v2 = vmax.f32 %v6315_v59, 0.0  ;;  %v6316_v12 = vadd.f32 %v15874_v9, %v6148_v28  ;;  %v6684_v40 = vrot.slane %v15896_v36, 1 }
 0x5df   : > { %v6448_v22 = vrot.slane %v6442_v13, 4  ;;  %v6472_v10 = vrot.slane %v6357_v16, 1  ;;  %v6358_v5 = vmax.f32 %v6318_v18, 0.0 }
 0x5e0   : > { %v6462_v37 = vrot.slane %v6355_v2, 1  ;;  %v6356_v39 = vmax.f32 %v6316_v12, 0.0 }
 0x5e1   : > { %v6449_v54 = vsel %vm1408_vm0, %v6447_v30, %v6448_v22  ;;  %v6451_v50 = vsel %vm1408_vm0, %v6448_v22, %v6450_v62  ;;  %v6479_v8 = vmax.f32 %v6357_v16, %v6472_v10 }
 0x5e2   : > { %v6454_v26 = vmax.f32 %v6430_v6, %v6449_v54  ;;  %v6455_v0 = vmax.f32 %v6431_v7, %v6451_v50  ;;  %v6463_v31 = vsel %vm2850_vm3, %v6460_v32, %v6462_v37  ;;  %v6470_v15 = vrot.slane %v6356_v39, 1  ;;  %v11594_v38 = vpop.f32.mrb[16].mxu1 }
 0x5e3   : > { %v6467_v47 = vmax.f32 %v6354_v60, %v6463_v31  ;;  %v6321_v44 = vadd.f32 %v11594_v38, %v15874_v9  ;;  %v6161_v33 = vpop.f32.mrb[17].mxu1  ;;  %v6486_v20 = vrot.slane %v6479_v8, 4  ;;  %v6495_v60 = vrot.slane %v6358_v5, 1 }
 0x5e4   : > { %v15911_v19 = vpack.c.bf16 %v6455_v0, %v6454_v26  ;;  %v6471_v29 = vsel %vm2850_vm3, %v6462_v37, %v6470_v15  ;;  %v6473_v35 = vsel %vm2850_vm3, %v6470_v15, %v6472_v10  ;;  %v6319_v3 = vadd.f32 %v15874_v9, %v6161_v33  ;;  %v11595_v51 = vpop.f32.mrb[18].mxu1 }
 0x5e5   : > { %v6477_v34 = vmax.f32 %v6355_v2, %v6471_v29  ;;  %v6478_v7 = vmax.f32 %v6356_v39, %v6473_v35  ;;  %v6361_v4 = vmax.f32 %v6321_v44, 0.0  ;;  %v6322_v24 = vadd.f32 %v11595_v51, %v15874_v9  ;;  %v6164_v41 = vpop.f32.mrb[19].mxu1  ;;  %v12379_v2 = vld [vmem:[%s17177_s5 + $0x188] sm:$0xff]  }
 0x5e6   : > { %v6359_v21 = vmax.f32 %v6319_v3, 0.0  ;;  %v6320_v6 = vadd.f32 %v15874_v9, %v6164_v41  ;;  %v6685_v61 = vrot.slane %v15911_v19, 1  ;;  %11762 = vmatprep.subr.bf16.mxu1 %v12379_v2 }
 0x5e7   : > { %v6483_v49 = vrot.slane %v6477_v34, 4  ;;  %v6484_v55 = vrot.slane %v6478_v7, 4  ;;  %v6362_v17 = vmax.f32 %v6322_v24, 0.0  ;;  %v6506_v32 = vrot.slane %v6361_v4, 1  ;;  %11763 = vmatpush3.bf16.msra.mxu1 %v12379_v2  ;;  %v12383_v24 = vld [vmem:[%s17177_s5 + $0x198] sm:$0xff]  }
 0x5e8   : > { %v6496_v58 = vrot.slane %v6359_v21, 1  ;;  %v6360_v23 = vmax.f32 %v6320_v6, 0.0  ;;  %v6686_v1 = vsel %vm2850_vm3, %v6684_v40, %v6685_v61 }
 0x5e9   : > { %v6485_v57 = vsel %vm1408_vm0, %v6483_v49, %v6484_v55  ;;  %v6487_v42 = vsel %vm1408_vm0, %v6484_v55, %v6486_v20  ;;  %v6508_v25 = vrot.slane %v6362_v17, 1  ;;  %6691 = vrot.lane.b32.xlu1 %v6686_v1, %s12765_s24 }
 0x5ea   : > { %v6490_v56 = vmax.f32 %v15901_v63, %v6485_v57  ;;  %v6491_v48 = vmax.f32 %v6467_v47, %v6487_v42  ;;  %v6497_v45 = vsel %vm2850_vm3, %v6495_v60, %v6496_v58  ;;  %v6498_v11 = vrot.slane %v6360_v23, 1  ;;  %v11598_v14 = vpop.f32.mrb[20].mxu1  ;;  %v15949_v47 = vld [vmem:[%s17177_s5] sm:$0xff]  }
 0x5eb   : > { %v6502_v52 = vmax.f32 %v6358_v5, %v6497_v45  ;;  %v6509_v46 = vsel %vm2850_vm3, %v6506_v32, %v6508_v25  ;;  %v6515_v27 = vmax.f32 %v6362_v17, %v6508_v25  ;;  %v6325_v59 = vadd.f32 %v11598_v14, %v15874_v9  ;;  %v6177_v53 = vpop.f32.mrb[21].mxu1  ;;  %v12381_v5 = vld [vmem:[%s17177_s5 + $0x190] sm:$0xff]   ;;  %11640 = vmatprep.subr.bf16.mxu0 %v15949_v47 }
 0x5ec   : > { %v15931_v13 = vpack.c.bf16 %v6491_v48, %v6490_v56  ;;  %v6514_v16 = vmax.f32 %v6361_v4, %v6509_v46  ;;  %v6499_v28 = vsel %vm2850_vm3, %v6496_v58, %v6498_v11  ;;  %v6507_v62 = vsel %vm2850_vm3, %v6498_v11, %v6506_v32  ;;  %v11599_v63 = vpop.f32.mrb[22].mxu1  ;;  %11764 = vmatprep.subr.bf16.mxu1 %v12381_v5  ;;  %v12385_v32 = vld [vmem:[%s17177_s5 + $0x1a0] sm:$0xff]  }
 0x5ed   : > { %v6522_v12 = vrot.slane %v6515_v27, 4  ;;  %v6503_v30 = vmax.f32 %v6359_v21, %v6499_v28  ;;  %v6513_v22 = vmax.f32 %v6360_v23, %v6507_v62  ;;  %v6365_v10 = vmax.f32 %v6325_v59, 0.0  ;;  %v6180_v18 = vpop.f32.mrb[23].mxu1  ;;  %11765 = vmatpush3.bf16.msra.mxu1 %v12381_v5 }
 0x5ee   : > { %v6520_v37 = vrot.slane %v6514_v16, 4  ;;  %v6323_v39 = vadd.f32 %v15874_v9, %v6177_v53  ;;  %v15940_v54 = vadd.f32 %v11599_v63, %v15874_v9  ;;  %v6324_v50 = vadd.f32 %v15874_v9, %v6180_v18  ;;  %11766 = vmatprep.subr.bf16.mxu1 %v12383_v24 }
 0x5ef   : > { %v6519_v26 = vrot.slane %v6513_v22, 4  ;;  %v6687_v0 = vrot.slane %v15931_v13, 1  ;;  %v6534_v29 = vrot.slane %v6365_v10, 1  ;;  %v6983_v25 = vrot.slane %v15931_v13, 4 }
 0x5f0   : > { %v6523_v31 = vsel %vm1408_vm0, %v6520_v37, %v6522_v12  ;;  %v6363_v15 = vmax.f32 %v6323_v39, 0.0  ;;  %v6366_v38 = vmax.f32 %v15940_v54, 0.0  ;;  %v6364_v8 = vmax.f32 %v6324_v50, 0.0 }
 0x5f1   : > { %v6521_v44 = vsel %vm1408_vm0, %v6519_v26, %v6520_v37  ;;  %v6527_v33 = vmax.f32 %v6503_v30, %v6523_v31  ;;  %v6688_v35 = vsel %vm2850_vm3, %v6685_v61, %v6687_v0  ;;  %11767 = vmatpush3.bf16.msra.mxu1 %v12383_v24  ;;  %v6982_v14 = vrot.slane %v15911_v19, 4 }
 0x5f2   : > { %v6526_v3 = vmax.f32 %v6502_v52, %v6521_v44  ;;  %v6531_v51 = vrot.slane %v6363_v15, 1  ;;  %v6542_v34 = vrot.slane %v6366_v38, 1  ;;  %v6532_v7 = vrot.slane %v6364_v8, 1  ;;  %6693 = vrot.lane.b32.xlu0 %v6688_v35, %s12765_s24  ;;  %v11602_v4 = vpop.f32.mrb[24].mxu1  ;;  %11768 = vmatprep.subr.bf16.mxu1 %v12385_v32 }
 0x5f3   : > { %v6329_v41 = vadd.f32 %v11602_v4, %v15874_v9  ;;  %v6193_v21 = vpop.f32.mrb[25].mxu1  ;;  %v6984_v62 = vsel %vm1408_vm0, %v6982_v14, %v6983_v25 }
 0x5f4   : > { %v15962_v6 = vpack.c.bf16 %v6527_v33, %v6526_v3  ;;  %v6543_v40 = vsel %vm2850_vm3, %v6534_v29, %v6542_v34  ;;  %v6533_v61 = vsel %vm2850_vm3, %v6531_v51, %v6532_v7  ;;  %v6535_v43 = vsel %vm2850_vm3, %v6532_v7, %v6534_v29  ;;  %v11603_v20 = vpop.f32.mrb[26].mxu1 }
 0x5f5   : > { %v6549_v49 = vmax.f32 %v6365_v10, %v6543_v40  ;;  %v15967_v55 = vmax.f32 %v6363_v15, %v6533_v61  ;;  %v15969_v17 = vmax.f32 %v6364_v8, %v6535_v43  ;;  %v6369_v60 = vmax.f32 %v6329_v41, 0.0  ;;  %v6196_v58 = vpop.f32.mrb[27].mxu1  ;;  %11769 = vmatpush3.bf16.msra.mxu1 %v12385_v32 }
 0x5f6   : > { %v6327_v23 = vadd.f32 %v15874_v9, %v6193_v21  ;;  %v15973_v1 = vadd.f32 %v11603_v20, %v15874_v9  ;;  %v6328_v57 = vadd.f32 %v15874_v9, %v6196_v58  ;;  %v15977_v42 = vrot.slane %v15962_v6, 1 }
 0x5f7   : > { %v6568_v52 = vrot.slane %v6369_v60, 1  ;;  %v15993_v63 = vrot.slane %v15962_v6, 4  ;;  %v6555_v8 = vrot.slane %v6549_v49, 4 }
 0x5f8   : > { %v6367_v56 = vmax.f32 %v6327_v23, 0.0  ;;  %v6370_v48 = vmax.f32 %v15973_v1, 0.0  ;;  %v6368_v45 = vmax.f32 %v6328_v57, 0.0  ;;  %6697 = vrot.lane.b32.xlu0 %v15977_v42, %s12765_s24  ;;  %v6690_v11 = vsel %vm2850_vm3, %v6687_v0, %v15977_v42 }
 0x5f9   : > { %6695 = vrot.lane.b32.xlu1 %v6690_v11, %s12765_s24  ;;  %v6986_v29 = vsel %vm1408_vm0, %v6983_v25, %v15993_v63  ;;  %v12389_v25 = vld [vmem:[%s17177_s5 + $0x1b0] sm:$0xff]  }
 0x5fa   : > { %v6544_v46 = vrot.slane %v6367_v56, 1  ;;  %v6570_v27 = vrot.slane %v6370_v48, 1  ;;  %v6567_v59 = vrot.slane %v6368_v45, 1  ;;  %v11606_v53 = vpop.f32.mrb[28].mxu1 }
 0x5fb   : > { %v6333_v16 = vadd.f32 %v11606_v53, %v15874_v9  ;;  %v6209_v28 = vpop.f32.mrb[29].mxu1 }
 0x5fc   : > { %v6545_v2 = vsel %vm2850_vm3, %v6542_v34, %v6544_v46  ;;  %v6551_v12 = vmax.f32 %v6367_v56, %v6544_v46  ;;  %v6571_v30 = vsel %vm2850_vm3, %v6568_v52, %v6570_v27  ;;  %v6569_v22 = vsel %vm2850_vm3, %v6567_v59, %v6568_v52  ;;  %6991 = vrot.lane.b32.xlu0 %v6984_v62, %s12765_s24  ;;  %v11607_v10 = vpop.f32.mrb[30].mxu1  ;;  %v12387_v34 = vld [vmem:[%s17177_s5 + $0x1a8] sm:$0xff]  }
 0x5fd   : > { %v6550_v18 = vmax.f32 %v6366_v38, %v6545_v2  ;;  %v15999_v37 = vmax.f32 %v6369_v60, %v6571_v30  ;;  %v16001_v39 = vmax.f32 %v6368_v45, %v6569_v22  ;;  %v6373_v54 = vmax.f32 %v6333_v16, 0.0  ;;  %6989 = vrot.lane.b32.xlu1 %v6982_v14, %s12765_s24  ;;  %v6212_v50 = vpop.f32.mrb[31].mxu1  ;;  %11770 = vmatprep.subr.bf16.mxu1 %v12387_v34  ;;  %v12391_v30 = vld [vmem:[%s17177_s5 + $0x1b8] sm:$0xff]  }
 0x5fe   : > { %v6558_v26 = vrot.slane %v6551_v12, 4  ;;  %v6331_v0 = vadd.f32 %v15874_v9, %v6209_v28  ;;  %v6334_v31 = vadd.f32 %v11607_v10, %v15874_v9  ;;  %v6332_v15 = vadd.f32 %v15874_v9, %v6212_v50  ;;  %11771 = vmatpush3.bf16.msra.mxu1 %v12387_v34 }
 0x5ff   : > { %v6556_v5 = vrot.slane %v6550_v18, 4  ;;  %v6603_v51 = vrot.slane %v6373_v54, 1  ;;  %11772 = vmatprep.subr.bf16.mxu1 %v12389_v25 }
 0x600   : > { %v6371_v44 = vmax.f32 %v6331_v0, 0.0  ;;  %v6374_v38 = vmax.f32 %v6334_v31, 0.0  ;;  %v6372_v33 = vmax.f32 %v6332_v15, 0.0 }
 0x601   : > { %v6557_v35 = vsel %vm1408_vm0, %v6555_v8, %v6556_v5  ;;  %v6559_v3 = vsel %vm1408_vm0, %v6556_v5, %v6558_v26  ;;  %6993 = vrot.lane.b32.xlu1 %v6986_v29, %s12765_s24 }
 0x602   : > { %v6562_v7 = vmax.f32 %v15967_v55, %v6557_v35  ;;  %v6563_v4 = vmax.f32 %v15969_v17, %v6559_v3  ;;  %v6578_v24 = vrot.slane %v6371_v44, 1  ;;  %v6604_v41 = vrot.slane %v6374_v38, 1  ;;  %v11610_v21 = vpop.f32.mrb[32].mxu1  ;;  %11773 = vmatpush3.bf16.msra.mxu1 %v12389_v25  ;;  %v16060_v35 = vld [vmem:[%s17177_s5 + $0x200] sm:$0xff]  }
 0x603   : > { %v6580_v40 = vrot.slane %v6372_v33, 1  ;;  %v6337_v61 = vadd.f32 %v11610_v21, %v15874_v9  ;;  %v6225_v43 = vpop.f32.mrb[33].mxu1  ;;  %11774 = vmatprep.subr.bf16.mxu1 %v12391_v30 }
 0x604   : > { %v16018_v20 = vpack.c.bf16 %v6563_v4, %v6562_v7  ;;  %v6579_v49 = vsel %vm2850_vm3, %v6570_v27, %v6578_v24  ;;  %v6605_v60 = vsel %vm2850_vm3, %v6603_v51, %v6604_v41  ;;  %v6335_v58 = vadd.f32 %v15874_v9, %v6225_v43  ;;  %v11611_v23 = vpop.f32.mrb[34].mxu1 }
 0x605   : > { %v6585_v55 = vmax.f32 %v6370_v48, %v6579_v49  ;;  %v16023_v17 = vmax.f32 %v6373_v54, %v6605_v60  ;;  %v6581_v1 = vsel %vm2850_vm3, %v6578_v24, %v6580_v40  ;;  %v6587_v57 = vmax.f32 %v6372_v33, %v6580_v40  ;;  %v6228_v32 = vpop.f32.mrb[35].mxu1 }
 0x606   : > { %v6586_v56 = vmax.f32 %v6371_v44, %v6581_v1  ;;  %v6377_v45 = vmax.f32 %v6337_v61, 0.0  ;;  %v6375_v11 = vmax.f32 %v6335_v58, 0.0  ;;  %v16030_v14 = vadd.f32 %v11611_v23, %v15874_v9  ;;  %11775 = vmatpush3.bf16.msra.mxu1 %v12391_v30 }
 0x607   : > { %v6594_v52 = vrot.slane %v6587_v57, 4  ;;  %v6336_v46 = vadd.f32 %v15874_v9, %v6228_v32  ;;  %v7149_v48 = vrot.slane %v16018_v20, 1  ;;  %v6591_v27 = vrot.slane %v6585_v55, 4  ;;  %11808 = vmatprep.subr.bf16.mxu1 %v16060_v35 }
 0x608   : > { %v6592_v59 = vrot.slane %v6586_v56, 4  ;;  %v6616_v53 = vrot.slane %v6377_v45, 1  ;;  %v6606_v16 = vrot.slane %v6375_v11, 1  ;;  %v6378_v28 = vmax.f32 %v16030_v14, 0.0 }
 0x609   : > { %v6376_v62 = vmax.f32 %v6336_v46, 0.0  ;;  %v7150_v2 = vsel %vm2850_vm3, %v15977_v42, %v7149_v48  ;;  %v6987_v12 = vrot.slane %v16018_v20, 4 }
 0x60a   : > { %v6593_v22 = vsel %vm1408_vm0, %v6591_v27, %v6592_v59  ;;  %v6595_v10 = vsel %vm1408_vm0, %v6592_v59, %v6594_v52  ;;  %v6607_v18 = vsel %vm2850_vm3, %v6604_v41, %v6606_v16  ;;  %7151 = vrot.lane.b32.xlu1 %v7150_v2, %s12765_s24  ;;  %v11614_v54 = vpop.f32.mrb[36].mxu1  ;;  %v6623_v31 = vmax.f32 %v6377_v45, %v6616_v53 }
 0x60b   : > { %v6598_v50 = vmax.f32 %v16001_v39, %v6593_v22  ;;  %v6599_v26 = vmax.f32 %v15999_v37, %v6595_v10  ;;  %v6611_v42 = vmax.f32 %v6374_v38, %v6607_v18  ;;  %v6241_v0 = vpop.f32.mrb[37].mxu1  ;;  %v6614_v15 = vrot.slane %v6376_v62, 1 }
 0x60c   : > { %v6988_v8 = vsel %vm1408_vm0, %v15993_v63, %v6987_v12  ;;  %v6341_v5 = vadd.f32 %v11614_v54, %v15874_v9  ;;  %v11615_v44 = vpop.f32.mrb[38].mxu1  ;;  %v6639_v29 = vrot.slane %v6378_v28, 1  ;;  %v6339_v37 = vadd.f32 %v15874_v9, %v6241_v0 }
 0x60d   : > { %v16052_v33 = vpack.c.bf16 %v6599_v26, %v6598_v50  ;;  %6995 = vrot.lane.b32.xlu0 %v6988_v8, %s12765_s24  ;;  %v6342_v39 = vadd.f32 %v11615_v44, %v15874_v9  ;;  %v6244_v38 = vpop.f32.mrb[39].mxu1  ;;  %v6615_v3 = vsel %vm2850_vm3, %v6606_v16, %v6614_v15  ;;  %v6617_v51 = vsel %vm2850_vm3, %v6614_v15, %v6616_v53 }
 0x60e   : > { %v6381_v34 = vmax.f32 %v6341_v5, 0.0  ;;  %v6340_v7 = vadd.f32 %v15874_v9, %v6244_v38  ;;  %v6621_v4 = vmax.f32 %v6375_v11, %v6615_v3  ;;  %v6622_v24 = vmax.f32 %v6376_v62, %v6617_v51 }
 0x60f   : > { %v6379_v41 = vmax.f32 %v6339_v37, 0.0  ;;  %v6382_v21 = vmax.f32 %v6342_v39, 0.0  ;;  %v6630_v40 = vrot.slane %v6623_v31, 4  ;;  %v7444_v49 = vrot.slane %v16052_v33, 1 }
 0x610   : > { %v6650_v61 = vrot.slane %v6381_v34, 1  ;;  %v6380_v43 = vmax.f32 %v6340_v7, 0.0  ;;  %v6627_v60 = vrot.slane %v6621_v4, 4  ;;  %v6628_v58 = vrot.slane %v6622_v24, 4  ;;  %v12382_v24 = vld [vmem:[%s17177_s5 + $0x8] sm:$0xff]  }
 0x611   : > { %7153 = vrot.lane.b32.xlu0 %v7149_v48, %s12765_s24  ;;  %v6640_v23 = vrot.slane %v6379_v41, 1  ;;  %v6652_v55 = vrot.slane %v6382_v21, 1  ;;  %v7445_v9 = vsel %vm2850_vm3, %v7149_v48, %v7444_v49  ;;  %v7729_v57 = vrot.slane %v16052_v33, 4 }
 0x612   : > { %v6642_v1 = vrot.slane %v6380_v43, 1  ;;  %v6629_v32 = vsel %vm1408_vm0, %v6627_v60, %v6628_v58  ;;  %v6631_v25 = vsel %vm1408_vm0, %v6628_v58, %v6630_v40  ;;  %7446 = vrot.lane.b32.xlu1 %v7445_v9, %s12765_s24 }
 0x613   : > { %v6641_v56 = vsel %vm2850_vm3, %v6639_v29, %v6640_v23  ;;  %v6653_v45 = vsel %vm2850_vm3, %v6650_v61, %v6652_v55  ;;  %v6634_v11 = vmax.f32 %v16023_v17, %v6629_v32  ;;  %v6635_v14 = vmax.f32 %v6611_v42, %v6631_v25  ;;  %v12392_v32 = vld [vmem:[%s17177_s5 + $0x30] sm:$0xff]  }
 0x614   : > { %v6646_v52 = vmax.f32 %v6378_v28, %v6641_v56  ;;  %v6658_v46 = vmax.f32 %v6381_v34, %v6653_v45  ;;  %v6659_v27 = vmax.f32 %v6382_v21, %v6652_v55  ;;  %v6643_v48 = vsel %vm2850_vm3, %v6640_v23, %v6642_v1 }
 0x615   : > { %v6651_v59 = vsel %vm2850_vm3, %v6642_v1, %v6650_v61  ;;  %7448 = vrot.lane.b32.xlu0 %v7444_v49, %s12765_s24  ;;  %v16079_v53 = vpack.c.bf16 %v6635_v14, %v6634_v11  ;;  %v6647_v62 = vmax.f32 %v6379_v41, %v6643_v48  ;;  %v16086_v28 = vsel %vm1408_vm0, %v6987_v12, %v7729_v57  ;;  %v12384_v61 = vld [vmem:[%s17177_s5 + $0x10] sm:$0xff]   ;;  %v12390_v1 = vld [vmem:[%s17177_s5 + $0x28] sm:$0xff]   ;;  %v12394_v11 = vld [vmem:[%s17177_s5 + $0x38] sm:$0xff]  }
 0x616   : > { %v6664_v16 = vrot.slane %v6658_v46, 4  ;;  %v6657_v2 = vmax.f32 %v6380_v43, %v6651_v59  ;;  %v6666_v30 = vrot.slane %v6659_v27, 4  ;;  %7733 = vrot.lane.b32.xlu1 %v15993_v63, %s12765_s24  ;;  %v12386_v43 = vld [vmem:[%s17177_s5 + $0x18] sm:$0xff]   ;;  %v12395_v48 = vld [vmem:[%s17177_s5 + $0x208] sm:$0xff]  }
 0x617   : > { %v7887_v22 = vrot.slane %v16079_v53, 1  ;;  %v7731_v10 = vrot.slane %v16079_v53, 4 }
 0x618   : > { %v6663_v17 = vrot.slane %v6657_v2, 4  ;;  %v6667_v18 = vsel %vm1408_vm0, %v6664_v16, %v6666_v30 }
 0x619   : > { %7735 = vrot.lane.b32.xlu0 %v16086_v28, %s12765_s24  ;;  %v6671_v50 = vmax.f32 %v6647_v62, %v6667_v18  ;;  %v7888_v63 = vsel %vm2850_vm3, %v7444_v49, %v7887_v22  ;;  %v16098_v26 = vsel %vm1408_vm0, %v7729_v57, %v7731_v10 }
 0x61a   : > { %v6665_v54 = vsel %vm1408_vm0, %v6663_v17, %v6664_v16  ;;  %7889 = vrot.lane.b32.xlu1 %v7888_v63, %s12765_s24 }
 0x61b   : > { %v6670_v12 = vmax.f32 %v6646_v52, %v6665_v54 }
 0x61d   : > { %v16101_v42 = vpack.c.bf16 %v6671_v50, %v6670_v12  ;;  %7737 = vrot.lane.b32.xlu0 %v16098_v26, %s12765_s24  ;;  %v12397_v50 = vld [vmem:[%s17177_s5 + $0x210] sm:$0xff]  }
 0x61e   : > { %7891 = vrot.lane.b32.xlu1 %v7887_v22, %s12765_s24 }
 0x61f   : > { %v8179_v0 = vrot.slane %v16101_v42, 1 }
 0x621   : > { %v8180_v31 = vsel %vm2850_vm3, %v7887_v22, %v8179_v0 }
 0x622   : > { %8181 = vrot.lane.b32.xlu0 %v8180_v31, %s12765_s24  ;;  %8183 = vrot.lane.b32.xlu1 %v8179_v0, %s12765_s24  ;;  %s10541_s24 = sshll.u32 %s12851_s21, 4  ;;  %s12769_s21 = smov [#allocation2]  }
 0x623   : > { %s17129_s12 = scalar_lea.hbm %s17183_s11, %s10541_s24  ;;  %s12703_s14 = sshll.u32 %s12769_s21, 4  ;;  %s12704_s14 = int_to_ptr.vmem [resolvable:$false] %s12703_s14 }
 0x624   : > { %s12705_s15 = scalar_lea.vmem %s12704_s14, 32  ;;  %p12706_p0 = scmp.lt.s32.totalorder %s17131_s0, %s12704_s14 }
 0x625   : > { %p12707_p1 = scmp.lt.s32.totalorder %s12705_s15, %s12699_s1 }
 0x627   : > { %p12708_p2 = por %p12707_p1, %p12706_p0 }
 0x629   : > { %p12709_p3 = pnand %p12708_p2, %p12702_p13 }
 0x65b   : > { %v6692_v15 = vpop.permute.xlu1 %6691 }
 0x65c   : > { %v6701_v8 = vsel %vm3099_vm7, %v15896_v36, %v6692_v15  ;;  %v12398_v15 = vld [vmem:[%s17177_s5 + $0x88] sm:$0xff]  }
 0x65d   : > { %v6751_v29 = vrot.slane %v6701_v8, 2 }
 0x664   : > { %v6694_v5 = vpop.permute.xlu0 %6693 }
 0x665   : > { %v16114_v44 = vsel %vm3099_vm7, %v15911_v19, %v6694_v5 }
 0x666   : > { %v6752_v37 = vrot.slane %v16114_v44, 2 }
 0x668   : > { %v6753_v39 = vsel %vm3518_vm9, %v6751_v29, %v6752_v37 }
 0x669   : > { %11632 = vmatprep.mubr.bf16.mxu0 %v6753_v39 }
 0x66a   : > { %v6698_v38 = vpop.permute.xlu0 %6697 }
 0x66b   : > { %v16120_v3 = vsel %vm3099_vm7, %v15962_v6, %v6698_v38  ;;  %v6696_v51 = vpop.permute.xlu1 %6695  ;;  %v12399_v38 = vld [vmem:[%s17177_s5 + $0x218] sm:$0xff]  }
 0x66c   : > { %v6756_v34 = vrot.slane %v16120_v3, 2  ;;  %v16125_v7 = vsel %vm3099_vm7, %v15931_v13, %v6696_v51 }
 0x66d   : > { %v6754_v4 = vrot.slane %v16125_v7, 2 }
 0x66e   : > { %v6992_v60 = vpop.permute.xlu0 %6991 }
 0x66f   : > { %v6755_v41 = vsel %vm3518_vm9, %v6752_v37, %v6754_v4  ;;  %v6757_v21 = vsel %vm3518_vm9, %v6754_v4, %v6756_v34  ;;  %v16134_v40 = vpop.permute.xlu1 %6989  ;;  %v16224_v51 = vsel %vm3099_vm7, %v15911_v19, %v6992_v60 }
 0x670   : > { %11633 = vmatmul.mubr.bf16.vlgmr.msra.gmra.mrb[200].mxu0 %v6755_v41 }
 0x671   : > { %11641 = vmatpush3.bf16.msra.mxu0 %v15949_v47  ;;  %11636 = vmatprep.mubr.bf16.mxu0 %v6757_v21  ;;  %v12388_v47 = vld [vmem:[%s17177_s5 + $0x20] sm:$0xff]  }
 0x672   : > { %11642 = vmatprep.subr.bf16.mxu0 %v12382_v24 }
 0x673   : > { %v16142_v49 = vpop.permute.xlu1 %6993 }
 0x675   : > { %11643 = vmatpush3.bf16.msra.mxu0 %v12382_v24 }
 0x676   : > { %11644 = vmatprep.subr.bf16.mxu0 %v12384_v61 }
 0x678   : > { %11637 = vmatmul.mubr.bf16.gmra.mrb[204].mxu0 %v6756_v34  ;;  %v6998_v34 = vsel %vm3099_vm7, %v15896_v36, %v16134_v40  ;;  %v12400_v36 = vld [vmem:[%s17177_s5 + $0x90] sm:$0xff]  }
 0x679   : > { %11645 = vmatpush3.bf16.msra.mxu0 %v12384_v61  ;;  %11656 = vmatprep.mubr.bf16.mxu0 %v6701_v8 }
 0x67a   : > { %11646 = vmatprep.subr.bf16.mxu0 %v12386_v43 }
 0x67c   : > { %v7152_v58 = vpop.permute.xlu1 %7151 }
 0x67d   : > { %v16149_v23 = vsel %vm3099_vm7, %v15962_v6, %v7152_v58  ;;  %11647 = vmatpush3.bf16.msra.mxu0 %v12386_v43  ;;  %v7026_v43 = vrot.slane %v16224_v51, 4  ;;  %v12401_v58 = vld [vmem:[%s17177_s5 + $0x220] sm:$0xff]  }
 0x67e   : > { %v7605_v55 = vrot.slane %v16149_v23, 2  ;;  %11648 = vmatprep.subr.bf16.mxu0 %v12388_v47  ;;  %v16212_v37 = vrot.slane %v16149_v23, 1  ;;  %v12417_v51 = vld [vmem:[%s17177_s5 + $0x2a0] sm:$0xff]  }
 0x67f   : > { %v6996_v9 = vpop.permute.xlu0 %6995 }
 0x680   : > { %v7606_v57 = vsel %vm3518_vm9, %v6754_v4, %v7605_v55  ;;  %v7004_v46 = vsel %vm3099_vm7, %v15962_v6, %v6996_v9  ;;  %v12396_v6 = vld [vmem:[%s17177_s5 + $0x80] sm:$0xff]  }
 0x681   : > { %11776 = vmatprep.mubr.bf16.mxu1 %v7606_v57  ;;  %11649 = vmatpush3.bf16.msra.mxu0 %v12388_v47  ;;  %v16185_v30 = vrot.slane %v7004_v46, 4  ;;  %v7025_v47 = vrot.slane %v6998_v34, 4  ;;  %v12402_v57 = vld [vmem:[%s17177_s5 + $0x98] sm:$0xff]   ;;  %v12416_v34 = vld [vmem:[%s17177_s5 + $0xd0] sm:$0xff]  }
 0x682   : > { %11650 = vmatprep.subr.bf16.mxu0 %v12390_v1 }
 0x683   : > { %v16159_v25 = vpop.permute.xlu0 %7153 }
 0x684   : > { %v7447_v56 = vpop.permute.xlu1 %7446 }
 0x685   : > { %11651 = vmatpush3.bf16.msra.mxu0 %v12390_v1  ;;  %v16163_v45 = vsel %vm3099_vm7, %v16018_v20, %v7447_v56 }
 0x686   : > { %11652 = vmatprep.subr.bf16.mxu0 %v12392_v32  ;;  %v7607_v52 = vrot.slane %v16163_v45, 2  ;;  %v7916_v31 = vrot.slane %v16163_v45, 1 }
 0x687   : > { %v7449_v14 = vpop.permute.xlu0 %7448 }
 0x688   : > { %v16173_v27 = vsel %vm3099_vm7, %v16052_v33, %v7449_v14  ;;  %v7734_v16 = vpop.permute.xlu1 %7733  ;;  %v7608_v62 = vsel %vm3518_vm9, %v7605_v55, %v7607_v52  ;;  %v7917_v19 = vsel %vm2850_vm3, %v16212_v37, %v7916_v31  ;;  %v7027_v14 = vsel %vm1408_vm0, %v7025_v47, %v7026_v43  ;;  %v12419_v47 = vld [vmem:[%s17177_s5 + $0x2a8] sm:$0xff]  }
 0x689   : > { %v7609_v59 = vrot.slane %v16173_v27, 2  ;;  %11653 = vmatpush3.bf16.msra.mxu0 %v12392_v32  ;;  %v7740_v2 = vsel %vm3099_vm7, %v15931_v13, %v7734_v16  ;;  %11777 = vmatmul.mubr.bf16.vlgmr.msra.gmra.mrb[40].mxu1 %v7608_v62  ;;  %v12406_v16 = vld [vmem:[%s17177_s5 + $0xa8] sm:$0xff]   ;;  %v12407_v62 = vld [vmem:[%s17177_s5 + $0x238] sm:$0xff]  }
 0x68a   : > { %11654 = vmatprep.subr.bf16.mxu0 %v12394_v11  ;;  %v7764_v22 = vrot.slane %v7740_v2, 4  ;;  %11809 = vmatpush3.bf16.msra.mxu1 %v16060_v35  ;;  %v12408_v2 = vld [vmem:[%s17177_s5 + $0xb0] sm:$0xff]  }
 0x68b   : > { %v7736_v17 = vpop.permute.xlu0 %7735  ;;  %v7610_v18 = vsel %vm3518_vm9, %v7607_v52, %v7609_v59  ;;  %11810 = vmatprep.subr.bf16.mxu1 %v12395_v48 }
 0x68c   : > { %v7742_v54 = vsel %vm3099_vm7, %v16018_v20, %v7736_v17  ;;  %11780 = vmatprep.mubr.bf16.mxu1 %v7610_v18  ;;  %v7890_v12 = vpop.permute.xlu1 %7889  ;;  %v16196_v0 = vsel %vm1408_vm0, %v7764_v22, %v16185_v30  ;;  %v12410_v18 = vld [vmem:[%s17177_s5 + $0xb8] sm:$0xff]  }
 0x68d   : > { %v7766_v63 = vrot.slane %v7742_v54, 4  ;;  %11655 = vmatpush3.bf16.msra.mxu0 %v12394_v11  ;;  %v16200_v35 = vsel %vm3099_vm7, %v16052_v33, %v7890_v12  ;;  %v7002_v54 = vsel %vm3099_vm7, %v15931_v13, %v16142_v49  ;;  %v12413_v13 = vld [vmem:[%s17177_s5 + $0x290] sm:$0xff]   ;;  %v12414_v49 = vld [vmem:[%s17177_s5 + $0xc8] sm:$0xff]  }
 0x68e   : > { %11664 = vmatprep.subr.bf16.mxu0 %v12396_v6  ;;  %v8340_v8 = vrot.slane %v16200_v35, 2  ;;  %11811 = vmatpush3.bf16.msra.mxu1 %v12395_v48  ;;  %v8057_v21 = vrot.slane %v16200_v35, 3  ;;  %v7918_v17 = vrot.slane %v16200_v35, 1 }
 0x68f   : > { %v7738_v5 = vpop.permute.xlu0 %7737  ;;  %v16209_v29 = vsel %vm1408_vm0, %v16185_v30, %v7766_v63  ;;  %11812 = vmatprep.subr.bf16.mxu1 %v12397_v50 }
 0x690   : > { %v16216_v39 = vsel %vm3099_vm7, %v16052_v33, %v7738_v5  ;;  %11657 = vmatmul.mubr.bf16.vlgmr.msra.gmra.mrb[208].mxu0 %v16114_v44  ;;  %v7892_v24 = vpop.permute.xlu1 %7891  ;;  %v16232_v33 = vsel %vm3518_vm9, %v7607_v52, %v8340_v8  ;;  %v12403_v52 = vld [vmem:[%s17177_s5 + $0x228] sm:$0xff]  }
 0x691   : > { %v7768_v4 = vrot.slane %v16216_v39, 4  ;;  %11660 = vmatprep.mubr.bf16.mxu0 %v16125_v7  ;;  %11665 = vmatpush3.bf16.msra.mxu0 %v12396_v6  ;;  %v16236_v41 = vsel %vm3099_vm7, %v16079_v53, %v7892_v24  ;;  %v12409_v6 = vld [vmem:[%s17177_s5 + $0x280] sm:$0xff]   ;;  %v7179_v24 = vrot.slane %v16125_v7, 1  ;;  %v12460_v39 = vld [vmem:[%s17177_s5 + $0x270] sm:$0xff]  }
 0x692   : > { %11781 = vmatmul.mubr.bf16.gmra.mrb[44].mxu1 %v7609_v59  ;;  %11666 = vmatprep.subr.bf16.mxu0 %v12398_v15  ;;  %v8059_v40 = vrot.slane %v16236_v41, 3  ;;  %v12405_v59 = vld [vmem:[%s17177_s5 + $0x230] sm:$0xff]   ;;  %v7920_v22 = vrot.slane %v16236_v41, 1 }
 0x693   : > { %11813 = vmatpush3.bf16.msra.mxu1 %v12397_v50  ;;  %11824 = vmatprep.mubr.bf16.mxu1 %v7917_v19  ;;  %v16250_v61 = vsel %vm1408_vm0, %v7766_v63, %v7768_v4  ;;  %v12411_v50 = vld [vmem:[%s17177_s5 + $0x288] sm:$0xff]   ;;  %v7919_v63 = vsel %vm2850_vm3, %v7916_v31, %v7918_v17  ;;  %v7178_v19 = vrot.slane %v16114_v44, 1 }
 0x694   : > { %11814 = vmatprep.subr.bf16.mxu1 %v12399_v38  ;;  %v8182_v60 = vpop.permute.xlu0 %8181  ;;  %v8184_v55 = vpop.permute.xlu1 %8183  ;;  %v16265_v9 = vsel %vm1409_vm1, %v8057_v21, %v8059_v40  ;;  %v7921_v12 = vsel %vm2850_vm3, %v7918_v17, %v7920_v22  ;;  %v7319_v17 = vrot.slane %v16114_v44, 3  ;;  %v12435_v44 = vld [vmem:[%s17177_s5 + $0x128] sm:$0xff]  }
 0x695   : > { %11667 = vmatpush3.bf16.msra.mxu0 %v12398_v15  ;;  %v16258_v1 = vsel %vm3099_vm7, %v16079_v53, %v8182_v60  ;;  %v16273_v56 = vsel %vm3099_vm7, %v16101_v42, %v8184_v55  ;;  %v12412_v15 = vld [vmem:[%s17177_s5 + $0xc0] sm:$0xff]   ;;  %v12423_v55 = vld [vmem:[%s17177_s5 + $0x2b8] sm:$0xff]   ;;  %v12436_v53 = vld [vmem:[%s17177_s5 + $0x130] sm:$0xff]  }
 0x696   : > { %11668 = vmatprep.subr.bf16.mxu0 %v12400_v36  ;;  %v8342_v32 = vrot.slane %v16258_v1, 2  ;;  %v8344_v11 = vrot.slane %v16273_v56, 2  ;;  %v12420_v60 = vld [vmem:[%s17177_s5 + $0xe0] sm:$0xff]  }
 0x697   : > { %11815 = vmatpush3.bf16.msra.mxu1 %v12399_v38  ;;  %v12415_v38 = vld [vmem:[%s17177_s5 + $0x298] sm:$0xff]  }
 0x698   : > { %11661 = vmatmul.mubr.bf16.gmra.mrb[212].mxu0 %v16120_v3  ;;  %11816 = vmatprep.subr.bf16.mxu1 %v12401_v58  ;;  %v16284_v46 = vsel %vm3518_vm9, %v8340_v8, %v8342_v32  ;;  %v16289_v48 = vsel %vm3518_vm9, %v8342_v32, %v8344_v11  ;;  %v12404_v3 = vld [vmem:[%s17177_s5 + $0xa0] sm:$0xff]   ;;  %v7028_v8 = vrot.slane %v7002_v54, 4 }
 0x699   : > { %11669 = vmatpush3.bf16.msra.mxu0 %v12400_v36  ;;  %11680 = vmatprep.mubr.bf16.mxu0 %v7027_v14  ;;  %v12418_v36 = vld [vmem:[%s17177_s5 + $0xd8] sm:$0xff]   ;;  %v12425_v32 = vld [vmem:[%s17177_s5 + $0x300] sm:$0xff]  }
 0x69a   : > { %11670 = vmatprep.subr.bf16.mxu0 %v12402_v57  ;;  %v7029_v31 = vsel %vm1408_vm0, %v7026_v43, %v7028_v8  ;;  %v7031_v5 = vsel %vm1408_vm0, %v7028_v8, %v16185_v30  ;;  %v7180_v43 = vsel %vm2850_vm3, %v7178_v19, %v7179_v24  ;;  %v12426_v14 = vld [vmem:[%s17177_s5 + $0xf8] sm:$0xff]  }
 0x69b   : > { %11817 = vmatpush3.bf16.msra.mxu1 %v12401_v58  ;;  %v12422_v58 = vld [vmem:[%s17177_s5 + $0xe8] sm:$0xff]   ;;  %v12449_v19 = vld [vmem:[%s17177_s5 + $0x1d8] sm:$0xff]  }
 0x69c   : > { %11818 = vmatprep.subr.bf16.mxu1 %v12403_v52 }
 0x69d   : > { %11671 = vmatpush3.bf16.msra.mxu0 %v12402_v57  ;;  %v12424_v57 = vld [vmem:[%s17177_s5 + $0xf0] sm:$0xff]  }
 0x69e   : > { %11672 = vmatprep.subr.bf16.mxu0 %v12404_v3 }
 0x69f   : > { %11819 = vmatpush3.bf16.msra.mxu1 %v12403_v52  ;;  %v12427_v52 = vld [vmem:[%s17177_s5 + $0x308] sm:$0xff]  }
 0x6a0   : > { %11820 = vmatprep.subr.bf16.mxu1 %v12405_v59 }
 0x6a1   : > { %11673 = vmatpush3.bf16.msra.mxu0 %v12404_v3  ;;  %v16385_v3 = vsel %vm3099_vm7, %v16018_v20, %v16159_v25  ;;  %v12430_v20 = vld [vmem:[%s17177_s5 + $0x108] sm:$0xff]   ;;  %v7182_v25 = vsel %vm2850_vm3, %v7179_v24, %v16212_v37  ;;  %v12448_v24 = vld [vmem:[%s17177_s5 + $0x1d0] sm:$0xff]  }
 0x6a2   : > { %11674 = vmatprep.subr.bf16.mxu0 %v12406_v16 }
 0x6a3   : > { %11821 = vmatpush3.bf16.msra.mxu1 %v12405_v59  ;;  %v12428_v59 = vld [vmem:[%s17177_s5 + $0x100] sm:$0xff]  }
 0x6a4   : > { %11822 = vmatprep.subr.bf16.mxu1 %v12407_v62 }
 0x6a5   : > { %11675 = vmatpush3.bf16.msra.mxu0 %v12406_v16  ;;  %v7183_v16 = vrot.slane %v16385_v3, 1 }
 0x6a6   : > { %11676 = vmatprep.subr.bf16.mxu0 %v12408_v2 }
 0x6a7   : > { %11823 = vmatpush3.bf16.msra.mxu1 %v12407_v62  ;;  %v12429_v62 = vld [vmem:[%s17177_s5 + $0x310] sm:$0xff]  }
 0x6a8   : > { %11856 = vmatprep.subr.bf16.mxu1 %v12409_v6 }
 0x6a9   : > { %11677 = vmatpush3.bf16.msra.mxu0 %v12408_v2  ;;  %v12431_v2 = vld [vmem:[%s17177_s5 + $0x318] sm:$0xff]  }
 0x6aa   : > { %11825 = vmatmul.mubr.bf16.vlgmr.msra.gmra.mrb[48].mxu1 %v7919_v63  ;;  %11678 = vmatprep.subr.bf16.mxu0 %v12410_v18  ;;  %v7324_v63 = vrot.slane %v16385_v3, 3 }
 0x6ab   : > { %11828 = vmatprep.mubr.bf16.mxu1 %v7921_v12  ;;  %11857 = vmatpush3.bf16.msra.mxu1 %v12409_v6  ;;  %v12432_v6 = vld [vmem:[%s17177_s5 + $0x110] sm:$0xff]   ;;  %v12439_v12 = vld [vmem:[%s17177_s5 + $0x148] sm:$0xff]  }
 0x6ac   : > { %11858 = vmatprep.subr.bf16.mxu1 %v12411_v50 }
 0x6ad   : > { %11679 = vmatpush3.bf16.msra.mxu0 %v12410_v18  ;;  %v12433_v18 = vld [vmem:[%s17177_s5 + $0x118] sm:$0xff]  }
 0x6ae   : > { %11688 = vmatprep.subr.bf16.mxu0 %v12412_v15 }
 0x6af   : > { %11859 = vmatpush3.bf16.msra.mxu1 %v12411_v50  ;;  %v16442_v50 = vrot.slane %v16149_v23, 3 }
 0x6b0   : > { %11681 = vmatmul.mubr.bf16.vlgmr.msra.gmra.mrb[216].mxu0 %v7029_v31  ;;  %11860 = vmatprep.subr.bf16.mxu1 %v12413_v13  ;;  %v12442_v31 = vld [vmem:[%s17177_s5 + $0x160] sm:$0xff]  }
 0x6b1   : > { %11684 = vmatprep.mubr.bf16.mxu0 %v7031_v5  ;;  %11689 = vmatpush3.bf16.msra.mxu0 %v12412_v15  ;;  %v7325_v8 = vsel %vm1409_vm1, %v16442_v50, %v7324_v63  ;;  %v12443_v5 = vld [vmem:[%s17177_s5 + $0x168] sm:$0xff]  }
 0x6b2   : > { %11829 = vmatmul.mubr.bf16.gmra.mrb[52].mxu1 %v7920_v22  ;;  %11690 = vmatprep.subr.bf16.mxu0 %v12414_v49  ;;  %v8471_v22 = vrot.slane %v16101_v42, 4  ;;  %v12434_v42 = vld [vmem:[%s17177_s5 + $0x120] sm:$0xff]  }
 0x6b3   : > { %11861 = vmatpush3.bf16.msra.mxu1 %v12413_v13  ;;  %11872 = vmatprep.mubr.bf16.mxu1 %v16163_v45  ;;  %v12440_v13 = vld [vmem:[%s17177_s5 + $0x150] sm:$0xff]  }
 0x6b4   : > { %11862 = vmatprep.subr.bf16.mxu1 %v12415_v38 }
 0x6b5   : > { %11691 = vmatpush3.bf16.msra.mxu0 %v12414_v49  ;;  %v12441_v49 = vld [vmem:[%s17177_s5 + $0x158] sm:$0xff]  }
 0x6b6   : > { %11692 = vmatprep.subr.bf16.mxu0 %v12416_v34 }
 0x6b7   : > { %11863 = vmatpush3.bf16.msra.mxu1 %v12415_v38  ;;  %v12444_v38 = vld [vmem:[%s17177_s5 + $0x170] sm:$0xff]  }
 0x6b8   : > { %11685 = vmatmul.mubr.bf16.gmra.mrb[220].mxu0 %v16185_v30  ;;  %11864 = vmatprep.subr.bf16.mxu1 %v12417_v51  ;;  %v12421_v30 = vld [vmem:[%s17177_s5 + $0x2b0] sm:$0xff]  }
 0x6b9   : > { %11693 = vmatpush3.bf16.msra.mxu0 %v12416_v34  ;;  %11704 = vmatprep.mubr.bf16.mxu0 %v7180_v43  ;;  %v12446_v34 = vld [vmem:[%s17177_s5 + $0x1c0] sm:$0xff]  }
 0x6ba   : > { %11694 = vmatprep.subr.bf16.mxu0 %v12418_v36  ;;  %v12454_v43 = vld [vmem:[%s17177_s5 + $0x240] sm:$0xff]  }
 0x6bb   : > { %11865 = vmatpush3.bf16.msra.mxu1 %v12417_v51  ;;  %v12447_v51 = vld [vmem:[%s17177_s5 + $0x1c8] sm:$0xff]  }
 0x6bc   : > { %11866 = vmatprep.subr.bf16.mxu1 %v12419_v47 }
 0x6bd   : > { %11695 = vmatpush3.bf16.msra.mxu0 %v12418_v36  ;;  %v12451_v36 = vld [vmem:[%s17177_s5 + $0x1e8] sm:$0xff]  }
 0x6be   : > { %11696 = vmatprep.subr.bf16.mxu0 %v12420_v60 }
 0x6bf   : > { %11867 = vmatpush3.bf16.msra.mxu1 %v12419_v47  ;;  %v12455_v47 = vld [vmem:[%s17177_s5 + $0x248] sm:$0xff]  }
 0x6c0   : > { %11868 = vmatprep.subr.bf16.mxu1 %v12421_v30 }
 0x6c1   : > { %11697 = vmatpush3.bf16.msra.mxu0 %v12420_v60  ;;  %v12456_v60 = vld [vmem:[%s17177_s5 + $0x250] sm:$0xff]  }
 0x6c2   : > { %11698 = vmatprep.subr.bf16.mxu0 %v12422_v58 }
 0x6c3   : > { %11869 = vmatpush3.bf16.msra.mxu1 %v12421_v30  ;;  %v8055_v30 = vrot.slane %v16163_v45, 3 }
 0x6c4   : > { %11870 = vmatprep.subr.bf16.mxu1 %v12423_v55 }
 0x6c5   : > { %11699 = vmatpush3.bf16.msra.mxu0 %v12422_v58  ;;  %v12457_v58 = vld [vmem:[%s17177_s5 + $0x258] sm:$0xff]  }
 0x6c6   : > { %11700 = vmatprep.subr.bf16.mxu0 %v12424_v57 }
 0x6c7   : > { %11871 = vmatpush3.bf16.msra.mxu1 %v12423_v55 }
 0x6c8   : > { %11904 = vmatprep.subr.bf16.mxu1 %v12425_v32 }
 0x6c9   : > { %11701 = vmatpush3.bf16.msra.mxu0 %v12424_v57 }
 0x6ca   : > { %11873 = vmatmul.mubr.bf16.vlgmr.msra.gmra.mrb[56].mxu1 %v16200_v35  ;;  %11702 = vmatprep.subr.bf16.mxu0 %v12426_v14  ;;  %v12466_v35 = vld [vmem:[%s17177_s5 + $0x2e0] sm:$0xff]  }
 0x6cb   : > { %11876 = vmatprep.mubr.bf16.mxu1 %v16258_v1  ;;  %11905 = vmatpush3.bf16.msra.mxu1 %v12425_v32  ;;  %v7184_v1 = vsel %vm2850_vm3, %v16212_v37, %v7183_v16  ;;  %v7320_v37 = vrot.slane %v16125_v7, 3 }
 0x6cc   : > { %11906 = vmatprep.subr.bf16.mxu1 %v12427_v52 }
 0x6cd   : > { %11703 = vmatpush3.bf16.msra.mxu0 %v12426_v14  ;;  %v7321_v54 = vsel %vm1409_vm1, %v7319_v17, %v7320_v37  ;;  %v7323_v15 = vsel %vm1409_vm1, %v7320_v37, %v16442_v50  ;;  %v12461_v14 = vld [vmem:[%s17177_s5 + $0x278] sm:$0xff]  }
 0x6ce   : > { %11712 = vmatprep.subr.bf16.mxu0 %v12428_v59 }
 0x6cf   : > { %11907 = vmatpush3.bf16.msra.mxu1 %v12427_v52  ;;  %v12462_v52 = vld [vmem:[%s17177_s5 + $0x2c0] sm:$0xff]  }
 0x6d0   : > { %11705 = vmatmul.mubr.bf16.vlgmr.msra.gmra.mrb[224].mxu0 %v7182_v25  ;;  %11908 = vmatprep.subr.bf16.mxu1 %v12429_v62  ;;  %v8058_v25 = vsel %vm1409_vm1, %v8055_v30, %v8057_v21 }
 0x6d1   : > { %11708 = vmatprep.mubr.bf16.mxu0 %v7184_v1  ;;  %11713 = vmatpush3.bf16.msra.mxu0 %v12428_v59  ;;  %v12464_v1 = vld [vmem:[%s17177_s5 + $0x2d0] sm:$0xff]  }
 0x6d2   : > { %11877 = vmatmul.mubr.bf16.gmra.mrb[60].mxu1 %v16273_v56  ;;  %11714 = vmatprep.subr.bf16.mxu0 %v12430_v20 }
 0x6d3   : > { %11909 = vmatpush3.bf16.msra.mxu1 %v12429_v62  ;;  %11912 = vmatprep.mubr.msk.bf16.mxu1 %vm3099_vm7, %v16086_v28  ;;  %v8472_v28 = vsel %vm1408_vm0, %v7731_v10, %v8471_v22  ;;  %v12437_v10 = vld [vmem:[%s17177_s5 + $0x138] sm:$0xff]  }
 0x6d4   : > { %11910 = vmatprep.subr.bf16.mxu1 %v12431_v2 }
 0x6d5   : > { %11715 = vmatpush3.bf16.msra.mxu0 %v12430_v20  ;;  %v12463_v20 = vld [vmem:[%s17177_s5 + $0x2c8] sm:$0xff]  }
 0x6d6   : > { %11716 = vmatprep.subr.bf16.mxu0 %v12432_v6 }
 0x6d7   : > { %11911 = vmatpush3.bf16.msra.mxu1 %v12431_v2  ;;  %v12465_v2 = vld [vmem:[%s17177_s5 + $0x2d8] sm:$0xff]  }
 0x6d8   : > { %11709 = vmatmul.mubr.bf16.gmra.mrb[228].mxu0 %v7183_v16 }
 0x6d9   : > { %11717 = vmatpush3.bf16.msra.mxu0 %v12432_v6  ;;  %11728 = vmatprep.mubr.bf16.mxu0 %v7321_v54  ;;  %v12467_v6 = vld [vmem:[%s17177_s5 + $0x2e8] sm:$0xff]  }
 0x6da   : > { %11913 = vmatmul.mubr.msk.bf16.vlgmr.msra.gmra.mrb[64].mxu1 %vm3099_vm7, %v16098_v26  ;;  %11718 = vmatprep.subr.bf16.mxu0 %v12433_v18  ;;  %v12438_v26 = vld [vmem:[%s17177_s5 + $0x140] sm:$0xff]  }
 0x6db   : > { %11916 = vmatprep.mubr.msk.bf16.mxu1 %vm3099_vm7, %v8472_v28 }
 0x6dd   : > { %11719 = vmatpush3.bf16.msra.mxu0 %v12433_v18 }
 0x6de   : > { %11720 = vmatprep.subr.bf16.mxu0 %v12434_v42 }
 0x6e1   : > { %11721 = vmatpush3.bf16.msra.mxu0 %v12434_v42 }
 0x6e2   : > { %11917 = vmatmul.mubr.msk.bf16.gmra.mrb[68].mxu1 %vm3099_vm7, %v8471_v22  ;;  %11722 = vmatprep.subr.bf16.mxu0 %v12435_v44 }
 0x6e5   : > { %11723 = vmatpush3.bf16.msra.mxu0 %v12435_v44 }
 0x6e6   : > { %11724 = vmatprep.subr.bf16.mxu0 %v12436_v53 }
 0x6e9   : > { %11725 = vmatpush3.bf16.msra.mxu0 %v12436_v53  ;;  %v12469_v53 = vld [vmem:[%s17177_s5 + $0x2f8] sm:$0xff]  }
 0x6ea   : > { %11726 = vmatprep.subr.bf16.mxu0 %v12437_v10 }
 0x6ed   : > { %11727 = vmatpush3.bf16.msra.mxu0 %v12437_v10 }
 0x6ee   : > { %11736 = vmatprep.subr.bf16.mxu0 %v12438_v26 }
 0x6f0   : > { %11729 = vmatmul.mubr.bf16.vlgmr.msra.gmra.mrb[232].mxu0 %v7323_v15 }
 0x6f1   : > { %11732 = vmatprep.mubr.bf16.mxu0 %v7325_v8  ;;  %11737 = vmatpush3.bf16.msra.mxu0 %v12438_v26 }
 0x6f2   : > { %11738 = vmatprep.subr.bf16.mxu0 %v12439_v12 }
 0x6f5   : > { %11739 = vmatpush3.bf16.msra.mxu0 %v12439_v12 }
 0x6f6   : > { %11740 = vmatprep.subr.bf16.mxu0 %v12440_v13 }
 0x6f8   : > { %11733 = vmatmul.mubr.bf16.gmra.mrb[236].mxu0 %v7324_v63 }
 0x6f9   : > { %11741 = vmatpush3.bf16.msra.mxu0 %v12440_v13  ;;  %11752 = vmatprep.mubr.bf16.mxu0 %v16125_v7  ;;  %v12445_v7 = vld [vmem:[%s17177_s5 + $0x178] sm:$0xff]  }
 0x6fa   : > { %11742 = vmatprep.subr.bf16.mxu0 %v12441_v49 }
 0x6fd   : > { %11743 = vmatpush3.bf16.msra.mxu0 %v12441_v49 }
 0x6fe   : > { %11744 = vmatprep.subr.bf16.mxu0 %v12442_v31 }
 0x701   : > { %11745 = vmatpush3.bf16.msra.mxu0 %v12442_v31 }
 0x702   : > { %11746 = vmatprep.subr.bf16.mxu0 %v12443_v5 }
 0x705   : > { %11747 = vmatpush3.bf16.msra.mxu0 %v12443_v5 }
 0x706   : > { %11748 = vmatprep.subr.bf16.mxu0 %v12444_v38 }
 0x709   : > { %11749 = vmatpush3.bf16.msra.mxu0 %v12444_v38 }
 0x70a   : > { %11750 = vmatprep.subr.bf16.mxu0 %v12445_v7 }
 0x70d   : > { %11751 = vmatpush3.bf16.msra.mxu0 %v12445_v7 }
 0x70e   : > { %11784 = vmatprep.subr.bf16.mxu0 %v12446_v34 }
 0x710   : > { %11753 = vmatmul.mubr.bf16.vlgmr.msra.gmra.mrb[240].mxu0 %v16149_v23  ;;  %v12450_v23 = vld [vmem:[%s17177_s5 + $0x1e0] sm:$0xff]  }
 0x711   : > { %11756 = vmatprep.mubr.bf16.mxu0 %v16163_v45  ;;  %11785 = vmatpush3.bf16.msra.mxu0 %v12446_v34  ;;  %v12459_v45 = vld [vmem:[%s17177_s5 + $0x268] sm:$0xff]  }
 0x712   : > { %11786 = vmatprep.subr.bf16.mxu0 %v12447_v51 }
 0x715   : > { %11787 = vmatpush3.bf16.msra.mxu0 %v12447_v51 }
 0x716   : > { %11788 = vmatprep.subr.bf16.mxu0 %v12448_v24 }
 0x718   : > { %11757 = vmatmul.mubr.bf16.gmra.mrb[244].mxu0 %v16173_v27  ;;  %v12452_v27 = vld [vmem:[%s17177_s5 + $0x1f0] sm:$0xff]  }
 0x719   : > { %11789 = vmatpush3.bf16.msra.mxu0 %v12448_v24  ;;  %11800 = vmatprep.mubr.bf16.mxu0 %v16196_v0  ;;  %v12453_v0 = vld [vmem:[%s17177_s5 + $0x1f8] sm:$0xff]  }
 0x71a   : > { %11790 = vmatprep.subr.bf16.mxu0 %v12449_v19 }
 0x71d   : > { %11791 = vmatpush3.bf16.msra.mxu0 %v12449_v19 }
 0x71e   : > { %11792 = vmatprep.subr.bf16.mxu0 %v12450_v23 }
 0x721   : > { %11793 = vmatpush3.bf16.msra.mxu0 %v12450_v23 }
 0x722   : > { %11794 = vmatprep.subr.bf16.mxu0 %v12451_v36 }
 0x725   : > { %11795 = vmatpush3.bf16.msra.mxu0 %v12451_v36 }
 0x726   : > { %11796 = vmatprep.subr.bf16.mxu0 %v12452_v27 }
 0x729   : > { %11797 = vmatpush3.bf16.msra.mxu0 %v12452_v27 }
 0x72a   : > { %11798 = vmatprep.subr.bf16.mxu0 %v12453_v0 }
 0x72d   : > { %11799 = vmatpush3.bf16.msra.mxu0 %v12453_v0 }
 0x72e   : > { %11832 = vmatprep.subr.bf16.mxu0 %v12454_v43 }
 0x730   : > { %11801 = vmatmul.mubr.bf16.vlgmr.msra.gmra.mrb[248].mxu0 %v16209_v29  ;;  %v8056_v29 = vsel %vm1409_vm1, %v16442_v50, %v8055_v30  ;;  %v12470_v30 = vld [vmem:[%s17179_s7] ss:$16 sps:$4 sm:$0xff]  }
 0x731   : > { %11804 = vmatprep.mubr.bf16.mxu0 %v16250_v61  ;;  %11833 = vmatpush3.bf16.msra.mxu0 %v12454_v43  ;;  %v12458_v61 = vld [vmem:[%s17177_s5 + $0x260] sm:$0xff]  }
 0x732   : > { %11834 = vmatprep.subr.bf16.mxu0 %v12455_v47 }
 0x735   : > { %11835 = vmatpush3.bf16.msra.mxu0 %v12455_v47 }
 0x736   : > { %11836 = vmatprep.subr.bf16.mxu0 %v12456_v60 }
 0x738   : > { %11805 = vmatmul.mubr.bf16.gmra.mrb[252].mxu0 %v7768_v4 }
 0x739   : > { %11837 = vmatpush3.bf16.msra.mxu0 %v12456_v60  ;;  %11848 = vmatprep.mubr.bf16.mxu0 %v8056_v29  ;;  %v12473_v29 = vld [vmem:[%s17179_s7 + $0x8] ss:$16 sps:$4 sm:$0xff]  }
 0x73a   : > { %11838 = vmatprep.subr.bf16.mxu0 %v12457_v58 }
 0x73d   : > { %11839 = vmatpush3.bf16.msra.mxu0 %v12457_v58  ;;  %v12472_v58 = vld [vmem:[%s17179_s7 + $0x4] ss:$16 sps:$4 sm:$0xff]  }
 0x73e   : > { %11840 = vmatprep.subr.bf16.mxu0 %v12458_v61 }
 0x741   : > { %11841 = vmatpush3.bf16.msra.mxu0 %v12458_v61  ;;  %v12475_v61 = vld [vmem:[%s17179_s7 + $0xc] ss:$16 sps:$4 sm:$0xff]  }
 0x742   : > { %11842 = vmatprep.subr.bf16.mxu0 %v12459_v45  ;;  %9489 = vmatprep.subr.bf16.mxu1 %v12475_v61 }
 0x743   : > { %v11634_v4 = vpop.f32.mrb[200].mxu0  ;;  %9490 = vmatpush1.bf16.msra.mxu1 %v12473_v29  ;;  %v12523_v29 = vld [vmem:[%s17179_s7 + $0x10c] ss:$16 sps:$4 sm:$0xff]  }
 0x744   : > { %v6844_v55 = vpop.f32.mrb[201].mxu0 }
 0x745   : > { %11843 = vmatpush3.bf16.msra.mxu0 %v12459_v45  ;;  %v11635_v57 = vpop.f32.mrb[202].mxu0  ;;  %v12478_v45 = vld [vmem:[%s17179_s7 + $0x24] ss:$16 sps:$4 sm:$0xff]  }
 0x746   : > { %v6847_v32 = vpop.f32.mrb[203].mxu0  ;;  %11844 = vmatprep.subr.bf16.mxu0 %v12460_v39  ;;  %v12484_v57 = vld [vmem:[%s17179_s7 + $0x44] ss:$16 sps:$4 sm:$0xff]  }
 0x747   : > { %v12487_v32 = vld [vmem:[%s17179_s7 + $0x4c] ss:$16 sps:$4 sm:$0xff]  }
 0x749   : > { %11845 = vmatpush3.bf16.msra.mxu0 %v12460_v39  ;;  %v12481_v39 = vld [vmem:[%s17179_s7 + $0x2c] ss:$16 sps:$4 sm:$0xff]  }
 0x74a   : > { %11846 = vmatprep.subr.bf16.mxu0 %v12461_v14  ;;  %9491 = vmatprep.subr.bf16.mxu1 %v12481_v39  ;;  %v12518_v39 = vld [vmem:[%s17179_s7 + $0x100] ss:$16 sps:$4 sm:$0xff]  }
 0x74b   : > { %v11638_v3 = vpop.f32.mrb[204].mxu0 }
 0x74c   : > { %v6858_v59 = vpop.f32.mrb[205].mxu0 }
 0x74d   : > { %11847 = vmatpush3.bf16.msra.mxu0 %v12461_v14  ;;  %v11639_v16 = vpop.f32.mrb[206].mxu0  ;;  %v12482_v14 = vld [vmem:[%s17179_s7 + $0x40] ss:$16 sps:$4 sm:$0xff]  }
 0x74e   : > { %v6861_v62 = vpop.f32.mrb[207].mxu0  ;;  %11880 = vmatprep.subr.bf16.mxu0 %v12462_v52 }
 0x750   : > { %11849 = vmatmul.mubr.bf16.vlgmr.msra.gmra.mrb[0].mxu0 %v8058_v25 }
 0x751   : > { %11852 = vmatprep.mubr.bf16.mxu0 %v16265_v9  ;;  %11881 = vmatpush3.bf16.msra.mxu0 %v12462_v52  ;;  %v12485_v52 = vld [vmem:[%s17179_s7 + $0x48] ss:$16 sps:$4 sm:$0xff]  }
 0x752   : > { %11882 = vmatprep.subr.bf16.mxu0 %v12463_v20 }
 0x755   : > { %11883 = vmatpush3.bf16.msra.mxu0 %v12463_v20 }
 0x756   : > { %11884 = vmatprep.subr.bf16.mxu0 %v12464_v1 }
 0x758   : > { %11853 = vmatmul.mubr.bf16.gmra.mrb[4].mxu0 %v8059_v40 }
 0x759   : > { %11885 = vmatpush3.bf16.msra.mxu0 %v12464_v1  ;;  %11896 = vmatprep.mubr.bf16.mxu0 %v16232_v33  ;;  %v12468_v33 = vld [vmem:[%s17177_s5 + $0x2f0] sm:$0xff]  }
 0x75a   : > { %11886 = vmatprep.subr.bf16.mxu0 %v12465_v2 }
 0x75c   : > { %v16552_v21 = vpop.f32.mrb[40].mxu1 }
 0x75d   : > { %11887 = vmatpush3.bf16.msra.mxu0 %v12465_v2  ;;  %v16554_v9 = vpop.f32.mrb[41].mxu1  ;;  %v12488_v2 = vld [vmem:[%s17179_s7 + $0x60] ss:$16 sps:$4 sm:$0xff]  }
 0x75e   : > { %11888 = vmatprep.subr.bf16.mxu0 %v12466_v35  ;;  %v11779_v41 = vpop.f32.mrb[42].mxu1 }
 0x75f   : > { %v7700_v40 = vpop.f32.mrb[43].mxu1 }
 0x761   : > { %11889 = vmatpush3.bf16.msra.mxu0 %v12466_v35  ;;  %v12490_v35 = vld [vmem:[%s17179_s7 + $0x64] ss:$16 sps:$4 sm:$0xff]  }
 0x762   : > { %11890 = vmatprep.subr.bf16.mxu0 %v12467_v6 }
 0x763   : > { %v11658_v37 = vpop.f32.mrb[208].mxu0 }
 0x764   : > { %v6961_v17 = vadd.f32 %v11658_v37, %v11634_v4  ;;  %v6953_v22 = vpop.f32.mrb[209].mxu0  ;;  %v12476_v4 = vld [vmem:[%s17179_s7 + $0x20] ss:$16 sps:$4 sm:$0xff]   ;;  %v12493_v37 = vld [vmem:[%s17179_s7 + $0x6c] ss:$16 sps:$4 sm:$0xff]  }
 0x765   : > { %v6954_v18 = vadd.f32 %v6953_v22, %v6844_v55  ;;  %v16562_v54 = vpop.f32.mrb[44].mxu1  ;;  %v11659_v28 = vpop.f32.mrb[210].mxu0  ;;  %11891 = vmatpush3.bf16.msra.mxu0 %v12467_v6  ;;  %v12479_v55 = vld [vmem:[%s17179_s7 + $0x28] ss:$16 sps:$4 sm:$0xff]  }
 0x766   : > { %v16564_v42 = vpop.f32.mrb[45].mxu1  ;;  %v6956_v44 = vpop.f32.mrb[211].mxu0  ;;  %11892 = vmatprep.subr.bf16.mxu0 %v12468_v33  ;;  %9492 = vmatpush1.bf16.msra.mxu1 %v12479_v55  ;;  %v12521_v55 = vld [vmem:[%s17179_s7 + $0x108] ss:$16 sps:$4 sm:$0xff]  }
 0x767   : > { %v11783_v10 = vpop.f32.mrb[46].mxu1  ;;  %9493 = vmatprep.subr.bf16.mxu1 %v12487_v32  ;;  %v12494_v44 = vld [vmem:[%s17179_s7 + $0x80] ss:$16 sps:$4 sm:$0xff]   ;;  %v12529_v32 = vld [vmem:[%s17179_s7 + $0x12c] ss:$16 sps:$4 sm:$0xff]  }
 0x768   : > { %v7714_v26 = vpop.f32.mrb[47].mxu1 }
 0x769   : > { %11893 = vmatpush3.bf16.msra.mxu0 %v12468_v33  ;;  %v12491_v33 = vld [vmem:[%s17179_s7 + $0x68] ss:$16 sps:$4 sm:$0xff]  }
 0x76a   : > { %11894 = vmatprep.subr.bf16.mxu0 %v12469_v53  ;;  %9494 = vmatpush1.bf16.msra.mxu1 %v12485_v52  ;;  %v12497_v26 = vld [vmem:[%s17179_s7 + $0x88] ss:$16 sps:$4 sm:$0xff]  }
 0x76b   : > { %v11662_v50 = vpop.f32.mrb[212].mxu0  ;;  %9495 = vmatprep.subr.bf16.mxu1 %v12493_v37  ;;  %v12527_v52 = vld [vmem:[%s17179_s7 + $0x128] ss:$16 sps:$4 sm:$0xff]  }
 0x76c   : > { %v6975_v63 = vadd.f32 %v11662_v50, %v11638_v3  ;;  %v6967_v12 = vpop.f32.mrb[213].mxu0 }
 0x76d   : > { %v6968_v15 = vadd.f32 %v6967_v12, %v6858_v59  ;;  %v11663_v8 = vpop.f32.mrb[214].mxu0  ;;  %11895 = vmatpush3.bf16.msra.mxu0 %v12469_v53  ;;  %v12499_v53 = vld [vmem:[%s17179_s7 + $0x8c] ss:$16 sps:$4 sm:$0xff]  }
 0x76e   : > { %v6970_v13 = vpop.f32.mrb[215].mxu0  ;;  %9407 = vmatprep.subr.bf16.mxu0 %v12472_v58  ;;  %9496 = vmatpush1.bf16.msra.mxu1 %v12491_v33  ;;  %v12502_v8 = vld [vmem:[%s17179_s7 + $0xa4] ss:$16 sps:$4 sm:$0xff]  }
 0x76f   : > { %9497 = vmatprep.subr.bf16.mxu1 %v12499_v53 }
 0x770   : > { %11897 = vmatmul.mubr.bf16.vlgmr.msra.gmra.mrb[8].mxu0 %v16284_v46 }
 0x771   : > { %11900 = vmatprep.mubr.bf16.mxu0 %v16289_v48  ;;  %9408 = vmatpush1.bf16.msra.mxu0 %v12470_v30  ;;  %v12520_v30 = vld [vmem:[%s17179_s7 + $0x104] ss:$16 sps:$4 sm:$0xff]  }
 0x772   : > { %9409 = vmatprep.subr.bf16.mxu0 %v12478_v45  ;;  %9498 = vmatpush1.bf16.msra.mxu1 %v12497_v26 }
 0x775   : > { %9410 = vmatpush1.bf16.msra.mxu0 %v12476_v4 }
 0x776   : > { %9411 = vmatprep.subr.bf16.mxu0 %v12484_v57  ;;  %v12526_v57 = vld [vmem:[%s17179_s7 + $0x124] ss:$16 sps:$4 sm:$0xff]  }
 0x778   : > { %11901 = vmatmul.mubr.bf16.gmra.mrb[12].mxu0 %v8344_v11 }
 0x779   : > { %9412 = vmatpush1.bf16.msra.mxu0 %v12482_v14  ;;  %v12524_v14 = vld [vmem:[%s17179_s7 + $0x120] ss:$16 sps:$4 sm:$0xff]  }
 0x77a   : > { %9413 = vmatprep.subr.bf16.mxu0 %v12490_v35 }
 0x77d   : > { %v16573_v49 = vpop.f32.mrb[48].mxu1  ;;  %9414 = vmatpush1.bf16.msra.mxu0 %v12488_v2 }
 0x77e   : > { %v16575_v31 = vpop.f32.mrb[49].mxu1 }
 0x77f   : > { %v11827_v5 = vpop.f32.mrb[50].mxu1 }
 0x780   : > { %v8011_v38 = vpop.f32.mrb[51].mxu1 }
 0x783   : > { %v11682_v7 = vpop.f32.mrb[216].mxu0 }
 0x784   : > { %v7146_v34 = vadd.f32 %v11682_v7, %v6961_v17  ;;  %v7118_v51 = vpop.f32.mrb[217].mxu0  ;;  %v12503_v7 = vld [vmem:[%s17179_s7 + $0xa8] ss:$16 sps:$4 sm:$0xff]  }
 0x785   : > { %v16577_v24 = vpop.f32.mrb[52].mxu1  ;;  %v7145_v19 = vadd.f32 %v7118_v51, %v6954_v18  ;;  %v11683_v23 = vpop.f32.mrb[218].mxu0  ;;  %v12496_v18 = vld [vmem:[%s17179_s7 + $0x84] ss:$16 sps:$4 sm:$0xff]  }
 0x786   : > { %v16579_v36 = vpop.f32.mrb[53].mxu1  ;;  %v7121_v46 = vpop.f32.mrb[219].mxu0  ;;  %9415 = vmatprep.subr.bf16.mxu0 %v12496_v18  ;;  %v12508_v23 = vld [vmem:[%s17179_s7 + $0xc4] ss:$16 sps:$4 sm:$0xff]  }
 0x787   : > { %v11831_v48 = vpop.f32.mrb[54].mxu1  ;;  %9416 = vmatpush1.bf16.msra.mxu0 %v12494_v44 }
 0x788   : > { %v8025_v27 = vpop.f32.mrb[55].mxu1  ;;  %9417 = vmatprep.subr.bf16.mxu0 %v12502_v8  ;;  %v12506_v48 = vld [vmem:[%s17179_s7 + $0xc0] ss:$16 sps:$4 sm:$0xff]  }
 0x789   : > { %v12511_v27 = vld [vmem:[%s17179_s7 + $0xcc] ss:$16 sps:$4 sm:$0xff]   ;;  %v12542_v8 = vld [vmem:[%s17179_s7 + $0x180] ss:$16 sps:$4 sm:$0xff]  }
 0x78b   : > { %v11686_v56 = vpop.f32.mrb[220].mxu0 }
 0x78c   : > { %v7148_v11 = vadd.f32 %v11686_v56, %v6975_v63  ;;  %v7132_v0 = vpop.f32.mrb[221].mxu0 }
 0x78d   : > { %v16581_v43 = vadd.f32 %v7132_v0, %v6968_v15  ;;  %v11687_v47 = vpop.f32.mrb[222].mxu0  ;;  %v12500_v15 = vld [vmem:[%s17179_s7 + $0xa0] ss:$16 sps:$4 sm:$0xff]   ;;  %v12514_v0 = vld [vmem:[%s17179_s7 + $0xe4] ss:$16 sps:$4 sm:$0xff]  }
 0x78e   : > { %v7135_v60 = vpop.f32.mrb[223].mxu0  ;;  %9418 = vmatpush1.bf16.msra.mxu0 %v12500_v15  ;;  %v12512_v47 = vld [vmem:[%s17179_s7 + $0xe0] ss:$16 sps:$4 sm:$0xff]   ;;  %v12547_v15 = vld [vmem:[%s17179_s7 + $0x18c] ss:$16 sps:$4 sm:$0xff]  }
 0x78f   : > { %9419 = vmatprep.subr.bf16.mxu0 %v12508_v23  ;;  %v12515_v60 = vld [vmem:[%s17179_s7 + $0xe8] ss:$16 sps:$4 sm:$0xff]   ;;  %v12556_v23 = vld [vmem:[%s17179_s7 + $0x1c4] ss:$16 sps:$4 sm:$0xff]  }
 0x792   : > { %9420 = vmatpush1.bf16.msra.mxu0 %v12506_v48  ;;  %v12554_v48 = vld [vmem:[%s17179_s7 + $0x1c0] ss:$16 sps:$4 sm:$0xff]  }
 0x793   : > { %9421 = vmatprep.subr.bf16.mxu0 %v12514_v0  ;;  %v12560_v0 = vld [vmem:[%s17179_s7 + $0x1e0] ss:$16 sps:$4 sm:$0xff]  }
 0x796   : > { %9422 = vmatpush1.bf16.msra.mxu0 %v12512_v47  ;;  %v12568_v47 = vld [vmem:[%s17179_s7 + $0x204] ss:$16 sps:$4 sm:$0xff]  }
 0x797   : > { %9423 = vmatprep.subr.bf16.mxu0 %v12520_v30 }
 0x79a   : > { %9424 = vmatpush1.bf16.msra.mxu0 %v12518_v39 }
 0x79b   : > { %9425 = vmatprep.subr.bf16.mxu0 %v12526_v57 }
 0x79d   : > { %v16619_v3 = vpop.f32.mrb[56].mxu1 }
 0x79e   : > { %v16621_v59 = vpop.f32.mrb[57].mxu1  ;;  %9426 = vmatpush1.bf16.msra.mxu0 %v12524_v14 }
 0x79f   : > { %v11875_v16 = vpop.f32.mrb[58].mxu1 }
 0x7a0   : > { %v8294_v62 = vpop.f32.mrb[59].mxu1  ;;  %v12532_v16 = vld [vmem:[%s17179_s7 + $0x144] ss:$16 sps:$4 sm:$0xff]  }
 0x7a1   : > { %v12535_v62 = vld [vmem:[%s17179_s7 + $0x14c] ss:$16 sps:$4 sm:$0xff]   ;;  %9427 = vmatprep.subr.bf16.mxu0 %v12532_v16 }
 0x7a3   : > { %v11706_v20 = vpop.f32.mrb[224].mxu0 }
 0x7a4   : > { %v16623_v25 = vadd.f32 %v11706_v20, %v7146_v34  ;;  %v7271_v1 = vpop.f32.mrb[225].mxu0  ;;  %v12505_v34 = vld [vmem:[%s17179_s7 + $0xac] ss:$16 sps:$4 sm:$0xff]   ;;  %v12530_v20 = vld [vmem:[%s17179_s7 + $0x140] ss:$16 sps:$4 sm:$0xff]  }
 0x7a5   : > { %v16631_v6 = vpop.f32.mrb[60].mxu1  ;;  %v16633_v41 = vadd.f32 %v7271_v1, %v7145_v19  ;;  %v11707_v40 = vpop.f32.mrb[226].mxu0  ;;  %9499 = vmatprep.subr.bf16.mxu1 %v12505_v34  ;;  %v12533_v1 = vld [vmem:[%s17179_s7 + $0x148] ss:$16 sps:$4 sm:$0xff]   ;;  %9428 = vmatpush1.bf16.msra.mxu0 %v12530_v20 }
 0x7a6   : > { %v16641_v17 = vpop.f32.mrb[61].mxu1  ;;  %v7274_v22 = vpop.f32.mrb[227].mxu0  ;;  %9500 = vmatpush1.bf16.msra.mxu1 %v12503_v7  ;;  %v12550_v7 = vld [vmem:[%s17179_s7 + $0x1a4] ss:$16 sps:$4 sm:$0xff]   ;;  %v12551_v34 = vld [vmem:[%s17179_s7 + $0x1a8] ss:$16 sps:$4 sm:$0xff]  }
 0x7a7   : > { %v11879_v28 = vpop.f32.mrb[62].mxu1  ;;  %9501 = vmatprep.subr.bf16.mxu1 %v12511_v27  ;;  %v12557_v27 = vld [vmem:[%s17179_s7 + $0x1c8] ss:$16 sps:$4 sm:$0xff]  }
 0x7a8   : > { %v8308_v10 = vpop.f32.mrb[63].mxu1 }
 0x7ab   : > { %v11710_v50 = vpop.f32.mrb[228].mxu0 }
 0x7ac   : > { %v16655_v63 = vadd.f32 %v11710_v50, %v7148_v11  ;;  %v7285_v12 = vpop.f32.mrb[229].mxu0  ;;  %v12509_v11 = vld [vmem:[%s17179_s7 + $0xc8] ss:$16 sps:$4 sm:$0xff]   ;;  %v12536_v50 = vld [vmem:[%s17179_s7 + $0x160] ss:$16 sps:$4 sm:$0xff]  }
 0x7ad   : > { %v16663_v13 = vpop.f32.mrb[64].mxu1  ;;  %v16666_v5 = vadd.f32 %v7285_v12, %v16581_v43  ;;  %v11711_v38 = vpop.f32.mrb[230].mxu0  ;;  %v12517_v43 = vld [vmem:[%s17179_s7 + $0xec] ss:$16 sps:$4 sm:$0xff]   ;;  %9502 = vmatpush1.bf16.msra.mxu1 %v12509_v11  ;;  %v12544_v12 = vld [vmem:[%s17179_s7 + $0x184] ss:$16 sps:$4 sm:$0xff]  }
 0x7ae   : > { %v16674_v51 = vpop.f32.mrb[65].mxu1  ;;  %v7288_v19 = vpop.f32.mrb[231].mxu0  ;;  %9503 = vmatprep.subr.bf16.mxu1 %v12517_v43  ;;  %v12548_v38 = vld [vmem:[%s17179_s7 + $0x1a0] ss:$16 sps:$4 sm:$0xff]   ;;  %v12565_v11 = vld [vmem:[%s17179_s7 + $0x1ec] ss:$16 sps:$4 sm:$0xff]  }
 0x7af   : > { %v11915_v46 = vpop.f32.mrb[66].mxu1  ;;  %v12553_v19 = vld [vmem:[%s17179_s7 + $0x1ac] ss:$16 sps:$4 sm:$0xff]   ;;  %v12563_v43 = vld [vmem:[%s17179_s7 + $0x1e8] ss:$16 sps:$4 sm:$0xff]  }
 0x7b0   : > { %v8546_v56 = vpop.f32.mrb[67].mxu1  ;;  %v12559_v46 = vld [vmem:[%s17179_s7 + $0x1cc] ss:$16 sps:$4 sm:$0xff]  }
 0x7b1   : > { %9504 = vmatpush1.bf16.msra.mxu1 %v12515_v60  ;;  %v12562_v56 = vld [vmem:[%s17179_s7 + $0x1e4] ss:$16 sps:$4 sm:$0xff]   ;;  %v12571_v60 = vld [vmem:[%s17179_s7 + $0x20c] ss:$16 sps:$4 sm:$0xff]  }
 0x7b2   : > { %9505 = vmatprep.subr.bf16.mxu1 %v12523_v29 }
 0x7b5   : > { %v16703_v58 = vpop.f32.mrb[68].mxu1  ;;  %9506 = vmatpush1.bf16.msra.mxu1 %v12521_v55 }
 0x7b6   : > { %v16708_v61 = vpop.f32.mrb[69].mxu1  ;;  %9507 = vmatprep.subr.bf16.mxu1 %v12529_v32 }
 0x7b7   : > { %v11919_v45 = vpop.f32.mrb[70].mxu1 }
 0x7b8   : > { %v8560_v4 = vpop.f32.mrb[71].mxu1 }
 0x7b9   : > { %9508 = vmatpush1.bf16.msra.mxu1 %v12527_v52 }
 0x7ba   : > { %9509 = vmatprep.subr.bf16.mxu1 %v12535_v62 }
 0x7bd   : > { %9510 = vmatpush1.bf16.msra.mxu1 %v12533_v1 }
 0x7c3   : > { %v11730_v2 = vpop.f32.mrb[232].mxu0 }
 0x7c4   : > { %v7440_v35 = vadd.f32 %v11730_v2, %v16623_v25  ;;  %v7412_v40 = vpop.f32.mrb[233].mxu0  ;;  %v12538_v25 = vld [vmem:[%s17179_s7 + $0x164] ss:$16 sps:$4 sm:$0xff]  }
 0x7c5   : > { %v7439_v33 = vadd.f32 %v7412_v40, %v16633_v41  ;;  %v11731_v37 = vpop.f32.mrb[234].mxu0  ;;  %v12539_v41 = vld [vmem:[%s17179_s7 + $0x168] ss:$16 sps:$4 sm:$0xff]   ;;  %9429 = vmatprep.subr.bf16.mxu0 %v12538_v25 }
 0x7c6   : > { %v7415_v22 = vpop.f32.mrb[235].mxu0  ;;  %9430 = vmatpush1.bf16.msra.mxu0 %v12536_v50 }
 0x7c7   : > { %9431 = vmatprep.subr.bf16.mxu0 %v12544_v12 }
 0x7ca   : > { %9432 = vmatpush1.bf16.msra.mxu0 %v12542_v8 }
 0x7cb   : > { %v11734_v18 = vpop.f32.mrb[236].mxu0  ;;  %9433 = vmatprep.subr.bf16.mxu0 %v12550_v7 }
 0x7cc   : > { %v7442_v28 = vadd.f32 %v11734_v18, %v16655_v63  ;;  %v7426_v44 = vpop.f32.mrb[237].mxu0  ;;  %v12541_v63 = vld [vmem:[%s17179_s7 + $0x16c] ss:$16 sps:$4 sm:$0xff]  }
 0x7cd   : > { %v7441_v53 = vadd.f32 %v7426_v44, %v16666_v5  ;;  %v11735_v10 = vpop.f32.mrb[238].mxu0  ;;  %9511 = vmatprep.subr.bf16.mxu1 %v12541_v63  ;;  %v12545_v5 = vld [vmem:[%s17179_s7 + $0x188] ss:$16 sps:$4 sm:$0xff]  }
 0x7ce   : > { %v7429_v26 = vpop.f32.mrb[239].mxu0  ;;  %9512 = vmatpush1.bf16.msra.mxu1 %v12539_v41  ;;  %9434 = vmatpush1.bf16.msra.mxu0 %v12548_v38 }
 0x7cf   : > { %9513 = vmatprep.subr.bf16.mxu1 %v12547_v15  ;;  %9435 = vmatprep.subr.bf16.mxu0 %v12556_v23 }
 0x7d2   : > { %9514 = vmatpush1.bf16.msra.mxu1 %v12545_v5  ;;  %9436 = vmatpush1.bf16.msra.mxu0 %v12554_v48 }
 0x7d3   : > { %9515 = vmatprep.subr.bf16.mxu1 %v12553_v19  ;;  %9437 = vmatprep.subr.bf16.mxu0 %v12562_v56 }
 0x7d6   : > { %9516 = vmatpush1.bf16.msra.mxu1 %v12551_v34  ;;  %9438 = vmatpush1.bf16.msra.mxu0 %v12560_v0 }
 0x7d7   : > { %9517 = vmatprep.subr.bf16.mxu1 %v12559_v46  ;;  %9448 = vmatprep.subr.bf16.mxu0 %v12568_v47 }
 0x7da   : > { %9518 = vmatpush1.bf16.msra.mxu1 %v12557_v27 }
 0x7db   : > { %9519 = vmatprep.subr.bf16.mxu1 %v12565_v11  ;;  %v10380_v11 = vld [vmem:[%s17178_s6] ss:$0 sm:$0xff] }
 0x7de   : > { %9520 = vmatpush1.bf16.msra.mxu1 %v12563_v43 }
 0x7df   : > { %9530 = vmatprep.subr.bf16.mxu1 %v12571_v60 }
 0x7e3   : > { %v11754_v30 = vpop.f32.mrb[240].mxu0 }
 0x7e4   : > { %v7584_v29 = vadd.f32 %v11754_v30, %v7440_v35  ;;  %v7556_v45 = vpop.f32.mrb[241].mxu0 }
 0x7e5   : > { %v7583_v39 = vadd.f32 %v7556_v45, %v7439_v33  ;;  %v11755_v4 = vpop.f32.mrb[242].mxu0 }
 0x7e6   : > { %v7559_v55 = vpop.f32.mrb[243].mxu0  ;;  %v7725_v57 = vadd.f32 %v16552_v21, %v7584_v29 }
 0x7e7   : > { %v7724_v32 = vadd.f32 %v16554_v9, %v7583_v39 }
 0x7eb   : > { %v11758_v14 = vpop.f32.mrb[244].mxu0 }
 0x7ec   : > { %v7586_v52 = vadd.f32 %v11758_v14, %v7442_v28  ;;  %v7570_v16 = vpop.f32.mrb[245].mxu0 }
 0x7ed   : > { %v7585_v62 = vadd.f32 %v7570_v16, %v7441_v53  ;;  %v11759_v20 = vpop.f32.mrb[246].mxu0 }
 0x7ee   : > { %v7573_v1 = vpop.f32.mrb[247].mxu0  ;;  %v7727_v2 = vadd.f32 %v16562_v54, %v7586_v52 }
 0x7ef   : > { %v7726_v40 = vadd.f32 %v16564_v42, %v7585_v62 }
 0x803   : > { %v11802_v37 = vpop.f32.mrb[248].mxu0 }
 0x804   : > { %v7884_v35 = vadd.f32 %v11802_v37, %v7725_v57  ;;  %v7856_v22 = vpop.f32.mrb[249].mxu0 }
 0x805   : > { %v7883_v33 = vadd.f32 %v7856_v22, %v7724_v32  ;;  %v11803_v18 = vpop.f32.mrb[250].mxu0 }
 0x806   : > { %v7859_v44 = vpop.f32.mrb[251].mxu0  ;;  %v8036_v21 = vadd.f32 %v16573_v49, %v7884_v35  ;;  %v12566_v18 = vld [vmem:[%s17179_s7 + $0x200] ss:$16 sps:$4 sm:$0xff]  }
 0x807   : > { %v8035_v9 = vadd.f32 %v16575_v31, %v7883_v33 }
 0x80b   : > { %v11806_v10 = vpop.f32.mrb[252].mxu0 }
 0x80c   : > { %v7886_v28 = vadd.f32 %v11806_v10, %v7727_v2  ;;  %v7870_v26 = vpop.f32.mrb[253].mxu0 }
 0x80d   : > { %v7885_v53 = vadd.f32 %v7870_v26, %v7726_v40  ;;  %v11807_v50 = vpop.f32.mrb[254].mxu0  ;;  %v12575_v26 = vld [vmem:[%s17179_s7 + $0x228] ss:$16 sps:$4 sm:$0xff]  }
 0x80e   : > { %v7873_v25 = vpop.f32.mrb[255].mxu0  ;;  %v8038_v54 = vadd.f32 %v16577_v24, %v7886_v28  ;;  %v12572_v28 = vld [vmem:[%s17179_s7 + $0x220] ss:$16 sps:$4 sm:$0xff]   ;;  %v12580_v50 = vld [vmem:[%s17179_s7 + $0x244] ss:$16 sps:$4 sm:$0xff]  }
 0x80f   : > { %v8037_v42 = vadd.f32 %v16579_v36, %v7885_v53  ;;  %v12583_v25 = vld [vmem:[%s17179_s7 + $0x24c] ss:$16 sps:$4 sm:$0xff]  }
 0x823   : > { %v11850_v41 = vpop.f32.mrb[0].mxu0 }
 0x824   : > { %v8175_v63 = vadd.f32 %v11850_v41, %v8036_v21  ;;  %v8147_v12 = vpop.f32.mrb[1].mxu0 }
 0x825   : > { %v8174_v15 = vadd.f32 %v8147_v12, %v8035_v9  ;;  %v11851_v8 = vpop.f32.mrb[2].mxu0  ;;  %v12577_v9 = vld [vmem:[%s17179_s7 + $0x22c] ss:$16 sps:$4 sm:$0xff]   ;;  %v12586_v12 = vld [vmem:[%s17179_s7 + $0x264] ss:$16 sps:$4 sm:$0xff]  }
 0x826   : > { %v8150_v5 = vpop.f32.mrb[3].mxu0  ;;  %v8319_v49 = vadd.f32 %v16619_v3, %v8175_v63  ;;  %v12581_v63 = vld [vmem:[%s17179_s7 + $0x248] ss:$16 sps:$4 sm:$0xff]   ;;  %v12584_v8 = vld [vmem:[%s17179_s7 + $0x260] ss:$16 sps:$4 sm:$0xff]  }
 0x827   : > { %v8318_v31 = vadd.f32 %v16621_v59, %v8174_v15  ;;  %v12589_v15 = vld [vmem:[%s17179_s7 + $0x26c] ss:$16 sps:$4 sm:$0xff]   ;;  %v12587_v5 = vld [vmem:[%s17179_s7 + $0x268] ss:$16 sps:$4 sm:$0xff]  }
 0x82b   : > { %v11854_v38 = vpop.f32.mrb[4].mxu0 }
 0x82c   : > { %v8177_v7 = vadd.f32 %v11854_v38, %v8038_v54  ;;  %v8161_v34 = vpop.f32.mrb[5].mxu0  ;;  %v12590_v38 = vld [vmem:[%s17179_s7 + $0x280] ss:$16 sps:$4 sm:$0xff]  }
 0x82d   : > { %v8176_v19 = vadd.f32 %v8161_v34, %v8037_v42  ;;  %v11855_v23 = vpop.f32.mrb[6].mxu0  ;;  %v12578_v42 = vld [vmem:[%s17179_s7 + $0x240] ss:$16 sps:$4 sm:$0xff]   ;;  %v12598_v34 = vld [vmem:[%s17179_s7 + $0x2a4] ss:$16 sps:$4 sm:$0xff]  }
 0x82e   : > { %v8164_v46 = vpop.f32.mrb[7].mxu0  ;;  %v8321_v24 = vadd.f32 %v16631_v6, %v8177_v7  ;;  %v12593_v7 = vld [vmem:[%s17179_s7 + $0x288] ss:$16 sps:$4 sm:$0xff]   ;;  %v12596_v23 = vld [vmem:[%s17179_s7 + $0x2a0] ss:$16 sps:$4 sm:$0xff]  }
 0x82f   : > { %v8320_v36 = vadd.f32 %v16641_v17, %v8176_v19  ;;  %v12601_v19 = vld [vmem:[%s17179_s7 + $0x2ac] ss:$16 sps:$4 sm:$0xff]   ;;  %v12599_v46 = vld [vmem:[%s17179_s7 + $0x2a8] ss:$16 sps:$4 sm:$0xff]  }
 0x843   : > { %v11898_v48 = vpop.f32.mrb[8].mxu0 }
 0x844   : > { %v8460_v27 = vadd.f32 %v11898_v48, %v8319_v49  ;;  %v8432_v56 = vpop.f32.mrb[9].mxu0  ;;  %v12592_v49 = vld [vmem:[%s17179_s7 + $0x284] ss:$16 sps:$4 sm:$0xff]   ;;  %v12602_v48 = vld [vmem:[%s17179_s7 + $0x2c0] ss:$16 sps:$4 sm:$0xff]  }
 0x845   : > { %v8459_v3 = vadd.f32 %v8432_v56, %v8318_v31  ;;  %v11899_v0 = vpop.f32.mrb[10].mxu0  ;;  %v12595_v31 = vld [vmem:[%s17179_s7 + $0x28c] ss:$16 sps:$4 sm:$0xff]   ;;  %v12610_v56 = vld [vmem:[%s17179_s7 + $0x2e4] ss:$16 sps:$4 sm:$0xff]  }
 0x846   : > { %v8571_v59 = vadd.f32 %v16663_v13, %v8460_v27  ;;  %v8435_v43 = vpop.f32.mrb[11].mxu0  ;;  %v12605_v27 = vld [vmem:[%s17179_s7 + $0x2c8] ss:$16 sps:$4 sm:$0xff]  }
 0x847   : > { %v8570_v47 = vadd.f32 %v16674_v51, %v8459_v3  ;;  %v12608_v3 = vld [vmem:[%s17179_s7 + $0x2e0] ss:$16 sps:$4 sm:$0xff]   ;;  %v12611_v0 = vld [vmem:[%s17179_s7 + $0x2e8] ss:$16 sps:$4 sm:$0xff]   ;;  %v12619_v43 = vld [vmem:[%s17179_s7 + $0x30c] ss:$16 sps:$4 sm:$0xff]  }
 0x848   : > { %v8582_v60 = vadd.f32 %v10380_v11, %v8571_v59  ;;  %v12616_v59 = vld [vmem:[%s17179_s7 + $0x304] ss:$16 sps:$4 sm:$0xff]  }
 0x849   : > { %v8581_v30 = vadd.f32 %v10380_v11, %v8570_v47  ;;  %v12614_v47 = vld [vmem:[%s17179_s7 + $0x300] ss:$16 sps:$4 sm:$0xff]  }
 0x84a   : > { %v8586_v29 = vmax.f32 %v8582_v60, 0.0  ;;  %v12617_v60 = vld [vmem:[%s17179_s7 + $0x308] ss:$16 sps:$4 sm:$0xff]  }
 0x84b   : > { %v8585_v6 = vmax.f32 %v8581_v30, 0.0  ;;  %v11902_v45 = vpop.f32.mrb[12].mxu0  ;;  %v12622_v30 = vld [vmem:[%s17179_s7 + $0x324] ss:$16 sps:$4 sm:$0xff]  }
 0x84c   : > { %v8594_v17 = vrot.slane %v8586_v29, 2  ;;  %v8462_v39 = vadd.f32 %v11902_v45, %v8321_v24  ;;  %v8446_v4 = vpop.f32.mrb[13].mxu0  ;;  %v12604_v24 = vld [vmem:[%s17179_s7 + $0x2c4] ss:$16 sps:$4 sm:$0xff]   ;;  %v12623_v45 = vld [vmem:[%s17179_s7 + $0x328] ss:$16 sps:$4 sm:$0xff]  }
 0x84d   : > { %v8590_v55 = vrot.slane %v8585_v6, 2  ;;  %v8461_v57 = vadd.f32 %v8446_v4, %v8320_v36  ;;  %v11903_v32 = vpop.f32.mrb[14].mxu0  ;;  %v12607_v36 = vld [vmem:[%s17179_s7 + $0x2cc] ss:$16 sps:$4 sm:$0xff]   ;;  %v12626_v4 = vld [vmem:[%s17179_s7 + $0x340] ss:$16 sps:$4 sm:$0xff]  }
 0x84e   : > { %v8596_v14 = vmax.f32 %v8586_v29, %v8594_v17  ;;  %v8573_v52 = vadd.f32 %v16703_v58, %v8462_v39  ;;  %v8449_v16 = vpop.f32.mrb[15].mxu0  ;;  %v12569_v58 = vld [vmem:[%s17179_s7 + $0x208] ss:$16 sps:$4 sm:$0xff]   ;;  %v12625_v29 = vld [vmem:[%s17179_s7 + $0x32c] ss:$16 sps:$4 sm:$0xff]  }
 0x84f   : > { %v8592_v62 = vmax.f32 %v8585_v6, %v8590_v55  ;;  %v8572_v13 = vadd.f32 %v16708_v61, %v8461_v57  ;;  %v12574_v61 = vld [vmem:[%s17179_s7 + $0x224] ss:$16 sps:$4 sm:$0xff]   ;;  %v12620_v6 = vld [vmem:[%s17179_s7 + $0x320] ss:$16 sps:$4 sm:$0xff]   ;;  %v12631_v39 = vld [vmem:[%s17179_s7 + $0x34c] ss:$16 sps:$4 sm:$0xff]  }
 0x850   : > { %v8584_v20 = vadd.f32 %v10380_v11, %v8573_v52  ;;  %v12628_v17 = vld [vmem:[%s17179_s7 + $0x344] ss:$16 sps:$4 sm:$0xff]   ;;  %v12629_v55 = vld [vmem:[%s17179_s7 + $0x348] ss:$16 sps:$4 sm:$0xff]   ;;  %v12637_v32 = vld [vmem:[%s17179_s7 + $0x36c] ss:$16 sps:$4 sm:$0xff]  }
 0x851   : > { %v8583_v51 = vadd.f32 %v10380_v11, %v8572_v13  ;;  %v8597_v1 = vmax.f32 %v8592_v62, %v8596_v14  ;;  %v12613_v11 = vld [vmem:[%s17179_s7 + $0x2ec] ss:$16 sps:$4 sm:$0xff]   ;;  %v12634_v57 = vld [vmem:[%s17179_s7 + $0x364] ss:$16 sps:$4 sm:$0xff]   ;;  %v12632_v14 = vld [vmem:[%s17179_s7 + $0x360] ss:$16 sps:$4 sm:$0xff]  }
 0x852   : > { %v8588_v2 = vmax.f32 %v8584_v20, 0.0  ;;  %v12635_v52 = vld [vmem:[%s17179_s7 + $0x368] ss:$16 sps:$4 sm:$0xff]   ;;  %v12640_v16 = vld [vmem:[%s17179_s7 + $0x384] ss:$16 sps:$4 sm:$0xff]  }
 0x853   : > { %v8587_v40 = vmax.f32 %v8583_v51, 0.0  ;;  %v8608_v37 = vrot.slane %v8597_v1, 4  ;;  %v8613_v21 = vpack.c.bf16 %v8597_v1, %v8597_v1  ;;  %v12643_v62 = vld [vmem:[%s17179_s7 + $0x38c] ss:$16 sps:$4 sm:$0xff]   ;;  %v12638_v13 = vld [vmem:[%s17179_s7 + $0x380] ss:$16 sps:$4 sm:$0xff]  }
 0x854   : > { %v8603_v35 = vrot.slane %v8588_v2, 2  ;;  %v12641_v20 = vld [vmem:[%s17179_s7 + $0x388] ss:$16 sps:$4 sm:$0xff]   ;;  %v12646_v51 = vld [vmem:[%s17179_s7 + $0x3a4] ss:$16 sps:$4 sm:$0xff]  }
 0x855   : > { %v8599_v22 = vrot.slane %v8587_v40, 2  ;;  %v8614_v33 = vpack.c.bf16 %v8608_v37, %v8608_v37  ;;  %v12649_v1 = vld [vmem:[%s17179_s7 + $0x3ac] ss:$16 sps:$4 sm:$0xff]   ;;  %v12652_v37 = vld [vmem:[%s17179_s7 + $0x3c4] ss:$16 sps:$4 sm:$0xff]  }
 0x856   : > { %v8605_v44 = vmax.f32 %v8588_v2, %v8603_v35  ;;  %v12644_v2 = vld [vmem:[%s17179_s7 + $0x3a0] ss:$16 sps:$4 sm:$0xff]   ;;  %v12655_v35 = vld [vmem:[%s17179_s7 + $0x3cc] ss:$16 sps:$4 sm:$0xff]  }
 0x857   : > { %v8601_v10 = vmax.f32 %v8587_v40, %v8599_v22  ;;  %9439 = vmatprep.mubr.bf16.mxu0 %v8614_v33  ;;  %9521 = vmatprep.mubr.bf16.mxu1 %v8614_v33  ;;  %v12647_v40 = vld [vmem:[%s17179_s7 + $0x3a8] ss:$16 sps:$4 sm:$0xff]   ;;  %v12650_v22 = vld [vmem:[%s17179_s7 + $0x3c0] ss:$16 sps:$4 sm:$0xff]  }
 0x858   : > { %9440 = vmatmul.mubr.bf16.vlgmr.msra.gmra.mrb[16].mxu0 %v8613_v21  ;;  %9522 = vmatmul.mubr.bf16.vlgmr.msra.gmra.mrb[72].mxu1 %v8613_v21  ;;  %v12653_v33 = vld [vmem:[%s17179_s7 + $0x3c8] ss:$16 sps:$4 sm:$0xff]  }
 0x859   : > { %9449 = vmatpush1.bf16.msra.mxu0 %v12566_v18  ;;  %9531 = vmatpush1.bf16.msra.mxu1 %v12569_v58  ;;  %v16847_v53 = vmax.f32 %v8601_v10, %v8605_v44  ;;  %v12658_v18 = vld [vmem:[%s17179_s7 + $0x3e4] ss:$16 sps:$4 sm:$0xff]   ;;  %v12661_v58 = vld [vmem:[%s17179_s7 + $0x3ec] ss:$16 sps:$4 sm:$0xff]   ;;  %v12656_v44 = vld [vmem:[%s17179_s7 + $0x3e0] ss:$16 sps:$4 sm:$0xff]  }
 0x85a   : > { %9450 = vmatprep.subr.bf16.mxu0 %v12574_v61  ;;  %9532 = vmatprep.subr.bf16.mxu1 %v12577_v9  ;;  %v12659_v21 = vld [vmem:[%s17179_s7 + $0x3e8] ss:$16 sps:$4 sm:$0xff]   ;;  %v12662_v61 = vld [vmem:[%s17181_s9 + $0x40] sm:$0xff]  }
 0x85b   : > { %v8611_v54 = vrot.slane %v16847_v53, 4  ;;  %v12663_v9 = vld [vmem:[%s17181_s9 + $0xc0] sm:$0xff]  }
 0x85c   : > { %v12664_v10 = vld [vmem:[%s17181_s9] sm:$0xff]  }
 0x85d   : > { %9451 = vmatpush1.bf16.msra.mxu0 %v12572_v28  ;;  %9533 = vmatpush1.bf16.msra.mxu1 %v12575_v26  ;;  %v8616_v41 = vpack.c.bf16 %v8611_v54, %v8611_v54  ;;  %v12665_v28 = vld [vmem:[%s17181_s9 + $0x80] sm:$0xff]   ;;  %v8615_v26 = vpack.c.bf16 %v16847_v53, %v16847_v53  ;;  %v12668_v54 = vld [vmem:[%s17181_s9 + $0x8] sm:$0xff]  }
 0x85e   : > { %9452 = vmatprep.subr.bf16.mxu0 %v12580_v50  ;;  %9534 = vmatprep.subr.bf16.mxu1 %v12583_v25  ;;  %v12666_v50 = vld [vmem:[%s17181_s9 + $0x48] sm:$0xff]  }
 0x85f   : > { %9480 = vmatprep.mubr.bf16.mxu0 %v8616_v41  ;;  %9562 = vmatprep.mubr.bf16.mxu1 %v8616_v41  ;;  %v12667_v25 = vld [vmem:[%s17181_s9 + $0xc8] sm:$0xff]   ;;  %v12671_v41 = vld [vmem:[%s17181_s9 + $0xd0] sm:$0xff]  }
 0x860   : > { %v12669_v53 = vld [vmem:[%s17181_s9 + $0x88] sm:$0xff]  }
 0x861   : > { %9453 = vmatpush1.bf16.msra.mxu0 %v12578_v42  ;;  %9535 = vmatpush1.bf16.msra.mxu1 %v12581_v63  ;;  %v12670_v42 = vld [vmem:[%s17181_s9 + $0x50] sm:$0xff]  }
 0x862   : > { %9454 = vmatprep.subr.bf16.mxu0 %v12586_v12  ;;  %9536 = vmatprep.subr.bf16.mxu1 %v12589_v15  ;;  %v12672_v63 = vld [vmem:[%s17181_s9 + $0x10] sm:$0xff]   ;;  %v12674_v15 = vld [vmem:[%s17181_s9 + $0x58] sm:$0xff]  }
 0x863   : > { %v12673_v12 = vld [vmem:[%s17181_s9 + $0x90] sm:$0xff]  }
 0x865   : > { %9455 = vmatpush1.bf16.msra.mxu0 %v12584_v8  ;;  %9537 = vmatpush1.bf16.msra.mxu1 %v12587_v5  ;;  %v12675_v8 = vld [vmem:[%s17181_s9 + $0xd8] sm:$0xff]  }
 0x866   : > { %9456 = vmatprep.subr.bf16.mxu0 %v12592_v49  ;;  %9538 = vmatprep.subr.bf16.mxu1 %v12595_v31  ;;  %v12676_v5 = vld [vmem:[%s17181_s9 + $0x18] sm:$0xff]   ;;  %v12678_v31 = vld [vmem:[%s17181_s9 + $0x60] sm:$0xff]  }
 0x867   : > { %v12677_v49 = vld [vmem:[%s17181_s9 + $0x98] sm:$0xff]  }
 0x869   : > { %9457 = vmatpush1.bf16.msra.mxu0 %v12590_v38  ;;  %9539 = vmatpush1.bf16.msra.mxu1 %v12593_v7  ;;  %v12679_v38 = vld [vmem:[%s17181_s9 + $0xe0] sm:$0xff]  }
 0x86a   : > { %9458 = vmatprep.subr.bf16.mxu0 %v12598_v34  ;;  %9540 = vmatprep.subr.bf16.mxu1 %v12601_v19  ;;  %v12680_v7 = vld [vmem:[%s17181_s9 + $0x20] sm:$0xff]   ;;  %v12682_v19 = vld [vmem:[%s17181_s9 + $0x68] sm:$0xff]  }
 0x86b   : > { %v12681_v34 = vld [vmem:[%s17181_s9 + $0xa0] sm:$0xff]  }
 0x86d   : > { %9459 = vmatpush1.bf16.msra.mxu0 %v12596_v23  ;;  %9541 = vmatpush1.bf16.msra.mxu1 %v12599_v46  ;;  %v12683_v23 = vld [vmem:[%s17181_s9 + $0xe8] sm:$0xff]  }
 0x86e   : > { %9460 = vmatprep.subr.bf16.mxu0 %v12604_v24  ;;  %9542 = vmatprep.subr.bf16.mxu1 %v12607_v36  ;;  %v12684_v46 = vld [vmem:[%s17181_s9 + $0x28] sm:$0xff]   ;;  %v12686_v36 = vld [vmem:[%s17181_s9 + $0x70] sm:$0xff]  }
 0x86f   : > { %v12685_v24 = vld [vmem:[%s17181_s9 + $0xa8] sm:$0xff]  }
 0x871   : > { %9461 = vmatpush1.bf16.msra.mxu0 %v12602_v48  ;;  %9543 = vmatpush1.bf16.msra.mxu1 %v12605_v27  ;;  %v12687_v48 = vld [vmem:[%s17181_s9 + $0xf0] sm:$0xff]  }
 0x872   : > { %9462 = vmatprep.subr.bf16.mxu0 %v12610_v56  ;;  %9544 = vmatprep.subr.bf16.mxu1 %v12613_v11  ;;  %v12688_v27 = vld [vmem:[%s17181_s9 + $0x30] sm:$0xff]   ;;  %v12690_v11 = vld [vmem:[%s17181_s9 + $0x78] sm:$0xff]  }
 0x873   : > { %v12689_v56 = vld [vmem:[%s17181_s9 + $0xb0] sm:$0xff]  }
 0x875   : > { %9463 = vmatpush1.bf16.msra.mxu0 %v12608_v3  ;;  %9545 = vmatpush1.bf16.msra.mxu1 %v12611_v0  ;;  %v12691_v3 = vld [vmem:[%s17181_s9 + $0xf8] sm:$0xff]  }
 0x876   : > { %9464 = vmatprep.subr.bf16.mxu0 %v12616_v59  ;;  %9546 = vmatprep.subr.bf16.mxu1 %v12619_v43  ;;  %v12692_v0 = vld [vmem:[%s17181_s9 + $0x38] sm:$0xff]   ;;  %v9387_v43 = vlaneseq }
 0x877   : > { %v12693_v59 = vld [vmem:[%s17181_s9 + $0xb8] sm:$0xff]  }
 0x879   : > { %9465 = vmatpush1.bf16.msra.mxu0 %v12614_v47  ;;  %9547 = vmatpush1.bf16.msra.mxu1 %v12617_v60  ;;  %v9388_v47 = vshrl.u32 %v9387_v43, 7 }
 0x87a   : > { %9466 = vmatprep.subr.bf16.mxu0 %v12622_v30  ;;  %9548 = vmatprep.subr.bf16.mxu1 %v12625_v29  ;;  %v8745_v29 = vld [vmem:[%s17180_s8] sm:$0xf] }
 0x87b   : > { %v9389_v60 = vsub.s32 0, %v9388_v47  ;;  %v9397_v30 = vsub.s32 2, %v9388_v47 }
 0x87d   : > { %9467 = vmatpush1.bf16.msra.mxu0 %v12620_v6  ;;  %9549 = vmatpush1.bf16.msra.mxu1 %v12623_v45  ;;  %v9393_v6 = vsub.s32 1, %v9388_v47  ;;  %v9401_v45 = vsub.s32 3, %v9388_v47 }
 0x87e   : > { %9468 = vmatprep.subr.bf16.mxu0 %v12628_v17  ;;  %9550 = vmatprep.subr.bf16.mxu1 %v12631_v39  ;;  %v9390_v17 = vrot.slane %v8745_v29, %v9389_v60  ;;  %v9398_v39 = vrot.slane %v8745_v29, %v9397_v30 }
 0x881   : > { %9469 = vmatpush1.bf16.msra.mxu0 %v12626_v4  ;;  %9551 = vmatpush1.bf16.msra.mxu1 %v12629_v55  ;;  %v9394_v4 = vrot.slane %v8745_v29, %v9393_v6  ;;  %v9402_v55 = vrot.slane %v8745_v29, %v9401_v45 }
 0x882   : > { %9470 = vmatprep.subr.bf16.mxu0 %v12634_v57  ;;  %9552 = vmatprep.subr.bf16.mxu1 %v12637_v32 }
 0x885   : > { %9471 = vmatpush1.bf16.msra.mxu0 %v12632_v14  ;;  %9553 = vmatpush1.bf16.msra.mxu1 %v12635_v52 }
 0x886   : > { %9472 = vmatprep.subr.bf16.mxu0 %v12640_v16  ;;  %9554 = vmatprep.subr.bf16.mxu1 %v12643_v62 }
 0x889   : > { %9473 = vmatpush1.bf16.msra.mxu0 %v12638_v13  ;;  %9555 = vmatpush1.bf16.msra.mxu1 %v12641_v20 }
 0x88a   : > { %9474 = vmatprep.subr.bf16.mxu0 %v12646_v51  ;;  %9556 = vmatprep.subr.bf16.mxu1 %v12649_v1 }
 0x88d   : > { %9475 = vmatpush1.bf16.msra.mxu0 %v12644_v2  ;;  %9557 = vmatpush1.bf16.msra.mxu1 %v12647_v40 }
 0x88e   : > { %9476 = vmatprep.subr.bf16.mxu0 %v12652_v37  ;;  %9558 = vmatprep.subr.bf16.mxu1 %v12655_v35 }
 0x891   : > { %9477 = vmatpush1.bf16.msra.mxu0 %v12650_v22  ;;  %9559 = vmatpush1.bf16.msra.mxu1 %v12653_v33 }
 0x892   : > { %9478 = vmatprep.subr.bf16.mxu0 %v12658_v18  ;;  %9560 = vmatprep.subr.bf16.mxu1 %v12661_v58 }
 0x895   : > { %9479 = vmatpush1.bf16.msra.mxu0 %v12656_v44  ;;  %9561 = vmatpush1.bf16.msra.mxu1 %v12659_v21 }
 0x896   : > { %10988 = vmatprep.subr.bf16.mxu0 %v12662_v61  ;;  %11010 = vmatprep.subr.bf16.mxu1 %v12663_v9 }
 0x898   : > { %9481 = vmatmul.mubr.bf16.vlgmr.msra.gmra.mrb[16].mxu0 %v8615_v26  ;;  %9563 = vmatmul.mubr.bf16.vlgmr.msra.gmra.mrb[72].mxu1 %v8615_v26 }
 0x899   : > { %10989 = vmatpush3.bf16.msra.mxu0 %v12664_v10  ;;  %11011 = vmatpush3.bf16.msra.mxu1 %v12665_v28  ;;  %v9643_v10 = vld [vmem:[%s17182_s10] sm:$0x1] }
 0x89a   : > { %10990 = vmatprep.subr.bf16.mxu0 %v12666_v50  ;;  %11012 = vmatprep.subr.bf16.mxu1 %v12667_v25 }
 0x89d   : > { %10991 = vmatpush3.bf16.msra.mxu0 %v12668_v54  ;;  %11013 = vmatpush3.bf16.msra.mxu1 %v12669_v53 }
 0x89e   : > { %10992 = vmatprep.subr.bf16.mxu0 %v12670_v42  ;;  %11014 = vmatprep.subr.bf16.mxu1 %v12671_v41 }
 0x8a1   : > { %10993 = vmatpush3.bf16.msra.mxu0 %v12672_v63  ;;  %11015 = vmatpush3.bf16.msra.mxu1 %v12673_v12 }
 0x8a2   : > { %10994 = vmatprep.subr.bf16.mxu0 %v12674_v15  ;;  %11016 = vmatprep.subr.bf16.mxu1 %v12675_v8 }
 0x8a5   : > { %10995 = vmatpush3.bf16.msra.mxu0 %v12676_v5  ;;  %11017 = vmatpush3.bf16.msra.mxu1 %v12677_v49 }
 0x8a6   : > { %10996 = vmatprep.subr.bf16.mxu0 %v12678_v31  ;;  %11018 = vmatprep.subr.bf16.mxu1 %v12679_v38 }
 0x8a9   : > { %10997 = vmatpush3.bf16.msra.mxu0 %v12680_v7  ;;  %11019 = vmatpush3.bf16.msra.mxu1 %v12681_v34 }
 0x8aa   : > { %10998 = vmatprep.subr.bf16.mxu0 %v12682_v19  ;;  %11020 = vmatprep.subr.bf16.mxu1 %v12683_v23 }
 0x8ad   : > { %10999 = vmatpush3.bf16.msra.mxu0 %v12684_v46  ;;  %11021 = vmatpush3.bf16.msra.mxu1 %v12685_v24 }
 0x8ae   : > { %11000 = vmatprep.subr.bf16.mxu0 %v12686_v36  ;;  %11022 = vmatprep.subr.bf16.mxu1 %v12687_v48 }
 0x8b1   : > { %11001 = vmatpush3.bf16.msra.mxu0 %v12688_v27  ;;  %11023 = vmatpush3.bf16.msra.mxu1 %v12689_v56 }
 0x8b2   : > { %11002 = vmatprep.subr.bf16.mxu0 %v12690_v11  ;;  %11024 = vmatprep.subr.bf16.mxu1 %v12691_v3 }
 0x8b5   : > { %11003 = vmatpush3.bf16.msra.mxu0 %v12692_v0  ;;  %11025 = vmatpush3.bf16.msra.mxu1 %v12693_v59 }
 0x96b   : > { %v9482_v57 = vpop.f32.mrb[16].mxu0  ;;  %v9564_v32 = vpop.f32.mrb[72].mxu1 }
 0x96c   : > { %v11920_v14 = vadd.f32 %v9482_v57, %v9390_v17  ;;  %v11922_v52 = vadd.f32 %v9564_v32, %v9398_v39  ;;  %v9484_v16 = vpop.f32.mrb[17].mxu0  ;;  %v9566_v62 = vpop.f32.mrb[73].mxu1 }
 0x96d   : > { %v11921_v13 = vadd.f32 %v9484_v16, %v9394_v4  ;;  %v11923_v20 = vadd.f32 %v9566_v62, %v9402_v55  ;;  %v9486_v51 = vpop.f32.mrb[18].mxu0  ;;  %v9568_v1 = vpop.f32.mrb[74].mxu1 }
 0x96e   : > { %v9571_v2 = vmax.f32 %v11920_v14, 0.0  ;;  %v9573_v40 = vmax.f32 %v11922_v52, 0.0  ;;  %v9487_v37 = vpop.f32.mrb[19].mxu0  ;;  %v9569_v35 = vpop.f32.mrb[75].mxu1 }
 0x96f   : > { %v9572_v22 = vmax.f32 %v11921_v13, 0.0  ;;  %v9574_v33 = vmax.f32 %v11923_v20, 0.0 }
 0x970   : > { %v9575_v44 = vpack.c.bf16 %v9571_v2, %v9571_v2  ;;  %v9577_v21 = vpack.c.bf16 %v9573_v40, %v9573_v40 }
 0x971   : > { %v9576_v18 = vpack.c.bf16 %v9572_v22, %v9572_v22  ;;  %v9578_v58 = vpack.c.bf16 %v9574_v33, %v9574_v33 }
 0x973   : > { %9868 = vmatprep.mubr.bf16.mxu0 %v9576_v18  ;;  %9908 = vmatprep.mubr.bf16.mxu1 %v9578_v58 }
 0x974   : > { %9869 = vmatmul.mubr.bf16.vlgmr.msra.gmra.mrb[20].mxu0 %v9575_v44  ;;  %9909 = vmatmul.mubr.bf16.vlgmr.msra.gmra.mrb[76].mxu1 %v9577_v21 }
 0xa47   : > { %v11004_v61 = vpop.f32.mrb[20].mxu0  ;;  %v11026_v9 = vpop.f32.mrb[76].mxu1 }
 0xa48   : > { %v11005_v28 = vpop.f32.mrb[21].mxu0  ;;  %v11027_v26 = vpop.f32.mrb[77].mxu1 }
 0xa49   : > { %v11006_v50 = vadd.f32 %v11005_v28, %v11004_v61  ;;  %v11028_v25 = vadd.f32 %v11027_v26, %v11026_v9  ;;  %v11007_v54 = vpop.f32.mrb[22].mxu0  ;;  %v11029_v53 = vpop.f32.mrb[78].mxu1 }
 0xa4a   : > { %v11008_v42 = vpop.f32.mrb[23].mxu0  ;;  %v11030_v41 = vpop.f32.mrb[79].mxu1 }
 0xa4b   : > { %v9871_v63 = vadd.f32 %v11006_v50, %v9643_v10 }
 0xa4d   : > { %v9911_v12 = vadd.f32 %v11028_v25, %v9871_v63 }
 0xa4f   : > { %v9917_v15 = vsel %vm9916_vm13, %v9911_v12, -inf }
 0xa50   : > { %9918 = vmax.xlane.f32.xlu0 %v9917_v15 }
 0xadd   : > { %v9919_v8 = vpop.xlane.xlu0 %9918 }
 0xade   : > { %v9920_v5 = vsub.f32 %v9911_v12, %v9919_v8 }
 0xae0   : > { %v9921_v49 = vmul.f32 1.442695, %v9920_v5 }
 0xae2   : > { %12694 = vpow2.f32 %v9921_v49 }
 0xaec   : > { %v12695_v31 = vpop.eup %12694 }
 0xaed   : > { %v9923_v38 = vsel %vm9916_vm13, %v12695_v31, 0.0 }
 0xaee   : > { %9924 = vadd.xlane.f32.xlu1 %v9923_v38 }
 0xb7b   : > { %v9925_v7 = vpop.xlane.xlu1 %9924 }
 0xb7c   : > { %12696 = vrcp.f32 %v9925_v7 }
 0xb86   : > { %v12697_v34 = vpop.eup %12696 }
 0xb87   : > { %v9927_v19 = vmul.f32 %v12697_v34, %v12695_v31 }
 0xb89   : > { %9928 = vst.msk [vmem:[%s378_s22] sm:$0x1] %vm9916_vm13, %v9927_v19 }
 0xb8a   : > { %12712 = shalt.err (!%p12709_p3)
}
 0xb8b   : > { %s12713_s16 = scalar_lea.hbm %s17129_s12, 16  ;;  %s12717_s22 = scalar_lea.hbm %s17183_s11, 32 }
 0xb8c   : > { %p12714_p4 = scmp.ne.s32.totalorder %s17129_s12, %s12713_s16  ;;  %p12718_p9 = scmp.lt.u32.totalorder %s17129_s12, %s17183_s11 }
 0xb8d   : > { %p12719_p10 = scmp.lt.u32.totalorder %s12717_s22, %s12713_s16  ;;  %p12721_p12 = scmp.lt.u32.totalorder %s12713_s16, %s17129_s12 }
 0xb8e   : > { %p12715_p7 = pnand %p12714_p4, %p12868_p5 }
 0xb8f   : > { %p12720_p11 = por %p12719_p10, %p12718_p9 }
 0xb90   : > { %p12716_p8 = pneg %p12715_p7 }
 0xb91   : > { %p12722_p13 = por %p12721_p12, %p12720_p11 }
 0xb93   : > { %p12723_p0 = pnand %p12722_p13, %p12716_p8 }
 0xb95   : > { %12726 = shalt.err (!%p12723_p0)
}
 0xb96   : > { %12173 = dma.vmem_to_hbm [thread:$0]  (%p12868_p5), %s17131_s0, 16, %s17129_s12, %s9930_s13  }
 0xb97 PF: > { %p12179_p1 = scmp.ge.s32.totalorder %s12761_s20, 2  ;;  %s9954_s1 = sand.u32 1, %s12749_s17  }
 0xb98   : > { %s9955_s21 = scalar_lea.sflag [#allocation3], %s9954_s1 }
 0xb99   : > { %p12176_p2 = pnand %p12179_p1, %p12872_p6 }
 0xb9b   : > { %12744 = dma.done.wait (!%p12176_p2), %s9955_s21, 16  }
 0xb9c   : > { %12746 = vsyncadd (!%p12176_p2), %s9955_s21, 4294967280  ;;  %p21_p3 = scmp.ge.s32.totalorder %s12855_s23, 4   ;;  %s17616_s17 = smov %s12753_s18 }
 0xb9d   : > { %s17617_s18 = smov %s12757_s19  ;;  %s17618_s19 = smov %s12866_s26 }
 0xb9e   : > { %s17619_s20 = smov %s12855_s23  ;;  %23 = sbr.rel (!%p21_p3) target bundleno = 6 (0x6), region = 99 }
 0xba5   :  { %9959 = vsyncpa [#allocation3], 1 }
 0xba6   :  { %9961 = vsyncpa [#allocation3 + $0x1], 1 }

</bundles_post_ra>
